<compile_context>
chip_gen: v5e
topology: v5e:2x2
jax: 0.10.0
libtpu: 0.0.40
codegen_flags: <defaults>
</compile_context>

<pallas_src>
import functools

import jax
import jax.numpy as jnp
from jax.experimental import pallas as pl
from jax.experimental.pallas import tpu as pltpu

IN_DIM = 4096
H1 = 512
H2 = 256
OUT_DIM = 40
OUT_PAD = 128   # pad fc3 output to a full lane width; slice to 40 outside


def _round_up(n, m):
    return ((n + m - 1) // m) * m


def _cdiv(a, b):
    return -(-a // b)


def _default_tb_cap():
    """Per-generation batch-tile cap: 512 on 64-MiB-VMEM chips (v7x), 1024 on
    128-MiB-VMEM chips (v5e/v6e). Falls back to 512 if the query fails."""
    try:
        info = pltpu.get_tpu_info()
        vmem = getattr(info, "vmem_capacity_bytes", None)
        if vmem is not None and vmem > (64 << 20):
            return 1024
        return 512
    except Exception:
        return 512


def _choose_tiling(B, tb_cap):
    """Pick (rows-per-tile TB, grid steps N) with:
       - TB a multiple of 8 and <= tb_cap,
       - B padded to TB*N with minimal waste,
       - >= 2 (even) steps whenever each step still holds >= 256 rows
         (feeds both v7x TensorCores without starving v5e's MXUs)."""
    B8 = _round_up(max(B, 1), 8)
    n = max(1, _cdiv(B8, tb_cap))
    if n == 1 and B8 >= 512:
        n = 2
    elif n > 1 and n % 2 == 1 and _round_up(_cdiv(B8, n + 1), 8) >= 256:
        n += 1
    tb = _round_up(_cdiv(B8, n), 8)
    return tb, n


def _simplnn_kernel(x_ref, w1_ref, b1_ref, w2_ref, b2_ref, w3_ref, b3_ref,
                    o_ref):
    # fc1 (BN1 scale folded into w1) + shift + ReLU; dropout = identity (eval).
    x = x_ref[...].astype(jnp.bfloat16)      # no-op when x is already bf16
    h1 = jnp.dot(x, w1_ref[...], preferred_element_type=jnp.float32)
    h1 = jnp.maximum(h1 + b1_ref[...], 0.0)

    # fc2 (BN2 scale folded into w2) + shift + ReLU.
    h2 = jnp.dot(h1.astype(jnp.bfloat16), w2_ref[...],
                 preferred_element_type=jnp.float32)
    h2 = jnp.maximum(h2 + b2_ref[...], 0.0)

    # fc3 (output zero-padded to 128 lanes -> unmasked lane-dense stores).
    o_ref[...] = (jnp.dot(h2.astype(jnp.bfloat16), w3_ref[...],
                          preferred_element_type=jnp.float32)
                  + b3_ref[...])


@functools.partial(jax.jit, static_argnames=("tb_cap",))
def _forward_impl(x, params, tb_cap):
    B = x.shape[0]
    TB, n_steps = _choose_tiling(B, tb_cap)
    B_pad = TB * n_steps
    if B_pad != B:
        x = jnp.pad(x, ((0, B_pad - B), (0, 0)))
    grid = (n_steps,)

    xb = x.dtype.itemsize
    w_bytes = ((IN_DIM * H1 + H1 * H2 + H2 * OUT_PAD) * 2     # bf16 weights
               + (H1 + H2 + OUT_PAD) * 4)                     # f32 shifts
    flops = 2 * B_pad * (IN_DIM * H1 + H1 * H2 + H2 * OUT_PAD)
    bytes_accessed = (B_pad * IN_DIM * xb + w_bytes + B_pad * OUT_PAD * 4)

    # VMEM budget: double-buffered x/out tiles, single-buffered weights,
    # kernel intermediates (f32 h1/h2 + bf16 copies), plus scratch headroom.
    inter = TB * (H1 * (4 + 2) + H2 * (4 + 2)
                  + (0 if xb == 2 else IN_DIM * 2))
    vmem_limit = (2 * TB * IN_DIM * xb + 2 * TB * OUT_PAD * 4
                  + w_bytes + inter + (8 << 20))
    vmem_limit = min(max(vmem_limit, 32 << 20), 100 << 20)

    resident = pl.Buffered(1)   # constant-index operands: fetched once, kept
    in_specs = [
        pl.BlockSpec((TB, IN_DIM), lambda i: (i, 0)),                 # x tile
        pl.BlockSpec((IN_DIM, H1), lambda i: (0, 0),
                     pipeline_mode=resident),                         # w1 (BN-folded, bf16)
        pl.BlockSpec((1, H1), lambda i: (0, 0),
                     pipeline_mode=resident),                         # shift1 (f32)
        pl.BlockSpec((H1, H2), lambda i: (0, 0),
                     pipeline_mode=resident),                         # w2 (BN-folded, bf16)
        pl.BlockSpec((1, H2), lambda i: (0, 0),
                     pipeline_mode=resident),                         # shift2 (f32)
        pl.BlockSpec((H2, OUT_PAD), lambda i: (0, 0),
                     pipeline_mode=resident),                         # w3 (padded, bf16)
        pl.BlockSpec((1, OUT_PAD), lambda i: (0, 0),
                     pipeline_mode=resident),                         # b3 (padded, f32)
    ]
    out_specs = pl.BlockSpec((TB, OUT_PAD), lambda i: (i, 0))

    out_pad = pl.pallas_call(
        _simplnn_kernel,
        out_shape=jax.ShapeDtypeStruct((B_pad, OUT_PAD), jnp.float32),
        grid=grid,
        in_specs=in_specs,
        out_specs=out_specs,
        compiler_params=pltpu.CompilerParams(
            dimension_semantics=("parallel",),
            vmem_limit_bytes=int(vmem_limit)),
        cost_estimate=pl.CostEstimate(flops=flops, transcendentals=0,
                                      bytes_accessed=bytes_accessed),
    )(x,
      params["w1"], params["b1"],
      params["w2"], params["b2"],
      params["w3"], params["b3"])
    return out_pad[:B, :OUT_DIM]


def simplnn_forward(x, params, tb_cap=None):
    """x: (B, 4096) bf16 (preferred) or f32 -> (B, 40) f32 (eval-mode forward)."""
    if tb_cap is None:
        tb_cap = _default_tb_cap()
    return _forward_impl(x, params, tb_cap=int(tb_cap))


def make_params(key):
    """Deterministic synthetic parameters; BN folded into weights + shift."""
    ks = jax.random.split(key, 8)
    eps = 1e-5

    def linear_w(kw, fan_in, fan_out):
        bound = 1.0 / jnp.sqrt(fan_in)
        return jax.random.uniform(kw, (fan_in, fan_out), jnp.float32,
                                  -bound, bound)

    w1 = linear_w(ks[0], IN_DIM, H1)
    fc1_b = jax.random.uniform(ks[1], (H1,), jnp.float32, -0.01, 0.01)
    w2 = linear_w(ks[2], H1, H2)
    fc2_b = jax.random.uniform(ks[3], (H2,), jnp.float32, -0.01, 0.01)
    w3_raw = linear_w(ks[4], H2, OUT_DIM)
    fc3_b = jax.random.uniform(ks[5], (OUT_DIM,), jnp.float32, -0.01, 0.01)

    # BatchNorm1d running stats / affine params (deterministic, non-trivial).
    def bn(kk, n):
        k1, k2, k3, k4 = jax.random.split(kk, 4)
        gamma = 1.0 + 0.1 * jax.random.normal(k1, (n,), jnp.float32)
        beta = 0.05 * jax.random.normal(k2, (n,), jnp.float32)
        rmean = 0.02 * jax.random.normal(k3, (n,), jnp.float32)
        rvar = 1.0 + 0.1 * jax.random.uniform(k4, (n,), jnp.float32)
        return gamma, beta, rmean, rvar

    g1, be1, m1, v1 = bn(ks[6], H1)
    g2, be2, m2, v2 = bn(ks[7], H2)

    # Fold: BN(xW + fc_b) = x (W * s) + (fc_b * s + beta - mean * s),
    # with s = gamma / sqrt(var + eps).  Scale goes into the weights.
    s1 = g1 / jnp.sqrt(v1 + eps)
    sh1 = fc1_b * s1 + be1 - m1 * s1
    s2 = g2 / jnp.sqrt(v2 + eps)
    sh2 = fc2_b * s2 + be2 - m2 * s2

    w1_f = (w1 * s1[None, :]).astype(jnp.bfloat16)
    w2_f = (w2 * s2[None, :]).astype(jnp.bfloat16)
    # Pad fc3 to 128 output lanes with zeros.
    w3_f = (jnp.zeros((H2, OUT_PAD), jnp.float32)
            .at[:, :OUT_DIM].set(w3_raw)).astype(jnp.bfloat16)
    b3_f = jnp.zeros((OUT_PAD,), jnp.float32).at[:OUT_DIM].set(fc3_b)

    # NOTE: "b1"/"b2" here are the BN-folded per-feature shifts, not raw biases.
    params = {
        "w1": w1_f, "b1": sh1.reshape(1, H1),
        "w2": w2_f, "b2": sh2.reshape(1, H2),
        "w3": w3_f, "b3": b3_f.reshape(1, OUT_PAD),
    }
    # Un-folded f32 copies for the pure-JAX (torch-semantics) reference.
    ref = {
        "w1": w1, "fc1_b": fc1_b, "g1": g1, "be1": be1, "m1": m1, "v1": v1,
        "w2": w2, "fc2_b": fc2_b, "g2": g2, "be2": be2, "m2": m2, "v2": v2,
        "w3": w3_raw, "fc3_b": fc3_b, "eps": eps,
    }
    return params, ref


def reference_forward(x, r):
    """Pure-f32 torch-semantics reference (eval mode)."""
    h = x @ r["w1"] + r["fc1_b"]
    h = r["g1"] * (h - r["m1"]) / jnp.sqrt(r["v1"] + r["eps"]) + r["be1"]
    h = jnp.maximum(h, 0.0)
    h = h @ r["w2"] + r["fc2_b"]
    h = r["g2"] * (h - r["m2"]) / jnp.sqrt(r["v2"] + r["eps"]) + r["be2"]
    h = jnp.maximum(h, 0.0)
    return h @ r["w3"] + r["fc3_b"]


if __name__ == "__main__":
    key = jax.random.PRNGKey(0)
    k_x, k_x2, k_p = jax.random.split(key, 3)

    B = 8
    x_f32 = jax.random.normal(k_x, (B, IN_DIM), jnp.float32)
    x = x_f32.astype(jnp.bfloat16)          # producer emits bf16 (perf review)
    params, ref_params = make_params(k_p)

    out = jax.block_until_ready(simplnn_forward(x, params))
    assert out.shape == (B, OUT_DIM), out.shape

    # Loose tolerance: kernel matmul path is bf16 (f32 accumulation) on a
    # bf16-rounded x; the reference is pure f32 on the same rounded x.
    ref = reference_forward(x.astype(jnp.float32), ref_params)
    max_err = float(jnp.max(jnp.abs(out - ref)))
    assert jnp.allclose(out, ref, atol=5e-2, rtol=5e-2), max_err

    # Padding path sanity: non-multiple-of-8 batch, f32 input still supported.
    x2 = jax.random.normal(k_x2, (12, IN_DIM), jnp.float32)
    out2 = jax.block_until_ready(simplnn_forward(x2, params))
    assert out2.shape == (12, OUT_DIM), out2.shape
    ref2 = reference_forward(x2, ref_params)
    assert jnp.allclose(out2, ref2, atol=5e-2, rtol=5e-2)

    print("KERNEL_OK")
</pallas_src>

<mosaic_0001>
module attributes {stable_mosaic.version = 11 : i64} {
  func.func @_simplnn_kernel(%arg0: i32, %arg1: memref<8x4096xbf16, #tpu.memory_space<vmem>>, %arg2: memref<4096x512xbf16, #tpu.memory_space<vmem>>, %arg3: memref<1x512xf32, #tpu.memory_space<vmem>>, %arg4: memref<512x256xbf16, #tpu.memory_space<vmem>>, %arg5: memref<1x256xf32, #tpu.memory_space<vmem>>, %arg6: memref<256x128xbf16, #tpu.memory_space<vmem>>, %arg7: memref<1x128xf32, #tpu.memory_space<vmem>>, %arg8: memref<8x128xf32, #tpu.memory_space<vmem>>) attributes {dimension_semantics = [#tpu.dimension_semantics<parallel>], iteration_bounds = array<i64: 1>, scalar_prefetch = 0 : i64, scratch_operands = 0 : i64, tpu.core_type = #tpu.core_type<tc>, window_params = [{transform_indices = @transform_0, window_bounds = array<i64: 8, 4096>}, {pipeline_mode = #tpu.pipeline_mode<synchronous>, transform_indices = @transform_1, window_bounds = array<i64: 4096, 512>}, {pipeline_mode = #tpu.pipeline_mode<synchronous>, transform_indices = @transform_2, window_bounds = array<i64: 1, 512>}, {pipeline_mode = #tpu.pipeline_mode<synchronous>, transform_indices = @transform_3, window_bounds = array<i64: 512, 256>}, {pipeline_mode = #tpu.pipeline_mode<synchronous>, transform_indices = @transform_4, window_bounds = array<i64: 1, 256>}, {pipeline_mode = #tpu.pipeline_mode<synchronous>, transform_indices = @transform_5, window_bounds = array<i64: 256, 128>}, {pipeline_mode = #tpu.pipeline_mode<synchronous>, transform_indices = @transform_6, window_bounds = array<i64: 1, 128>}, {transform_indices = @transform_7, window_bounds = array<i64: 8, 128>}]} {
    %c0 = arith.constant 0 : index
    %c0_0 = arith.constant 0 : index
    %0 = vector.load %arg1[%c0, %c0_0] : memref<8x4096xbf16, #tpu.memory_space<vmem>>, vector<8x4096xbf16>
    %c0_1 = arith.constant 0 : index
    %c0_2 = arith.constant 0 : index
    %1 = vector.load %arg2[%c0_1, %c0_2] : memref<4096x512xbf16, #tpu.memory_space<vmem>>, vector<4096x512xbf16>
    %cst = arith.constant dense<0.000000e+00> : vector<8x512xf32>
    %2 = tpu.matmul %0, %1, %cst {dimension_numbers = #tpu.dot_dimension_numbers<[1], [0], [0], [1], [0, 0, 1, 1], [], []>} : vector<8x4096xbf16>, vector<4096x512xbf16>, vector<8x512xf32> -> vector<8x512xf32>
    %c0_3 = arith.constant 0 : index
    %c0_4 = arith.constant 0 : index
    %3 = vector.load %arg3[%c0_3, %c0_4] : memref<1x512xf32, #tpu.memory_space<vmem>>, vector<1x512xf32>
    %4 = vector.broadcast %3 : vector<1x512xf32> to vector<8x512xf32>
    %5 = arith.addf %2, %4 : vector<8x512xf32>
    %cst_5 = arith.constant 0.000000e+00 : f32
    %6 = vector.broadcast %cst_5 : f32 to vector<8x512xf32>
    %7 = arith.maximumf %5, %6 : vector<8x512xf32>
    %8 = arith.truncf %7 : vector<8x512xf32> to vector<8x512xbf16>
    %c0_6 = arith.constant 0 : index
    %c0_7 = arith.constant 0 : index
    %9 = vector.load %arg4[%c0_6, %c0_7] : memref<512x256xbf16, #tpu.memory_space<vmem>>, vector<512x256xbf16>
    %cst_8 = arith.constant dense<0.000000e+00> : vector<8x256xf32>
    %10 = tpu.matmul %8, %9, %cst_8 {dimension_numbers = #tpu.dot_dimension_numbers<[1], [0], [0], [1], [0, 0, 1, 1], [], []>} : vector<8x512xbf16>, vector<512x256xbf16>, vector<8x256xf32> -> vector<8x256xf32>
    %c0_9 = arith.constant 0 : index
    %c0_10 = arith.constant 0 : index
    %11 = vector.load %arg5[%c0_9, %c0_10] : memref<1x256xf32, #tpu.memory_space<vmem>>, vector<1x256xf32>
    %12 = vector.broadcast %11 : vector<1x256xf32> to vector<8x256xf32>
    %13 = arith.addf %10, %12 : vector<8x256xf32>
    %cst_11 = arith.constant 0.000000e+00 : f32
    %14 = vector.broadcast %cst_11 : f32 to vector<8x256xf32>
    %15 = arith.maximumf %13, %14 : vector<8x256xf32>
    %16 = arith.truncf %15 : vector<8x256xf32> to vector<8x256xbf16>
    %c0_12 = arith.constant 0 : index
    %c0_13 = arith.constant 0 : index
    %17 = vector.load %arg6[%c0_12, %c0_13] : memref<256x128xbf16, #tpu.memory_space<vmem>>, vector<256x128xbf16>
    %cst_14 = arith.constant dense<0.000000e+00> : vector<8x128xf32>
    %18 = tpu.matmul %16, %17, %cst_14 {dimension_numbers = #tpu.dot_dimension_numbers<[1], [0], [0], [1], [0, 0, 1, 1], [], []>} : vector<8x256xbf16>, vector<256x128xbf16>, vector<8x128xf32> -> vector<8x128xf32>
    %c0_15 = arith.constant 0 : index
    %c0_16 = arith.constant 0 : index
    %19 = vector.load %arg7[%c0_15, %c0_16] : memref<1x128xf32, #tpu.memory_space<vmem>>, vector<1x128xf32>
    %20 = vector.broadcast %19 : vector<1x128xf32> to vector<8x128xf32>
    %21 = arith.addf %18, %20 : vector<8x128xf32>
    %c0_17 = arith.constant 0 : index
    %c0_18 = arith.constant 0 : index
    %22 = vector.load %arg8[%c0_17, %c0_18] : memref<8x128xf32, #tpu.memory_space<vmem>>, vector<8x128xf32>
    tpu.vector_store %arg8[%c0_17, %c0_18], %21 {strides = array<i32>} : memref<8x128xf32, #tpu.memory_space<vmem>>, vector<8x128xf32>,
    return
  }
  func.func @transform_0(%arg0: i32) -> (i32, i32) {
    %c0_i32 = arith.constant 0 : i32
    %c0_i32_0 = arith.constant 0 : i32
    return %arg0, %c0_i32 : i32, i32
  }
  func.func @transform_1(%arg0: i32) -> (i32, i32) {
    %c0_i32 = arith.constant 0 : i32
    %c0_i32_0 = arith.constant 0 : i32
    %c0_i32_1 = arith.constant 0 : i32
    return %c0_i32, %c0_i32_0 : i32, i32
  }
  func.func @transform_2(%arg0: i32) -> (i32, i32) {
    %c0_i32 = arith.constant 0 : i32
    %c0_i32_0 = arith.constant 0 : i32
    %c0_i32_1 = arith.constant 0 : i32
    return %c0_i32, %c0_i32_0 : i32, i32
  }
  func.func @transform_3(%arg0: i32) -> (i32, i32) {
    %c0_i32 = arith.constant 0 : i32
    %c0_i32_0 = arith.constant 0 : i32
    %c0_i32_1 = arith.constant 0 : i32
    return %c0_i32, %c0_i32_0 : i32, i32
  }
  func.func @transform_4(%arg0: i32) -> (i32, i32) {
    %c0_i32 = arith.constant 0 : i32
    %c0_i32_0 = arith.constant 0 : i32
    %c0_i32_1 = arith.constant 0 : i32
    return %c0_i32, %c0_i32_0 : i32, i32
  }
  func.func @transform_5(%arg0: i32) -> (i32, i32) {
    %c0_i32 = arith.constant 0 : i32
    %c0_i32_0 = arith.constant 0 : i32
    %c0_i32_1 = arith.constant 0 : i32
    return %c0_i32, %c0_i32_0 : i32, i32
  }
  func.func @transform_6(%arg0: i32) -> (i32, i32) {
    %c0_i32 = arith.constant 0 : i32
    %c0_i32_0 = arith.constant 0 : i32
    %c0_i32_1 = arith.constant 0 : i32
    return %c0_i32, %c0_i32_0 : i32, i32
  }
  func.func @transform_7(%arg0: i32) -> (i32, i32) {
    %c0_i32 = arith.constant 0 : i32
    %c0_i32_0 = arith.constant 0 : i32
    return %arg0, %c0_i32 : i32, i32
  }
}

</mosaic_0001>

<bundles_post_ra>
// kernel: _forward_impl.1
= control target key start
LH: loop header
LB: loop body
LE: loop exit
PB: predicated region body
PF: predicated region fallthrough
CT: control target
= control target key end

     0   :  { %12 = vsyncpa [#allocation3], 0  ;;  %s14868_s0 = inlined_call_operand.hbm [shape: bf16[8,4096], index: 0, kind: input, shape index: {}]   ;;  %s14869_s1 = inlined_call_operand.hbm [shape: bf16[4096,512], index: 1, kind: input, shape index: {}]   ;;  %s14870_s2 = inlined_call_operand.hbm [shape: f32[1,512], index: 2, kind: input, shape index: {}]   ;;  %s14871_s3 = inlined_call_operand.hbm [shape: bf16[512,256], index: 3, kind: input, shape index: {}]   ;;  %s14872_s4 = inlined_call_operand.hbm [shape: f32[1,256], index: 4, kind: input, shape index: {}]   ;;  %s14873_s5 = inlined_call_operand.hbm [shape: bf16[256,128], index: 5, kind: input, shape index: {}]   ;;  %s14874_s6 = inlined_call_operand.hbm [shape: f32[1,128], index: 6, kind: input, shape index: {}]   ;;  %s14875_s7 = inlined_call_operand.hbm [shape: f32[8,128], index: 7, kind: output, shape index: {}]  }
   0x1   :  { %13 = vsyncpa [#allocation6], 0 }
   0x2   :  { %14 = vsyncpa [#allocation9], 0 }
   0x3   :  { %15 = vsyncpa [#allocation12], 0  ;;  %s32_s26 = sshll.u32 %s14869_s1, 4  ;;  %s33_s26 = int_to_ptr.hbm [resolvable:$true] %s32_s26 }
   0x4   :  { %16 = vsyncpa [#allocation4], 0  ;;  %s14499_s27 = smov [#allocation5]   ;;  %s56_s8 = sshll.u32 %s14871_s3, 4  ;;  %s57_s8 = int_to_ptr.hbm [resolvable:$true] %s56_s8 }
   0x5   :  { %s34_s28 = sshll.u32 %s14499_s27, 4  ;;  %s14500_s9 = smov 256   ;;  %s35_s28 = int_to_ptr.vmem [resolvable:$true] %s34_s28 }
   0x6   :  { %s14501_s10 = smov 16   ;;  %s14502_s11 = smov [#allocation8]  }
   0x7   :  { %40 = dma.hbm_to_vmem [thread:$0]  %s33_s26, 131072, %s35_s28, [#allocation6], %s14500_s9, %s14500_s9, %s14501_s10  }
   0x8   :  { %s58_s12 = sshll.u32 %s14502_s11, 4  ;;  %s14503_s13 = smov 128   ;;  %s59_s12 = int_to_ptr.vmem [resolvable:$true] %s58_s12 }
   0x9   :  { %s14504_s14 = smov 8   ;;  %s80_s16 = sshll.u32 %s14873_s5, 4  ;;  %s81_s16 = int_to_ptr.hbm [resolvable:$true] %s80_s16 }
   0xa   :  { %64 = dma.hbm_to_vmem [thread:$0]  %s57_s8, 8192, %s59_s12, [#allocation9], %s14503_s13, %s14503_s13, %s14504_s14  }
   0xb   :  { %s14505_s17 = smov [#allocation11]   ;;  %s22_s20 = sshll.u32 %s14868_s0, 4  ;;  %s23_s20 = int_to_ptr.hbm [resolvable:$true] %s22_s20 }
   0xc   :  { %s82_s18 = sshll.u32 %s14505_s17, 4  ;;  %s14506_s21 = smov 64   ;;  %s83_s18 = int_to_ptr.vmem [resolvable:$true] %s82_s18 }
   0xd   :  { %s14507_s22 = smov 4   ;;  %s14508_s23 = smov [#allocation2]  }
   0xe   :  { %88 = dma.hbm_to_vmem [thread:$0]  %s81_s16, 2048, %s83_s18, [#allocation12], %s14506_s21, %s14506_s21, %s14507_s22  }
   0xf   :  { %s24_s24 = sshll.u32 %s14508_s23, 4  ;;  %s46_s27 = sshll.u32 %s14870_s2, 4  ;;  %s25_s24 = int_to_ptr.vmem [resolvable:$true] %s24_s24  ;;  %s47_s27 = int_to_ptr.hbm [resolvable:$true] %s46_s27 }
  0x10   :  { %27 = dma.hbm_to_vmem [thread:$0]  %s23_s20, 2048, %s25_s24, [#allocation3]  }
  0x11   :  { %s70_s29 = sshll.u32 %s14872_s4, 4  ;;  %s14509_s30 = smov [#allocation7]   ;;  %s71_s29 = int_to_ptr.hbm [resolvable:$true] %s70_s29 }
  0x12   :  { %s48_s8 = sshll.u32 %s14509_s30, 4  ;;  %s14510_s0 = smov [#allocation10]   ;;  %s49_s8 = int_to_ptr.vmem [resolvable:$true] %s48_s8 }
  0x13   :  { %51 = dma.hbm_to_vmem [thread:$0]  %s47_s27, 64, %s49_s8, [#allocation6]  }
  0x14   :  { %s72_s9 = sshll.u32 %s14510_s0, 4  ;;  %s94_s12 = sshll.u32 %s14874_s6, 4  ;;  %s73_s9 = int_to_ptr.vmem [resolvable:$true] %s72_s9  ;;  %s95_s12 = int_to_ptr.hbm [resolvable:$true] %s94_s12 }
  0x15   :  { %75 = dma.hbm_to_vmem [thread:$0]  %s71_s29, 32, %s73_s9, [#allocation9]  }
  0x16   :  { %s14511_s2 = smov [#allocation13]  }
  0x17   :  { %s96_s13 = sshll.u32 %s14511_s2, 4  ;;  %s97_s13 = int_to_ptr.vmem [resolvable:$true] %s96_s13 }
  0x18   :  { %99 = dma.hbm_to_vmem [thread:$0]  %s95_s12, 16, %s97_s13, [#allocation12]  }
  0x19   :  { %14489 = dma.done.wait [#allocation3], 2048  }
  0x1a   :  { %14490 = vsyncadd [#allocation3], 4294965248 }
  0x1b   :  { %14491 = dma.done.wait [#allocation6], 131136  }
  0x1c   :  { %14492 = vsyncadd [#allocation6], 4294836160 }
  0x1d   :  { %14493 = dma.done.wait [#allocation9], 8224  }
  0x1e   :  { %14494 = vsyncadd [#allocation9], 4294959072 }
  0x1f   :  { %14495 = dma.done.wait [#allocation12], 2064  }
  0x20   :  { %14496 = vsyncadd [#allocation12], 4294965232  ;;  %v8873_v0 = vld [vmem:[#allocation5 + $0xe0] sm:$0xf]  ;;  %v13205_v1 = vld [vmem:[#allocation5 + $0xec] sm:$0xf0] }
  0x21   :  { %v9001_v2 = vld [vmem:[#allocation5 + $0x1e0] sm:$0xf]  ;;  %v8874_v3 = vor.u32 %v13205_v1, %v8873_v0  ;;  %v13237_v4 = vld [vmem:[#allocation5 + $0x1ec] sm:$0xf0]  ;;  %s14512_s4 = smov [#allocation14]   ;;  %s8746_s15 = sshll.u32 %s14875_s7, 4  ;;  %s8747_s15 = int_to_ptr.hbm [resolvable:$true] %s8746_s15 }
  0x22   :  { %v9129_v5 = vld [vmem:[#allocation5 + $0x2e0] sm:$0xf]  ;;  %v13269_v6 = vld [vmem:[#allocation5 + $0x2ec] sm:$0xf0]  ;;  %v9002_v7 = vor.u32 %v13237_v4, %v9001_v2  ;;  %s8744_s6 = sshll.u32 %s14512_s4, 4  ;;  %s8745_s6 = int_to_ptr.vmem [resolvable:$true] %s8744_s6 }
  0x23   :  { %v9130_v8 = vor.u32 %v13269_v6, %v9129_v5  ;;  %v9257_v9 = vld [vmem:[#allocation5 + $0x3e0] sm:$0xf]  ;;  %v13301_v10 = vld [vmem:[#allocation5 + $0x3ec] sm:$0xf0]  ;;  %6410 = vmatpush.bf16.msra.mxu0 %v8874_v3 }
  0x24   :  { %v8857_v11 = vld [vmem:[#allocation5 + $0xc0] sm:$0xf]  ;;  %v9258_v12 = vor.u32 %v13301_v10, %v9257_v9  ;;  %v13201_v13 = vld [vmem:[#allocation5 + $0xcc] sm:$0xf0]  ;;  %6423 = vmatpush.bf16.msra.mxu1 %v9002_v7 }
  0x25   :  { %v8985_v14 = vld [vmem:[#allocation5 + $0x1c0] sm:$0xf]  ;;  %v13233_v15 = vld [vmem:[#allocation5 + $0x1cc] sm:$0xf0]  ;;  %6436 = vmatpush.bf16.msra.mxu2 %v9130_v8  ;;  %v8858_v16 = vor.u32 %v13201_v13, %v8857_v11 }
  0x26   :  { %v8986_v17 = vor.u32 %v13233_v15, %v8985_v14  ;;  %v9113_v18 = vld [vmem:[#allocation5 + $0x2c0] sm:$0xf]  ;;  %v13265_v19 = vld [vmem:[#allocation5 + $0x2cc] sm:$0xf0]  ;;  %6449 = vmatpush.bf16.msra.mxu3 %v9258_v12 }
  0x27   :  { %v9241_v20 = vld [vmem:[#allocation5 + $0x3c0] sm:$0xf]  ;;  %v9114_v21 = vor.u32 %v13265_v19, %v9113_v18  ;;  %v13297_v22 = vld [vmem:[#allocation5 + $0x3cc] sm:$0xf0]  ;;  %6411 = vmatpush.bf16.msra.mxu0 %v8858_v16 }
  0x28   :  { %v8841_v23 = vld [vmem:[#allocation5 + $0xa0] sm:$0xf]  ;;  %v13197_v24 = vld [vmem:[#allocation5 + $0xac] sm:$0xf0]  ;;  %v9242_v25 = vor.u32 %v13297_v22, %v9241_v20  ;;  %6424 = vmatpush.bf16.msra.mxu1 %v8986_v17 }
  0x29   :  { %v8969_v26 = vld [vmem:[#allocation5 + $0x1a0] sm:$0xf]  ;;  %v13229_v27 = vld [vmem:[#allocation5 + $0x1ac] sm:$0xf0]  ;;  %v8842_v29 = vor.u32 %v13197_v24, %v8841_v23  ;;  %6437 = vmatpush.bf16.msra.mxu2 %v9114_v21 }
  0x2a   :  { %v9097_v28 = vld [vmem:[#allocation5 + $0x2a0] sm:$0xf]  ;;  %v13261_v30 = vld [vmem:[#allocation5 + $0x2ac] sm:$0xf0]  ;;  %v8970_v33 = vor.u32 %v13229_v27, %v8969_v26  ;;  %6450 = vmatpush.bf16.msra.mxu3 %v9242_v25 }
  0x2b   :  { %v9225_v31 = vld [vmem:[#allocation5 + $0x3a0] sm:$0xf]  ;;  %v13293_v32 = vld [vmem:[#allocation5 + $0x3ac] sm:$0xf0]  ;;  %v9098_v34 = vor.u32 %v13261_v30, %v9097_v28  ;;  %6412 = vmatpush.bf16.msra.mxu0 %v8842_v29 }
  0x2c   :  { %v8825_v35 = vld [vmem:[#allocation5 + $0x80] sm:$0xf]  ;;  %v13193_v36 = vld [vmem:[#allocation5 + $0x8c] sm:$0xf0]  ;;  %v9226_v38 = vor.u32 %v13293_v32, %v9225_v31  ;;  %6425 = vmatpush.bf16.msra.mxu1 %v8970_v33 }
  0x2d   :  { %v8953_v37 = vld [vmem:[#allocation5 + $0x180] sm:$0xf]  ;;  %v13225_v39 = vld [vmem:[#allocation5 + $0x18c] sm:$0xf0]  ;;  %v8826_v44 = vor.u32 %v13193_v36, %v8825_v35  ;;  %6438 = vmatpush.bf16.msra.mxu2 %v9098_v34 }
  0x2e   :  { %v9081_v40 = vld [vmem:[#allocation5 + $0x280] sm:$0xf]  ;;  %v13257_v41 = vld [vmem:[#allocation5 + $0x28c] sm:$0xf0]  ;;  %v8954_v45 = vor.u32 %v13225_v39, %v8953_v37  ;;  %6451 = vmatpush.bf16.msra.mxu3 %v9226_v38 }
  0x2f   :  { %v9209_v42 = vld [vmem:[#allocation5 + $0x380] sm:$0xf]  ;;  %v13289_v43 = vld [vmem:[#allocation5 + $0x38c] sm:$0xf0]  ;;  %v9082_v46 = vor.u32 %v13257_v41, %v9081_v40  ;;  %6413 = vmatpush.bf16.msra.mxu0 %v8826_v44 }
  0x30   :  { %v8809_v47 = vld [vmem:[#allocation5 + $0x60] sm:$0xf]  ;;  %v13189_v48 = vld [vmem:[#allocation5 + $0x6c] sm:$0xf0]  ;;  %v9210_v50 = vor.u32 %v13289_v43, %v9209_v42  ;;  %6426 = vmatpush.bf16.msra.mxu1 %v8954_v45 }
  0x31   :  { %v8937_v49 = vld [vmem:[#allocation5 + $0x160] sm:$0xf]  ;;  %v13221_v51 = vld [vmem:[#allocation5 + $0x16c] sm:$0xf0]  ;;  %v8810_v56 = vor.u32 %v13189_v48, %v8809_v47  ;;  %6439 = vmatpush.bf16.msra.mxu2 %v9082_v46 }
  0x32   :  { %v9065_v52 = vld [vmem:[#allocation5 + $0x260] sm:$0xf]  ;;  %v13253_v53 = vld [vmem:[#allocation5 + $0x26c] sm:$0xf0]  ;;  %v8938_v57 = vor.u32 %v13221_v51, %v8937_v49  ;;  %6452 = vmatpush.bf16.msra.mxu3 %v9210_v50 }
  0x33   :  { %v9193_v54 = vld [vmem:[#allocation5 + $0x360] sm:$0xf]  ;;  %v13285_v55 = vld [vmem:[#allocation5 + $0x36c] sm:$0xf0]  ;;  %v9066_v58 = vor.u32 %v13253_v53, %v9065_v52  ;;  %6414 = vmatpush.bf16.msra.mxu0 %v8810_v56 }
  0x34   :  { %v8793_v59 = vld [vmem:[#allocation5 + $0x40] sm:$0xf]  ;;  %v13185_v60 = vld [vmem:[#allocation5 + $0x4c] sm:$0xf0]  ;;  %v9194_v62 = vor.u32 %v13285_v55, %v9193_v54  ;;  %6427 = vmatpush.bf16.msra.mxu1 %v8938_v57 }
  0x35   :  { %v8921_v61 = vld [vmem:[#allocation5 + $0x140] sm:$0xf]  ;;  %v13217_v63 = vld [vmem:[#allocation5 + $0x14c] sm:$0xf0]  ;;  %v8794_v4 = vor.u32 %v13185_v60, %v8793_v59  ;;  %6440 = vmatpush.bf16.msra.mxu2 %v9066_v58 }
  0x36   :  { %v9049_v0 = vld [vmem:[#allocation5 + $0x240] sm:$0xf]  ;;  %v13249_v1 = vld [vmem:[#allocation5 + $0x24c] sm:$0xf0]  ;;  %v8922_v5 = vor.u32 %v13217_v63, %v8921_v61  ;;  %6453 = vmatpush.bf16.msra.mxu3 %v9194_v62 }
  0x37   :  { %v9177_v2 = vld [vmem:[#allocation5 + $0x340] sm:$0xf]  ;;  %v13281_v3 = vld [vmem:[#allocation5 + $0x34c] sm:$0xf0]  ;;  %v9050_v6 = vor.u32 %v13249_v1, %v9049_v0  ;;  %6415 = vmatpush.bf16.msra.mxu0 %v8794_v4 }
  0x38   :  { %v8777_v7 = vld [vmem:[#allocation5 + $0x20] sm:$0xf]  ;;  %v13181_v8 = vld [vmem:[#allocation5 + $0x2c] sm:$0xf0]  ;;  %v9178_v10 = vor.u32 %v13281_v3, %v9177_v2  ;;  %6428 = vmatpush.bf16.msra.mxu1 %v8922_v5  ;;  %v129_v2 = vld [vmem:[#allocation2 + $0x8] sm:$0xff] }
  0x39   :  { %v8905_v9 = vld [vmem:[#allocation5 + $0x120] sm:$0xf]  ;;  %v13213_v11 = vld [vmem:[#allocation5 + $0x12c] sm:$0xf0]  ;;  %v8778_v16 = vor.u32 %v13181_v8, %v8777_v7  ;;  %6441 = vmatpush.bf16.msra.mxu2 %v9050_v6  ;;  %v1196_v8 = vunpack.c.l.b16 %v129_v2 }
  0x3a   :  { %v9033_v12 = vld [vmem:[#allocation5 + $0x220] sm:$0xf]  ;;  %v13245_v13 = vld [vmem:[#allocation5 + $0x22c] sm:$0xf0]  ;;  %v8906_v19 = vor.u32 %v13213_v11, %v8905_v9  ;;  %6454 = vmatpush.bf16.msra.mxu3 %v9178_v10  ;;  %v1197_v10 = vunpack.c.h.b16 %v129_v2 }
  0x3b   :  { %v9161_v14 = vld [vmem:[#allocation5 + $0x320] sm:$0xf]  ;;  %v13277_v15 = vld [vmem:[#allocation5 + $0x32c] sm:$0xf0]  ;;  %v9034_v20 = vor.u32 %v13245_v13, %v9033_v12  ;;  %6416 = vmatpush.bf16.msra.mxu0 %v8778_v16 }
  0x3c   :  { %v8761_v17 = vld [vmem:[#allocation5] sm:$0xf]  ;;  %v13177_v18 = vld [vmem:[#allocation5 + $0xc] sm:$0xf0]  ;;  %v9162_v24 = vor.u32 %v13277_v15, %v9161_v14  ;;  %6429 = vmatpush.bf16.msra.mxu1 %v8906_v19 }
  0x3d   :  { %v8889_v21 = vld [vmem:[#allocation5 + $0x100] sm:$0xf]  ;;  %v13209_v22 = vld [vmem:[#allocation5 + $0x10c] sm:$0xf0]  ;;  %v8762_v31 = vor.u32 %v13177_v18, %v8761_v17  ;;  %6442 = vmatpush.bf16.msra.mxu2 %v9034_v20  ;;  %v14574_v18 = vpack.c.b16 %v1196_v8, %v1196_v8  ;;  %v14578_v20 = vpack.c.b16 %v1197_v10, %v1197_v10 }
  0x3e   :  { %v9017_v23 = vld [vmem:[#allocation5 + $0x200] sm:$0xf]  ;;  %v13241_v25 = vld [vmem:[#allocation5 + $0x20c] sm:$0xf0]  ;;  %v8890_v35 = vor.u32 %v13209_v22, %v8889_v21  ;;  %6455 = vmatpush.bf16.msra.mxu3 %v9162_v24 }
  0x3f   :  { %v9145_v26 = vld [vmem:[#allocation5 + $0x300] sm:$0xf]  ;;  %v13273_v27 = vld [vmem:[#allocation5 + $0x30c] sm:$0xf0]  ;;  %v9018_v36 = vor.u32 %v13241_v25, %v9017_v23  ;;  %6417 = vmatpush.bf16.msra.mxu0 %v8762_v31 }
  0x40   :  { %v9385_v28 = vld [vmem:[#allocation5 + $0x4e0] sm:$0xf]  ;;  %v13333_v29 = vld [vmem:[#allocation5 + $0x4ec] sm:$0xf0]  ;;  %v9146_v39 = vor.u32 %v13273_v27, %v9145_v26  ;;  %6430 = vmatpush.bf16.msra.mxu1 %v8890_v35 }
  0x41   :  { %v9513_v30 = vld [vmem:[#allocation5 + $0x5e0] sm:$0xf]  ;;  %v13365_v32 = vld [vmem:[#allocation5 + $0x5ec] sm:$0xf0]  ;;  %v9386_v40 = vor.u32 %v13333_v29, %v9385_v28  ;;  %6443 = vmatpush.bf16.msra.mxu2 %v9018_v36 }
  0x42   :  { %v9641_v33 = vld [vmem:[#allocation5 + $0x6e0] sm:$0xf]  ;;  %v13397_v34 = vld [vmem:[#allocation5 + $0x6ec] sm:$0xf0]  ;;  %v9514_v41 = vor.u32 %v13365_v32, %v9513_v30  ;;  %6456 = vmatpush.bf16.msra.mxu3 %v9146_v39 }
  0x43   :  { %v9769_v37 = vld [vmem:[#allocation5 + $0x7e0] sm:$0xf]  ;;  %v13429_v38 = vld [vmem:[#allocation5 + $0x7ec] sm:$0xf0]  ;;  %v9642_v42 = vor.u32 %v13397_v34, %v9641_v33  ;;  %6462 = vmatpush.bf16.msrb.mxu0 %v9386_v40 }
  0x44   :  { %v9369_v43 = vld [vmem:[#allocation5 + $0x4c0] sm:$0xf]  ;;  %v13329_v44 = vld [vmem:[#allocation5 + $0x4cc] sm:$0xf0]  ;;  %v9770_v46 = vor.u32 %v13429_v38, %v9769_v37  ;;  %6475 = vmatpush.bf16.msrb.mxu1 %v9514_v41  ;;  %6444 = vmatmul.bf16.vlgmr.msra.gmra.mxu2 %v14574_v18 }
  0x45   :  { %v9497_v45 = vld [vmem:[#allocation5 + $0x5c0] sm:$0xf]  ;;  %v13361_v47 = vld [vmem:[#allocation5 + $0x5cc] sm:$0xf0]  ;;  %v9370_v52 = vor.u32 %v13329_v44, %v9369_v43  ;;  %6488 = vmatpush.bf16.msrb.mxu2 %v9642_v42  ;;  %6457 = vmatmul.bf16.vlgmr.msra.gmra.mxu3 %v14578_v20 }
  0x46   :  { %v9625_v48 = vld [vmem:[#allocation5 + $0x6c0] sm:$0xf]  ;;  %v13393_v49 = vld [vmem:[#allocation5 + $0x6cc] sm:$0xf0]  ;;  %v9498_v54 = vor.u32 %v13361_v47, %v9497_v45  ;;  %6501 = vmatpush.bf16.msrb.mxu3 %v9770_v46 }
  0x47   :  { %v9753_v50 = vld [vmem:[#allocation5 + $0x7c0] sm:$0xf]  ;;  %v13425_v51 = vld [vmem:[#allocation5 + $0x7cc] sm:$0xf0]  ;;  %v9626_v55 = vor.u32 %v13393_v49, %v9625_v48  ;;  %6463 = vmatpush.bf16.msrb.mxu0 %v9370_v52 }
  0x48   :  { %v9353_v53 = vld [vmem:[#allocation5 + $0x4a0] sm:$0xf]  ;;  %v13325_v56 = vld [vmem:[#allocation5 + $0x4ac] sm:$0xf0]  ;;  %v9754_v59 = vor.u32 %v13425_v51, %v9753_v50  ;;  %6476 = vmatpush.bf16.msrb.mxu1 %v9498_v54 }
  0x49   :  { %v9481_v57 = vld [vmem:[#allocation5 + $0x5a0] sm:$0xf]  ;;  %v13357_v58 = vld [vmem:[#allocation5 + $0x5ac] sm:$0xf0]  ;;  %v9354_v0 = vor.u32 %v13325_v56, %v9353_v53  ;;  %6489 = vmatpush.bf16.msrb.mxu2 %v9626_v55 }
  0x4a   :  { %v9609_v60 = vld [vmem:[#allocation5 + $0x6a0] sm:$0xf]  ;;  %v13389_v61 = vld [vmem:[#allocation5 + $0x6ac] sm:$0xf0]  ;;  %v9482_v1 = vor.u32 %v13357_v58, %v9481_v57  ;;  %6502 = vmatpush.bf16.msrb.mxu3 %v9754_v59 }
  0x4b   :  { %v9737_v62 = vld [vmem:[#allocation5 + $0x7a0] sm:$0xf]  ;;  %v13421_v63 = vld [vmem:[#allocation5 + $0x7ac] sm:$0xf0]  ;;  %v9610_v4 = vor.u32 %v13389_v61, %v9609_v60  ;;  %6464 = vmatpush.bf16.msrb.mxu0 %v9354_v0 }
  0x4c   :  { %v128_v3 = vld [vmem:[#allocation2] sm:$0xff]  ;;  %v13321_v6 = vld [vmem:[#allocation5 + $0x48c] sm:$0xf0]  ;;  %v9738_v11 = vor.u32 %v13421_v63, %v9737_v62  ;;  %6477 = vmatpush.bf16.msrb.mxu1 %v9482_v1 }
  0x4d   :  { %v9337_v5 = vld [vmem:[#allocation5 + $0x480] sm:$0xf]  ;;  %v1194_v9 = vunpack.c.l.b16 %v128_v3  ;;  %v13353_v12 = vld [vmem:[#allocation5 + $0x58c] sm:$0xf0]  ;;  %v1195_v15 = vunpack.c.h.b16 %v128_v3  ;;  %6490 = vmatpush.bf16.msrb.mxu2 %v9610_v4  ;;  %v131_v3 = vld [vmem:[#allocation2 + $0x18] sm:$0xff] }
  0x4e   :  { %v9465_v7 = vld [vmem:[#allocation5 + $0x580] sm:$0xf]  ;;  %v13385_v14 = vld [vmem:[#allocation5 + $0x68c] sm:$0xf0]  ;;  %v9338_v21 = vor.u32 %v13321_v6, %v9337_v5  ;;  %6503 = vmatpush.bf16.msrb.mxu3 %v9738_v11 }
  0x4f   :  { %v9593_v13 = vld [vmem:[#allocation5 + $0x680] sm:$0xf]  ;;  %v13417_v17 = vld [vmem:[#allocation5 + $0x78c] sm:$0xf0]  ;;  %v14576_v19 = vpack.c.b16 %v1194_v9, %v1194_v9  ;;  %v14580_v22 = vpack.c.b16 %v1195_v15, %v1195_v15  ;;  %v9466_v23 = vor.u32 %v13353_v12, %v9465_v7  ;;  %v1200_v15 = vunpack.c.l.b16 %v131_v3 }
  0x50   :  { %v9721_v16 = vld [vmem:[#allocation5 + $0x780] sm:$0xf]  ;;  %v9594_v24 = vor.u32 %v13385_v14, %v9593_v13  ;;  %v13317_v26 = vld [vmem:[#allocation5 + $0x46c] sm:$0xf0]  ;;  %6465 = vmatpush.bf16.msrb.mxu0 %v9338_v21 }
  0x51   :  { %v9321_v25 = vld [vmem:[#allocation5 + $0x460] sm:$0xf]  ;;  %v9722_v28 = vor.u32 %v13417_v17, %v9721_v16  ;;  %v13349_v29 = vld [vmem:[#allocation5 + $0x56c] sm:$0xf0]  ;;  %6418 = vmatmul.bf16.vlgmr.msra.gmra.mxu0 %v14576_v19  ;;  %6431 = vmatmul.bf16.vlgmr.msra.gmra.mxu1 %v14580_v22 }
  0x52   :  { %v9449_v27 = vld [vmem:[#allocation5 + $0x560] sm:$0xf]  ;;  %v13381_v31 = vld [vmem:[#allocation5 + $0x66c] sm:$0xf0]  ;;  %v9322_v34 = vor.u32 %v13317_v26, %v9321_v25  ;;  %6478 = vmatpush.bf16.msrb.mxu1 %v9466_v23  ;;  %6491 = vmatpush.bf16.msrb.mxu2 %v9594_v24  ;;  %v1201_v25 = vunpack.c.h.b16 %v131_v3 }
  0x53   :  { %v9577_v30 = vld [vmem:[#allocation5 + $0x660] sm:$0xf]  ;;  %v13413_v33 = vld [vmem:[#allocation5 + $0x76c] sm:$0xf0]  ;;  %v9450_v35 = vor.u32 %v13349_v29, %v9449_v27  ;;  %6504 = vmatpush.bf16.msrb.mxu3 %v9722_v28 }
  0x54   :  { %v9705_v32 = vld [vmem:[#allocation5 + $0x760] sm:$0xf]  ;;  %v9578_v36 = vor.u32 %v13381_v31, %v9577_v30  ;;  %v13313_v38 = vld [vmem:[#allocation5 + $0x44c] sm:$0xf0]  ;;  %6466 = vmatpush.bf16.msrb.mxu0 %v9322_v34 }
  0x55   :  { %v9305_v37 = vld [vmem:[#allocation5 + $0x440] sm:$0xf]  ;;  %v9706_v40 = vor.u32 %v13413_v33, %v9705_v32  ;;  %v13345_v41 = vld [vmem:[#allocation5 + $0x54c] sm:$0xf0] }
  0x56   :  { %v9433_v39 = vld [vmem:[#allocation5 + $0x540] sm:$0xf]  ;;  %v13377_v43 = vld [vmem:[#allocation5 + $0x64c] sm:$0xf0]  ;;  %v9306_v46 = vor.u32 %v13313_v38, %v9305_v37  ;;  %6479 = vmatpush.bf16.msrb.mxu1 %v9450_v35  ;;  %6492 = vmatpush.bf16.msrb.mxu2 %v9578_v36  ;;  %v14586_v38 = vpack.c.b16 %v1200_v15, %v1200_v15 }
  0x57   :  { %v9561_v42 = vld [vmem:[#allocation5 + $0x640] sm:$0xf]  ;;  %v13409_v45 = vld [vmem:[#allocation5 + $0x74c] sm:$0xf0]  ;;  %v9434_v47 = vor.u32 %v13345_v41, %v9433_v39  ;;  %6505 = vmatpush.bf16.msrb.mxu3 %v9706_v40 }
  0x58   :  { %v9689_v44 = vld [vmem:[#allocation5 + $0x740] sm:$0xf]  ;;  %v9562_v48 = vor.u32 %v13377_v43, %v9561_v42  ;;  %v13309_v50 = vld [vmem:[#allocation5 + $0x42c] sm:$0xf0]  ;;  %6467 = vmatpush.bf16.msrb.mxu0 %v9306_v46  ;;  %v14590_v42 = vpack.c.b16 %v1201_v25, %v1201_v25 }
  0x59   :  { %v9289_v49 = vld [vmem:[#allocation5 + $0x420] sm:$0xf]  ;;  %v9690_v52 = vor.u32 %v13409_v45, %v9689_v44  ;;  %v13341_v53 = vld [vmem:[#allocation5 + $0x52c] sm:$0xf0] }
  0x5a   :  { %v9417_v51 = vld [vmem:[#allocation5 + $0x520] sm:$0xf]  ;;  %v13373_v55 = vld [vmem:[#allocation5 + $0x62c] sm:$0xf0]  ;;  %v9290_v59 = vor.u32 %v13309_v50, %v9289_v49  ;;  %6480 = vmatpush.bf16.msrb.mxu1 %v9434_v47  ;;  %6493 = vmatpush.bf16.msrb.mxu2 %v9562_v48 }
  0x5b   :  { %v9545_v54 = vld [vmem:[#allocation5 + $0x620] sm:$0xf]  ;;  %v13405_v57 = vld [vmem:[#allocation5 + $0x72c] sm:$0xf0]  ;;  %v9418_v63 = vor.u32 %v13341_v53, %v9417_v51  ;;  %6506 = vmatpush.bf16.msrb.mxu3 %v9690_v52 }
  0x5c   :  { %v9673_v56 = vld [vmem:[#allocation5 + $0x720] sm:$0xf]  ;;  %v13305_v60 = vld [vmem:[#allocation5 + $0x40c] sm:$0xf0]  ;;  %v9546_v0 = vor.u32 %v13373_v55, %v9545_v54  ;;  %6468 = vmatpush.bf16.msrb.mxu0 %v9290_v59 }
  0x5d   :  { %v9273_v58 = vld [vmem:[#allocation5 + $0x400] sm:$0xf]  ;;  %v13337_v62 = vld [vmem:[#allocation5 + $0x50c] sm:$0xf0]  ;;  %v9674_v4 = vor.u32 %v13405_v57, %v9673_v56 }
  0x5e   :  { %v9401_v61 = vld [vmem:[#allocation5 + $0x500] sm:$0xf]  ;;  %v13369_v2 = vld [vmem:[#allocation5 + $0x60c] sm:$0xf0]  ;;  %v9274_v11 = vor.u32 %v13305_v60, %v9273_v58  ;;  %6481 = vmatpush.bf16.msrb.mxu1 %v9418_v63  ;;  %6494 = vmatpush.bf16.msrb.mxu2 %v9546_v0 }
  0x5f   :  { %v9529_v1 = vld [vmem:[#allocation5 + $0x600] sm:$0xf]  ;;  %v13401_v6 = vld [vmem:[#allocation5 + $0x70c] sm:$0xf0]  ;;  %v9402_v16 = vor.u32 %v13337_v62, %v9401_v61  ;;  %6507 = vmatpush.bf16.msrb.mxu3 %v9674_v4 }
  0x60   :  { %v9657_v5 = vld [vmem:[#allocation5 + $0x700] sm:$0xf]  ;;  %v130_v7 = vld [vmem:[#allocation2 + $0x10] sm:$0xff]  ;;  %v9530_v17 = vor.u32 %v13369_v2, %v9529_v1  ;;  %6469 = vmatpush.bf16.msrb.mxu0 %v9274_v11 }
  0x61   :  { %v9897_v8 = vld [vmem:[#allocation5 + $0x8e0] sm:$0xf]  ;;  %v13461_v9 = vld [vmem:[#allocation5 + $0x8ec] sm:$0xf0]  ;;  %v1198_v24 = vunpack.c.l.b16 %v130_v7  ;;  %v9658_v26 = vor.u32 %v13401_v6, %v9657_v5  ;;  %v1199_v28 = vunpack.c.h.b16 %v130_v7 }
  0x62   :  { %v10025_v10 = vld [vmem:[#allocation5 + $0x9e0] sm:$0xf]  ;;  %v13493_v12 = vld [vmem:[#allocation5 + $0x9ec] sm:$0xf0]  ;;  %v9898_v27 = vor.u32 %v13461_v9, %v9897_v8  ;;  %6482 = vmatpush.bf16.msrb.mxu1 %v9402_v16  ;;  %6495 = vmatpush.bf16.msrb.mxu2 %v9530_v17 }
  0x63   :  { %v10153_v13 = vld [vmem:[#allocation5 + $0xae0] sm:$0xf]  ;;  %v13525_v14 = vld [vmem:[#allocation5 + $0xaec] sm:$0xf0]  ;;  %v10026_v29 = vor.u32 %v13493_v12, %v10025_v10  ;;  %v14588_v41 = vpack.c.b16 %v1198_v24, %v1198_v24  ;;  %6508 = vmatpush.bf16.msrb.mxu3 %v9658_v26  ;;  %v14592_v44 = vpack.c.b16 %v1199_v28, %v1199_v28 }
  0x64   :  { %v10281_v21 = vld [vmem:[#allocation5 + $0xbe0] sm:$0xf]  ;;  %v13557_v23 = vld [vmem:[#allocation5 + $0xbec] sm:$0xf0]  ;;  %v10154_v30 = vor.u32 %v13525_v14, %v10153_v13  ;;  %6514 = vmatpush.bf16.msra.mxu0 %v9898_v27 }
  0x65   :  { %v9881_v31 = vld [vmem:[#allocation5 + $0x8c0] sm:$0xf]  ;;  %v13457_v32 = vld [vmem:[#allocation5 + $0x8cc] sm:$0xf0]  ;;  %v10282_v34 = vor.u32 %v13557_v23, %v10281_v21  ;;  %6496 = vmatmul.bf16.vlgmr.msrb.gmra.mxu2 %v14586_v38  ;;  %6470 = vmatmul.bf16.vlgmr.msrb.gmra.mxu0 %v14588_v41 }
  0x66   :  { %v10009_v33 = vld [vmem:[#allocation5 + $0x9c0] sm:$0xf]  ;;  %v13489_v35 = vld [vmem:[#allocation5 + $0x9cc] sm:$0xf0]  ;;  %v9882_v43 = vor.u32 %v13457_v32, %v9881_v31  ;;  %6527 = vmatpush.bf16.msra.mxu1 %v10026_v29  ;;  %6540 = vmatpush.bf16.msra.mxu2 %v10154_v30 }
  0x67   :  { %v10137_v36 = vld [vmem:[#allocation5 + $0xac0] sm:$0xf]  ;;  %v13521_v37 = vld [vmem:[#allocation5 + $0xacc] sm:$0xf0]  ;;  %v10010_v45 = vor.u32 %v13489_v35, %v10009_v33  ;;  %6553 = vmatpush.bf16.msra.mxu3 %v10282_v34  ;;  %6483 = vmatmul.bf16.vlgmr.msrb.gmra.mxu1 %v14592_v44 }
  0x68   :  { %v10265_v39 = vld [vmem:[#allocation5 + $0xbc0] sm:$0xf]  ;;  %v13553_v40 = vld [vmem:[#allocation5 + $0xbcc] sm:$0xf0]  ;;  %v10138_v46 = vor.u32 %v13521_v37, %v10137_v36  ;;  %6509 = vmatmul.bf16.vlgmr.msrb.gmra.mxu3 %v14590_v42  ;;  %6515 = vmatpush.bf16.msra.mxu0 %v9882_v43 }
  0x69   :  { %v9865_v47 = vld [vmem:[#allocation5 + $0x8a0] sm:$0xf]  ;;  %v13453_v48 = vld [vmem:[#allocation5 + $0x8ac] sm:$0xf0]  ;;  %v10266_v50 = vor.u32 %v13553_v40, %v10265_v39 }
  0x6a   :  { %v9993_v49 = vld [vmem:[#allocation5 + $0x9a0] sm:$0xf]  ;;  %v13485_v51 = vld [vmem:[#allocation5 + $0x9ac] sm:$0xf0]  ;;  %v9866_v56 = vor.u32 %v13453_v48, %v9865_v47  ;;  %6528 = vmatpush.bf16.msra.mxu1 %v10010_v45  ;;  %6541 = vmatpush.bf16.msra.mxu2 %v10138_v46 }
  0x6b   :  { %v10121_v52 = vld [vmem:[#allocation5 + $0xaa0] sm:$0xf]  ;;  %v13517_v53 = vld [vmem:[#allocation5 + $0xaac] sm:$0xf0]  ;;  %v9994_v57 = vor.u32 %v13485_v51, %v9993_v49  ;;  %6554 = vmatpush.bf16.msra.mxu3 %v10266_v50 }
  0x6c   :  { %v10249_v54 = vld [vmem:[#allocation5 + $0xba0] sm:$0xf]  ;;  %v13549_v55 = vld [vmem:[#allocation5 + $0xbac] sm:$0xf0]  ;;  %v10122_v58 = vor.u32 %v13517_v53, %v10121_v52  ;;  %6516 = vmatpush.bf16.msra.mxu0 %v9866_v56 }
  0x6d   :  { %v9849_v59 = vld [vmem:[#allocation5 + $0x880] sm:$0xf]  ;;  %v13449_v60 = vld [vmem:[#allocation5 + $0x88c] sm:$0xf0]  ;;  %v10250_v62 = vor.u32 %v13549_v55, %v10249_v54 }
  0x6e   :  { %v9977_v61 = vld [vmem:[#allocation5 + $0x980] sm:$0xf]  ;;  %v13481_v63 = vld [vmem:[#allocation5 + $0x98c] sm:$0xf0]  ;;  %v9850_v4 = vor.u32 %v13449_v60, %v9849_v59  ;;  %6529 = vmatpush.bf16.msra.mxu1 %v9994_v57  ;;  %6542 = vmatpush.bf16.msra.mxu2 %v10122_v58 }
  0x6f   :  { %v10105_v0 = vld [vmem:[#allocation5 + $0xa80] sm:$0xf]  ;;  %v13513_v1 = vld [vmem:[#allocation5 + $0xa8c] sm:$0xf0]  ;;  %v9978_v5 = vor.u32 %v13481_v63, %v9977_v61  ;;  %6555 = vmatpush.bf16.msra.mxu3 %v10250_v62  ;;  %v133_v61 = vld [vmem:[#allocation2 + $0x28] sm:$0xff] }
  0x70   :  { %v10233_v2 = vld [vmem:[#allocation5 + $0xb80] sm:$0xf]  ;;  %v13545_v3 = vld [vmem:[#allocation5 + $0xb8c] sm:$0xf0]  ;;  %v10106_v6 = vor.u32 %v13513_v1, %v10105_v0  ;;  %6517 = vmatpush.bf16.msra.mxu0 %v9850_v4 }
  0x71   :  { %v9833_v7 = vld [vmem:[#allocation5 + $0x860] sm:$0xf]  ;;  %v13445_v8 = vld [vmem:[#allocation5 + $0x86c] sm:$0xf0]  ;;  %v10234_v10 = vor.u32 %v13545_v3, %v10233_v2 }
  0x72   :  { %v9961_v9 = vld [vmem:[#allocation5 + $0x960] sm:$0xf]  ;;  %v13477_v11 = vld [vmem:[#allocation5 + $0x96c] sm:$0xf0]  ;;  %v9834_v16 = vor.u32 %v13445_v8, %v9833_v7  ;;  %6530 = vmatpush.bf16.msra.mxu1 %v9978_v5  ;;  %6543 = vmatpush.bf16.msra.mxu2 %v10106_v6 }
  0x73   :  { %v10089_v12 = vld [vmem:[#allocation5 + $0xa60] sm:$0xf]  ;;  %v13509_v13 = vld [vmem:[#allocation5 + $0xa6c] sm:$0xf0]  ;;  %v9962_v17 = vor.u32 %v13477_v11, %v9961_v9  ;;  %6556 = vmatpush.bf16.msra.mxu3 %v10234_v10  ;;  %v1204_v10 = vunpack.c.l.b16 %v133_v61 }
  0x74   :  { %v10217_v14 = vld [vmem:[#allocation5 + $0xb60] sm:$0xf]  ;;  %v13541_v15 = vld [vmem:[#allocation5 + $0xb6c] sm:$0xf0]  ;;  %v10090_v21 = vor.u32 %v13509_v13, %v10089_v12  ;;  %6518 = vmatpush.bf16.msra.mxu0 %v9834_v16 }
  0x75   :  { %v9817_v23 = vld [vmem:[#allocation5 + $0x840] sm:$0xf]  ;;  %v13441_v24 = vld [vmem:[#allocation5 + $0x84c] sm:$0xf0]  ;;  %v10218_v26 = vor.u32 %v13541_v15, %v10217_v14  ;;  %v1205_v14 = vunpack.c.h.b16 %v133_v61 }
  0x76   :  { %v9945_v25 = vld [vmem:[#allocation5 + $0x940] sm:$0xf]  ;;  %v13473_v27 = vld [vmem:[#allocation5 + $0x94c] sm:$0xf0]  ;;  %v9818_v32 = vor.u32 %v13441_v24, %v9817_v23  ;;  %6531 = vmatpush.bf16.msra.mxu1 %v9962_v17  ;;  %6544 = vmatpush.bf16.msra.mxu2 %v10090_v21 }
  0x77   :  { %v10073_v28 = vld [vmem:[#allocation5 + $0xa40] sm:$0xf]  ;;  %v13505_v29 = vld [vmem:[#allocation5 + $0xa4c] sm:$0xf0]  ;;  %v9946_v34 = vor.u32 %v13473_v27, %v9945_v25  ;;  %6557 = vmatpush.bf16.msra.mxu3 %v10218_v26 }
  0x78   :  { %v10201_v30 = vld [vmem:[#allocation5 + $0xb40] sm:$0xf]  ;;  %v13537_v31 = vld [vmem:[#allocation5 + $0xb4c] sm:$0xf0]  ;;  %v10074_v35 = vor.u32 %v13505_v29, %v10073_v28  ;;  %6519 = vmatpush.bf16.msra.mxu0 %v9818_v32  ;;  %v14600_v29 = vpack.c.b16 %v1204_v10, %v1204_v10 }
  0x79   :  { %v9801_v33 = vld [vmem:[#allocation5 + $0x820] sm:$0xf]  ;;  %v13437_v36 = vld [vmem:[#allocation5 + $0x82c] sm:$0xf0]  ;;  %v10202_v40 = vor.u32 %v13537_v31, %v10201_v30 }
  0x7a   :  { %v9929_v37 = vld [vmem:[#allocation5 + $0x920] sm:$0xf]  ;;  %v13469_v39 = vld [vmem:[#allocation5 + $0x92c] sm:$0xf0]  ;;  %v9802_v49 = vor.u32 %v13437_v36, %v9801_v33  ;;  %6532 = vmatpush.bf16.msra.mxu1 %v9946_v34  ;;  %6545 = vmatpush.bf16.msra.mxu2 %v10074_v35  ;;  %v14604_v33 = vpack.c.b16 %v1205_v14, %v1205_v14 }
  0x7b   :  { %v10057_v43 = vld [vmem:[#allocation5 + $0xa20] sm:$0xf]  ;;  %v13501_v45 = vld [vmem:[#allocation5 + $0xa2c] sm:$0xf0]  ;;  %v9930_v53 = vor.u32 %v13469_v39, %v9929_v37  ;;  %6558 = vmatpush.bf16.msra.mxu3 %v10202_v40 }
  0x7c   :  { %v10185_v46 = vld [vmem:[#allocation5 + $0xb20] sm:$0xf]  ;;  %v13533_v47 = vld [vmem:[#allocation5 + $0xb2c] sm:$0xf0]  ;;  %v10058_v54 = vor.u32 %v13501_v45, %v10057_v43  ;;  %6520 = vmatpush.bf16.msra.mxu0 %v9802_v49 }
  0x7d   :  { %v9785_v48 = vld [vmem:[#allocation5 + $0x800] sm:$0xf]  ;;  %v13433_v50 = vld [vmem:[#allocation5 + $0x80c] sm:$0xf0]  ;;  %v10186_v58 = vor.u32 %v13533_v47, %v10185_v46 }
  0x7e   :  { %v9913_v51 = vld [vmem:[#allocation5 + $0x900] sm:$0xf]  ;;  %v13465_v52 = vld [vmem:[#allocation5 + $0x90c] sm:$0xf0]  ;;  %v9786_v1 = vor.u32 %v13433_v50, %v9785_v48  ;;  %6533 = vmatpush.bf16.msra.mxu1 %v9930_v53  ;;  %6546 = vmatpush.bf16.msra.mxu2 %v10058_v54 }
  0x7f   :  { %v10041_v55 = vld [vmem:[#allocation5 + $0xa00] sm:$0xf]  ;;  %v13497_v56 = vld [vmem:[#allocation5 + $0xa0c] sm:$0xf0]  ;;  %v9914_v6 = vor.u32 %v13465_v52, %v9913_v51  ;;  %6559 = vmatpush.bf16.msra.mxu3 %v10186_v58 }
  0x80   :  { %v132_v57 = vld [vmem:[#allocation2 + $0x20] sm:$0xff]  ;;  %v13529_v60 = vld [vmem:[#allocation5 + $0xb0c] sm:$0xf0]  ;;  %v10042_v7 = vor.u32 %v13497_v56, %v10041_v55  ;;  %6521 = vmatpush.bf16.msra.mxu0 %v9786_v1 }
  0x81   :  { %v10169_v59 = vld [vmem:[#allocation5 + $0xb00] sm:$0xf]  ;;  %v13589_v63 = vld [vmem:[#allocation5 + $0xcec] sm:$0xf0]  ;;  %v1202_v5 = vunpack.c.l.b16 %v132_v57  ;;  %v1203_v11 = vunpack.c.h.b16 %v132_v57 }
  0x82   :  { %v10409_v62 = vld [vmem:[#allocation5 + $0xce0] sm:$0xf]  ;;  %v13621_v2 = vld [vmem:[#allocation5 + $0xdec] sm:$0xf0]  ;;  %v10170_v12 = vor.u32 %v13529_v60, %v10169_v59  ;;  %6534 = vmatpush.bf16.msra.mxu1 %v9914_v6  ;;  %6547 = vmatpush.bf16.msra.mxu2 %v10042_v7 }
  0x83   :  { %v10537_v0 = vld [vmem:[#allocation5 + $0xde0] sm:$0xf]  ;;  %v13653_v4 = vld [vmem:[#allocation5 + $0xeec] sm:$0xf0]  ;;  %v10410_v13 = vor.u32 %v13589_v63, %v10409_v62  ;;  %v14598_v25 = vpack.c.b16 %v1202_v5, %v1202_v5  ;;  %v14602_v30 = vpack.c.b16 %v1203_v11, %v1203_v11 }
  0x84   :  { %v10665_v3 = vld [vmem:[#allocation5 + $0xee0] sm:$0xf]  ;;  %v13685_v9 = vld [vmem:[#allocation5 + $0xfec] sm:$0xf0]  ;;  %v10538_v15 = vor.u32 %v13621_v2, %v10537_v0  ;;  %6560 = vmatpush.bf16.msra.mxu3 %v10170_v12 }
  0x85   :  { %v10793_v8 = vld [vmem:[#allocation5 + $0xfe0] sm:$0xf]  ;;  %v10666_v16 = vor.u32 %v13653_v4, %v10665_v3  ;;  %v13585_v21 = vld [vmem:[#allocation5 + $0xccc] sm:$0xf0]  ;;  %6566 = vmatpush.bf16.msrb.mxu0 %v10410_v13  ;;  %6548 = vmatmul.bf16.vlgmr.msra.gmra.mxu2 %v14600_v29 }
  0x86   :  { %v10393_v17 = vld [vmem:[#allocation5 + $0xcc0] sm:$0xf]  ;;  %v10794_v24 = vor.u32 %v13685_v9, %v10793_v8  ;;  %v13617_v26 = vld [vmem:[#allocation5 + $0xdcc] sm:$0xf0]  ;;  %6579 = vmatpush.bf16.msrb.mxu1 %v10538_v15  ;;  %6522 = vmatmul.bf16.vlgmr.msra.gmra.mxu0 %v14598_v25 }
  0x87   :  { %v10521_v23 = vld [vmem:[#allocation5 + $0xdc0] sm:$0xf]  ;;  %v13649_v28 = vld [vmem:[#allocation5 + $0xecc] sm:$0xf0]  ;;  %v10394_v34 = vor.u32 %v13585_v21, %v10393_v17  ;;  %6592 = vmatpush.bf16.msrb.mxu2 %v10666_v16  ;;  %6535 = vmatmul.bf16.vlgmr.msra.gmra.mxu1 %v14602_v30 }
  0x88   :  { %v10649_v27 = vld [vmem:[#allocation5 + $0xec0] sm:$0xf]  ;;  %v13681_v32 = vld [vmem:[#allocation5 + $0xfcc] sm:$0xf0]  ;;  %v10522_v35 = vor.u32 %v13617_v26, %v10521_v23  ;;  %6605 = vmatpush.bf16.msrb.mxu3 %v10794_v24 }
  0x89   :  { %v10777_v31 = vld [vmem:[#allocation5 + $0xfc0] sm:$0xf]  ;;  %v10650_v36 = vor.u32 %v13649_v28, %v10649_v27  ;;  %v13581_v39 = vld [vmem:[#allocation5 + $0xcac] sm:$0xf0]  ;;  %6561 = vmatmul.bf16.vlgmr.msra.gmra.mxu3 %v14604_v33  ;;  %6567 = vmatpush.bf16.msrb.mxu0 %v10394_v34 }
  0x8a   :  { %v10377_v37 = vld [vmem:[#allocation5 + $0xca0] sm:$0xf]  ;;  %v10778_v43 = vor.u32 %v13681_v32, %v10777_v31  ;;  %v13613_v45 = vld [vmem:[#allocation5 + $0xdac] sm:$0xf0]  ;;  %6580 = vmatpush.bf16.msrb.mxu1 %v10522_v35 }
  0x8b   :  { %v10505_v40 = vld [vmem:[#allocation5 + $0xda0] sm:$0xf]  ;;  %v13645_v47 = vld [vmem:[#allocation5 + $0xeac] sm:$0xf0]  ;;  %v10378_v50 = vor.u32 %v13581_v39, %v10377_v37  ;;  %6593 = vmatpush.bf16.msrb.mxu2 %v10650_v36 }
  0x8c   :  { %v10633_v46 = vld [vmem:[#allocation5 + $0xea0] sm:$0xf]  ;;  %v13677_v49 = vld [vmem:[#allocation5 + $0xfac] sm:$0xf0]  ;;  %v10506_v51 = vor.u32 %v13613_v45, %v10505_v40  ;;  %6606 = vmatpush.bf16.msrb.mxu3 %v10778_v43 }
  0x8d   :  { %v10761_v48 = vld [vmem:[#allocation5 + $0xfa0] sm:$0xf]  ;;  %v10634_v52 = vor.u32 %v13645_v47, %v10633_v46  ;;  %v13577_v54 = vld [vmem:[#allocation5 + $0xc8c] sm:$0xf0]  ;;  %6568 = vmatpush.bf16.msrb.mxu0 %v10378_v50 }
  0x8e   :  { %v10361_v53 = vld [vmem:[#allocation5 + $0xc80] sm:$0xf]  ;;  %v10762_v56 = vor.u32 %v13677_v49, %v10761_v48  ;;  %v13609_v57 = vld [vmem:[#allocation5 + $0xd8c] sm:$0xf0]  ;;  %6581 = vmatpush.bf16.msrb.mxu1 %v10506_v51 }
  0x8f   :  { %v10489_v55 = vld [vmem:[#allocation5 + $0xd80] sm:$0xf]  ;;  %v13641_v59 = vld [vmem:[#allocation5 + $0xe8c] sm:$0xf0]  ;;  %v10362_v62 = vor.u32 %v13577_v54, %v10361_v53  ;;  %6594 = vmatpush.bf16.msrb.mxu2 %v10634_v52 }
  0x90   :  { %v10617_v58 = vld [vmem:[#allocation5 + $0xe80] sm:$0xf]  ;;  %v13673_v61 = vld [vmem:[#allocation5 + $0xf8c] sm:$0xf0]  ;;  %v10490_v63 = vor.u32 %v13609_v57, %v10489_v55  ;;  %6607 = vmatpush.bf16.msrb.mxu3 %v10762_v56 }
  0x91   :  { %v10745_v60 = vld [vmem:[#allocation5 + $0xf80] sm:$0xf]  ;;  %v10618_v0 = vor.u32 %v13641_v59, %v10617_v58  ;;  %v13573_v2 = vld [vmem:[#allocation5 + $0xc6c] sm:$0xf0]  ;;  %6569 = vmatpush.bf16.msrb.mxu0 %v10362_v62  ;;  %v135_v59 = vld [vmem:[#allocation2 + $0x38] sm:$0xff] }
  0x92   :  { %v10345_v1 = vld [vmem:[#allocation5 + $0xc60] sm:$0xf]  ;;  %v10746_v4 = vor.u32 %v13673_v61, %v10745_v60  ;;  %v13605_v5 = vld [vmem:[#allocation5 + $0xd6c] sm:$0xf0]  ;;  %6582 = vmatpush.bf16.msrb.mxu1 %v10490_v63 }
  0x93   :  { %v10473_v3 = vld [vmem:[#allocation5 + $0xd60] sm:$0xf]  ;;  %v13637_v7 = vld [vmem:[#allocation5 + $0xe6c] sm:$0xf0]  ;;  %v10346_v10 = vor.u32 %v13573_v2, %v10345_v1  ;;  %6595 = vmatpush.bf16.msrb.mxu2 %v10618_v0 }
  0x94   :  { %v10601_v6 = vld [vmem:[#allocation5 + $0xe60] sm:$0xf]  ;;  %v13669_v9 = vld [vmem:[#allocation5 + $0xf6c] sm:$0xf0]  ;;  %v10474_v11 = vor.u32 %v13605_v5, %v10473_v3  ;;  %6608 = vmatpush.bf16.msrb.mxu3 %v10746_v4 }
  0x95   :  { %v10729_v8 = vld [vmem:[#allocation5 + $0xf60] sm:$0xf]  ;;  %v10602_v12 = vor.u32 %v13637_v7, %v10601_v6  ;;  %v13569_v14 = vld [vmem:[#allocation5 + $0xc4c] sm:$0xf0]  ;;  %6570 = vmatpush.bf16.msrb.mxu0 %v10346_v10 }
  0x96   :  { %v10329_v13 = vld [vmem:[#allocation5 + $0xc40] sm:$0xf]  ;;  %v10730_v16 = vor.u32 %v13669_v9, %v10729_v8  ;;  %v13601_v17 = vld [vmem:[#allocation5 + $0xd4c] sm:$0xf0]  ;;  %6583 = vmatpush.bf16.msrb.mxu1 %v10474_v11  ;;  %v1208_v8 = vunpack.c.l.b16 %v135_v59 }
  0x97   :  { %v10457_v15 = vld [vmem:[#allocation5 + $0xd40] sm:$0xf]  ;;  %v13633_v23 = vld [vmem:[#allocation5 + $0xe4c] sm:$0xf0]  ;;  %v10330_v27 = vor.u32 %v13569_v14, %v10329_v13  ;;  %6596 = vmatpush.bf16.msrb.mxu2 %v10602_v12  ;;  %v1209_v12 = vunpack.c.h.b16 %v135_v59 }
  0x98   :  { %v10585_v21 = vld [vmem:[#allocation5 + $0xe40] sm:$0xf]  ;;  %v13665_v26 = vld [vmem:[#allocation5 + $0xf4c] sm:$0xf0]  ;;  %v10458_v28 = vor.u32 %v13601_v17, %v10457_v15  ;;  %6609 = vmatpush.bf16.msrb.mxu3 %v10730_v16 }
  0x99   :  { %v10713_v24 = vld [vmem:[#allocation5 + $0xf40] sm:$0xf]  ;;  %v10586_v31 = vor.u32 %v13633_v23, %v10585_v21  ;;  %v13565_v34 = vld [vmem:[#allocation5 + $0xc2c] sm:$0xf0]  ;;  %6571 = vmatpush.bf16.msrb.mxu0 %v10330_v27 }
  0x9a   :  { %v10313_v32 = vld [vmem:[#allocation5 + $0xc20] sm:$0xf]  ;;  %v10714_v36 = vor.u32 %v13665_v26, %v10713_v24  ;;  %v13597_v37 = vld [vmem:[#allocation5 + $0xd2c] sm:$0xf0]  ;;  %6584 = vmatpush.bf16.msrb.mxu1 %v10458_v28  ;;  %v14612_v28 = vpack.c.b16 %v1208_v8, %v1208_v8 }
  0x9b   :  { %v10441_v35 = vld [vmem:[#allocation5 + $0xd20] sm:$0xf]  ;;  %v13629_v40 = vld [vmem:[#allocation5 + $0xe2c] sm:$0xf0]  ;;  %v10314_v47 = vor.u32 %v13565_v34, %v10313_v32  ;;  %6597 = vmatpush.bf16.msrb.mxu2 %v10586_v31 }
  0x9c   :  { %v10569_v39 = vld [vmem:[#allocation5 + $0xe20] sm:$0xf]  ;;  %v13661_v45 = vld [vmem:[#allocation5 + $0xf2c] sm:$0xf0]  ;;  %v10442_v51 = vor.u32 %v13597_v37, %v10441_v35  ;;  %6610 = vmatpush.bf16.msrb.mxu3 %v10714_v36  ;;  %v14616_v35 = vpack.c.b16 %v1209_v12, %v1209_v12 }
  0x9d   :  { %v10697_v43 = vld [vmem:[#allocation5 + $0xf20] sm:$0xf]  ;;  %v13561_v48 = vld [vmem:[#allocation5 + $0xc0c] sm:$0xf0]  ;;  %v10570_v52 = vor.u32 %v13629_v40, %v10569_v39  ;;  %6572 = vmatpush.bf16.msrb.mxu0 %v10314_v47 }
  0x9e   :  { %v10297_v46 = vld [vmem:[#allocation5 + $0xc00] sm:$0xf]  ;;  %v13593_v50 = vld [vmem:[#allocation5 + $0xd0c] sm:$0xf0]  ;;  %v10698_v56 = vor.u32 %v13661_v45, %v10697_v43  ;;  %6585 = vmatpush.bf16.msrb.mxu1 %v10442_v51 }
  0x9f   :  { %v10425_v49 = vld [vmem:[#allocation5 + $0xd00] sm:$0xf]  ;;  %v13625_v54 = vld [vmem:[#allocation5 + $0xe0c] sm:$0xf0]  ;;  %v10298_v63 = vor.u32 %v13561_v48, %v10297_v46  ;;  %6598 = vmatpush.bf16.msrb.mxu2 %v10570_v52 }
  0xa0   :  { %v10553_v53 = vld [vmem:[#allocation5 + $0xe00] sm:$0xf]  ;;  %v134_v55 = vld [vmem:[#allocation2 + $0x30] sm:$0xff]  ;;  %v10426_v4 = vor.u32 %v13593_v50, %v10425_v49  ;;  %6611 = vmatpush.bf16.msrb.mxu3 %v10698_v56 }
  0xa1   :  { %v10681_v57 = vld [vmem:[#allocation5 + $0xf00] sm:$0xf]  ;;  %v13657_v58 = vld [vmem:[#allocation5 + $0xf0c] sm:$0xf0]  ;;  %v1206_v3 = vunpack.c.l.b16 %v134_v55  ;;  %v10554_v5 = vor.u32 %v13625_v54, %v10553_v53  ;;  %v1207_v9 = vunpack.c.h.b16 %v134_v55  ;;  %6573 = vmatpush.bf16.msrb.mxu0 %v10298_v63 }
  0xa2   :  { %v10921_v60 = vld [vmem:[#allocation5 + $0x10e0] sm:$0xf]  ;;  %v13717_v61 = vld [vmem:[#allocation5 + $0x10ec] sm:$0xf0]  ;;  %v10682_v10 = vor.u32 %v13657_v58, %v10681_v57  ;;  %6586 = vmatpush.bf16.msrb.mxu1 %v10426_v4 }
  0xa3   :  { %v11049_v62 = vld [vmem:[#allocation5 + $0x11e0] sm:$0xf]  ;;  %v13749_v0 = vld [vmem:[#allocation5 + $0x11ec] sm:$0xf0]  ;;  %v10922_v11 = vor.u32 %v13717_v61, %v10921_v60  ;;  %v14610_v23 = vpack.c.b16 %v1206_v3, %v1206_v3  ;;  %6599 = vmatpush.bf16.msrb.mxu2 %v10554_v5  ;;  %v14614_v31 = vpack.c.b16 %v1207_v9, %v1207_v9 }
  0xa4   :  { %v11177_v1 = vld [vmem:[#allocation5 + $0x12e0] sm:$0xf]  ;;  %v13781_v2 = vld [vmem:[#allocation5 + $0x12ec] sm:$0xf0]  ;;  %v11050_v13 = vor.u32 %v13749_v0, %v11049_v62  ;;  %6612 = vmatpush.bf16.msrb.mxu3 %v10682_v10 }
  0xa5   :  { %v11305_v6 = vld [vmem:[#allocation5 + $0x13e0] sm:$0xf]  ;;  %v13813_v7 = vld [vmem:[#allocation5 + $0x13ec] sm:$0xf0]  ;;  %v11178_v14 = vor.u32 %v13781_v2, %v11177_v1  ;;  %6618 = vmatpush.bf16.msra.mxu0 %v10922_v11  ;;  %6587 = vmatmul.bf16.vlgmr.msrb.gmra.mxu1 %v14614_v31 }
  0xa6   :  { %v10905_v15 = vld [vmem:[#allocation5 + $0x10c0] sm:$0xf]  ;;  %v13713_v16 = vld [vmem:[#allocation5 + $0x10cc] sm:$0xf0]  ;;  %v11306_v21 = vor.u32 %v13813_v7, %v11305_v6  ;;  %6631 = vmatpush.bf16.msra.mxu1 %v11050_v13  ;;  %6574 = vmatmul.bf16.vlgmr.msrb.gmra.mxu0 %v14610_v23 }
  0xa7   :  { %v11033_v17 = vld [vmem:[#allocation5 + $0x11c0] sm:$0xf]  ;;  %v13745_v24 = vld [vmem:[#allocation5 + $0x11cc] sm:$0xf0]  ;;  %v10906_v36 = vor.u32 %v13713_v16, %v10905_v15  ;;  %6644 = vmatpush.bf16.msra.mxu2 %v11178_v14  ;;  %6613 = vmatmul.bf16.vlgmr.msrb.gmra.mxu3 %v14616_v35 }
  0xa8   :  { %v11161_v26 = vld [vmem:[#allocation5 + $0x12c0] sm:$0xf]  ;;  %v13777_v27 = vld [vmem:[#allocation5 + $0x12cc] sm:$0xf0]  ;;  %v11034_v37 = vor.u32 %v13745_v24, %v11033_v17  ;;  %6657 = vmatpush.bf16.msra.mxu3 %v11306_v21  ;;  %6600 = vmatmul.bf16.vlgmr.msrb.gmra.mxu2 %v14612_v28 }
  0xa9   :  { %v11289_v32 = vld [vmem:[#allocation5 + $0x13c0] sm:$0xf]  ;;  %v13809_v34 = vld [vmem:[#allocation5 + $0x13cc] sm:$0xf0]  ;;  %v11162_v39 = vor.u32 %v13777_v27, %v11161_v26  ;;  %6619 = vmatpush.bf16.msra.mxu0 %v10906_v36 }
  0xaa   :  { %v10889_v40 = vld [vmem:[#allocation5 + $0x10a0] sm:$0xf]  ;;  %v13709_v43 = vld [vmem:[#allocation5 + $0x10ac] sm:$0xf0]  ;;  %v11290_v46 = vor.u32 %v13809_v34, %v11289_v32  ;;  %6632 = vmatpush.bf16.msra.mxu1 %v11034_v37 }
  0xab   :  { %v11017_v45 = vld [vmem:[#allocation5 + $0x11a0] sm:$0xf]  ;;  %v13741_v47 = vld [vmem:[#allocation5 + $0x11ac] sm:$0xf0]  ;;  %v10890_v52 = vor.u32 %v13709_v43, %v10889_v40  ;;  %6645 = vmatpush.bf16.msra.mxu2 %v11162_v39 }
  0xac   :  { %v11145_v48 = vld [vmem:[#allocation5 + $0x12a0] sm:$0xf]  ;;  %v13773_v49 = vld [vmem:[#allocation5 + $0x12ac] sm:$0xf0]  ;;  %v11018_v53 = vor.u32 %v13741_v47, %v11017_v45  ;;  %6658 = vmatpush.bf16.msra.mxu3 %v11290_v46 }
  0xad   :  { %v11273_v50 = vld [vmem:[#allocation5 + $0x13a0] sm:$0xf]  ;;  %v13805_v51 = vld [vmem:[#allocation5 + $0x13ac] sm:$0xf0]  ;;  %v11146_v54 = vor.u32 %v13773_v49, %v11145_v48  ;;  %6620 = vmatpush.bf16.msra.mxu0 %v10890_v52 }
  0xae   :  { %v10873_v55 = vld [vmem:[#allocation5 + $0x1080] sm:$0xf]  ;;  %v13705_v56 = vld [vmem:[#allocation5 + $0x108c] sm:$0xf0]  ;;  %v11274_v58 = vor.u32 %v13805_v51, %v11273_v50  ;;  %6633 = vmatpush.bf16.msra.mxu1 %v11018_v53 }
  0xaf   :  { %v11001_v57 = vld [vmem:[#allocation5 + $0x1180] sm:$0xf]  ;;  %v13737_v59 = vld [vmem:[#allocation5 + $0x118c] sm:$0xf0]  ;;  %v10874_v0 = vor.u32 %v13705_v56, %v10873_v55  ;;  %6646 = vmatpush.bf16.msra.mxu2 %v11146_v54 }
  0xb0   :  { %v11129_v60 = vld [vmem:[#allocation5 + $0x1280] sm:$0xf]  ;;  %v13769_v61 = vld [vmem:[#allocation5 + $0x128c] sm:$0xf0]  ;;  %v11002_v1 = vor.u32 %v13737_v59, %v11001_v57  ;;  %6659 = vmatpush.bf16.msra.mxu3 %v11274_v58 }
  0xb1   :  { %v11257_v62 = vld [vmem:[#allocation5 + $0x1380] sm:$0xf]  ;;  %v13801_v63 = vld [vmem:[#allocation5 + $0x138c] sm:$0xf0]  ;;  %v11130_v2 = vor.u32 %v13769_v61, %v11129_v60  ;;  %6621 = vmatpush.bf16.msra.mxu0 %v10874_v0 }
  0xb2   :  { %v10857_v3 = vld [vmem:[#allocation5 + $0x1060] sm:$0xf]  ;;  %v13701_v4 = vld [vmem:[#allocation5 + $0x106c] sm:$0xf0]  ;;  %v11258_v6 = vor.u32 %v13801_v63, %v11257_v62  ;;  %6634 = vmatpush.bf16.msra.mxu1 %v11002_v1  ;;  %v137_v1 = vld [vmem:[#allocation2 + $0x48] sm:$0xff] }
  0xb3   :  { %v10985_v5 = vld [vmem:[#allocation5 + $0x1160] sm:$0xf]  ;;  %v13733_v7 = vld [vmem:[#allocation5 + $0x116c] sm:$0xf0]  ;;  %v10858_v12 = vor.u32 %v13701_v4, %v10857_v3  ;;  %6647 = vmatpush.bf16.msra.mxu2 %v11130_v2 }
  0xb4   :  { %v11113_v8 = vld [vmem:[#allocation5 + $0x1260] sm:$0xf]  ;;  %v13765_v9 = vld [vmem:[#allocation5 + $0x126c] sm:$0xf0]  ;;  %v10986_v13 = vor.u32 %v13733_v7, %v10985_v5  ;;  %6660 = vmatpush.bf16.msra.mxu3 %v11258_v6 }
  0xb5   :  { %v11241_v10 = vld [vmem:[#allocation5 + $0x1360] sm:$0xf]  ;;  %v13797_v11 = vld [vmem:[#allocation5 + $0x136c] sm:$0xf0]  ;;  %v11114_v14 = vor.u32 %v13765_v9, %v11113_v8  ;;  %6622 = vmatpush.bf16.msra.mxu0 %v10858_v12 }
  0xb6   :  { %v10841_v15 = vld [vmem:[#allocation5 + $0x1040] sm:$0xf]  ;;  %v13697_v16 = vld [vmem:[#allocation5 + $0x104c] sm:$0xf0]  ;;  %v11242_v21 = vor.u32 %v13797_v11, %v11241_v10  ;;  %6635 = vmatpush.bf16.msra.mxu1 %v10986_v13 }
  0xb7   :  { %v10969_v17 = vld [vmem:[#allocation5 + $0x1140] sm:$0xf]  ;;  %v13729_v24 = vld [vmem:[#allocation5 + $0x114c] sm:$0xf0]  ;;  %v10842_v36 = vor.u32 %v13697_v16, %v10841_v15  ;;  %6648 = vmatpush.bf16.msra.mxu2 %v11114_v14  ;;  %v1212_v14 = vunpack.c.l.b16 %v137_v1 }
  0xb8   :  { %v11097_v26 = vld [vmem:[#allocation5 + $0x1240] sm:$0xf]  ;;  %v13761_v27 = vld [vmem:[#allocation5 + $0x124c] sm:$0xf0]  ;;  %v10970_v37 = vor.u32 %v13729_v24, %v10969_v17  ;;  %6661 = vmatpush.bf16.msra.mxu3 %v11242_v21  ;;  %v1213_v21 = vunpack.c.h.b16 %v137_v1 }
  0xb9   :  { %v11225_v32 = vld [vmem:[#allocation5 + $0x1340] sm:$0xf]  ;;  %v13793_v34 = vld [vmem:[#allocation5 + $0x134c] sm:$0xf0]  ;;  %v11098_v39 = vor.u32 %v13761_v27, %v11097_v26  ;;  %6623 = vmatpush.bf16.msra.mxu0 %v10842_v36 }
  0xba   :  { %v10825_v40 = vld [vmem:[#allocation5 + $0x1020] sm:$0xf]  ;;  %v13693_v43 = vld [vmem:[#allocation5 + $0x102c] sm:$0xf0]  ;;  %v11226_v46 = vor.u32 %v13793_v34, %v11225_v32  ;;  %6636 = vmatpush.bf16.msra.mxu1 %v10970_v37 }
  0xbb   :  { %v10953_v45 = vld [vmem:[#allocation5 + $0x1120] sm:$0xf]  ;;  %v13725_v47 = vld [vmem:[#allocation5 + $0x112c] sm:$0xf0]  ;;  %v10826_v53 = vor.u32 %v13693_v43, %v10825_v40  ;;  %6649 = vmatpush.bf16.msra.mxu2 %v11098_v39 }
  0xbc   :  { %v11081_v48 = vld [vmem:[#allocation5 + $0x1220] sm:$0xf]  ;;  %v13757_v49 = vld [vmem:[#allocation5 + $0x122c] sm:$0xf0]  ;;  %v10954_v57 = vor.u32 %v13725_v47, %v10953_v45  ;;  %6662 = vmatpush.bf16.msra.mxu3 %v11226_v46  ;;  %v14624_v45 = vpack.c.b16 %v1212_v14, %v1212_v14 }
  0xbd   :  { %v11209_v50 = vld [vmem:[#allocation5 + $0x1320] sm:$0xf]  ;;  %v13789_v51 = vld [vmem:[#allocation5 + $0x132c] sm:$0xf0]  ;;  %v11082_v58 = vor.u32 %v13757_v49, %v11081_v48  ;;  %6624 = vmatpush.bf16.msra.mxu0 %v10826_v53  ;;  %v14628_v49 = vpack.c.b16 %v1213_v21, %v1213_v21 }
  0xbe   :  { %v10809_v52 = vld [vmem:[#allocation5 + $0x1000] sm:$0xf]  ;;  %v13689_v54 = vld [vmem:[#allocation5 + $0x100c] sm:$0xf0]  ;;  %v11210_v62 = vor.u32 %v13789_v51, %v11209_v50  ;;  %6637 = vmatpush.bf16.msra.mxu1 %v10954_v57 }
  0xbf   :  { %v10937_v55 = vld [vmem:[#allocation5 + $0x1100] sm:$0xf]  ;;  %v13721_v56 = vld [vmem:[#allocation5 + $0x110c] sm:$0xf0]  ;;  %v10810_v5 = vor.u32 %v13689_v54, %v10809_v52  ;;  %6650 = vmatpush.bf16.msra.mxu2 %v11082_v58 }
  0xc0   :  { %v11065_v59 = vld [vmem:[#allocation5 + $0x1200] sm:$0xf]  ;;  %v13753_v60 = vld [vmem:[#allocation5 + $0x120c] sm:$0xf0]  ;;  %v10938_v10 = vor.u32 %v13721_v56, %v10937_v55  ;;  %6663 = vmatpush.bf16.msra.mxu3 %v11210_v62 }
  0xc1   :  { %v136_v61 = vld [vmem:[#allocation2 + $0x40] sm:$0xff]  ;;  %v13785_v0 = vld [vmem:[#allocation5 + $0x130c] sm:$0xf0]  ;;  %v11066_v11 = vor.u32 %v13753_v60, %v11065_v59  ;;  %6625 = vmatpush.bf16.msra.mxu0 %v10810_v5 }
  0xc2   :  { %v11193_v63 = vld [vmem:[#allocation5 + $0x1300] sm:$0xf]  ;;  %v13845_v3 = vld [vmem:[#allocation5 + $0x14ec] sm:$0xf0]  ;;  %v1210_v9 = vunpack.c.l.b16 %v136_v61  ;;  %v1211_v15 = vunpack.c.h.b16 %v136_v61  ;;  %6638 = vmatpush.bf16.msra.mxu1 %v10938_v10 }
  0xc3   :  { %v11433_v2 = vld [vmem:[#allocation5 + $0x14e0] sm:$0xf]  ;;  %v13877_v6 = vld [vmem:[#allocation5 + $0x15ec] sm:$0xf0]  ;;  %v11194_v16 = vor.u32 %v13785_v0, %v11193_v63  ;;  %6651 = vmatpush.bf16.msra.mxu2 %v11066_v11 }
  0xc4   :  { %v11561_v4 = vld [vmem:[#allocation5 + $0x15e0] sm:$0xf]  ;;  %v13909_v8 = vld [vmem:[#allocation5 + $0x16ec] sm:$0xf0]  ;;  %v11434_v17 = vor.u32 %v13845_v3, %v11433_v2  ;;  %v14622_v37 = vpack.c.b16 %v1210_v9, %v1210_v9  ;;  %v14626_v46 = vpack.c.b16 %v1211_v15, %v1211_v15 }
  0xc5   :  { %v11689_v7 = vld [vmem:[#allocation5 + $0x16e0] sm:$0xf]  ;;  %v13941_v13 = vld [vmem:[#allocation5 + $0x17ec] sm:$0xf0]  ;;  %v11562_v24 = vor.u32 %v13877_v6, %v11561_v4  ;;  %6664 = vmatpush.bf16.msra.mxu3 %v11194_v16 }
  0xc6   :  { %v11817_v12 = vld [vmem:[#allocation5 + $0x17e0] sm:$0xf]  ;;  %v11690_v26 = vor.u32 %v13909_v8, %v11689_v7  ;;  %v13841_v32 = vld [vmem:[#allocation5 + $0x14cc] sm:$0xf0]  ;;  %6670 = vmatpush.bf16.msrb.mxu0 %v11434_v17  ;;  %6652 = vmatmul.bf16.vlgmr.msra.gmra.mxu2 %v14624_v45 }
  0xc7   :  { %v11417_v27 = vld [vmem:[#allocation5 + $0x14c0] sm:$0xf]  ;;  %v11818_v36 = vor.u32 %v13941_v13, %v11817_v12  ;;  %v13873_v39 = vld [vmem:[#allocation5 + $0x15cc] sm:$0xf0]  ;;  %6683 = vmatpush.bf16.msrb.mxu1 %v11562_v24  ;;  %6626 = vmatmul.bf16.vlgmr.msra.gmra.mxu0 %v14622_v37 }
  0xc8   :  { %v11545_v34 = vld [vmem:[#allocation5 + $0x15c0] sm:$0xf]  ;;  %v13905_v43 = vld [vmem:[#allocation5 + $0x16cc] sm:$0xf0]  ;;  %v11418_v50 = vor.u32 %v13841_v32, %v11417_v27  ;;  %6696 = vmatpush.bf16.msrb.mxu2 %v11690_v26  ;;  %6639 = vmatmul.bf16.vlgmr.msra.gmra.mxu1 %v14626_v46 }
  0xc9   :  { %v11673_v40 = vld [vmem:[#allocation5 + $0x16c0] sm:$0xf]  ;;  %v13937_v48 = vld [vmem:[#allocation5 + $0x17cc] sm:$0xf0]  ;;  %v11546_v51 = vor.u32 %v13873_v39, %v11545_v34  ;;  %6709 = vmatpush.bf16.msrb.mxu3 %v11818_v36 }
  0xca   :  { %v11801_v47 = vld [vmem:[#allocation5 + $0x17c0] sm:$0xf]  ;;  %v11674_v52 = vor.u32 %v13905_v43, %v11673_v40  ;;  %v13837_v54 = vld [vmem:[#allocation5 + $0x14ac] sm:$0xf0]  ;;  %6665 = vmatmul.bf16.vlgmr.msra.gmra.mxu3 %v14628_v49  ;;  %6671 = vmatpush.bf16.msrb.mxu0 %v11418_v50 }
  0xcb   :  { %v11401_v53 = vld [vmem:[#allocation5 + $0x14a0] sm:$0xf]  ;;  %v11802_v56 = vor.u32 %v13937_v48, %v11801_v47  ;;  %v13869_v57 = vld [vmem:[#allocation5 + $0x15ac] sm:$0xf0]  ;;  %6684 = vmatpush.bf16.msrb.mxu1 %v11546_v51 }
  0xcc   :  { %v11529_v55 = vld [vmem:[#allocation5 + $0x15a0] sm:$0xf]  ;;  %v13901_v59 = vld [vmem:[#allocation5 + $0x16ac] sm:$0xf0]  ;;  %v11402_v62 = vor.u32 %v13837_v54, %v11401_v53  ;;  %6697 = vmatpush.bf16.msrb.mxu2 %v11674_v52 }
  0xcd   :  { %v11657_v58 = vld [vmem:[#allocation5 + $0x16a0] sm:$0xf]  ;;  %v13933_v61 = vld [vmem:[#allocation5 + $0x17ac] sm:$0xf0]  ;;  %v11530_v63 = vor.u32 %v13869_v57, %v11529_v55  ;;  %6710 = vmatpush.bf16.msrb.mxu3 %v11802_v56 }
  0xce   :  { %v11785_v60 = vld [vmem:[#allocation5 + $0x17a0] sm:$0xf]  ;;  %v11658_v0 = vor.u32 %v13901_v59, %v11657_v58  ;;  %v13833_v2 = vld [vmem:[#allocation5 + $0x148c] sm:$0xf0]  ;;  %6672 = vmatpush.bf16.msrb.mxu0 %v11402_v62  ;;  %v6419_v57 = vpop.f32.mrf.mxu0 }
  0xcf   :  { %v11385_v1 = vld [vmem:[#allocation5 + $0x1480] sm:$0xf]  ;;  %v11786_v4 = vor.u32 %v13933_v61, %v11785_v60  ;;  %v13865_v5 = vld [vmem:[#allocation5 + $0x158c] sm:$0xf0]  ;;  %6685 = vmatpush.bf16.msrb.mxu1 %v11530_v63 }
  0xd0   :  { %v11513_v3 = vld [vmem:[#allocation5 + $0x1580] sm:$0xf]  ;;  %v13897_v7 = vld [vmem:[#allocation5 + $0x168c] sm:$0xf0]  ;;  %v11386_v10 = vor.u32 %v13833_v2, %v11385_v1  ;;  %6698 = vmatpush.bf16.msrb.mxu2 %v11658_v0  ;;  %v6432_v0 = vpop.f32.mrf.mxu1 }
  0xd1   :  { %v11641_v6 = vld [vmem:[#allocation5 + $0x1680] sm:$0xf]  ;;  %v13929_v9 = vld [vmem:[#allocation5 + $0x178c] sm:$0xf0]  ;;  %v11514_v12 = vor.u32 %v13865_v5, %v11513_v3  ;;  %6711 = vmatpush.bf16.msrb.mxu3 %v11786_v4 }
  0xd2   :  { %v11769_v8 = vld [vmem:[#allocation5 + $0x1780] sm:$0xf]  ;;  %v11642_v13 = vor.u32 %v13897_v7, %v11641_v6  ;;  %v13829_v14 = vld [vmem:[#allocation5 + $0x146c] sm:$0xf0]  ;;  %6673 = vmatpush.bf16.msrb.mxu0 %v11386_v10 }
  0xd3   :  { %v11369_v11 = vld [vmem:[#allocation5 + $0x1460] sm:$0xf]  ;;  %v13861_v16 = vld [vmem:[#allocation5 + $0x156c] sm:$0xf0]  ;;  %v11770_v17 = vor.u32 %v13929_v9, %v11769_v8  ;;  %6686 = vmatpush.bf16.msrb.mxu1 %v11514_v12 }
  0xd4   :  { %v11497_v15 = vld [vmem:[#allocation5 + $0x1560] sm:$0xf]  ;;  %v13893_v24 = vld [vmem:[#allocation5 + $0x166c] sm:$0xf0]  ;;  %v11370_v34 = vor.u32 %v13829_v14, %v11369_v11  ;;  %6699 = vmatpush.bf16.msrb.mxu2 %v11642_v13 }
  0xd5   :  { %v11625_v21 = vld [vmem:[#allocation5 + $0x1660] sm:$0xf]  ;;  %v13925_v32 = vld [vmem:[#allocation5 + $0x176c] sm:$0xf0]  ;;  %v11498_v39 = vor.u32 %v13861_v16, %v11497_v15  ;;  %6712 = vmatpush.bf16.msrb.mxu3 %v11770_v17 }
  0xd6   :  { %v1168_v26 = vld [vmem:[#allocation7] sm:$0xf]  ;;  %v11626_v40 = vor.u32 %v13893_v24, %v11625_v21  ;;  %v13825_v43 = vld [vmem:[#allocation5 + $0x144c] sm:$0xf0]  ;;  %6674 = vmatpush.bf16.msrb.mxu0 %v11370_v34  ;;  %v6445_v21 = vpop.f32.mrf.mxu2 }
  0xd7   :  { %v11753_v27 = vld [vmem:[#allocation5 + $0x1760] sm:$0xf]  ;;  %v1170_v48 = vperm.slane %v1168_v26, 0  ;;  %v13857_v51 = vld [vmem:[#allocation5 + $0x154c] sm:$0xf0]  ;;  %6687 = vmatpush.bf16.msrb.mxu1 %v11498_v39 }
  0xd8   :  { %v11353_v36 = vld [vmem:[#allocation5 + $0x1440] sm:$0xf]  ;;  %v11754_v50 = vor.u32 %v13925_v32, %v11753_v27  ;;  %v13889_v53 = vld [vmem:[#allocation5 + $0x164c] sm:$0xf0]  ;;  %6700 = vmatpush.bf16.msrb.mxu2 %v11626_v40  ;;  %v139_v32 = vld [vmem:[#allocation2 + $0x58] sm:$0xff] }
  0xd9   :  { %v11481_v47 = vld [vmem:[#allocation5 + $0x1540] sm:$0xf]  ;;  %v13921_v55 = vld [vmem:[#allocation5 + $0x174c] sm:$0xf0]  ;;  %v11354_v56 = vor.u32 %v13825_v43, %v11353_v36  ;;  %v6420_v63 = vadd.f32 %v6419_v57, %v1170_v48  ;;  %v6458_v36 = vpop.f32.mrf.mxu3 }
  0xda   :  { %v11609_v52 = vld [vmem:[#allocation5 + $0x1640] sm:$0xf]  ;;  %v11482_v58 = vor.u32 %v13857_v51, %v11481_v47  ;;  %v13821_v61 = vld [vmem:[#allocation5 + $0x142c] sm:$0xf0]  ;;  %6713 = vmatpush.bf16.msrb.mxu3 %v11754_v50 }
  0xdb   :  { %v11737_v54 = vld [vmem:[#allocation5 + $0x1740] sm:$0xf]  ;;  %v11610_v59 = vor.u32 %v13889_v53, %v11609_v52  ;;  %v13853_v2 = vld [vmem:[#allocation5 + $0x152c] sm:$0xf0]  ;;  %v6433_v8 = vadd.f32 %v6432_v0, %v6420_v63  ;;  %6675 = vmatpush.bf16.msrb.mxu0 %v11354_v56  ;;  %v1217_v0 = vunpack.c.h.b16 %v139_v32 }
  0xdc   :  { %v11337_v60 = vld [vmem:[#allocation5 + $0x1420] sm:$0xf]  ;;  %v11738_v1 = vor.u32 %v13921_v55, %v11737_v54  ;;  %v13885_v4 = vld [vmem:[#allocation5 + $0x162c] sm:$0xf0]  ;;  %6688 = vmatpush.bf16.msrb.mxu1 %v11482_v58  ;;  %v6421_v54 = vpop.f32.mrf.mxu0 }
  0xdd   :  { %v11465_v62 = vld [vmem:[#allocation5 + $0x1520] sm:$0xf]  ;;  %v13917_v6 = vld [vmem:[#allocation5 + $0x172c] sm:$0xf0]  ;;  %v11338_v9 = vor.u32 %v13821_v61, %v11337_v60  ;;  %6701 = vmatpush.bf16.msrb.mxu2 %v11610_v59  ;;  %v6446_v34 = vadd.f32 %v6445_v21, %v6433_v8  ;;  %v1216_v59 = vunpack.c.l.b16 %v139_v32  ;;  %v6434_v61 = vpop.f32.mrf.mxu1 }
  0xde   :  { %v11593_v3 = vld [vmem:[#allocation5 + $0x1620] sm:$0xf]  ;;  %v13817_v10 = vld [vmem:[#allocation5 + $0x140c] sm:$0xf0]  ;;  %v11466_v13 = vor.u32 %v13853_v2, %v11465_v62  ;;  %6714 = vmatpush.bf16.msrb.mxu3 %v11738_v1 }
  0xdf   :  { %v11721_v5 = vld [vmem:[#allocation5 + $0x1720] sm:$0xf]  ;;  %v13849_v12 = vld [vmem:[#allocation5 + $0x150c] sm:$0xf0]  ;;  %v11594_v14 = vor.u32 %v13885_v4, %v11593_v3  ;;  %6676 = vmatpush.bf16.msrb.mxu0 %v11338_v9  ;;  %v14634_v53 = vadd.f32 %v6458_v36, %v6446_v34 }
  0xe0   :  { %v11321_v7 = vld [vmem:[#allocation5 + $0x1400] sm:$0xf]  ;;  %v13881_v16 = vld [vmem:[#allocation5 + $0x160c] sm:$0xf0]  ;;  %v11722_v24 = vor.u32 %v13917_v6, %v11721_v5  ;;  %6689 = vmatpush.bf16.msrb.mxu1 %v11466_v13 }
  0xe1   :  { %v11449_v11 = vld [vmem:[#allocation5 + $0x1500] sm:$0xf]  ;;  %v138_v17 = vld [vmem:[#allocation2 + $0x50] sm:$0xff]  ;;  %v11322_v47 = vor.u32 %v13817_v10, %v11321_v7  ;;  %6702 = vmatpush.bf16.msrb.mxu2 %v11594_v14  ;;  %v6460_v21 = vpop.f32.mrf.mxu3 }
  0xe2   :  { %v11577_v15 = vld [vmem:[#allocation5 + $0x1600] sm:$0xf]  ;;  %v13913_v27 = vld [vmem:[#allocation5 + $0x170c] sm:$0xf0]  ;;  %v1214_v52 = vunpack.c.l.b16 %v138_v17  ;;  %v11450_v55 = vor.u32 %v13849_v12, %v11449_v11  ;;  %v1215_v60 = vunpack.c.h.b16 %v138_v17  ;;  %6715 = vmatpush.bf16.msrb.mxu3 %v11722_v24  ;;  %v14638_v11 = vpack.c.b16 %v1216_v59, %v1216_v59 }
  0xe3   :  { %v11705_v26 = vld [vmem:[#allocation5 + $0x1700] sm:$0xf]  ;;  %v13973_v40 = vld [vmem:[#allocation5 + $0x18ec] sm:$0xf0]  ;;  %v11578_v56 = vor.u32 %v13881_v16, %v11577_v15  ;;  %6677 = vmatpush.bf16.msrb.mxu0 %v11322_v47  ;;  %v6447_v15 = vpop.f32.mrf.mxu2  ;;  %v14642_v16 = vpack.c.b16 %v1217_v0, %v1217_v0 }
  0xe4   :  { %v11945_v39 = vld [vmem:[#allocation5 + $0x18e0] sm:$0xf]  ;;  %v14005_v48 = vld [vmem:[#allocation5 + $0x19ec] sm:$0xf0]  ;;  %v11706_v62 = vor.u32 %v13913_v27, %v11705_v26  ;;  %v14636_v7 = vpack.c.b16 %v1214_v52, %v1214_v52  ;;  %6690 = vmatpush.bf16.msrb.mxu1 %v11450_v55  ;;  %v14640_v12 = vpack.c.b16 %v1215_v60, %v1215_v60  ;;  %v6471_v0 = vpop.f32.mrf.mxu0 }
  0xe5   :  { %v12073_v43 = vld [vmem:[#allocation5 + $0x19e0] sm:$0xf]  ;;  %v14037_v51 = vld [vmem:[#allocation5 + $0x1aec] sm:$0xf0]  ;;  %v11946_v63 = vor.u32 %v13973_v40, %v11945_v39  ;;  %6703 = vmatpush.bf16.msrb.mxu2 %v11578_v56 }
  0xe6   :  { %v12201_v50 = vld [vmem:[#allocation5 + $0x1ae0] sm:$0xf]  ;;  %v14069_v58 = vld [vmem:[#allocation5 + $0x1bec] sm:$0xf0]  ;;  %v12074_v1 = vor.u32 %v14005_v48, %v12073_v43  ;;  %6716 = vmatpush.bf16.msrb.mxu3 %v11706_v62  ;;  %6678 = vmatmul.bf16.vlgmr.msrb.gmra.mxu0 %v14636_v7 }
  0xe7   :  { %v12329_v57 = vld [vmem:[#allocation5 + $0x1be0] sm:$0xf]  ;;  %v12202_v2 = vor.u32 %v14037_v51, %v12201_v50  ;;  %v13969_v4 = vld [vmem:[#allocation5 + $0x18cc] sm:$0xf0]  ;;  %6722 = vmatpush.bf16.msra.mxu0 %v11946_v63  ;;  %6691 = vmatmul.bf16.vlgmr.msrb.gmra.mxu1 %v14640_v12 }
  0xe8   :  { %v11929_v3 = vld [vmem:[#allocation5 + $0x18c0] sm:$0xf]  ;;  %v12330_v6 = vor.u32 %v14069_v58, %v12329_v57  ;;  %v14001_v8 = vld [vmem:[#allocation5 + $0x19cc] sm:$0xf0]  ;;  %6735 = vmatpush.bf16.msra.mxu1 %v12074_v1  ;;  %6704 = vmatmul.bf16.vlgmr.msrb.gmra.mxu2 %v14638_v11 }
  0xe9   :  { %v12057_v5 = vld [vmem:[#allocation5 + $0x19c0] sm:$0xf]  ;;  %v14033_v10 = vld [vmem:[#allocation5 + $0x1acc] sm:$0xf0]  ;;  %v11930_v17 = vor.u32 %v13969_v4, %v11929_v3  ;;  %6748 = vmatpush.bf16.msra.mxu2 %v12202_v2  ;;  %6717 = vmatmul.bf16.vlgmr.msrb.gmra.mxu3 %v14642_v16 }
  0xea   :  { %v12185_v9 = vld [vmem:[#allocation5 + $0x1ac0] sm:$0xf]  ;;  %v14065_v14 = vld [vmem:[#allocation5 + $0x1bcc] sm:$0xf0]  ;;  %v12058_v24 = vor.u32 %v14001_v8, %v12057_v5  ;;  %6761 = vmatpush.bf16.msra.mxu3 %v12330_v6  ;;  %v6472_v6 = vadd.f32 %v6471_v0, %v14634_v53  ;;  %v6484_v8 = vpop.f32.mrf.mxu1 }
  0xeb   :  { %v12313_v13 = vld [vmem:[#allocation5 + $0x1bc0] sm:$0xf]  ;;  %v12186_v26 = vor.u32 %v14033_v10, %v12185_v9  ;;  %v13965_v32 = vld [vmem:[#allocation5 + $0x18ac] sm:$0xf0]  ;;  %6723 = vmatpush.bf16.msra.mxu0 %v11930_v17 }
  0xec   :  { %v11913_v27 = vld [vmem:[#allocation5 + $0x18a0] sm:$0xf]  ;;  %v12314_v36 = vor.u32 %v14065_v14, %v12313_v13  ;;  %v13997_v39 = vld [vmem:[#allocation5 + $0x19ac] sm:$0xf0]  ;;  %6736 = vmatpush.bf16.msra.mxu1 %v12058_v24  ;;  %v6485_v21 = vadd.f32 %v6484_v8, %v6472_v6 }
  0xed   :  { %v12041_v34 = vld [vmem:[#allocation5 + $0x19a0] sm:$0xf]  ;;  %v14029_v43 = vld [vmem:[#allocation5 + $0x1aac] sm:$0xf0]  ;;  %v11914_v50 = vor.u32 %v13965_v32, %v11913_v27  ;;  %6749 = vmatpush.bf16.msra.mxu2 %v12186_v26 }
  0xee   :  { %v12169_v40 = vld [vmem:[#allocation5 + $0x1aa0] sm:$0xf]  ;;  %v14061_v48 = vld [vmem:[#allocation5 + $0x1bac] sm:$0xf0]  ;;  %v12042_v51 = vor.u32 %v13997_v39, %v12041_v34  ;;  %6762 = vmatpush.bf16.msra.mxu3 %v12314_v36  ;;  %v6497_v39 = vpop.f32.mrf.mxu2 }
  0xef   :  { %v12297_v47 = vld [vmem:[#allocation5 + $0x1ba0] sm:$0xf]  ;;  %v12170_v52 = vor.u32 %v14029_v43, %v12169_v40  ;;  %v13961_v55 = vld [vmem:[#allocation5 + $0x188c] sm:$0xf0]  ;;  %6724 = vmatpush.bf16.msra.mxu0 %v11914_v50  ;;  %v6510_v50 = vpop.f32.mrf.mxu3 }
  0xf0   :  { %v11897_v54 = vld [vmem:[#allocation5 + $0x1880] sm:$0xf]  ;;  %v12298_v57 = vor.u32 %v14061_v48, %v12297_v47  ;;  %v13993_v58 = vld [vmem:[#allocation5 + $0x198c] sm:$0xf0]  ;;  %6737 = vmatpush.bf16.msra.mxu1 %v12042_v51  ;;  %v6498_v48 = vadd.f32 %v6497_v39, %v6485_v21 }
  0xf1   :  { %v12025_v56 = vld [vmem:[#allocation5 + $0x1980] sm:$0xf]  ;;  %v14025_v60 = vld [vmem:[#allocation5 + $0x1a8c] sm:$0xf0]  ;;  %v11898_v63 = vor.u32 %v13961_v55, %v11897_v54  ;;  %6750 = vmatpush.bf16.msra.mxu2 %v12170_v52 }
  0xf2   :  { %v12153_v59 = vld [vmem:[#allocation5 + $0x1a80] sm:$0xf]  ;;  %v14057_v62 = vld [vmem:[#allocation5 + $0x1b8c] sm:$0xf0]  ;;  %v12026_v1 = vor.u32 %v13993_v58, %v12025_v56  ;;  %6763 = vmatpush.bf16.msra.mxu3 %v12298_v57  ;;  %v14649_v55 = vadd.f32 %v6510_v50, %v6498_v48  ;;  %v6473_v56 = vpop.f32.mrf.mxu0 }
  0xf3   :  { %v12281_v61 = vld [vmem:[#allocation5 + $0x1b80] sm:$0xf]  ;;  %v12154_v2 = vor.u32 %v14025_v60, %v12153_v59  ;;  %v13957_v4 = vld [vmem:[#allocation5 + $0x186c] sm:$0xf0]  ;;  %6725 = vmatpush.bf16.msra.mxu0 %v11898_v63 }
  0xf4   :  { %v11881_v3 = vld [vmem:[#allocation5 + $0x1860] sm:$0xf]  ;;  %v12282_v9 = vor.u32 %v14057_v62, %v12281_v61  ;;  %v13989_v10 = vld [vmem:[#allocation5 + $0x196c] sm:$0xf0]  ;;  %6738 = vmatpush.bf16.msra.mxu1 %v12026_v1  ;;  %v6486_v62 = vpop.f32.mrf.mxu1 }
  0xf5   :  { %v12009_v5 = vld [vmem:[#allocation5 + $0x1960] sm:$0xf]  ;;  %v14021_v14 = vld [vmem:[#allocation5 + $0x1a6c] sm:$0xf0]  ;;  %v11882_v24 = vor.u32 %v13957_v4, %v11881_v3  ;;  %6751 = vmatpush.bf16.msra.mxu2 %v12154_v2 }
  0xf6   :  { %v12137_v13 = vld [vmem:[#allocation5 + $0x1a60] sm:$0xf]  ;;  %v14053_v17 = vld [vmem:[#allocation5 + $0x1b6c] sm:$0xf0]  ;;  %v12010_v26 = vor.u32 %v13989_v10, %v12009_v5  ;;  %6764 = vmatpush.bf16.msra.mxu3 %v12282_v9 }
  0xf7   :  { %v12265_v15 = vld [vmem:[#allocation5 + $0x1b60] sm:$0xf]  ;;  %v12138_v27 = vor.u32 %v14021_v14, %v12137_v13  ;;  %v13953_v34 = vld [vmem:[#allocation5 + $0x184c] sm:$0xf0]  ;;  %6726 = vmatpush.bf16.msra.mxu0 %v11882_v24  ;;  %v6499_v24 = vpop.f32.mrf.mxu2 }
  0xf8   :  { %v11865_v32 = vld [vmem:[#allocation5 + $0x1840] sm:$0xf]  ;;  %v12266_v53 = vor.u32 %v14053_v17, %v12265_v15  ;;  %v13985_v40 = vld [vmem:[#allocation5 + $0x194c] sm:$0xf0]  ;;  %6739 = vmatpush.bf16.msra.mxu1 %v12010_v26 }
  0xf9   :  { %v11993_v36 = vld [vmem:[#allocation5 + $0x1940] sm:$0xf]  ;;  %v14017_v47 = vld [vmem:[#allocation5 + $0x1a4c] sm:$0xf0]  ;;  %v11866_v54 = vor.u32 %v13953_v34, %v11865_v32  ;;  %6752 = vmatpush.bf16.msra.mxu2 %v12138_v27  ;;  %v141_v34 = vld [vmem:[#allocation2 + $0x68] sm:$0xff] }
  0xfa   :  { %v12121_v43 = vld [vmem:[#allocation5 + $0x1a40] sm:$0xf]  ;;  %v14049_v52 = vld [vmem:[#allocation5 + $0x1b4c] sm:$0xf0]  ;;  %v11994_v57 = vor.u32 %v13985_v40, %v11993_v36  ;;  %6765 = vmatpush.bf16.msra.mxu3 %v12266_v53  ;;  %v6512_v36 = vpop.f32.mrf.mxu3  ;;  %v1221_v62 = vunpack.c.h.b16 %v141_v34 }
  0xfb   :  { %v12249_v51 = vld [vmem:[#allocation5 + $0x1b40] sm:$0xf]  ;;  %v12122_v58 = vor.u32 %v14017_v47, %v12121_v43  ;;  %v13949_v60 = vld [vmem:[#allocation5 + $0x182c] sm:$0xf0]  ;;  %6727 = vmatpush.bf16.msra.mxu0 %v11866_v54 }
  0xfc   :  { %v11849_v59 = vld [vmem:[#allocation5 + $0x1820] sm:$0xf]  ;;  %v12250_v63 = vor.u32 %v14049_v52, %v12249_v51  ;;  %v13981_v0 = vld [vmem:[#allocation5 + $0x192c] sm:$0xf0]  ;;  %6740 = vmatpush.bf16.msra.mxu1 %v11994_v57 }
  0xfd   :  { %v11977_v61 = vld [vmem:[#allocation5 + $0x1920] sm:$0xf]  ;;  %v14013_v2 = vld [vmem:[#allocation5 + $0x1a2c] sm:$0xf0]  ;;  %v11850_v6 = vor.u32 %v13949_v60, %v11849_v59  ;;  %6753 = vmatpush.bf16.msra.mxu2 %v12122_v58  ;;  %v1220_v58 = vunpack.c.l.b16 %v141_v34 }
  0xfe   :  { %v12105_v1 = vld [vmem:[#allocation5 + $0x1a20] sm:$0xf]  ;;  %v14045_v4 = vld [vmem:[#allocation5 + $0x1b2c] sm:$0xf0]  ;;  %v11978_v13 = vor.u32 %v13981_v0, %v11977_v61  ;;  %6766 = vmatpush.bf16.msra.mxu3 %v12250_v63 }
  0xff   :  { %v12233_v3 = vld [vmem:[#allocation5 + $0x1b20] sm:$0xf]  ;;  %v13945_v8 = vld [vmem:[#allocation5 + $0x180c] sm:$0xf0]  ;;  %v12106_v14 = vor.u32 %v14013_v2, %v12105_v1  ;;  %6728 = vmatpush.bf16.msra.mxu0 %v11850_v6 }
 0x100   :  { %v11833_v5 = vld [vmem:[#allocation5 + $0x1800] sm:$0xf]  ;;  %v13977_v10 = vld [vmem:[#allocation5 + $0x190c] sm:$0xf0]  ;;  %v12234_v26 = vor.u32 %v14045_v4, %v12233_v3  ;;  %6741 = vmatpush.bf16.msra.mxu1 %v11978_v13 }
 0x101   :  { %v11961_v9 = vld [vmem:[#allocation5 + $0x1900] sm:$0xf]  ;;  %v14009_v17 = vld [vmem:[#allocation5 + $0x1a0c] sm:$0xf0]  ;;  %v11834_v43 = vor.u32 %v13945_v8, %v11833_v5  ;;  %6754 = vmatpush.bf16.msra.mxu2 %v12106_v14 }
 0x102   :  { %v12089_v15 = vld [vmem:[#allocation5 + $0x1a00] sm:$0xf]  ;;  %v14041_v32 = vld [vmem:[#allocation5 + $0x1b0c] sm:$0xf0]  ;;  %v11962_v52 = vor.u32 %v13977_v10, %v11961_v9  ;;  %6767 = vmatpush.bf16.msra.mxu3 %v12234_v26  ;;  %v14653_v10 = vpack.c.b16 %v1220_v58, %v1220_v58 }
 0x103   :  { %v140_v21 = vld [vmem:[#allocation2 + $0x60] sm:$0xff]  ;;  %v14101_v53 = vld [vmem:[#allocation5 + $0x1cec] sm:$0xf0]  ;;  %v12090_v54 = vor.u32 %v14009_v17, %v12089_v15  ;;  %6729 = vmatpush.bf16.msra.mxu0 %v11834_v43  ;;  %v14657_v17 = vpack.c.b16 %v1221_v62, %v1221_v62 }
 0x104   :  { %v12217_v27 = vld [vmem:[#allocation5 + $0x1b00] sm:$0xf]  ;;  %v14133_v47 = vld [vmem:[#allocation5 + $0x1dec] sm:$0xf0]  ;;  %v1218_v51 = vunpack.c.l.b16 %v140_v21  ;;  %v1219_v59 = vunpack.c.h.b16 %v140_v21  ;;  %6742 = vmatpush.bf16.msra.mxu1 %v11962_v52 }
 0x105   :  { %v12457_v39 = vld [vmem:[#allocation5 + $0x1ce0] sm:$0xf]  ;;  %v14165_v50 = vld [vmem:[#allocation5 + $0x1eec] sm:$0xf0]  ;;  %v12218_v60 = vor.u32 %v14041_v32, %v12217_v27  ;;  %6755 = vmatpush.bf16.msra.mxu2 %v12090_v54 }
 0x106   :  { %v12585_v40 = vld [vmem:[#allocation5 + $0x1de0] sm:$0xf]  ;;  %v14197_v57 = vld [vmem:[#allocation5 + $0x1fec] sm:$0xf0]  ;;  %v12458_v61 = vor.u32 %v14101_v53, %v12457_v39  ;;  %v14651_v5 = vpack.c.b16 %v1218_v51, %v1218_v51  ;;  %v14655_v13 = vpack.c.b16 %v1219_v59, %v1219_v59 }
 0x107   :  { %v12713_v48 = vld [vmem:[#allocation5 + $0x1ee0] sm:$0xf]  ;;  %v12586_v63 = vor.u32 %v14133_v47, %v12585_v40  ;;  %v14097_v2 = vld [vmem:[#allocation5 + $0x1ccc] sm:$0xf0]  ;;  %6768 = vmatpush.bf16.msra.mxu3 %v12218_v60 }
 0x108   :  { %v12841_v56 = vld [vmem:[#allocation5 + $0x1fe0] sm:$0xf]  ;;  %v12714_v0 = vor.u32 %v14165_v50, %v12713_v48  ;;  %v14129_v6 = vld [vmem:[#allocation5 + $0x1dcc] sm:$0xf0]  ;;  %6774 = vmatpush.bf16.msrb.mxu0 %v12458_v61  ;;  %6756 = vmatmul.bf16.vlgmr.msra.gmra.mxu2 %v14653_v10  ;;  %v6523_v61 = vpop.f32.mrf.mxu0 }
 0x109   :  { %v12441_v1 = vld [vmem:[#allocation5 + $0x1cc0] sm:$0xf]  ;;  %v12842_v4 = vor.u32 %v14197_v57, %v12841_v56  ;;  %v14161_v9 = vld [vmem:[#allocation5 + $0x1ecc] sm:$0xf0]  ;;  %6787 = vmatpush.bf16.msrb.mxu1 %v12586_v63  ;;  %6730 = vmatmul.bf16.vlgmr.msra.gmra.mxu0 %v14651_v5 }
 0x10a   :  { %v12569_v3 = vld [vmem:[#allocation5 + $0x1dc0] sm:$0xf]  ;;  %v14193_v15 = vld [vmem:[#allocation5 + $0x1fcc] sm:$0xf0]  ;;  %v12442_v21 = vor.u32 %v14097_v2, %v12441_v1  ;;  %6800 = vmatpush.bf16.msrb.mxu2 %v12714_v0  ;;  %6743 = vmatmul.bf16.vlgmr.msra.gmra.mxu1 %v14655_v13  ;;  %v6524_v0 = vadd.f32 %v6523_v61, %v14649_v55  ;;  %v6536_v2 = vpop.f32.mrf.mxu1 }
 0x10b   :  { %v12697_v8 = vld [vmem:[#allocation5 + $0x1ec0] sm:$0xf]  ;;  %v12570_v24 = vor.u32 %v14129_v6, %v12569_v3  ;;  %v14093_v32 = vld [vmem:[#allocation5 + $0x1cac] sm:$0xf0]  ;;  %6813 = vmatpush.bf16.msrb.mxu3 %v12842_v4 }
 0x10c   :  { %v12825_v14 = vld [vmem:[#allocation5 + $0x1fc0] sm:$0xf]  ;;  %v12698_v26 = vor.u32 %v14161_v9, %v12697_v8  ;;  %v14125_v39 = vld [vmem:[#allocation5 + $0x1dac] sm:$0xf0]  ;;  %6769 = vmatmul.bf16.vlgmr.msra.gmra.mxu3 %v14657_v17  ;;  %6775 = vmatpush.bf16.msrb.mxu0 %v12442_v21 }
 0x10d   :  { %v12425_v27 = vld [vmem:[#allocation5 + $0x1ca0] sm:$0xf]  ;;  %v12826_v36 = vor.u32 %v14193_v15, %v12825_v14  ;;  %v14157_v40 = vld [vmem:[#allocation5 + $0x1eac] sm:$0xf0]  ;;  %6788 = vmatpush.bf16.msrb.mxu1 %v12570_v24  ;;  %v6537_v15 = vadd.f32 %v6536_v2, %v6524_v0 }
 0x10e   :  { %v12553_v34 = vld [vmem:[#allocation5 + $0x1da0] sm:$0xf]  ;;  %v14189_v47 = vld [vmem:[#allocation5 + $0x1fac] sm:$0xf0]  ;;  %v12426_v48 = vor.u32 %v14093_v32, %v12425_v27  ;;  %6801 = vmatpush.bf16.msrb.mxu2 %v12698_v26 }
 0x10f   :  { %v12681_v53 = vld [vmem:[#allocation5 + $0x1ea0] sm:$0xf]  ;;  %v12554_v50 = vor.u32 %v14125_v39, %v12553_v34  ;;  %v14089_v54 = vld [vmem:[#allocation5 + $0x1c8c] sm:$0xf0]  ;;  %6814 = vmatpush.bf16.msrb.mxu3 %v12826_v36 }
 0x110   :  { %v12809_v43 = vld [vmem:[#allocation5 + $0x1fa0] sm:$0xf]  ;;  %v12682_v51 = vor.u32 %v14157_v40, %v12681_v53  ;;  %v14121_v58 = vld [vmem:[#allocation5 + $0x1d8c] sm:$0xf0]  ;;  %6776 = vmatpush.bf16.msrb.mxu0 %v12426_v48 }
 0x111   :  { %v12409_v52 = vld [vmem:[#allocation5 + $0x1c80] sm:$0xf]  ;;  %v12810_v57 = vor.u32 %v14189_v47, %v12809_v43  ;;  %v14153_v60 = vld [vmem:[#allocation5 + $0x1e8c] sm:$0xf0]  ;;  %6789 = vmatpush.bf16.msrb.mxu1 %v12554_v50  ;;  %v6549_v47 = vpop.f32.mrf.mxu2 }
 0x112   :  { %v12537_v56 = vld [vmem:[#allocation5 + $0x1d80] sm:$0xf]  ;;  %v14185_v63 = vld [vmem:[#allocation5 + $0x1f8c] sm:$0xf0]  ;;  %v12410_v1 = vor.u32 %v14089_v54, %v12409_v52  ;;  %6802 = vmatpush.bf16.msrb.mxu2 %v12682_v51  ;;  %v6550_v52 = vadd.f32 %v6549_v47, %v6537_v15  ;;  %v6562_v54 = vpop.f32.mrf.mxu3  ;;  %v143_v47 = vld [vmem:[#allocation2 + $0x78] sm:$0xff] }
 0x113   :  { %v12665_v59 = vld [vmem:[#allocation5 + $0x1e80] sm:$0xf]  ;;  %v12538_v3 = vor.u32 %v14121_v58, %v12537_v56  ;;  %v14085_v8 = vld [vmem:[#allocation5 + $0x1c6c] sm:$0xf0]  ;;  %6815 = vmatpush.bf16.msrb.mxu3 %v12810_v57  ;;  %v6525_v58 = vpop.f32.mrf.mxu0 }
 0x114   :  { %v12793_v62 = vld [vmem:[#allocation5 + $0x1f80] sm:$0xf]  ;;  %v12666_v4 = vor.u32 %v14153_v60, %v12665_v59  ;;  %v14117_v21 = vld [vmem:[#allocation5 + $0x1d6c] sm:$0xf0]  ;;  %6777 = vmatpush.bf16.msrb.mxu0 %v12410_v1  ;;  %v6538_v60 = vpop.f32.mrf.mxu1  ;;  %v14664_v61 = vadd.f32 %v6562_v54, %v6550_v52  ;;  %v13235_v52 = vld [vmem:[#allocation5 + $0x1e4] sm:$0xf] }
 0x115   :  { %v12393_v6 = vld [vmem:[#allocation5 + $0x1c60] sm:$0xf]  ;;  %v12794_v14 = vor.u32 %v14185_v63, %v12793_v62  ;;  %v14149_v26 = vld [vmem:[#allocation5 + $0x1e6c] sm:$0xf0]  ;;  %6790 = vmatpush.bf16.msrb.mxu1 %v12538_v3  ;;  %v13267_v58 = vld [vmem:[#allocation5 + $0x2e4] sm:$0xf] }
 0x116   :  { %v12521_v9 = vld [vmem:[#allocation5 + $0x1d60] sm:$0xf]  ;;  %v14181_v32 = vld [vmem:[#allocation5 + $0x1f6c] sm:$0xf0]  ;;  %v12394_v34 = vor.u32 %v14085_v8, %v12393_v6  ;;  %6803 = vmatpush.bf16.msrb.mxu2 %v12666_v4 }
 0x117   :  { %v12649_v24 = vld [vmem:[#allocation5 + $0x1e60] sm:$0xf]  ;;  %v12522_v55 = vor.u32 %v14117_v21, %v12521_v9  ;;  %v14081_v53 = vld [vmem:[#allocation5 + $0x1c4c] sm:$0xf0]  ;;  %6816 = vmatpush.bf16.msrb.mxu3 %v12794_v14 }
 0x118   :  { %v12777_v27 = vld [vmem:[#allocation5 + $0x1f60] sm:$0xf]  ;;  %v12650_v36 = vor.u32 %v14149_v26, %v12649_v24  ;;  %v14113_v48 = vld [vmem:[#allocation5 + $0x1d4c] sm:$0xf0]  ;;  %6778 = vmatpush.bf16.msrb.mxu0 %v12394_v34 }
 0x119   :  { %v12377_v39 = vld [vmem:[#allocation5 + $0x1c40] sm:$0xf]  ;;  %v12778_v43 = vor.u32 %v14181_v32, %v12777_v27  ;;  %v14145_v51 = vld [vmem:[#allocation5 + $0x1e4c] sm:$0xf0]  ;;  %6791 = vmatpush.bf16.msrb.mxu1 %v12522_v55 }
 0x11a   :  { %v12505_v40 = vld [vmem:[#allocation5 + $0x1d40] sm:$0xf]  ;;  %v14177_v57 = vld [vmem:[#allocation5 + $0x1f4c] sm:$0xf0]  ;;  %v12378_v59 = vor.u32 %v14081_v53, %v12377_v39  ;;  %6804 = vmatpush.bf16.msrb.mxu2 %v12650_v36  ;;  %v6564_v54 = vpop.f32.mrf.mxu3 }
 0x11b   :  { %v12633_v50 = vld [vmem:[#allocation5 + $0x1e40] sm:$0xf]  ;;  %v12506_v62 = vor.u32 %v14113_v48, %v12505_v40  ;;  %v14077_v1 = vld [vmem:[#allocation5 + $0x1c2c] sm:$0xf0]  ;;  %6817 = vmatpush.bf16.msrb.mxu3 %v12778_v43  ;;  %v6551_v48 = vpop.f32.mrf.mxu2 }
 0x11c   :  { %v12761_v56 = vld [vmem:[#allocation5 + $0x1f40] sm:$0xf]  ;;  %v12634_v63 = vor.u32 %v14145_v51, %v12633_v50  ;;  %v14109_v4 = vld [vmem:[#allocation5 + $0x1d2c] sm:$0xf0]  ;;  %6779 = vmatpush.bf16.msrb.mxu0 %v12378_v59  ;;  %v13203_v50 = vld [vmem:[#allocation5 + $0xe4] sm:$0xf] }
 0x11d   :  { %v12361_v0 = vld [vmem:[#allocation5 + $0x1c20] sm:$0xf]  ;;  %v12762_v3 = vor.u32 %v14177_v57, %v12761_v56  ;;  %v14141_v8 = vld [vmem:[#allocation5 + $0x1e2c] sm:$0xf0]  ;;  %6792 = vmatpush.bf16.msrb.mxu1 %v12506_v62  ;;  %v8875_v51 = vld [vmem:[#allocation5 + $0xf0] sm:$0xf0] }
 0x11e   :  { %v12489_v2 = vld [vmem:[#allocation5 + $0x1d20] sm:$0xf]  ;;  %v14173_v14 = vld [vmem:[#allocation5 + $0x1f2c] sm:$0xf0]  ;;  %v12362_v21 = vor.u32 %v14077_v1, %v12361_v0  ;;  %6805 = vmatpush.bf16.msrb.mxu2 %v12634_v63  ;;  %v9003_v57 = vld [vmem:[#allocation5 + $0x1f0] sm:$0xf0] }
 0x11f   :  { %v12617_v6 = vld [vmem:[#allocation5 + $0x1e20] sm:$0xf]  ;;  %v14073_v24 = vld [vmem:[#allocation5 + $0x1c0c] sm:$0xf0]  ;;  %v12490_v32 = vor.u32 %v14109_v4, %v12489_v2  ;;  %6818 = vmatpush.bf16.msrb.mxu3 %v12762_v3  ;;  %v9131_v59 = vld [vmem:[#allocation5 + $0x2f0] sm:$0xf0]  ;;  %v1224_v2 = vunpack.c.l.b16 %v143_v47 }
 0x120   :  { %v12745_v9 = vld [vmem:[#allocation5 + $0x1f20] sm:$0xf]  ;;  %v14105_v27 = vld [vmem:[#allocation5 + $0x1d0c] sm:$0xf0]  ;;  %v12618_v34 = vor.u32 %v14141_v8, %v12617_v6  ;;  %6780 = vmatpush.bf16.msrb.mxu0 %v12362_v21  ;;  %v13299_v0 = vld [vmem:[#allocation5 + $0x3e4] sm:$0xf]  ;;  %v8878_v6 = vor.u32 %v13203_v50, %v8875_v51  ;;  %v1225_v8 = vunpack.c.h.b16 %v143_v47 }
 0x121   :  { %v12345_v15 = vld [vmem:[#allocation5 + $0x1c00] sm:$0xf]  ;;  %v14137_v36 = vld [vmem:[#allocation5 + $0x1e0c] sm:$0xf0]  ;;  %v12746_v53 = vor.u32 %v14173_v14, %v12745_v9  ;;  %6793 = vmatpush.bf16.msrb.mxu1 %v12490_v32  ;;  %v9259_v1 = vld [vmem:[#allocation5 + $0x3f0] sm:$0xf0]  ;;  %v9006_v9 = vor.u32 %v13235_v52, %v9003_v57  ;;  %v9134_v14 = vor.u32 %v13267_v58, %v9131_v59 }
 0x122   :  { %v12473_v26 = vld [vmem:[#allocation5 + $0x1d00] sm:$0xf]  ;;  %v142_v39 = vld [vmem:[#allocation2 + $0x70] sm:$0xff]  ;;  %v12346_v56 = vor.u32 %v14073_v24, %v12345_v15  ;;  %6806 = vmatpush.bf16.msrb.mxu2 %v12618_v34  ;;  %v13199_v21 = vld [vmem:[#allocation5 + $0xc4] sm:$0xf]  ;;  %v9262_v48 = vor.u32 %v13299_v0, %v9259_v1  ;;  %v14668_v34 = vpack.c.b16 %v1224_v2, %v1224_v2 }
 0x123   :  { %v12601_v55 = vld [vmem:[#allocation5 + $0x1e00] sm:$0xf]  ;;  %v14169_v43 = vld [vmem:[#allocation5 + $0x1f0c] sm:$0xf0]  ;;  %v1222_v60 = vunpack.c.l.b16 %v142_v39  ;;  %v12474_v62 = vor.u32 %v14105_v27, %v12473_v26  ;;  %v1223_v3 = vunpack.c.h.b16 %v142_v39  ;;  %6819 = vmatpush.bf16.msrb.mxu3 %v12746_v53  ;;  %v8859_v15 = vld [vmem:[#allocation5 + $0xd0] sm:$0xf0]  ;;  %v14672_v53 = vpack.c.b16 %v1225_v8, %v1225_v8 }
 0x124   :  { %v12729_v40 = vld [vmem:[#allocation5 + $0x1f00] sm:$0xf]  ;;  %v12602_v63 = vor.u32 %v14137_v36, %v12601_v55  ;;  %v13231_v24 = vld [vmem:[#allocation5 + $0x1c4] sm:$0xf]  ;;  %6781 = vmatpush.bf16.msrb.mxu0 %v12346_v56  ;;  %v8987_v32 = vld [vmem:[#allocation5 + $0x1d0] sm:$0xf0] }
 0x125   :  { %v12730_v4 = vor.u32 %v14169_v43, %v12729_v40  ;;  %v14666_v54 = vpack.c.b16 %v1222_v60, %v1222_v60  ;;  %v13263_v26 = vld [vmem:[#allocation5 + $0x2c4] sm:$0xf]  ;;  %v9115_v27 = vld [vmem:[#allocation5 + $0x2d0] sm:$0xf0]  ;;  %6794 = vmatpush.bf16.msrb.mxu1 %v12474_v62  ;;  %v14670_v55 = vpack.c.b16 %v1223_v3, %v1223_v3  ;;  %v8862_v40 = vor.u32 %v13199_v21, %v8859_v15  ;;  %v6575_v21 = vpop.f32.mrf.mxu0 }
 0x126   :  { %6807 = vmatpush.bf16.msrb.mxu2 %v12602_v63  ;;  %v13295_v36 = vld [vmem:[#allocation5 + $0x3c4] sm:$0xf]  ;;  %v9243_v39 = vld [vmem:[#allocation5 + $0x3d0] sm:$0xf0]  ;;  %v8990_v43 = vor.u32 %v13231_v24, %v8987_v32  ;;  %v9118_v47 = vor.u32 %v13263_v26, %v9115_v27  ;;  %v6588_v26 = vpop.f32.mrf.mxu1 }
 0x127   :  { %6820 = vmatpush.bf16.msrb.mxu3 %v12730_v4  ;;  %v13195_v50 = vld [vmem:[#allocation5 + $0xa4] sm:$0xf]  ;;  %v8843_v51 = vld [vmem:[#allocation5 + $0xb0] sm:$0xf0]  ;;  %6782 = vmatmul.bf16.vlgmr.msrb.gmra.mxu0 %v14666_v54  ;;  %v9246_v56 = vor.u32 %v13295_v36, %v9243_v39 }
 0x128   :  { %6826 = vmatpush.bf16.msra.mxu0 %v8878_v6  ;;  %v13227_v52 = vld [vmem:[#allocation5 + $0x1a4] sm:$0xf]  ;;  %v8971_v57 = vld [vmem:[#allocation5 + $0x1b0] sm:$0xf0]  ;;  %6795 = vmatmul.bf16.vlgmr.msrb.gmra.mxu1 %v14670_v55  ;;  %v8846_v63 = vor.u32 %v13195_v50, %v8843_v51 }
 0x129   :  { %6839 = vmatpush.bf16.msra.mxu1 %v9006_v9  ;;  %v13259_v58 = vld [vmem:[#allocation5 + $0x2a4] sm:$0xf]  ;;  %v9099_v59 = vld [vmem:[#allocation5 + $0x2b0] sm:$0xf0]  ;;  %6808 = vmatmul.bf16.vlgmr.msrb.gmra.mxu2 %v14668_v34  ;;  %v8974_v0 = vor.u32 %v13227_v52, %v8971_v57 }
 0x12a   :  { %6852 = vmatpush.bf16.msra.mxu2 %v9134_v14  ;;  %v13291_v60 = vld [vmem:[#allocation5 + $0x3a4] sm:$0xf]  ;;  %v9227_v62 = vld [vmem:[#allocation5 + $0x3b0] sm:$0xf0]  ;;  %6821 = vmatmul.bf16.vlgmr.msrb.gmra.mxu3 %v14672_v53  ;;  %v9102_v1 = vor.u32 %v13259_v58, %v9099_v59 }
 0x12b   :  { %6865 = vmatpush.bf16.msra.mxu3 %v9262_v48  ;;  %v13191_v2 = vld [vmem:[#allocation5 + $0x84] sm:$0xf]  ;;  %v8827_v3 = vld [vmem:[#allocation5 + $0x90] sm:$0xf0]  ;;  %v9230_v6 = vor.u32 %v13291_v60, %v9227_v62  ;;  %v6576_v48 = vadd.f32 %v6575_v21, %v14664_v61 }
 0x12c   :  { %6827 = vmatpush.bf16.msra.mxu0 %v8862_v40  ;;  %v13223_v4 = vld [vmem:[#allocation5 + $0x184] sm:$0xf]  ;;  %v8955_v8 = vld [vmem:[#allocation5 + $0x190] sm:$0xf0]  ;;  %v8830_v32 = vor.u32 %v13191_v2, %v8827_v3  ;;  %v6601_v2 = vpop.f32.mrf.mxu2 }
 0x12d   :  { %6840 = vmatpush.bf16.msra.mxu1 %v8990_v43  ;;  %v13255_v9 = vld [vmem:[#allocation5 + $0x284] sm:$0xf]  ;;  %v9083_v14 = vld [vmem:[#allocation5 + $0x290] sm:$0xf0]  ;;  %v8958_v27 = vor.u32 %v13223_v4, %v8955_v8  ;;  %v6589_v50 = vadd.f32 %v6588_v26, %v6576_v48 }
 0x12e   :  { %6853 = vmatpush.bf16.msra.mxu2 %v9118_v47  ;;  %v13287_v15 = vld [vmem:[#allocation5 + $0x384] sm:$0xf]  ;;  %v9211_v24 = vld [vmem:[#allocation5 + $0x390] sm:$0xf0]  ;;  %v9086_v36 = vor.u32 %v13255_v9, %v9083_v14  ;;  %v6614_v9 = vpop.f32.mrf.mxu3  ;;  %v6590_v48 = vpop.f32.mrf.mxu1 }
 0x12f   :  { %6866 = vmatpush.bf16.msra.mxu3 %v9246_v56  ;;  %v13187_v39 = vld [vmem:[#allocation5 + $0x64] sm:$0xf]  ;;  %v8811_v40 = vld [vmem:[#allocation5 + $0x70] sm:$0xf0]  ;;  %v9214_v47 = vor.u32 %v13287_v15, %v9211_v24  ;;  %v6602_v8 = vadd.f32 %v6601_v2, %v6589_v50  ;;  %v6577_v15 = vpop.f32.mrf.mxu0 }
 0x130   :  { %6828 = vmatpush.bf16.msra.mxu0 %v8846_v63  ;;  %v13219_v43 = vld [vmem:[#allocation5 + $0x164] sm:$0xf]  ;;  %v8939_v51 = vld [vmem:[#allocation5 + $0x170] sm:$0xf0]  ;;  %v8814_v59 = vor.u32 %v13187_v39, %v8811_v40 }
 0x131   :  { %6841 = vmatpush.bf16.msra.mxu1 %v8974_v0  ;;  %v13251_v52 = vld [vmem:[#allocation5 + $0x264] sm:$0xf]  ;;  %v9067_v56 = vld [vmem:[#allocation5 + $0x270] sm:$0xf0]  ;;  %v8942_v61 = vor.u32 %v13219_v43, %v8939_v51 }
 0x132   :  { %6854 = vmatpush.bf16.msra.mxu2 %v9102_v1  ;;  %v13283_v57 = vld [vmem:[#allocation5 + $0x364] sm:$0xf]  ;;  %v9195_v58 = vld [vmem:[#allocation5 + $0x370] sm:$0xf0]  ;;  %v9070_v60 = vor.u32 %v13251_v52, %v9067_v56 }
 0x133   :  { %6867 = vmatpush.bf16.msra.mxu3 %v9230_v6  ;;  %v13183_v62 = vld [vmem:[#allocation5 + $0x44] sm:$0xf]  ;;  %v8795_v63 = vld [vmem:[#allocation5 + $0x50] sm:$0xf0]  ;;  %v9198_v1 = vor.u32 %v13283_v57, %v9195_v58 }
 0x134   :  { %6829 = vmatpush.bf16.msra.mxu0 %v8830_v32  ;;  %v13215_v0 = vld [vmem:[#allocation5 + $0x144] sm:$0xf]  ;;  %v8923_v3 = vld [vmem:[#allocation5 + $0x150] sm:$0xf0]  ;;  %v8798_v24 = vor.u32 %v13183_v62, %v8795_v63  ;;  %v14679_v32 = vadd.f32 %v6614_v9, %v6602_v8 }
 0x135   :  { %6842 = vmatpush.bf16.msra.mxu1 %v8958_v27  ;;  %v13247_v4 = vld [vmem:[#allocation5 + $0x244] sm:$0xf]  ;;  %v9051_v6 = vld [vmem:[#allocation5 + $0x250] sm:$0xf0]  ;;  %v8926_v26 = vor.u32 %v13215_v0, %v8923_v3 }
 0x136   :  { %6855 = vmatpush.bf16.msra.mxu2 %v9086_v36  ;;  %v13279_v14 = vld [vmem:[#allocation5 + $0x344] sm:$0xf]  ;;  %v9179_v21 = vld [vmem:[#allocation5 + $0x350] sm:$0xf0]  ;;  %v9054_v27 = vor.u32 %v13247_v4, %v9051_v6  ;;  %v6603_v6 = vpop.f32.mrf.mxu2 }
 0x137   :  { %6868 = vmatpush.bf16.msra.mxu3 %v9214_v47  ;;  %v13179_v36 = vld [vmem:[#allocation5 + $0x24] sm:$0xf]  ;;  %v8779_v39 = vld [vmem:[#allocation5 + $0x30] sm:$0xf0]  ;;  %v9182_v43 = vor.u32 %v13279_v14, %v9179_v21  ;;  %v6616_v21 = vpop.f32.mrf.mxu3 }
 0x138   :  { %6830 = vmatpush.bf16.msra.mxu0 %v8814_v59  ;;  %v13211_v40 = vld [vmem:[#allocation5 + $0x124] sm:$0xf]  ;;  %v8907_v47 = vld [vmem:[#allocation5 + $0x130] sm:$0xf0]  ;;  %v8782_v57 = vor.u32 %v13179_v36, %v8779_v39 }
 0x139   :  { %6843 = vmatpush.bf16.msra.mxu1 %v8942_v61  ;;  %v13243_v50 = vld [vmem:[#allocation5 + $0x224] sm:$0xf]  ;;  %v9035_v51 = vld [vmem:[#allocation5 + $0x230] sm:$0xf0]  ;;  %v8910_v61 = vor.u32 %v13211_v40, %v8907_v47 }
 0x13a   :  { %6856 = vmatpush.bf16.msra.mxu2 %v9070_v60  ;;  %v13275_v52 = vld [vmem:[#allocation5 + $0x324] sm:$0xf]  ;;  %v9163_v56 = vld [vmem:[#allocation5 + $0x330] sm:$0xf0]  ;;  %v9038_v60 = vor.u32 %v13243_v50, %v9035_v51 }
 0x13b   :  { %6869 = vmatpush.bf16.msra.mxu3 %v9198_v1  ;;  %v13175_v58 = vld [vmem:[#allocation5 + $0x4] sm:$0xf]  ;;  %v8763_v59 = vld [vmem:[#allocation5 + $0x10] sm:$0xf0]  ;;  %v9166_v2 = vor.u32 %v13275_v52, %v9163_v56 }
 0x13c   :  { %6831 = vmatpush.bf16.msra.mxu0 %v8798_v24  ;;  %v13207_v62 = vld [vmem:[#allocation5 + $0x104] sm:$0xf]  ;;  %v8891_v63 = vld [vmem:[#allocation5 + $0x110] sm:$0xf0]  ;;  %v8766_v15 = vor.u32 %v13175_v58, %v8763_v59 }
 0x13d   :  { %6844 = vmatpush.bf16.msra.mxu1 %v8926_v26  ;;  %v13239_v0 = vld [vmem:[#allocation5 + $0x204] sm:$0xf]  ;;  %v9019_v1 = vld [vmem:[#allocation5 + $0x210] sm:$0xf0] }
 0x13e   :  { %6857 = vmatpush.bf16.msra.mxu2 %v9054_v27  ;;  %v13271_v3 = vld [vmem:[#allocation5 + $0x304] sm:$0xf]  ;;  %v9147_v4 = vld [vmem:[#allocation5 + $0x310] sm:$0xf0]  ;;  %v8894_v27 = vor.u32 %v13207_v62, %v8891_v63  ;;  %v9022_v36 = vor.u32 %v13239_v0, %v9019_v1 }
 0x13f   :  { %6870 = vmatpush.bf16.msra.mxu3 %v9182_v43  ;;  %v13331_v8 = vld [vmem:[#allocation5 + $0x4e4] sm:$0xf]  ;;  %v9387_v9 = vld [vmem:[#allocation5 + $0x4f0] sm:$0xf0]  ;;  %v9150_v43 = vor.u32 %v13271_v3, %v9147_v4 }
 0x140   :  { %v13363_v14 = vld [vmem:[#allocation5 + $0x5e4] sm:$0xf]  ;;  %6832 = vmatpush.bf16.msra.mxu0 %v8782_v57  ;;  %v9515_v24 = vld [vmem:[#allocation5 + $0x5f0] sm:$0xf0]  ;;  %v9390_v47 = vor.u32 %v13331_v8, %v9387_v9 }
 0x141   :  { %v13395_v48 = vld [vmem:[#allocation5 + $0x6e4] sm:$0xf]  ;;  %v9643_v26 = vld [vmem:[#allocation5 + $0x6f0] sm:$0xf0]  ;;  %6845 = vmatpush.bf16.msra.mxu1 %v8910_v61  ;;  %v9518_v50 = vor.u32 %v13363_v14, %v9515_v24 }
 0x142   :  { %6858 = vmatpush.bf16.msra.mxu2 %v9038_v60  ;;  %v13427_v39 = vld [vmem:[#allocation5 + $0x7e4] sm:$0xf]  ;;  %v9771_v40 = vld [vmem:[#allocation5 + $0x7f0] sm:$0xf0]  ;;  %v9646_v51 = vor.u32 %v13395_v48, %v9643_v26 }
 0x143   :  { %6871 = vmatpush.bf16.msra.mxu3 %v9166_v2  ;;  %v13327_v52 = vld [vmem:[#allocation5 + $0x4c4] sm:$0xf]  ;;  %v9371_v56 = vld [vmem:[#allocation5 + $0x4d0] sm:$0xf0]  ;;  %v9774_v57 = vor.u32 %v13427_v39, %v9771_v40 }
 0x144   :  { %v13359_v6 = vld [vmem:[#allocation5 + $0x5c4] sm:$0xf]  ;;  %6833 = vmatpush.bf16.msra.mxu0 %v8766_v15  ;;  %v9499_v58 = vld [vmem:[#allocation5 + $0x5d0] sm:$0xf0]  ;;  %v9374_v62 = vor.u32 %v13327_v52, %v9371_v56  ;;  %v6627_v52 = vpop.f32.mrf.mxu0 }
 0x145   :  { %v13391_v59 = vld [vmem:[#allocation5 + $0x6c4] sm:$0xf]  ;;  %v9627_v21 = vld [vmem:[#allocation5 + $0x6d0] sm:$0xf0]  ;;  %6846 = vmatpush.bf16.msra.mxu1 %v8894_v27  ;;  %v9502_v63 = vor.u32 %v13359_v6, %v9499_v58 }
 0x146   :  { %6859 = vmatpush.bf16.msra.mxu2 %v9022_v36  ;;  %v13423_v61 = vld [vmem:[#allocation5 + $0x7c4] sm:$0xf]  ;;  %v9755_v60 = vld [vmem:[#allocation5 + $0x7d0] sm:$0xf0]  ;;  %v9630_v0 = vor.u32 %v13391_v59, %v9627_v21  ;;  %v6640_v59 = vpop.f32.mrf.mxu1 }
 0x147   :  { %6872 = vmatpush.bf16.msra.mxu3 %v9150_v43  ;;  %v13323_v2 = vld [vmem:[#allocation5 + $0x4a4] sm:$0xf]  ;;  %v9355_v1 = vld [vmem:[#allocation5 + $0x4b0] sm:$0xf0]  ;;  %v9758_v4 = vor.u32 %v13423_v61, %v9755_v60  ;;  %6834 = vmatmul.bf16.vlgmr.msra.gmra.mxu0 %v14576_v19 }
 0x148   :  { %6878 = vmatpush.bf16.msrb.mxu0 %v9390_v47  ;;  %v13355_v3 = vld [vmem:[#allocation5 + $0x5a4] sm:$0xf]  ;;  %v9483_v8 = vld [vmem:[#allocation5 + $0x5b0] sm:$0xf0]  ;;  %v9358_v48 = vor.u32 %v13323_v2, %v9355_v1  ;;  %6847 = vmatmul.bf16.vlgmr.msra.gmra.mxu1 %v14580_v22 }
 0x149   :  { %6891 = vmatpush.bf16.msrb.mxu1 %v9518_v50  ;;  %v13387_v9 = vld [vmem:[#allocation5 + $0x6a4] sm:$0xf]  ;;  %v9611_v14 = vld [vmem:[#allocation5 + $0x6b0] sm:$0xf0]  ;;  %6860 = vmatmul.bf16.vlgmr.msra.gmra.mxu2 %v14574_v18  ;;  %v9486_v26 = vor.u32 %v13355_v3, %v9483_v8 }
 0x14a   :  { %6904 = vmatpush.bf16.msrb.mxu2 %v9646_v51  ;;  %v13419_v15 = vld [vmem:[#allocation5 + $0x7a4] sm:$0xf]  ;;  %v9739_v24 = vld [vmem:[#allocation5 + $0x7b0] sm:$0xf0]  ;;  %6873 = vmatmul.bf16.vlgmr.msra.gmra.mxu3 %v14578_v20  ;;  %v9614_v27 = vor.u32 %v13387_v9, %v9611_v14 }
 0x14b   :  { %6917 = vmatpush.bf16.msrb.mxu3 %v9774_v57  ;;  %v13319_v36 = vld [vmem:[#allocation5 + $0x484] sm:$0xf]  ;;  %v9339_v39 = vld [vmem:[#allocation5 + $0x490] sm:$0xf0]  ;;  %v9742_v43 = vor.u32 %v13419_v15, %v9739_v24  ;;  %v6628_v57 = vadd.f32 %v6627_v52, %v14679_v32 }
 0x14c   :  { %6879 = vmatpush.bf16.msrb.mxu0 %v9374_v62  ;;  %v13351_v40 = vld [vmem:[#allocation5 + $0x584] sm:$0xf]  ;;  %v9467_v47 = vld [vmem:[#allocation5 + $0x590] sm:$0xf0]  ;;  %v9342_v58 = vor.u32 %v13319_v36, %v9339_v39  ;;  %v6653_v36 = vpop.f32.mrf.mxu2 }
 0x14d   :  { %6892 = vmatpush.bf16.msrb.mxu1 %v9502_v63  ;;  %v13383_v50 = vld [vmem:[#allocation5 + $0x684] sm:$0xf]  ;;  %v9595_v51 = vld [vmem:[#allocation5 + $0x690] sm:$0xf0]  ;;  %v9470_v21 = vor.u32 %v13351_v40, %v9467_v47  ;;  %v6641_v2 = vadd.f32 %v6640_v59, %v6628_v57 }
 0x14e   :  { %6905 = vmatpush.bf16.msrb.mxu2 %v9630_v0  ;;  %v13415_v56 = vld [vmem:[#allocation5 + $0x784] sm:$0xf]  ;;  %v9723_v6 = vld [vmem:[#allocation5 + $0x790] sm:$0xf0]  ;;  %v9598_v61 = vor.u32 %v13383_v50, %v9595_v51  ;;  %v6666_v50 = vpop.f32.mrf.mxu3  ;;  %v6642_v57 = vpop.f32.mrf.mxu1 }
 0x14f   :  { %6918 = vmatpush.bf16.msrb.mxu3 %v9758_v4  ;;  %v13315_v60 = vld [vmem:[#allocation5 + $0x464] sm:$0xf]  ;;  %v9323_v62 = vld [vmem:[#allocation5 + $0x470] sm:$0xf0]  ;;  %v9726_v0 = vor.u32 %v13415_v56, %v9723_v6  ;;  %v6654_v47 = vadd.f32 %v6653_v36, %v6641_v2  ;;  %v6629_v56 = vpop.f32.mrf.mxu0 }
 0x150   :  { %6880 = vmatpush.bf16.msrb.mxu0 %v9358_v48  ;;  %v13347_v63 = vld [vmem:[#allocation5 + $0x564] sm:$0xf]  ;;  %v9451_v1 = vld [vmem:[#allocation5 + $0x570] sm:$0xf0]  ;;  %v9326_v14 = vor.u32 %v13315_v60, %v9323_v62 }
 0x151   :  { %6893 = vmatpush.bf16.msrb.mxu1 %v9486_v26  ;;  %v13379_v3 = vld [vmem:[#allocation5 + $0x664] sm:$0xf]  ;;  %v9579_v4 = vld [vmem:[#allocation5 + $0x670] sm:$0xf0]  ;;  %v9454_v32 = vor.u32 %v13347_v63, %v9451_v1 }
 0x152   :  { %6906 = vmatpush.bf16.msrb.mxu2 %v9614_v27  ;;  %v13411_v8 = vld [vmem:[#allocation5 + $0x764] sm:$0xf]  ;;  %v9707_v9 = vld [vmem:[#allocation5 + $0x770] sm:$0xf0]  ;;  %v9582_v15 = vor.u32 %v13379_v3, %v9579_v4 }
 0x153   :  { %6919 = vmatpush.bf16.msrb.mxu3 %v9742_v43  ;;  %v13311_v24 = vld [vmem:[#allocation5 + $0x444] sm:$0xf]  ;;  %v9307_v48 = vld [vmem:[#allocation5 + $0x450] sm:$0xf0]  ;;  %v9710_v27 = vor.u32 %v13411_v8, %v9707_v9 }
 0x154   :  { %6881 = vmatpush.bf16.msrb.mxu0 %v9342_v58  ;;  %v13343_v26 = vld [vmem:[#allocation5 + $0x544] sm:$0xf]  ;;  %v9435_v39 = vld [vmem:[#allocation5 + $0x550] sm:$0xf0]  ;;  %v9310_v6 = vor.u32 %v13311_v24, %v9307_v48  ;;  %v14686_v58 = vadd.f32 %v6666_v50, %v6654_v47 }
 0x155   :  { %6894 = vmatpush.bf16.msrb.mxu1 %v9470_v21  ;;  %v13375_v40 = vld [vmem:[#allocation5 + $0x644] sm:$0xf]  ;;  %v9563_v43 = vld [vmem:[#allocation5 + $0x650] sm:$0xf0]  ;;  %v9438_v59 = vor.u32 %v13343_v26, %v9435_v39 }
 0x156   :  { %6907 = vmatpush.bf16.msrb.mxu2 %v9598_v61  ;;  %v13407_v51 = vld [vmem:[#allocation5 + $0x744] sm:$0xf]  ;;  %v9691_v52 = vld [vmem:[#allocation5 + $0x750] sm:$0xf0]  ;;  %v9566_v21 = vor.u32 %v13375_v40, %v9563_v43  ;;  %v6655_v43 = vpop.f32.mrf.mxu2 }
 0x157   :  { %6920 = vmatpush.bf16.msrb.mxu3 %v9726_v0  ;;  %v13307_v61 = vld [vmem:[#allocation5 + $0x424] sm:$0xf]  ;;  %v9291_v60 = vld [vmem:[#allocation5 + $0x430] sm:$0xf0]  ;;  %v9694_v63 = vor.u32 %v13407_v51, %v9691_v52  ;;  %v6668_v52 = vpop.f32.mrf.mxu3 }
 0x158   :  { %6882 = vmatpush.bf16.msrb.mxu0 %v9326_v14  ;;  %v13339_v62 = vld [vmem:[#allocation5 + $0x524] sm:$0xf]  ;;  %v9419_v0 = vld [vmem:[#allocation5 + $0x530] sm:$0xf0]  ;;  %v9294_v8 = vor.u32 %v13307_v61, %v9291_v60 }
 0x159   :  { %6895 = vmatpush.bf16.msrb.mxu1 %v9454_v32  ;;  %v13371_v2 = vld [vmem:[#allocation5 + $0x624] sm:$0xf]  ;;  %v9547_v1 = vld [vmem:[#allocation5 + $0x630] sm:$0xf0]  ;;  %v9422_v32 = vor.u32 %v13339_v62, %v9419_v0 }
 0x15a   :  { %6908 = vmatpush.bf16.msrb.mxu2 %v9582_v15  ;;  %v13403_v3 = vld [vmem:[#allocation5 + $0x724] sm:$0xf]  ;;  %v9675_v4 = vld [vmem:[#allocation5 + $0x730] sm:$0xf0]  ;;  %v9550_v15 = vor.u32 %v13371_v2, %v9547_v1 }
 0x15b   :  { %6921 = vmatpush.bf16.msrb.mxu3 %v9710_v27  ;;  %v13303_v9 = vld [vmem:[#allocation5 + $0x404] sm:$0xf]  ;;  %v9275_v14 = vld [vmem:[#allocation5 + $0x410] sm:$0xf0]  ;;  %v9678_v36 = vor.u32 %v13403_v3, %v9675_v4 }
 0x15c   :  { %6883 = vmatpush.bf16.msrb.mxu0 %v9310_v6  ;;  %v13335_v24 = vld [vmem:[#allocation5 + $0x504] sm:$0xf]  ;;  %v9403_v48 = vld [vmem:[#allocation5 + $0x510] sm:$0xf0]  ;;  %v9278_v56 = vor.u32 %v13303_v9, %v9275_v14 }
 0x15d   :  { %6896 = vmatpush.bf16.msrb.mxu1 %v9438_v59  ;;  %v13367_v26 = vld [vmem:[#allocation5 + $0x604] sm:$0xf]  ;;  %v9531_v27 = vld [vmem:[#allocation5 + $0x610] sm:$0xf0] }
 0x15e   :  { %6909 = vmatpush.bf16.msrb.mxu2 %v9566_v21  ;;  %v13399_v39 = vld [vmem:[#allocation5 + $0x704] sm:$0xf]  ;;  %v9659_v40 = vld [vmem:[#allocation5 + $0x710] sm:$0xf0]  ;;  %v9406_v21 = vor.u32 %v13335_v24, %v9403_v48  ;;  %v9534_v61 = vor.u32 %v13367_v26, %v9531_v27 }
 0x15f   :  { %6922 = vmatpush.bf16.msrb.mxu3 %v9694_v63  ;;  %v13459_v47 = vld [vmem:[#allocation5 + $0x8e4] sm:$0xf]  ;;  %v9899_v50 = vld [vmem:[#allocation5 + $0x8f0] sm:$0xf0]  ;;  %v9662_v63 = vor.u32 %v13399_v39, %v9659_v40 }
 0x160   :  { %v13491_v51 = vld [vmem:[#allocation5 + $0x9e4] sm:$0xf]  ;;  %6884 = vmatpush.bf16.msrb.mxu0 %v9294_v8  ;;  %v10027_v6 = vld [vmem:[#allocation5 + $0x9f0] sm:$0xf0]  ;;  %v9902_v0 = vor.u32 %v13459_v47, %v9899_v50 }
 0x161   :  { %v13523_v57 = vld [vmem:[#allocation5 + $0xae4] sm:$0xf]  ;;  %v10155_v59 = vld [vmem:[#allocation5 + $0xaf0] sm:$0xf0]  ;;  %6897 = vmatpush.bf16.msrb.mxu1 %v9422_v32  ;;  %v10030_v2 = vor.u32 %v13491_v51, %v10027_v6 }
 0x162   :  { %6910 = vmatpush.bf16.msrb.mxu2 %v9550_v15  ;;  %v13555_v60 = vld [vmem:[#allocation5 + $0xbe4] sm:$0xf]  ;;  %v10283_v62 = vld [vmem:[#allocation5 + $0xbf0] sm:$0xf0]  ;;  %v10158_v1 = vor.u32 %v13523_v57, %v10155_v59 }
 0x163   :  { %6923 = vmatpush.bf16.msrb.mxu3 %v9678_v36  ;;  %v13455_v3 = vld [vmem:[#allocation5 + $0x8c4] sm:$0xf]  ;;  %v9883_v4 = vld [vmem:[#allocation5 + $0x8d0] sm:$0xf0]  ;;  %v10286_v8 = vor.u32 %v13555_v60, %v10283_v62 }
 0x164   :  { %v13487_v43 = vld [vmem:[#allocation5 + $0x9c4] sm:$0xf]  ;;  %6885 = vmatpush.bf16.msrb.mxu0 %v9278_v56  ;;  %v10011_v9 = vld [vmem:[#allocation5 + $0x9d0] sm:$0xf0]  ;;  %v9886_v24 = vor.u32 %v13455_v3, %v9883_v4  ;;  %v6679_v3 = vpop.f32.mrf.mxu0 }
 0x165   :  { %v13519_v14 = vld [vmem:[#allocation5 + $0xac4] sm:$0xf]  ;;  %v10139_v52 = vld [vmem:[#allocation5 + $0xad0] sm:$0xf0]  ;;  %6898 = vmatpush.bf16.msrb.mxu1 %v9406_v21  ;;  %v10014_v48 = vor.u32 %v13487_v43, %v10011_v9 }
 0x166   :  { %6911 = vmatpush.bf16.msrb.mxu2 %v9534_v61  ;;  %v13551_v32 = vld [vmem:[#allocation5 + $0xbc4] sm:$0xf]  ;;  %v10267_v15 = vld [vmem:[#allocation5 + $0xbd0] sm:$0xf0]  ;;  %v10142_v26 = vor.u32 %v13519_v14, %v10139_v52  ;;  %v6692_v14 = vpop.f32.mrf.mxu1 }
 0x167   :  { %6924 = vmatpush.bf16.msrb.mxu3 %v9662_v63  ;;  %v13451_v36 = vld [vmem:[#allocation5 + $0x8a4] sm:$0xf]  ;;  %v9867_v27 = vld [vmem:[#allocation5 + $0x8b0] sm:$0xf0]  ;;  %v10270_v40 = vor.u32 %v13551_v32, %v10267_v15  ;;  %6886 = vmatmul.bf16.vlgmr.msrb.gmra.mxu0 %v14588_v41 }
 0x168   :  { %6930 = vmatpush.bf16.msra.mxu0 %v9902_v0  ;;  %v13483_v39 = vld [vmem:[#allocation5 + $0x9a4] sm:$0xf]  ;;  %v9995_v47 = vld [vmem:[#allocation5 + $0x9b0] sm:$0xf0]  ;;  %v9870_v57 = vor.u32 %v13451_v36, %v9867_v27  ;;  %6899 = vmatmul.bf16.vlgmr.msrb.gmra.mxu1 %v14592_v44 }
 0x169   :  { %6943 = vmatpush.bf16.msra.mxu1 %v10030_v2  ;;  %6912 = vmatmul.bf16.vlgmr.msrb.gmra.mxu2 %v14586_v38  ;;  %v13515_v50 = vld [vmem:[#allocation5 + $0xaa4] sm:$0xf]  ;;  %v10123_v51 = vld [vmem:[#allocation5 + $0xab0] sm:$0xf0]  ;;  %v9998_v59 = vor.u32 %v13483_v39, %v9995_v47 }
 0x16a   :  { %6956 = vmatpush.bf16.msra.mxu2 %v10158_v1  ;;  %v13547_v56 = vld [vmem:[#allocation5 + $0xba4] sm:$0xf]  ;;  %v10251_v6 = vld [vmem:[#allocation5 + $0xbb0] sm:$0xf0]  ;;  %6925 = vmatmul.bf16.vlgmr.msrb.gmra.mxu3 %v14590_v42  ;;  %v10126_v21 = vor.u32 %v13515_v50, %v10123_v51 }
 0x16b   :  { %6969 = vmatpush.bf16.msra.mxu3 %v10286_v8  ;;  %v13447_v61 = vld [vmem:[#allocation5 + $0x884] sm:$0xf]  ;;  %v9851_v60 = vld [vmem:[#allocation5 + $0x890] sm:$0xf0]  ;;  %v10254_v63 = vor.u32 %v13547_v56, %v10251_v6  ;;  %v6680_v8 = vadd.f32 %v6679_v3, %v14686_v58 }
 0x16c   :  { %6931 = vmatpush.bf16.msra.mxu0 %v9886_v24  ;;  %v13479_v62 = vld [vmem:[#allocation5 + $0x984] sm:$0xf]  ;;  %v9979_v0 = vld [vmem:[#allocation5 + $0x990] sm:$0xf0]  ;;  %v9854_v9 = vor.u32 %v13447_v61, %v9851_v60  ;;  %v6705_v61 = vpop.f32.mrf.mxu2 }
 0x16d   :  { %6944 = vmatpush.bf16.msra.mxu1 %v10014_v48  ;;  %v13511_v2 = vld [vmem:[#allocation5 + $0xa84] sm:$0xf]  ;;  %v10107_v1 = vld [vmem:[#allocation5 + $0xa90] sm:$0xf0]  ;;  %v9982_v52 = vor.u32 %v13479_v62, %v9979_v0  ;;  %v6693_v36 = vadd.f32 %v6692_v14, %v6680_v8 }
 0x16e   :  { %6957 = vmatpush.bf16.msra.mxu2 %v10142_v26  ;;  %v13543_v4 = vld [vmem:[#allocation5 + $0xb84] sm:$0xf]  ;;  %v10235_v43 = vld [vmem:[#allocation5 + $0xb90] sm:$0xf0]  ;;  %v10110_v32 = vor.u32 %v13511_v2, %v10107_v1  ;;  %v6718_v2 = vpop.f32.mrf.mxu3  ;;  %v6694_v8 = vpop.f32.mrf.mxu1 }
 0x16f   :  { %6970 = vmatpush.bf16.msra.mxu3 %v10270_v40  ;;  %v13443_v15 = vld [vmem:[#allocation5 + $0x864] sm:$0xf]  ;;  %v9835_v24 = vld [vmem:[#allocation5 + $0x870] sm:$0xf0]  ;;  %v10238_v26 = vor.u32 %v13543_v4, %v10235_v43  ;;  %v6706_v0 = vadd.f32 %v6705_v61, %v6693_v36  ;;  %v6681_v4 = vpop.f32.mrf.mxu0 }
 0x170   :  { %6932 = vmatpush.bf16.msra.mxu0 %v9870_v57  ;;  %v13475_v48 = vld [vmem:[#allocation5 + $0x964] sm:$0xf]  ;;  %v9963_v27 = vld [vmem:[#allocation5 + $0x970] sm:$0xf0]  ;;  %v9838_v51 = vor.u32 %v13443_v15, %v9835_v24 }
 0x171   :  { %6945 = vmatpush.bf16.msra.mxu1 %v9998_v59  ;;  %v13507_v39 = vld [vmem:[#allocation5 + $0xa64] sm:$0xf]  ;;  %v10091_v40 = vld [vmem:[#allocation5 + $0xa70] sm:$0xf0]  ;;  %v9966_v58 = vor.u32 %v13475_v48, %v9963_v27 }
 0x172   :  { %6958 = vmatpush.bf16.msra.mxu2 %v10126_v21  ;;  %v13539_v47 = vld [vmem:[#allocation5 + $0xb64] sm:$0xf]  ;;  %v10219_v50 = vld [vmem:[#allocation5 + $0xb70] sm:$0xf0]  ;;  %v10094_v56 = vor.u32 %v13507_v39, %v10091_v40 }
 0x173   :  { %6971 = vmatpush.bf16.msra.mxu3 %v10254_v63  ;;  %v13439_v6 = vld [vmem:[#allocation5 + $0x844] sm:$0xf]  ;;  %v9819_v57 = vld [vmem:[#allocation5 + $0x850] sm:$0xf0]  ;;  %v10222_v21 = vor.u32 %v13539_v47, %v10219_v50 }
 0x174   :  { %6933 = vmatpush.bf16.msra.mxu0 %v9854_v9  ;;  %v13471_v59 = vld [vmem:[#allocation5 + $0x944] sm:$0xf]  ;;  %v9947_v60 = vld [vmem:[#allocation5 + $0x950] sm:$0xf0]  ;;  %v9822_v43 = vor.u32 %v13439_v6, %v9819_v57  ;;  %v14693_v9 = vadd.f32 %v6718_v2, %v6706_v0 }
 0x175   :  { %6946 = vmatpush.bf16.msra.mxu1 %v9982_v52  ;;  %v13503_v62 = vld [vmem:[#allocation5 + $0xa44] sm:$0xf]  ;;  %v10075_v63 = vld [vmem:[#allocation5 + $0xa50] sm:$0xf0]  ;;  %v9950_v14 = vor.u32 %v13471_v59, %v9947_v60 }
 0x176   :  { %6959 = vmatpush.bf16.msra.mxu2 %v10110_v32  ;;  %v13535_v1 = vld [vmem:[#allocation5 + $0xb44] sm:$0xf]  ;;  %v10203_v3 = vld [vmem:[#allocation5 + $0xb50] sm:$0xf0]  ;;  %v10078_v52 = vor.u32 %v13503_v62, %v10075_v63  ;;  %v6707_v63 = vpop.f32.mrf.mxu2 }
 0x177   :  { %6972 = vmatpush.bf16.msra.mxu3 %v10238_v26  ;;  %v13435_v32 = vld [vmem:[#allocation5 + $0x824] sm:$0xf]  ;;  %v9803_v15 = vld [vmem:[#allocation5 + $0x830] sm:$0xf0]  ;;  %v10206_v48 = vor.u32 %v13535_v1, %v10203_v3  ;;  %v6720_v3 = vpop.f32.mrf.mxu3 }
 0x178   :  { %6934 = vmatpush.bf16.msra.mxu0 %v9838_v51  ;;  %v13467_v24 = vld [vmem:[#allocation5 + $0x924] sm:$0xf]  ;;  %v9931_v26 = vld [vmem:[#allocation5 + $0x930] sm:$0xf0]  ;;  %v9806_v47 = vor.u32 %v13435_v32, %v9803_v15 }
 0x179   :  { %6947 = vmatpush.bf16.msra.mxu1 %v9966_v58  ;;  %v13499_v36 = vld [vmem:[#allocation5 + $0xa24] sm:$0xf]  ;;  %v10059_v27 = vld [vmem:[#allocation5 + $0xa30] sm:$0xf0]  ;;  %v9934_v58 = vor.u32 %v13467_v24, %v9931_v26 }
 0x17a   :  { %6960 = vmatpush.bf16.msra.mxu2 %v10094_v56  ;;  %v13531_v39 = vld [vmem:[#allocation5 + $0xb24] sm:$0xf]  ;;  %v10187_v40 = vld [vmem:[#allocation5 + $0xb30] sm:$0xf0]  ;;  %v10062_v56 = vor.u32 %v13499_v36, %v10059_v27 }
 0x17b   :  { %6973 = vmatpush.bf16.msra.mxu3 %v10222_v21  ;;  %v13431_v50 = vld [vmem:[#allocation5 + $0x804] sm:$0xf]  ;;  %v9787_v51 = vld [vmem:[#allocation5 + $0x810] sm:$0xf0]  ;;  %v10190_v61 = vor.u32 %v13531_v39, %v10187_v40 }
 0x17c   :  { %6935 = vmatpush.bf16.msra.mxu0 %v9822_v43  ;;  %v13463_v6 = vld [vmem:[#allocation5 + $0x904] sm:$0xf]  ;;  %v9915_v57 = vld [vmem:[#allocation5 + $0x910] sm:$0xf0]  ;;  %v9790_v4 = vor.u32 %v13431_v50, %v9787_v51 }
 0x17d   :  { %6948 = vmatpush.bf16.msra.mxu1 %v9950_v14  ;;  %v13495_v59 = vld [vmem:[#allocation5 + $0xa04] sm:$0xf]  ;;  %v10043_v21 = vld [vmem:[#allocation5 + $0xa10] sm:$0xf0] }
 0x17e   :  { %6961 = vmatpush.bf16.msra.mxu2 %v10078_v52  ;;  %v13527_v60 = vld [vmem:[#allocation5 + $0xb04] sm:$0xf]  ;;  %v10171_v62 = vld [vmem:[#allocation5 + $0xb10] sm:$0xf0]  ;;  %v9918_v52 = vor.u32 %v13463_v6, %v9915_v57  ;;  %v10046_v32 = vor.u32 %v13495_v59, %v10043_v21 }
 0x17f   :  { %6974 = vmatpush.bf16.msra.mxu3 %v10206_v48  ;;  %v13587_v0 = vld [vmem:[#allocation5 + $0xce4] sm:$0xf]  ;;  %v10411_v2 = vld [vmem:[#allocation5 + $0xcf0] sm:$0xf0]  ;;  %v10174_v48 = vor.u32 %v13527_v60, %v10171_v62 }
 0x180   :  { %v13619_v1 = vld [vmem:[#allocation5 + $0xde4] sm:$0xf]  ;;  %6936 = vmatpush.bf16.msra.mxu0 %v9806_v47  ;;  %v10539_v43 = vld [vmem:[#allocation5 + $0xdf0] sm:$0xf0]  ;;  %v10414_v26 = vor.u32 %v13587_v0, %v10411_v2 }
 0x181   :  { %v13651_v8 = vld [vmem:[#allocation5 + $0xee4] sm:$0xf]  ;;  %v10667_v14 = vld [vmem:[#allocation5 + $0xef0] sm:$0xf0]  ;;  %6949 = vmatpush.bf16.msra.mxu1 %v9934_v58  ;;  %v10542_v36 = vor.u32 %v13619_v1, %v10539_v43 }
 0x182   :  { %6962 = vmatpush.bf16.msra.mxu2 %v10062_v56  ;;  %v13683_v15 = vld [vmem:[#allocation5 + $0xfe4] sm:$0xf]  ;;  %v10795_v24 = vld [vmem:[#allocation5 + $0xff0] sm:$0xf0]  ;;  %v10670_v27 = vor.u32 %v13651_v8, %v10667_v14 }
 0x183   :  { %6975 = vmatpush.bf16.msra.mxu3 %v10190_v61  ;;  %v13583_v39 = vld [vmem:[#allocation5 + $0xcc4] sm:$0xf]  ;;  %v10395_v40 = vld [vmem:[#allocation5 + $0xcd0] sm:$0xf0]  ;;  %v10798_v47 = vor.u32 %v13683_v15, %v10795_v24 }
 0x184   :  { %v13615_v63 = vld [vmem:[#allocation5 + $0xdc4] sm:$0xf]  ;;  %6937 = vmatpush.bf16.msra.mxu0 %v9790_v4  ;;  %v10523_v50 = vld [vmem:[#allocation5 + $0xdd0] sm:$0xf0]  ;;  %v10398_v6 = vor.u32 %v13583_v39, %v10395_v40 }
 0x185   :  { %v13647_v51 = vld [vmem:[#allocation5 + $0xec4] sm:$0xf]  ;;  %v10651_v3 = vld [vmem:[#allocation5 + $0xed0] sm:$0xf0]  ;;  %6950 = vmatpush.bf16.msra.mxu1 %v9918_v52  ;;  %v10526_v57 = vor.u32 %v13615_v63, %v10523_v50 }
 0x186   :  { %6963 = vmatpush.bf16.msra.mxu2 %v10046_v32  ;;  %v13679_v58 = vld [vmem:[#allocation5 + $0xfc4] sm:$0xf]  ;;  %v10779_v56 = vld [vmem:[#allocation5 + $0xfd0] sm:$0xf0]  ;;  %v10654_v59 = vor.u32 %v13647_v51, %v10651_v3  ;;  %v6731_v39 = vpop.f32.mrf.mxu0 }
 0x187   :  { %6976 = vmatpush.bf16.msra.mxu3 %v10174_v48  ;;  %v13579_v61 = vld [vmem:[#allocation5 + $0xca4] sm:$0xf]  ;;  %v10379_v21 = vld [vmem:[#allocation5 + $0xcb0] sm:$0xf0]  ;;  %6938 = vmatmul.bf16.vlgmr.msra.gmra.mxu0 %v14598_v25  ;;  %v10782_v62 = vor.u32 %v13679_v58, %v10779_v56  ;;  %v6744_v51 = vpop.f32.mrf.mxu1 }
 0x188   :  { %6982 = vmatpush.bf16.msrb.mxu0 %v10414_v26  ;;  %v13611_v60 = vld [vmem:[#allocation5 + $0xda4] sm:$0xf]  ;;  %v10507_v0 = vld [vmem:[#allocation5 + $0xdb0] sm:$0xf0]  ;;  %6951 = vmatmul.bf16.vlgmr.msra.gmra.mxu1 %v14602_v30  ;;  %v10382_v8 = vor.u32 %v13579_v61, %v10379_v21 }
 0x189   :  { %6995 = vmatpush.bf16.msrb.mxu1 %v10542_v36  ;;  %v13643_v2 = vld [vmem:[#allocation5 + $0xea4] sm:$0xf]  ;;  %v10635_v1 = vld [vmem:[#allocation5 + $0xeb0] sm:$0xf0]  ;;  %6964 = vmatmul.bf16.vlgmr.msra.gmra.mxu2 %v14600_v29  ;;  %v10510_v14 = vor.u32 %v13611_v60, %v10507_v0 }
 0x18a   :  { %7008 = vmatpush.bf16.msrb.mxu2 %v10670_v27  ;;  %v13675_v4 = vld [vmem:[#allocation5 + $0xfa4] sm:$0xf]  ;;  %v10763_v43 = vld [vmem:[#allocation5 + $0xfb0] sm:$0xf0]  ;;  %6977 = vmatmul.bf16.vlgmr.msra.gmra.mxu3 %v14604_v33  ;;  %v10638_v52 = vor.u32 %v13643_v2, %v10635_v1 }
 0x18b   :  { %7021 = vmatpush.bf16.msrb.mxu3 %v10798_v47  ;;  %v13575_v32 = vld [vmem:[#allocation5 + $0xc84] sm:$0xf]  ;;  %v10363_v15 = vld [vmem:[#allocation5 + $0xc90] sm:$0xf0]  ;;  %v10766_v48 = vor.u32 %v13675_v4, %v10763_v43  ;;  %v6732_v47 = vadd.f32 %v6731_v39, %v14693_v9 }
 0x18c   :  { %6983 = vmatpush.bf16.msrb.mxu0 %v10398_v6  ;;  %v13607_v24 = vld [vmem:[#allocation5 + $0xd84] sm:$0xf]  ;;  %v10491_v26 = vld [vmem:[#allocation5 + $0xd90] sm:$0xf0]  ;;  %v10366_v50 = vor.u32 %v13575_v32, %v10363_v15  ;;  %v6757_v32 = vpop.f32.mrf.mxu2 }
 0x18d   :  { %6996 = vmatpush.bf16.msrb.mxu1 %v10526_v57  ;;  %v13639_v36 = vld [vmem:[#allocation5 + $0xe84] sm:$0xf]  ;;  %v10619_v27 = vld [vmem:[#allocation5 + $0xe90] sm:$0xf0]  ;;  %v10494_v3 = vor.u32 %v13607_v24, %v10491_v26  ;;  %v6745_v61 = vadd.f32 %v6744_v51, %v6732_v47 }
 0x18e   :  { %7009 = vmatpush.bf16.msrb.mxu2 %v10654_v59  ;;  %v13671_v40 = vld [vmem:[#allocation5 + $0xf84] sm:$0xf]  ;;  %v10747_v63 = vld [vmem:[#allocation5 + $0xf90] sm:$0xf0]  ;;  %v10622_v58 = vor.u32 %v13639_v36, %v10619_v27 }
 0x18f   :  { %7022 = vmatpush.bf16.msrb.mxu3 %v10782_v62  ;;  %v13571_v56 = vld [vmem:[#allocation5 + $0xc64] sm:$0xf]  ;;  %v10347_v6 = vld [vmem:[#allocation5 + $0xc70] sm:$0xf0]  ;;  %v10750_v59 = vor.u32 %v13671_v40, %v10747_v63  ;;  %v6758_v26 = vadd.f32 %v6757_v32, %v6745_v61  ;;  %v6770_v36 = vpop.f32.mrf.mxu3  ;;  %v6733_v40 = vpop.f32.mrf.mxu0 }
 0x190   :  { %6984 = vmatpush.bf16.msrb.mxu0 %v10382_v8  ;;  %v13603_v57 = vld [vmem:[#allocation5 + $0xd64] sm:$0xf]  ;;  %v10475_v21 = vld [vmem:[#allocation5 + $0xd70] sm:$0xf0]  ;;  %v10350_v1 = vor.u32 %v13571_v56, %v10347_v6  ;;  %v6746_v47 = vpop.f32.mrf.mxu1 }
 0x191   :  { %6997 = vmatpush.bf16.msrb.mxu1 %v10510_v14  ;;  %v13635_v60 = vld [vmem:[#allocation5 + $0xe64] sm:$0xf]  ;;  %v10603_v62 = vld [vmem:[#allocation5 + $0xe70] sm:$0xf0]  ;;  %v10478_v9 = vor.u32 %v13603_v57, %v10475_v21 }
 0x192   :  { %7010 = vmatpush.bf16.msrb.mxu2 %v10638_v52  ;;  %v13667_v0 = vld [vmem:[#allocation5 + $0xf64] sm:$0xf]  ;;  %v10731_v2 = vld [vmem:[#allocation5 + $0xf70] sm:$0xf0]  ;;  %v10606_v4 = vor.u32 %v13635_v60, %v10603_v62 }
 0x193   :  { %7023 = vmatpush.bf16.msrb.mxu3 %v10766_v48  ;;  %v13567_v43 = vld [vmem:[#allocation5 + $0xc44] sm:$0xf]  ;;  %v10331_v8 = vld [vmem:[#allocation5 + $0xc50] sm:$0xf0]  ;;  %v10734_v52 = vor.u32 %v13667_v0, %v10731_v2 }
 0x194   :  { %6985 = vmatpush.bf16.msrb.mxu0 %v10366_v50  ;;  %v13599_v14 = vld [vmem:[#allocation5 + $0xd44] sm:$0xf]  ;;  %v10459_v15 = vld [vmem:[#allocation5 + $0xd50] sm:$0xf0]  ;;  %v10334_v63 = vor.u32 %v13567_v43, %v10331_v8  ;;  %v14700_v50 = vadd.f32 %v6770_v36, %v6758_v26 }
 0x195   :  { %6998 = vmatpush.bf16.msrb.mxu1 %v10494_v3  ;;  %v13631_v24 = vld [vmem:[#allocation5 + $0xe44] sm:$0xf]  ;;  %v10587_v48 = vld [vmem:[#allocation5 + $0xe50] sm:$0xf0]  ;;  %v10462_v51 = vor.u32 %v13599_v14, %v10459_v15 }
 0x196   :  { %7011 = vmatpush.bf16.msrb.mxu2 %v10622_v58  ;;  %v13663_v27 = vld [vmem:[#allocation5 + $0xf44] sm:$0xf]  ;;  %v10715_v39 = vld [vmem:[#allocation5 + $0xf50] sm:$0xf0]  ;;  %v10590_v3 = vor.u32 %v13631_v24, %v10587_v48  ;;  %v6759_v48 = vpop.f32.mrf.mxu2 }
 0x197   :  { %7024 = vmatpush.bf16.msrb.mxu3 %v10750_v59  ;;  %v13563_v58 = vld [vmem:[#allocation5 + $0xc24] sm:$0xf]  ;;  %v10315_v56 = vld [vmem:[#allocation5 + $0xc30] sm:$0xf0]  ;;  %v10718_v57 = vor.u32 %v13663_v27, %v10715_v39  ;;  %v6772_v39 = vpop.f32.mrf.mxu3 }
 0x198   :  { %6986 = vmatpush.bf16.msrb.mxu0 %v10350_v1  ;;  %v13595_v6 = vld [vmem:[#allocation5 + $0xd24] sm:$0xf]  ;;  %v10443_v59 = vld [vmem:[#allocation5 + $0xd30] sm:$0xf0]  ;;  %v10318_v0 = vor.u32 %v13563_v58, %v10315_v56 }
 0x199   :  { %6999 = vmatpush.bf16.msrb.mxu1 %v10478_v9  ;;  %v13627_v61 = vld [vmem:[#allocation5 + $0xe24] sm:$0xf]  ;;  %v10571_v21 = vld [vmem:[#allocation5 + $0xe30] sm:$0xf0]  ;;  %v10446_v9 = vor.u32 %v13595_v6, %v10443_v59 }
 0x19a   :  { %7012 = vmatpush.bf16.msrb.mxu2 %v10606_v4  ;;  %v13659_v60 = vld [vmem:[#allocation5 + $0xf24] sm:$0xf]  ;;  %v10699_v62 = vld [vmem:[#allocation5 + $0xf30] sm:$0xf0]  ;;  %v10574_v4 = vor.u32 %v13627_v61, %v10571_v21 }
 0x19b   :  { %7025 = vmatpush.bf16.msrb.mxu3 %v10734_v52  ;;  %v13559_v2 = vld [vmem:[#allocation5 + $0xc04] sm:$0xf]  ;;  %v10299_v1 = vld [vmem:[#allocation5 + $0xc10] sm:$0xf0]  ;;  %v10702_v32 = vor.u32 %v13659_v60, %v10699_v62 }
 0x19c   :  { %6987 = vmatpush.bf16.msrb.mxu0 %v10334_v63  ;;  %v13591_v43 = vld [vmem:[#allocation5 + $0xd04] sm:$0xf]  ;;  %v10427_v8 = vld [vmem:[#allocation5 + $0xd10] sm:$0xf0]  ;;  %v10302_v40 = vor.u32 %v13559_v2, %v10299_v1 }
 0x19d   :  { %7000 = vmatpush.bf16.msrb.mxu1 %v10462_v51  ;;  %v13623_v14 = vld [vmem:[#allocation5 + $0xe04] sm:$0xf]  ;;  %v10555_v52 = vld [vmem:[#allocation5 + $0xe10] sm:$0xf0] }
 0x19e   :  { %7013 = vmatpush.bf16.msrb.mxu2 %v10590_v3  ;;  %v13655_v15 = vld [vmem:[#allocation5 + $0xf04] sm:$0xf]  ;;  %v10683_v24 = vld [vmem:[#allocation5 + $0xf10] sm:$0xf0]  ;;  %v10430_v3 = vor.u32 %v13591_v43, %v10427_v8  ;;  %v10558_v58 = vor.u32 %v13623_v14, %v10555_v52 }
 0x19f   :  { %7026 = vmatpush.bf16.msrb.mxu3 %v10718_v57  ;;  %v13715_v26 = vld [vmem:[#allocation5 + $0x10e4] sm:$0xf]  ;;  %v10923_v36 = vld [vmem:[#allocation5 + $0x10f0] sm:$0xf0]  ;;  %v10686_v57 = vor.u32 %v13655_v15, %v10683_v24 }
 0x1a0   :  { %v13747_v27 = vld [vmem:[#allocation5 + $0x11e4] sm:$0xf]  ;;  %6988 = vmatpush.bf16.msrb.mxu0 %v10318_v0  ;;  %v11051_v63 = vld [vmem:[#allocation5 + $0x11f0] sm:$0xf0]  ;;  %v10926_v59 = vor.u32 %v13715_v26, %v10923_v36 }
 0x1a1   :  { %v13779_v47 = vld [vmem:[#allocation5 + $0x12e4] sm:$0xf]  ;;  %v11179_v51 = vld [vmem:[#allocation5 + $0x12f0] sm:$0xf0]  ;;  %7001 = vmatpush.bf16.msrb.mxu1 %v10446_v9  ;;  %v11054_v61 = vor.u32 %v13747_v27, %v11051_v63 }
 0x1a2   :  { %7014 = vmatpush.bf16.msrb.mxu2 %v10574_v4  ;;  %v13811_v56 = vld [vmem:[#allocation5 + $0x13e4] sm:$0xf]  ;;  %v11307_v6 = vld [vmem:[#allocation5 + $0x13f0] sm:$0xf0]  ;;  %v11182_v21 = vor.u32 %v13779_v47, %v11179_v51 }
 0x1a3   :  { %7027 = vmatpush.bf16.msrb.mxu3 %v10702_v32  ;;  %v13711_v60 = vld [vmem:[#allocation5 + $0x10c4] sm:$0xf]  ;;  %v10907_v62 = vld [vmem:[#allocation5 + $0x10d0] sm:$0xf0]  ;;  %v11310_v0 = vor.u32 %v13811_v56, %v11307_v6 }
 0x1a4   :  { %v13743_v48 = vld [vmem:[#allocation5 + $0x11c4] sm:$0xf]  ;;  %6989 = vmatpush.bf16.msrb.mxu0 %v10302_v40  ;;  %v11035_v2 = vld [vmem:[#allocation5 + $0x11d0] sm:$0xf0]  ;;  %v10910_v43 = vor.u32 %v13711_v60, %v10907_v62  ;;  %v6783_v60 = vpop.f32.mrf.mxu0 }
 0x1a5   :  { %v13775_v1 = vld [vmem:[#allocation5 + $0x12c4] sm:$0xf]  ;;  %v11163_v39 = vld [vmem:[#allocation5 + $0x12d0] sm:$0xf0]  ;;  %7002 = vmatpush.bf16.msrb.mxu1 %v10430_v3  ;;  %v11038_v8 = vor.u32 %v13743_v48, %v11035_v2 }
 0x1a6   :  { %7015 = vmatpush.bf16.msrb.mxu2 %v10558_v58  ;;  %v13807_v9 = vld [vmem:[#allocation5 + $0x13c4] sm:$0xf]  ;;  %v11291_v4 = vld [vmem:[#allocation5 + $0x13d0] sm:$0xf0]  ;;  %v11166_v14 = vor.u32 %v13775_v1, %v11163_v39  ;;  %v6796_v1 = vpop.f32.mrf.mxu1 }
 0x1a7   :  { %7028 = vmatpush.bf16.msrb.mxu3 %v10686_v57  ;;  %v13707_v32 = vld [vmem:[#allocation5 + $0x10a4] sm:$0xf]  ;;  %v10891_v52 = vld [vmem:[#allocation5 + $0x10b0] sm:$0xf0]  ;;  %6990 = vmatmul.bf16.vlgmr.msrb.gmra.mxu0 %v14610_v23  ;;  %v11294_v24 = vor.u32 %v13807_v9, %v11291_v4 }
 0x1a8   :  { %7034 = vmatpush.bf16.msra.mxu0 %v10926_v59  ;;  %v13739_v15 = vld [vmem:[#allocation5 + $0x11a4] sm:$0xf]  ;;  %v11019_v26 = vld [vmem:[#allocation5 + $0x11b0] sm:$0xf0]  ;;  %7003 = vmatmul.bf16.vlgmr.msrb.gmra.mxu1 %v14614_v31  ;;  %v10894_v47 = vor.u32 %v13707_v32, %v10891_v52 }
 0x1a9   :  { %7047 = vmatpush.bf16.msra.mxu1 %v11054_v61  ;;  %v13771_v36 = vld [vmem:[#allocation5 + $0x12a4] sm:$0xf]  ;;  %v11147_v27 = vld [vmem:[#allocation5 + $0x12b0] sm:$0xf0]  ;;  %7016 = vmatmul.bf16.vlgmr.msrb.gmra.mxu2 %v14612_v28  ;;  %v11022_v51 = vor.u32 %v13739_v15, %v11019_v26 }
 0x1aa   :  { %7060 = vmatpush.bf16.msra.mxu2 %v11182_v21  ;;  %v13803_v40 = vld [vmem:[#allocation5 + $0x13a4] sm:$0xf]  ;;  %v11275_v63 = vld [vmem:[#allocation5 + $0x13b0] sm:$0xf0]  ;;  %7029 = vmatmul.bf16.vlgmr.msrb.gmra.mxu3 %v14616_v35  ;;  %v11150_v3 = vor.u32 %v13771_v36, %v11147_v27 }
 0x1ab   :  { %7073 = vmatpush.bf16.msra.mxu3 %v11310_v0  ;;  %v13703_v58 = vld [vmem:[#allocation5 + $0x1084] sm:$0xf]  ;;  %v10875_v56 = vld [vmem:[#allocation5 + $0x1090] sm:$0xf0]  ;;  %v11278_v57 = vor.u32 %v13803_v40, %v11275_v63  ;;  %v6784_v0 = vadd.f32 %v6783_v60, %v14700_v50 }
 0x1ac   :  { %7035 = vmatpush.bf16.msra.mxu0 %v10910_v43  ;;  %v13735_v6 = vld [vmem:[#allocation5 + $0x1184] sm:$0xf]  ;;  %v11003_v59 = vld [vmem:[#allocation5 + $0x1190] sm:$0xf0]  ;;  %v10878_v2 = vor.u32 %v13703_v58, %v10875_v56  ;;  %v6809_v58 = vpop.f32.mrf.mxu2 }
 0x1ad   :  { %7048 = vmatpush.bf16.msra.mxu1 %v11038_v8  ;;  %v13767_v61 = vld [vmem:[#allocation5 + $0x1284] sm:$0xf]  ;;  %v11131_v21 = vld [vmem:[#allocation5 + $0x1290] sm:$0xf0]  ;;  %v11006_v39 = vor.u32 %v13735_v6, %v11003_v59  ;;  %v6797_v32 = vadd.f32 %v6796_v1, %v6784_v0 }
 0x1ae   :  { %7061 = vmatpush.bf16.msra.mxu2 %v11166_v14  ;;  %v13799_v62 = vld [vmem:[#allocation5 + $0x1384] sm:$0xf]  ;;  %v11259_v48 = vld [vmem:[#allocation5 + $0x1390] sm:$0xf0]  ;;  %v11134_v9 = vor.u32 %v13767_v61, %v11131_v21  ;;  %v6822_v61 = vpop.f32.mrf.mxu3  ;;  %v6798_v0 = vpop.f32.mrf.mxu1 }
 0x1af   :  { %7074 = vmatpush.bf16.msra.mxu3 %v11294_v24  ;;  %v13699_v4 = vld [vmem:[#allocation5 + $0x1064] sm:$0xf]  ;;  %v10859_v43 = vld [vmem:[#allocation5 + $0x1070] sm:$0xf0]  ;;  %v11262_v14 = vor.u32 %v13799_v62, %v11259_v48  ;;  %v6810_v59 = vadd.f32 %v6809_v58, %v6797_v32  ;;  %v6785_v62 = vpop.f32.mrf.mxu0 }
 0x1b0   :  { %7036 = vmatpush.bf16.msra.mxu0 %v10894_v47  ;;  %v13731_v8 = vld [vmem:[#allocation5 + $0x1164] sm:$0xf]  ;;  %v10987_v52 = vld [vmem:[#allocation5 + $0x1170] sm:$0xf0]  ;;  %v10862_v27 = vor.u32 %v13699_v4, %v10859_v43 }
 0x1b1   :  { %7049 = vmatpush.bf16.msra.mxu1 %v11022_v51  ;;  %v13763_v15 = vld [vmem:[#allocation5 + $0x1264] sm:$0xf]  ;;  %v11115_v24 = vld [vmem:[#allocation5 + $0x1270] sm:$0xf0]  ;;  %v10990_v50 = vor.u32 %v13731_v8, %v10987_v52 }
 0x1b2   :  { %7062 = vmatpush.bf16.msra.mxu2 %v11150_v3  ;;  %v13795_v26 = vld [vmem:[#allocation5 + $0x1364] sm:$0xf]  ;;  %v11243_v36 = vld [vmem:[#allocation5 + $0x1370] sm:$0xf0]  ;;  %v11118_v40 = vor.u32 %v13763_v15, %v11115_v24 }
 0x1b3   :  { %7075 = vmatpush.bf16.msra.mxu3 %v11278_v57  ;;  %v13695_v63 = vld [vmem:[#allocation5 + $0x1044] sm:$0xf]  ;;  %v10843_v47 = vld [vmem:[#allocation5 + $0x1050] sm:$0xf0]  ;;  %v11246_v3 = vor.u32 %v13795_v26, %v11243_v36 }
 0x1b4   :  { %7037 = vmatpush.bf16.msra.mxu0 %v10878_v2  ;;  %v13727_v51 = vld [vmem:[#allocation5 + $0x1144] sm:$0xf]  ;;  %v10971_v56 = vld [vmem:[#allocation5 + $0x1150] sm:$0xf0]  ;;  %v10846_v48 = vor.u32 %v13695_v63, %v10843_v47  ;;  %v14707_v2 = vadd.f32 %v6822_v61, %v6810_v59 }
 0x1b5   :  { %7050 = vmatpush.bf16.msra.mxu1 %v11006_v39  ;;  %v13759_v6 = vld [vmem:[#allocation5 + $0x1244] sm:$0xf]  ;;  %v11099_v57 = vld [vmem:[#allocation5 + $0x1250] sm:$0xf0]  ;;  %v10974_v1 = vor.u32 %v13727_v51, %v10971_v56 }
 0x1b6   :  { %7063 = vmatpush.bf16.msra.mxu2 %v11134_v9  ;;  %v13791_v21 = vld [vmem:[#allocation5 + $0x1344] sm:$0xf]  ;;  %v11227_v60 = vld [vmem:[#allocation5 + $0x1350] sm:$0xf0]  ;;  %14876 = vst [vmem:[#allocation20_spill] sm:$0xff] %v14707_v2  ;;  %v11102_v39 = vor.u32 %v13759_v6, %v11099_v57  ;;  %v6811_v57 = vpop.f32.mrf.mxu2 }
 0x1b7   :  { %7076 = vmatpush.bf16.msra.mxu3 %v11262_v14  ;;  %v13691_v9 = vld [vmem:[#allocation5 + $0x1024] sm:$0xf]  ;;  %v10827_v4 = vld [vmem:[#allocation5 + $0x1030] sm:$0xf0]  ;;  %v11230_v8 = vor.u32 %v13791_v21, %v11227_v60  ;;  %v6824_v60 = vpop.f32.mrf.mxu3 }
 0x1b8   :  { %7038 = vmatpush.bf16.msra.mxu0 %v10862_v27  ;;  %v13723_v43 = vld [vmem:[#allocation5 + $0x1124] sm:$0xf]  ;;  %v10955_v14 = vld [vmem:[#allocation5 + $0x1130] sm:$0xf0]  ;;  %v10830_v26 = vor.u32 %v13691_v9, %v10827_v4 }
 0x1b9   :  { %7051 = vmatpush.bf16.msra.mxu1 %v10990_v50  ;;  %v13755_v32 = vld [vmem:[#allocation5 + $0x1224] sm:$0xf]  ;;  %v11083_v52 = vld [vmem:[#allocation5 + $0x1230] sm:$0xf0]  ;;  %v10958_v50 = vor.u32 %v13723_v43, %v10955_v14 }
 0x1ba   :  { %7064 = vmatpush.bf16.msra.mxu2 %v11118_v40  ;;  %v13787_v15 = vld [vmem:[#allocation5 + $0x1324] sm:$0xf]  ;;  %v11211_v24 = vld [vmem:[#allocation5 + $0x1330] sm:$0xf0]  ;;  %v11086_v40 = vor.u32 %v13755_v32, %v11083_v52 }
 0x1bb   :  { %7077 = vmatpush.bf16.msra.mxu3 %v11246_v3  ;;  %v13687_v36 = vld [vmem:[#allocation5 + $0x1004] sm:$0xf]  ;;  %v10811_v27 = vld [vmem:[#allocation5 + $0x1010] sm:$0xf0]  ;;  %v11214_v58 = vor.u32 %v13787_v15, %v11211_v24 }
 0x1bc   :  { %7039 = vmatpush.bf16.msra.mxu0 %v10846_v48  ;;  %v13719_v63 = vld [vmem:[#allocation5 + $0x1104] sm:$0xf]  ;;  %v10939_v47 = vld [vmem:[#allocation5 + $0x1110] sm:$0xf0]  ;;  %v10814_v62 = vor.u32 %v13687_v36, %v10811_v27 }
 0x1bd   :  { %7052 = vmatpush.bf16.msra.mxu1 %v10974_v1  ;;  %v13751_v51 = vld [vmem:[#allocation5 + $0x1204] sm:$0xf]  ;;  %v11067_v3 = vld [vmem:[#allocation5 + $0x1210] sm:$0xf0] }
 0x1be   :  { %7065 = vmatpush.bf16.msra.mxu2 %v11102_v39  ;;  %v13783_v56 = vld [vmem:[#allocation5 + $0x1304] sm:$0xf]  ;;  %v11195_v6 = vld [vmem:[#allocation5 + $0x1310] sm:$0xf0]  ;;  %v10942_v39 = vor.u32 %v13719_v63, %v10939_v47  ;;  %v11070_v9 = vor.u32 %v13751_v51, %v11067_v3 }
 0x1bf   :  { %7078 = vmatpush.bf16.msra.mxu3 %v11230_v8  ;;  %v13843_v59 = vld [vmem:[#allocation5 + $0x14e4] sm:$0xf]  ;;  %v11435_v61 = vld [vmem:[#allocation5 + $0x14f0] sm:$0xf0]  ;;  %v11198_v8 = vor.u32 %v13783_v56, %v11195_v6 }
 0x1c0   :  { %v13875_v21 = vld [vmem:[#allocation5 + $0x15e4] sm:$0xf]  ;;  %7040 = vmatpush.bf16.msra.mxu0 %v10830_v26  ;;  %v11563_v48 = vld [vmem:[#allocation5 + $0x15f0] sm:$0xf0]  ;;  %v11438_v14 = vor.u32 %v13843_v59, %v11435_v61 }
 0x1c1   :  { %v13907_v0 = vld [vmem:[#allocation5 + $0x16e4] sm:$0xf]  ;;  %v11691_v1 = vld [vmem:[#allocation5 + $0x16f0] sm:$0xf0]  ;;  %7053 = vmatpush.bf16.msra.mxu1 %v10958_v50  ;;  %v11566_v32 = vor.u32 %v13875_v21, %v11563_v48 }
 0x1c2   :  { %7066 = vmatpush.bf16.msra.mxu2 %v11086_v40  ;;  %v13939_v4 = vld [vmem:[#allocation5 + $0x17e4] sm:$0xf]  ;;  %v11819_v43 = vld [vmem:[#allocation5 + $0x17f0] sm:$0xf0]  ;;  %v11694_v52 = vor.u32 %v13907_v0, %v11691_v1 }
 0x1c3   :  { %7079 = vmatpush.bf16.msra.mxu3 %v11214_v58  ;;  %v13839_v15 = vld [vmem:[#allocation5 + $0x14c4] sm:$0xf]  ;;  %v11419_v24 = vld [vmem:[#allocation5 + $0x14d0] sm:$0xf0]  ;;  %v11822_v26 = vor.u32 %v13939_v4, %v11819_v43 }
 0x1c4   :  { %v13871_v57 = vld [vmem:[#allocation5 + $0x15c4] sm:$0xf]  ;;  %7041 = vmatpush.bf16.msra.mxu0 %v10814_v62  ;;  %v11547_v36 = vld [vmem:[#allocation5 + $0x15d0] sm:$0xf0]  ;;  %v11422_v63 = vor.u32 %v13839_v15, %v11419_v24 }
 0x1c5   :  { %v13903_v27 = vld [vmem:[#allocation5 + $0x16c4] sm:$0xf]  ;;  %v11675_v60 = vld [vmem:[#allocation5 + $0x16d0] sm:$0xf0]  ;;  %7054 = vmatpush.bf16.msra.mxu1 %v10942_v39  ;;  %v11550_v47 = vor.u32 %v13871_v57, %v11547_v36 }
 0x1c6   :  { %7067 = vmatpush.bf16.msra.mxu2 %v11070_v9  ;;  %v13935_v50 = vld [vmem:[#allocation5 + $0x17c4] sm:$0xf]  ;;  %v11803_v40 = vld [vmem:[#allocation5 + $0x17d0] sm:$0xf0]  ;;  %v11678_v51 = vor.u32 %v13903_v27, %v11675_v60  ;;  %v6835_v27 = vpop.f32.mrf.mxu0 }
 0x1c7   :  { %7080 = vmatpush.bf16.msra.mxu3 %v11198_v8  ;;  %v13835_v58 = vld [vmem:[#allocation5 + $0x14a4] sm:$0xf]  ;;  %v11403_v3 = vld [vmem:[#allocation5 + $0x14b0] sm:$0xf0]  ;;  %7042 = vmatmul.bf16.vlgmr.msra.gmra.mxu0 %v14622_v37  ;;  %v11806_v6 = vor.u32 %v13935_v50, %v11803_v40  ;;  %v14294_v8 = vld [vmem:[#allocation7] sm:$0xf] }
 0x1c8   :  { %7086 = vmatpush.bf16.msrb.mxu0 %v11438_v14  ;;  %v13867_v56 = vld [vmem:[#allocation5 + $0x15a4] sm:$0xf]  ;;  %v11531_v59 = vld [vmem:[#allocation5 + $0x15b0] sm:$0xf0]  ;;  %7055 = vmatmul.bf16.vlgmr.msra.gmra.mxu1 %v14626_v46  ;;  %v11406_v0 = vor.u32 %v13835_v58, %v11403_v3  ;;  %v1171_v14 = vperm.slane %v14294_v8, 1  ;;  %v6848_v58 = vpop.f32.mrf.mxu1 }
 0x1c9   :  { %7099 = vmatpush.bf16.msrb.mxu1 %v11566_v32  ;;  %v13899_v61 = vld [vmem:[#allocation5 + $0x16a4] sm:$0xf]  ;;  %v11659_v21 = vld [vmem:[#allocation5 + $0x16b0] sm:$0xf0]  ;;  %7068 = vmatmul.bf16.vlgmr.msra.gmra.mxu2 %v14624_v45  ;;  %v11534_v39 = vor.u32 %v13867_v56, %v11531_v59 }
 0x1ca   :  { %7112 = vmatpush.bf16.msrb.mxu2 %v11694_v52  ;;  %v13931_v62 = vld [vmem:[#allocation5 + $0x17a4] sm:$0xf]  ;;  %v11787_v48 = vld [vmem:[#allocation5 + $0x17b0] sm:$0xf0]  ;;  %7081 = vmatmul.bf16.vlgmr.msra.gmra.mxu3 %v14628_v49  ;;  %v11662_v9 = vor.u32 %v13899_v61, %v11659_v21 }
 0x1cb   :  { %7125 = vmatpush.bf16.msrb.mxu3 %v11822_v26  ;;  %v13831_v1 = vld [vmem:[#allocation5 + $0x1484] sm:$0xf]  ;;  %v11387_v4 = vld [vmem:[#allocation5 + $0x1490] sm:$0xf0]  ;;  %v11790_v32 = vor.u32 %v13931_v62, %v11787_v48 }
 0x1cc   :  { %7087 = vmatpush.bf16.msrb.mxu0 %v11422_v63  ;;  %v13863_v43 = vld [vmem:[#allocation5 + $0x1584] sm:$0xf]  ;;  %v11515_v52 = vld [vmem:[#allocation5 + $0x1590] sm:$0xf0]  ;;  %v11390_v36 = vor.u32 %v13831_v1, %v11387_v4 }
 0x1cd   :  { %7100 = vmatpush.bf16.msrb.mxu1 %v11550_v47  ;;  %v13895_v15 = vld [vmem:[#allocation5 + $0x1684] sm:$0xf]  ;;  %v11643_v24 = vld [vmem:[#allocation5 + $0x1690] sm:$0xf0]  ;;  %v11518_v60 = vor.u32 %v13863_v43, %v11515_v52  ;;  %v6861_v43 = vpop.f32.mrf.mxu2 }
 0x1ce   :  { %7113 = vmatpush.bf16.msrb.mxu2 %v11678_v51  ;;  %v13927_v57 = vld [vmem:[#allocation5 + $0x1784] sm:$0xf]  ;;  %v11771_v26 = vld [vmem:[#allocation5 + $0x1790] sm:$0xf0]  ;;  %v11646_v50 = vor.u32 %v13895_v15, %v11643_v24  ;;  %v6836_v51 = vadd.f32 %v6835_v27, %v1171_v14  ;;  %v6874_v24 = vpop.f32.mrf.mxu3 }
 0x1cf   :  { %7126 = vmatpush.bf16.msrb.mxu3 %v11806_v6  ;;  %v13827_v40 = vld [vmem:[#allocation5 + $0x1464] sm:$0xf]  ;;  %v11371_v63 = vld [vmem:[#allocation5 + $0x1470] sm:$0xf0]  ;;  %v11774_v3 = vor.u32 %v13927_v57, %v11771_v26 }
 0x1d0   :  { %7088 = vmatpush.bf16.msrb.mxu0 %v11406_v0  ;;  %v13859_v47 = vld [vmem:[#allocation5 + $0x1564] sm:$0xf]  ;;  %v11499_v56 = vld [vmem:[#allocation5 + $0x1570] sm:$0xf0]  ;;  %v6849_v62 = vadd.f32 %v6848_v58, %v6836_v51  ;;  %v11374_v48 = vor.u32 %v13827_v40, %v11371_v63  ;;  %v6850_v58 = vpop.f32.mrf.mxu1 }
 0x1d1   :  { %7101 = vmatpush.bf16.msrb.mxu1 %v11534_v39  ;;  %v13891_v6 = vld [vmem:[#allocation5 + $0x1664] sm:$0xf]  ;;  %v11627_v59 = vld [vmem:[#allocation5 + $0x1670] sm:$0xf0]  ;;  %v11502_v0 = vor.u32 %v13859_v47, %v11499_v56 }
 0x1d2   :  { %7114 = vmatpush.bf16.msrb.mxu2 %v11662_v9  ;;  %v13923_v61 = vld [vmem:[#allocation5 + $0x1764] sm:$0xf]  ;;  %v11755_v21 = vld [vmem:[#allocation5 + $0x1770] sm:$0xf0]  ;;  %v11630_v1 = vor.u32 %v13891_v6, %v11627_v59  ;;  %v6862_v15 = vadd.f32 %v6861_v43, %v6849_v62 }
 0x1d3   :  { %7127 = vmatpush.bf16.msrb.mxu3 %v11790_v32  ;;  %v13823_v39 = vld [vmem:[#allocation5 + $0x1444] sm:$0xf]  ;;  %v11355_v9 = vld [vmem:[#allocation5 + $0x1450] sm:$0xf0]  ;;  %v11758_v8 = vor.u32 %v13923_v61, %v11755_v21 }
 0x1d4   :  { %7089 = vmatpush.bf16.msrb.mxu0 %v11390_v36  ;;  %v13855_v4 = vld [vmem:[#allocation5 + $0x1544] sm:$0xf]  ;;  %v11483_v14 = vld [vmem:[#allocation5 + $0x1550] sm:$0xf0]  ;;  %v11358_v36 = vor.u32 %v13823_v39, %v11355_v9  ;;  %v14713_v27 = vadd.f32 %v6874_v24, %v6862_v15 }
 0x1d5   :  { %7102 = vmatpush.bf16.msrb.mxu1 %v11518_v60  ;;  %v13887_v32 = vld [vmem:[#allocation5 + $0x1644] sm:$0xf]  ;;  %v11611_v52 = vld [vmem:[#allocation5 + $0x1650] sm:$0xf0]  ;;  %v6837_v60 = vpop.f32.mrf.mxu0 }
 0x1d6   :  { %7115 = vmatpush.bf16.msrb.mxu2 %v11646_v50  ;;  %v13919_v57 = vld [vmem:[#allocation5 + $0x1744] sm:$0xf]  ;;  %v11739_v26 = vld [vmem:[#allocation5 + $0x1750] sm:$0xf0]  ;;  %v11486_v50 = vor.u32 %v13855_v4, %v11483_v14  ;;  %v11614_v40 = vor.u32 %v13887_v32, %v11611_v52  ;;  %v6863_v14 = vpop.f32.mrf.mxu2  ;;  %v6876_v24 = vpop.f32.mrf.mxu3 }
 0x1d7   :  { %7128 = vmatpush.bf16.msrb.mxu3 %v11774_v3  ;;  %v13819_v63 = vld [vmem:[#allocation5 + $0x1424] sm:$0xf]  ;;  %v11339_v47 = vld [vmem:[#allocation5 + $0x1430] sm:$0xf0]  ;;  %v11742_v3 = vor.u32 %v13919_v57, %v11739_v26 }
 0x1d8   :  { %7090 = vmatpush.bf16.msrb.mxu0 %v11374_v48  ;;  %v13851_v51 = vld [vmem:[#allocation5 + $0x1524] sm:$0xf]  ;;  %v11467_v56 = vld [vmem:[#allocation5 + $0x1530] sm:$0xf0]  ;;  %v11342_v62 = vor.u32 %v13819_v63, %v11339_v47 }
 0x1d9   :  { %7103 = vmatpush.bf16.msrb.mxu1 %v11502_v0  ;;  %v13883_v6 = vld [vmem:[#allocation5 + $0x1624] sm:$0xf]  ;;  %v11595_v59 = vld [vmem:[#allocation5 + $0x1630] sm:$0xf0]  ;;  %v11470_v0 = vor.u32 %v13851_v51, %v11467_v56 }
 0x1da   :  { %7116 = vmatpush.bf16.msrb.mxu2 %v11630_v1  ;;  %v13915_v61 = vld [vmem:[#allocation5 + $0x1724] sm:$0xf]  ;;  %v11723_v21 = vld [vmem:[#allocation5 + $0x1730] sm:$0xf0]  ;;  %v11598_v1 = vor.u32 %v13883_v6, %v11595_v59 }
 0x1db   :  { %7129 = vmatpush.bf16.msrb.mxu3 %v11758_v8  ;;  %v13815_v48 = vld [vmem:[#allocation5 + $0x1404] sm:$0xf]  ;;  %v11323_v39 = vld [vmem:[#allocation5 + $0x1410] sm:$0xf0]  ;;  %v11726_v8 = vor.u32 %v13915_v61, %v11723_v21 }
 0x1dc   :  { %7091 = vmatpush.bf16.msrb.mxu0 %v11358_v36  ;;  %v13847_v9 = vld [vmem:[#allocation5 + $0x1504] sm:$0xf]  ;;  %v11451_v4 = vld [vmem:[#allocation5 + $0x1510] sm:$0xf0]  ;;  %v11326_v60 = vor.u32 %v13815_v48, %v11323_v39 }
 0x1dd   :  { %7104 = vmatpush.bf16.msrb.mxu1 %v11486_v50  ;;  %v13879_v43 = vld [vmem:[#allocation5 + $0x1604] sm:$0xf]  ;;  %v11579_v32 = vld [vmem:[#allocation5 + $0x1610] sm:$0xf0]  ;;  %v11454_v47 = vor.u32 %v13847_v9, %v11451_v4 }
 0x1de   :  { %7117 = vmatpush.bf16.msrb.mxu2 %v11614_v40  ;;  %v13911_v52 = vld [vmem:[#allocation5 + $0x1704] sm:$0xf]  ;;  %v11707_v15 = vld [vmem:[#allocation5 + $0x1710] sm:$0xf0]  ;;  %v11582_v51 = vor.u32 %v13879_v43, %v11579_v32 }
 0x1df   :  { %7130 = vmatpush.bf16.msrb.mxu3 %v11742_v3  ;;  %v13971_v57 = vld [vmem:[#allocation5 + $0x18e4] sm:$0xf]  ;;  %v11947_v26 = vld [vmem:[#allocation5 + $0x18f0] sm:$0xf0]  ;;  %v11710_v3 = vor.u32 %v13911_v52, %v11707_v15 }
 0x1e0   :  { %v14003_v36 = vld [vmem:[#allocation5 + $0x19e4] sm:$0xf]  ;;  %7092 = vmatpush.bf16.msrb.mxu0 %v11342_v62  ;;  %v12075_v63 = vld [vmem:[#allocation5 + $0x19f0] sm:$0xf0]  ;;  %v11950_v6 = vor.u32 %v13971_v57, %v11947_v26 }
 0x1e1   :  { %v14035_v50 = vld [vmem:[#allocation5 + $0x1ae4] sm:$0xf]  ;;  %v12203_v40 = vld [vmem:[#allocation5 + $0x1af0] sm:$0xf0]  ;;  %7105 = vmatpush.bf16.msrb.mxu1 %v11470_v0  ;;  %v12078_v59 = vor.u32 %v14003_v36, %v12075_v63 }
 0x1e2   :  { %7118 = vmatpush.bf16.msrb.mxu2 %v11598_v1  ;;  %v14067_v58 = vld [vmem:[#allocation5 + $0x1be4] sm:$0xf]  ;;  %v12331_v56 = vld [vmem:[#allocation5 + $0x1bf0] sm:$0xf0]  ;;  %v12206_v61 = vor.u32 %v14035_v50, %v12203_v40 }
 0x1e3   :  { %7131 = vmatpush.bf16.msrb.mxu3 %v11726_v8  ;;  %v13967_v21 = vld [vmem:[#allocation5 + $0x18c4] sm:$0xf]  ;;  %v11931_v14 = vld [vmem:[#allocation5 + $0x18d0] sm:$0xf0]  ;;  %v12334_v62 = vor.u32 %v14067_v58, %v12331_v56 }
 0x1e4   :  { %v13999_v24 = vld [vmem:[#allocation5 + $0x19c4] sm:$0xf]  ;;  %7093 = vmatpush.bf16.msrb.mxu0 %v11326_v60  ;;  %v12059_v48 = vld [vmem:[#allocation5 + $0x19d0] sm:$0xf0]  ;;  %v11934_v9 = vor.u32 %v13967_v21, %v11931_v14 }
 0x1e5   :  { %v14031_v39 = vld [vmem:[#allocation5 + $0x1ac4] sm:$0xf]  ;;  %v12187_v2 = vld [vmem:[#allocation5 + $0x1ad0] sm:$0xf0]  ;;  %7106 = vmatpush.bf16.msrb.mxu1 %v11454_v47  ;;  %v12062_v4 = vor.u32 %v13999_v24, %v12059_v48  ;;  %v6887_v24 = vpop.f32.mrf.mxu0 }
 0x1e6   :  { %7119 = vmatpush.bf16.msrb.mxu2 %v11582_v51  ;;  %v14063_v0 = vld [vmem:[#allocation5 + $0x1bc4] sm:$0xf]  ;;  %v12315_v1 = vld [vmem:[#allocation5 + $0x1bd0] sm:$0xf0]  ;;  %v12190_v43 = vor.u32 %v14031_v39, %v12187_v2 }
 0x1e7   :  { %7132 = vmatpush.bf16.msrb.mxu3 %v11710_v3  ;;  %v13963_v8 = vld [vmem:[#allocation5 + $0x18a4] sm:$0xf]  ;;  %v11915_v32 = vld [vmem:[#allocation5 + $0x18b0] sm:$0xf0]  ;;  %7094 = vmatmul.bf16.vlgmr.msrb.gmra.mxu0 %v14636_v7  ;;  %v12318_v15 = vor.u32 %v14063_v0, %v12315_v1 }
 0x1e8   :  { %7138 = vmatpush.bf16.msra.mxu0 %v11950_v6  ;;  %v13995_v52 = vld [vmem:[#allocation5 + $0x19a4] sm:$0xf]  ;;  %v12043_v57 = vld [vmem:[#allocation5 + $0x19b0] sm:$0xf0]  ;;  %7107 = vmatmul.bf16.vlgmr.msrb.gmra.mxu1 %v14640_v12  ;;  %v11918_v2 = vor.u32 %v13963_v8, %v11915_v32 }
 0x1e9   :  { %7151 = vmatpush.bf16.msra.mxu1 %v12078_v59  ;;  %v14027_v26 = vld [vmem:[#allocation5 + $0x1aa4] sm:$0xf]  ;;  %v12171_v36 = vld [vmem:[#allocation5 + $0x1ab0] sm:$0xf0]  ;;  %7120 = vmatmul.bf16.vlgmr.msrb.gmra.mxu2 %v14638_v11  ;;  %v12046_v50 = vor.u32 %v13995_v52, %v12043_v57 }
 0x1ea   :  { %7164 = vmatpush.bf16.msra.mxu2 %v12206_v61  ;;  %v14059_v60 = vld [vmem:[#allocation5 + $0x1ba4] sm:$0xf]  ;;  %v12299_v63 = vld [vmem:[#allocation5 + $0x1bb0] sm:$0xf0]  ;;  %7133 = vmatmul.bf16.vlgmr.msrb.gmra.mxu3 %v14642_v16  ;;  %v12174_v40 = vor.u32 %v14027_v26, %v12171_v36 }
 0x1eb   :  { %7177 = vmatpush.bf16.msra.mxu3 %v12334_v62  ;;  %v13959_v47 = vld [vmem:[#allocation5 + $0x1884] sm:$0xf]  ;;  %v11899_v51 = vld [vmem:[#allocation5 + $0x1890] sm:$0xf0]  ;;  %v12302_v56 = vor.u32 %v14059_v60, %v12299_v63 }
 0x1ec   :  { %7139 = vmatpush.bf16.msra.mxu0 %v11934_v9  ;;  %v13991_v58 = vld [vmem:[#allocation5 + $0x1984] sm:$0xf]  ;;  %v12027_v3 = vld [vmem:[#allocation5 + $0x1990] sm:$0xf0]  ;;  %v11902_v14 = vor.u32 %v13959_v47, %v11899_v51  ;;  %v6888_v9 = vadd.f32 %v6887_v24, %v14713_v27  ;;  %v6913_v47 = vpop.f32.mrf.mxu2 }
 0x1ed   :  { %7152 = vmatpush.bf16.msra.mxu1 %v12062_v4  ;;  %v14023_v6 = vld [vmem:[#allocation5 + $0x1a84] sm:$0xf]  ;;  %v12155_v59 = vld [vmem:[#allocation5 + $0x1a90] sm:$0xf0]  ;;  %v12030_v62 = vor.u32 %v13991_v58, %v12027_v3  ;;  %v6900_v4 = vpop.f32.mrf.mxu1  ;;  %v6889_v24 = vpop.f32.mrf.mxu0 }
 0x1ee   :  { %7165 = vmatpush.bf16.msra.mxu2 %v12190_v43  ;;  %v14055_v61 = vld [vmem:[#allocation5 + $0x1b84] sm:$0xf]  ;;  %v12283_v21 = vld [vmem:[#allocation5 + $0x1b90] sm:$0xf0]  ;;  %v12158_v48 = vor.u32 %v14023_v6, %v12155_v59  ;;  %v6901_v26 = vadd.f32 %v6900_v4, %v6888_v9  ;;  %v6926_v6 = vpop.f32.mrf.mxu3 }
 0x1ef   :  { %7178 = vmatpush.bf16.msra.mxu3 %v12318_v15  ;;  %v13955_v39 = vld [vmem:[#allocation5 + $0x1864] sm:$0xf]  ;;  %v11883_v0 = vld [vmem:[#allocation5 + $0x1870] sm:$0xf0]  ;;  %v12286_v43 = vor.u32 %v14055_v61, %v12283_v21 }
 0x1f0   :  { %7140 = vmatpush.bf16.msra.mxu0 %v11918_v2  ;;  %v13987_v1 = vld [vmem:[#allocation5 + $0x1964] sm:$0xf]  ;;  %v12011_v8 = vld [vmem:[#allocation5 + $0x1970] sm:$0xf0]  ;;  %v11886_v36 = vor.u32 %v13955_v39, %v11883_v0  ;;  %v6914_v3 = vadd.f32 %v6913_v47, %v6901_v26 }
 0x1f1   :  { %7153 = vmatpush.bf16.msra.mxu1 %v12046_v50  ;;  %v14019_v32 = vld [vmem:[#allocation5 + $0x1a64] sm:$0xf]  ;;  %v12139_v52 = vld [vmem:[#allocation5 + $0x1a70] sm:$0xf0]  ;;  %v12014_v60 = vor.u32 %v13987_v1, %v12011_v8 }
 0x1f2   :  { %7166 = vmatpush.bf16.msra.mxu2 %v12174_v40  ;;  %v14051_v15 = vld [vmem:[#allocation5 + $0x1b64] sm:$0xf]  ;;  %v12267_v57 = vld [vmem:[#allocation5 + $0x1b70] sm:$0xf0]  ;;  %v12142_v63 = vor.u32 %v14019_v32, %v12139_v52 }
 0x1f3   :  { %7179 = vmatpush.bf16.msra.mxu3 %v12302_v56  ;;  %v13951_v2 = vld [vmem:[#allocation5 + $0x1844] sm:$0xf]  ;;  %v11867_v50 = vld [vmem:[#allocation5 + $0x1850] sm:$0xf0]  ;;  %v12270_v27 = vor.u32 %v14051_v15, %v12267_v57 }
 0x1f4   :  { %7141 = vmatpush.bf16.msra.mxu0 %v11902_v14  ;;  %v13983_v40 = vld [vmem:[#allocation5 + $0x1944] sm:$0xf]  ;;  %v11995_v51 = vld [vmem:[#allocation5 + $0x1950] sm:$0xf0]  ;;  %v11870_v21 = vor.u32 %v13951_v2, %v11867_v50  ;;  %v14720_v14 = vadd.f32 %v6926_v6, %v6914_v3  ;;  %v6915_v47 = vpop.f32.mrf.mxu2 }
 0x1f5   :  { %7154 = vmatpush.bf16.msra.mxu1 %v12030_v62  ;;  %v14015_v58 = vld [vmem:[#allocation5 + $0x1a44] sm:$0xf]  ;;  %v12123_v56 = vld [vmem:[#allocation5 + $0x1a50] sm:$0xf0]  ;;  %v11998_v62 = vor.u32 %v13983_v40, %v11995_v51  ;;  %v6902_v9 = vpop.f32.mrf.mxu1 }
 0x1f6   :  { %7167 = vmatpush.bf16.msra.mxu2 %v12158_v48  ;;  %v14047_v59 = vld [vmem:[#allocation5 + $0x1b44] sm:$0xf]  ;;  %v12251_v61 = vld [vmem:[#allocation5 + $0x1b50] sm:$0xf0]  ;;  %v12126_v48 = vor.u32 %v14015_v58, %v12123_v56  ;;  %v6928_v3 = vpop.f32.mrf.mxu3 }
 0x1f7   :  { %7180 = vmatpush.bf16.msra.mxu3 %v12286_v43  ;;  %v13947_v39 = vld [vmem:[#allocation5 + $0x1824] sm:$0xf]  ;;  %v11851_v0 = vld [vmem:[#allocation5 + $0x1830] sm:$0xf0]  ;;  %v12254_v4 = vor.u32 %v14047_v59, %v12251_v61 }
 0x1f8   :  { %7142 = vmatpush.bf16.msra.mxu0 %v11886_v36  ;;  %v13979_v1 = vld [vmem:[#allocation5 + $0x1924] sm:$0xf]  ;;  %v11979_v43 = vld [vmem:[#allocation5 + $0x1930] sm:$0xf0]  ;;  %v11854_v57 = vor.u32 %v13947_v39, %v11851_v0 }
 0x1f9   :  { %7155 = vmatpush.bf16.msra.mxu1 %v12014_v60  ;;  %v14011_v8 = vld [vmem:[#allocation5 + $0x1a24] sm:$0xf]  ;;  %v12107_v32 = vld [vmem:[#allocation5 + $0x1a30] sm:$0xf0]  ;;  %v11982_v60 = vor.u32 %v13979_v1, %v11979_v43 }
 0x1fa   :  { %7168 = vmatpush.bf16.msra.mxu2 %v12142_v63  ;;  %v14043_v52 = vld [vmem:[#allocation5 + $0x1b24] sm:$0xf]  ;;  %v12235_v15 = vld [vmem:[#allocation5 + $0x1b30] sm:$0xf0]  ;;  %v12110_v63 = vor.u32 %v14011_v8, %v12107_v32 }
 0x1fb   :  { %7181 = vmatpush.bf16.msra.mxu3 %v12270_v27  ;;  %v13943_v26 = vld [vmem:[#allocation5 + $0x1804] sm:$0xf]  ;;  %v11835_v36 = vld [vmem:[#allocation5 + $0x1810] sm:$0xf0]  ;;  %v12238_v27 = vor.u32 %v14043_v52, %v12235_v15 }
 0x1fc   :  { %7143 = vmatpush.bf16.msra.mxu0 %v11870_v21  ;;  %v13975_v2 = vld [vmem:[#allocation5 + $0x1904] sm:$0xf]  ;;  %v11963_v50 = vld [vmem:[#allocation5 + $0x1910] sm:$0xf0]  ;;  %v11838_v21 = vor.u32 %v13943_v26, %v11835_v36 }
 0x1fd   :  { %7156 = vmatpush.bf16.msra.mxu1 %v11998_v62  ;;  %v14007_v40 = vld [vmem:[#allocation5 + $0x1a04] sm:$0xf]  ;;  %v12091_v51 = vld [vmem:[#allocation5 + $0x1a10] sm:$0xf0]  ;;  %v11966_v39 = vor.u32 %v13975_v2, %v11963_v50 }
 0x1fe   :  { %7169 = vmatpush.bf16.msra.mxu2 %v12126_v48  ;;  %v14039_v58 = vld [vmem:[#allocation5 + $0x1b04] sm:$0xf]  ;;  %v12219_v56 = vld [vmem:[#allocation5 + $0x1b10] sm:$0xf0]  ;;  %v12094_v0 = vor.u32 %v14007_v40, %v12091_v51 }
 0x1ff   :  { %7182 = vmatpush.bf16.msra.mxu3 %v12254_v4  ;;  %v14099_v6 = vld [vmem:[#allocation5 + $0x1ce4] sm:$0xf]  ;;  %v12459_v59 = vld [vmem:[#allocation5 + $0x1cf0] sm:$0xf0]  ;;  %v12222_v4 = vor.u32 %v14039_v58, %v12219_v56 }
 0x200   :  { %v14131_v61 = vld [vmem:[#allocation5 + $0x1de4] sm:$0xf]  ;;  %7144 = vmatpush.bf16.msra.mxu0 %v11854_v57  ;;  %v12587_v24 = vld [vmem:[#allocation5 + $0x1df0] sm:$0xf0]  ;;  %v12462_v43 = vor.u32 %v14099_v6, %v12459_v59 }
 0x201   :  { %v14163_v62 = vld [vmem:[#allocation5 + $0x1ee4] sm:$0xf]  ;;  %v12715_v48 = vld [vmem:[#allocation5 + $0x1ef0] sm:$0xf0]  ;;  %7157 = vmatpush.bf16.msra.mxu1 %v11982_v60  ;;  %v12590_v8 = vor.u32 %v14131_v61, %v12587_v24 }
 0x202   :  { %7170 = vmatpush.bf16.msra.mxu2 %v12110_v63  ;;  %v14195_v1 = vld [vmem:[#allocation5 + $0x1fe4] sm:$0xf]  ;;  %v12843_v9 = vld [vmem:[#allocation5 + $0x1ff0] sm:$0xf0]  ;;  %v12718_v32 = vor.u32 %v14163_v62, %v12715_v48 }
 0x203   :  { %7183 = vmatpush.bf16.msra.mxu3 %v12238_v27  ;;  %v14095_v52 = vld [vmem:[#allocation5 + $0x1cc4] sm:$0xf]  ;;  %v12443_v15 = vld [vmem:[#allocation5 + $0x1cd0] sm:$0xf0]  ;;  %v12846_v57 = vor.u32 %v14195_v1, %v12843_v9 }
 0x204   :  { %v14127_v47 = vld [vmem:[#allocation5 + $0x1dc4] sm:$0xf]  ;;  %7145 = vmatpush.bf16.msra.mxu0 %v11838_v21  ;;  %v12571_v26 = vld [vmem:[#allocation5 + $0x1dd0] sm:$0xf0]  ;;  %v12446_v2 = vor.u32 %v14095_v52, %v12443_v15  ;;  %v6939_v52 = vpop.f32.mrf.mxu0 }
 0x205   :  { %v14159_v36 = vld [vmem:[#allocation5 + $0x1ec4] sm:$0xf]  ;;  %v12699_v3 = vld [vmem:[#allocation5 + $0x1ed0] sm:$0xf0]  ;;  %7158 = vmatpush.bf16.msra.mxu1 %v11966_v39  ;;  %v12574_v50 = vor.u32 %v14127_v47, %v12571_v26 }
 0x206   :  { %7171 = vmatpush.bf16.msra.mxu2 %v12094_v0  ;;  %v14191_v60 = vld [vmem:[#allocation5 + $0x1fc4] sm:$0xf]  ;;  %v12827_v63 = vld [vmem:[#allocation5 + $0x1fd0] sm:$0xf0]  ;;  %v12702_v40 = vor.u32 %v14159_v36, %v12699_v3  ;;  %v6952_v36 = vpop.f32.mrf.mxu1 }
 0x207   :  { %7184 = vmatpush.bf16.msra.mxu3 %v12222_v4  ;;  %v14091_v27 = vld [vmem:[#allocation5 + $0x1ca4] sm:$0xf]  ;;  %v12427_v51 = vld [vmem:[#allocation5 + $0x1cb0] sm:$0xf0]  ;;  %7146 = vmatmul.bf16.vlgmr.msra.gmra.mxu0 %v14651_v5  ;;  %v12830_v56 = vor.u32 %v14191_v60, %v12827_v63 }
 0x208   :  { %7190 = vmatpush.bf16.msrb.mxu0 %v12462_v43  ;;  %v14123_v58 = vld [vmem:[#allocation5 + $0x1da4] sm:$0xf]  ;;  %v12555_v6 = vld [vmem:[#allocation5 + $0x1db0] sm:$0xf0]  ;;  %7159 = vmatmul.bf16.vlgmr.msra.gmra.mxu1 %v14655_v13  ;;  %v12430_v62 = vor.u32 %v14091_v27, %v12427_v51 }
 0x209   :  { %7203 = vmatpush.bf16.msrb.mxu1 %v12590_v8  ;;  %v14155_v59 = vld [vmem:[#allocation5 + $0x1ea4] sm:$0xf]  ;;  %v12683_v61 = vld [vmem:[#allocation5 + $0x1eb0] sm:$0xf0]  ;;  %7172 = vmatmul.bf16.vlgmr.msra.gmra.mxu2 %v14653_v10  ;;  %v12558_v48 = vor.u32 %v14123_v58, %v12555_v6 }
 0x20a   :  { %7216 = vmatpush.bf16.msrb.mxu2 %v12718_v32  ;;  %v14187_v21 = vld [vmem:[#allocation5 + $0x1fa4] sm:$0xf]  ;;  %v12811_v24 = vld [vmem:[#allocation5 + $0x1fb0] sm:$0xf0]  ;;  %7185 = vmatmul.bf16.vlgmr.msra.gmra.mxu3 %v14657_v17  ;;  %v12686_v39 = vor.u32 %v14155_v59, %v12683_v61 }
 0x20b   :  { %7229 = vmatpush.bf16.msrb.mxu3 %v12846_v57  ;;  %v14087_v0 = vld [vmem:[#allocation5 + $0x1c84] sm:$0xf]  ;;  %v12411_v1 = vld [vmem:[#allocation5 + $0x1c90] sm:$0xf0]  ;;  %v12814_v4 = vor.u32 %v14187_v21, %v12811_v24  ;;  %v6940_v57 = vadd.f32 %v6939_v52, %v14720_v14 }
 0x20c   :  { %7191 = vmatpush.bf16.msrb.mxu0 %v12446_v2  ;;  %v14119_v9 = vld [vmem:[#allocation5 + $0x1d84] sm:$0xf]  ;;  %v12539_v43 = vld [vmem:[#allocation5 + $0x1d90] sm:$0xf0]  ;;  %v12414_v26 = vor.u32 %v14087_v0, %v12411_v1  ;;  %v6965_v0 = vpop.f32.mrf.mxu2 }
 0x20d   :  { %7204 = vmatpush.bf16.msrb.mxu1 %v12574_v50  ;;  %v14151_v8 = vld [vmem:[#allocation5 + $0x1e84] sm:$0xf]  ;;  %v12667_v32 = vld [vmem:[#allocation5 + $0x1e90] sm:$0xf0]  ;;  %v12542_v3 = vor.u32 %v14119_v9, %v12539_v43  ;;  %v6953_v27 = vadd.f32 %v6952_v36, %v6940_v57 }
 0x20e   :  { %7217 = vmatpush.bf16.msrb.mxu2 %v12702_v40  ;;  %v14183_v15 = vld [vmem:[#allocation5 + $0x1f84] sm:$0xf]  ;;  %v12795_v47 = vld [vmem:[#allocation5 + $0x1f90] sm:$0xf0]  ;;  %v12670_v60 = vor.u32 %v14151_v8, %v12667_v32  ;;  %v6978_v8 = vpop.f32.mrf.mxu3  ;;  %v6954_v57 = vpop.f32.mrf.mxu1 }
 0x20f   :  { %7230 = vmatpush.bf16.msrb.mxu3 %v12830_v56  ;;  %v14083_v63 = vld [vmem:[#allocation5 + $0x1c64] sm:$0xf]  ;;  %v12395_v2 = vld [vmem:[#allocation5 + $0x1c70] sm:$0xf0]  ;;  %v12798_v40 = vor.u32 %v14183_v15, %v12795_v47  ;;  %v6966_v43 = vadd.f32 %v6965_v0, %v6953_v27  ;;  %v6941_v15 = vpop.f32.mrf.mxu0  ;;  %v9137_v57 = vld [vmem:[#allocation5 + $0x2e8] sm:$0xf] }
 0x210   :  { %7192 = vmatpush.bf16.msrb.mxu0 %v12430_v62  ;;  %v14115_v50 = vld [vmem:[#allocation5 + $0x1d64] sm:$0xf]  ;;  %v12523_v51 = vld [vmem:[#allocation5 + $0x1d70] sm:$0xf0]  ;;  %v12398_v61 = vor.u32 %v14083_v63, %v12395_v2 }
 0x211   :  { %7205 = vmatpush.bf16.msrb.mxu1 %v12558_v48  ;;  %v14147_v58 = vld [vmem:[#allocation5 + $0x1e64] sm:$0xf]  ;;  %v12651_v56 = vld [vmem:[#allocation5 + $0x1e70] sm:$0xf0]  ;;  %v12526_v14 = vor.u32 %v14115_v50, %v12523_v51 }
 0x212   :  { %7218 = vmatpush.bf16.msrb.mxu2 %v12686_v39  ;;  %v14179_v6 = vld [vmem:[#allocation5 + $0x1f64] sm:$0xf]  ;;  %v12779_v59 = vld [vmem:[#allocation5 + $0x1f70] sm:$0xf0]  ;;  %v12654_v21 = vor.u32 %v14147_v58, %v12651_v56 }
 0x213   :  { %7231 = vmatpush.bf16.msrb.mxu3 %v12814_v4  ;;  %v14079_v24 = vld [vmem:[#allocation5 + $0x1c44] sm:$0xf]  ;;  %v12379_v62 = vld [vmem:[#allocation5 + $0x1c50] sm:$0xf0]  ;;  %v12782_v39 = vor.u32 %v14179_v6, %v12779_v59 }
 0x214   :  { %7193 = vmatpush.bf16.msrb.mxu0 %v12414_v26  ;;  %v14111_v48 = vld [vmem:[#allocation5 + $0x1d44] sm:$0xf]  ;;  %v12507_v1 = vld [vmem:[#allocation5 + $0x1d50] sm:$0xf0]  ;;  %v12382_v47 = vor.u32 %v14079_v24, %v12379_v62  ;;  %v14727_v26 = vadd.f32 %v6978_v8, %v6966_v43  ;;  %v8881_v43 = vld [vmem:[#allocation5 + $0xe8] sm:$0xf] }
 0x215   :  { %7206 = vmatpush.bf16.msrb.mxu1 %v12542_v3  ;;  %v14143_v9 = vld [vmem:[#allocation5 + $0x1e44] sm:$0xf]  ;;  %v12635_v4 = vld [vmem:[#allocation5 + $0x1e50] sm:$0xf0]  ;;  %v12510_v36 = vor.u32 %v14111_v48, %v12507_v1  ;;  %v13206_v8 = vld [vmem:[#allocation5 + $0xf4] sm:$0xf0] }
 0x216   :  { %7219 = vmatpush.bf16.msrb.mxu2 %v12670_v60  ;;  %v14175_v32 = vld [vmem:[#allocation5 + $0x1f44] sm:$0xf]  ;;  %v12763_v52 = vld [vmem:[#allocation5 + $0x1f50] sm:$0xf0]  ;;  %v12638_v3 = vor.u32 %v14143_v9, %v12635_v4  ;;  %v6967_v4 = vpop.f32.mrf.mxu2 }
 0x217   :  { %7232 = vmatpush.bf16.msrb.mxu3 %v12798_v40  ;;  %v14075_v60 = vld [vmem:[#allocation5 + $0x1c24] sm:$0xf]  ;;  %v12363_v63 = vld [vmem:[#allocation5 + $0x1c30] sm:$0xf0]  ;;  %v12766_v50 = vor.u32 %v14175_v32, %v12763_v52  ;;  %v9009_v32 = vld [vmem:[#allocation5 + $0x1e8] sm:$0xf]  ;;  %v6980_v52 = vpop.f32.mrf.mxu3 }
 0x218   :  { %7194 = vmatpush.bf16.msrb.mxu0 %v12398_v61  ;;  %v14107_v2 = vld [vmem:[#allocation5 + $0x1d24] sm:$0xf]  ;;  %v12491_v40 = vld [vmem:[#allocation5 + $0x1d30] sm:$0xf0]  ;;  %v12366_v6 = vor.u32 %v14075_v60, %v12363_v63  ;;  %v9265_v63 = vld [vmem:[#allocation5 + $0x3e8] sm:$0xf] }
 0x219   :  { %7207 = vmatpush.bf16.msrb.mxu1 %v12526_v14  ;;  %v14139_v27 = vld [vmem:[#allocation5 + $0x1e24] sm:$0xf]  ;;  %v12619_v51 = vld [vmem:[#allocation5 + $0x1e30] sm:$0xf0]  ;;  %v12494_v14 = vor.u32 %v14107_v2, %v12491_v40  ;;  %v13302_v2 = vld [vmem:[#allocation5 + $0x3f4] sm:$0xf0]  ;;  %v8882_v40 = vor.u32 %v13206_v8, %v8881_v43 }
 0x21a   :  { %7220 = vmatpush.bf16.msrb.mxu2 %v12654_v21  ;;  %v14171_v58 = vld [vmem:[#allocation5 + $0x1f24] sm:$0xf]  ;;  %v12747_v56 = vld [vmem:[#allocation5 + $0x1f30] sm:$0xf0]  ;;  %v12622_v21 = vor.u32 %v14139_v27, %v12619_v51  ;;  %v8993_v4 = vld [vmem:[#allocation5 + $0x1c8] sm:$0xf] }
 0x21b   :  { %7233 = vmatpush.bf16.msrb.mxu3 %v12782_v39  ;;  %v14071_v59 = vld [vmem:[#allocation5 + $0x1c04] sm:$0xf]  ;;  %v12347_v61 = vld [vmem:[#allocation5 + $0x1c10] sm:$0xf0]  ;;  %v12750_v0 = vor.u32 %v14171_v58, %v12747_v56  ;;  %v8865_v58 = vld [vmem:[#allocation5 + $0xc8] sm:$0xf] }
 0x21c   :  { %7195 = vmatpush.bf16.msrb.mxu0 %v12382_v47  ;;  %v14103_v24 = vld [vmem:[#allocation5 + $0x1d04] sm:$0xf]  ;;  %v12475_v62 = vld [vmem:[#allocation5 + $0x1d10] sm:$0xf0]  ;;  %v12350_v15 = vor.u32 %v14071_v59, %v12347_v61  ;;  %v13238_v47 = vld [vmem:[#allocation5 + $0x1f4] sm:$0xf0] }
 0x21d   :  { %7208 = vmatpush.bf16.msrb.mxu1 %v12510_v36  ;;  %v14135_v48 = vld [vmem:[#allocation5 + $0x1e04] sm:$0xf]  ;;  %v12603_v39 = vld [vmem:[#allocation5 + $0x1e10] sm:$0xf0]  ;;  %v13270_v36 = vld [vmem:[#allocation5 + $0x2f4] sm:$0xf0]  ;;  %v9010_v27 = vor.u32 %v13238_v47, %v9009_v32 }
 0x21e   :  { %7221 = vmatpush.bf16.msrb.mxu2 %v12638_v3  ;;  %v14167_v1 = vld [vmem:[#allocation5 + $0x1f04] sm:$0xf]  ;;  %v12731_v9 = vld [vmem:[#allocation5 + $0x1f10] sm:$0xf0]  ;;  %v12478_v3 = vor.u32 %v14103_v24, %v12475_v62  ;;  %v12606_v60 = vor.u32 %v14135_v48, %v12603_v39  ;;  %v9138_v51 = vor.u32 %v13270_v36, %v9137_v57  ;;  %v13202_v56 = vld [vmem:[#allocation5 + $0xd4] sm:$0xf0] }
 0x21f   :  { %7234 = vmatpush.bf16.msrb.mxu3 %v12766_v50  ;;  %v12734_v50 = vor.u32 %v14167_v1, %v12731_v9  ;;  %v13234_v59 = vld [vmem:[#allocation5 + $0x1d4] sm:$0xf0]  ;;  %v9121_v61 = vld [vmem:[#allocation5 + $0x2c8] sm:$0xf]  ;;  %v8866_v24 = vor.u32 %v13202_v56, %v8865_v58 }
 0x220   :  { %7196 = vmatpush.bf16.msrb.mxu0 %v12366_v6  ;;  %v9266_v6 = vor.u32 %v13302_v2, %v9265_v63  ;;  %v13266_v52 = vld [vmem:[#allocation5 + $0x2d4] sm:$0xf0]  ;;  %v8994_v62 = vor.u32 %v13234_v59, %v8993_v4  ;;  %v8977_v1 = vld [vmem:[#allocation5 + $0x1a8] sm:$0xf] }
 0x221   :  { %7209 = vmatpush.bf16.msrb.mxu1 %v12494_v14  ;;  %v9249_v14 = vld [vmem:[#allocation5 + $0x3c8] sm:$0xf]  ;;  %v9122_v48 = vor.u32 %v13266_v52, %v9121_v61  ;;  %v13198_v39 = vld [vmem:[#allocation5 + $0xb4] sm:$0xf0] }
 0x222   :  { %7222 = vmatpush.bf16.msrb.mxu2 %v12622_v21  ;;  %v13298_v21 = vld [vmem:[#allocation5 + $0x3d4] sm:$0xf0]  ;;  %v9105_v8 = vld [vmem:[#allocation5 + $0x2a8] sm:$0xf] }
 0x223   :  { %7235 = vmatpush.bf16.msrb.mxu3 %v12750_v0  ;;  %v8849_v0 = vld [vmem:[#allocation5 + $0xa8] sm:$0xf]  ;;  %v9250_v9 = vor.u32 %v13298_v21, %v9249_v14  ;;  %v13230_v43 = vld [vmem:[#allocation5 + $0x1b4] sm:$0xf0] }
 0x224   :  { %7197 = vmatpush.bf16.msrb.mxu0 %v12350_v15  ;;  %v13262_v32 = vld [vmem:[#allocation5 + $0x2b4] sm:$0xf0]  ;;  %v9233_v15 = vld [vmem:[#allocation5 + $0x3a8] sm:$0xf]  ;;  %v8850_v57 = vor.u32 %v13198_v39, %v8849_v0  ;;  %v8978_v36 = vor.u32 %v13230_v43, %v8977_v1  ;;  %v6991_v58 = vpop.f32.mrf.mxu0 }
 0x225   :  { %7210 = vmatpush.bf16.msrb.mxu1 %v12478_v3  ;;  %v13294_v47 = vld [vmem:[#allocation5 + $0x3b4] sm:$0xf0]  ;;  %v9106_v3 = vor.u32 %v13262_v32, %v9105_v8  ;;  %v8961_v2 = vld [vmem:[#allocation5 + $0x188] sm:$0xf]  ;;  %v7004_v61 = vpop.f32.mrf.mxu1 }
 0x226   :  { %7223 = vmatpush.bf16.msrb.mxu2 %v12606_v60  ;;  %v8833_v60 = vld [vmem:[#allocation5 + $0x88] sm:$0xf]  ;;  %v13194_v63 = vld [vmem:[#allocation5 + $0x94] sm:$0xf0] }
 0x227   :  { %7236 = vmatpush.bf16.msrb.mxu3 %v12734_v50  ;;  %7198 = vmatmul.bf16.vlgmr.msrb.gmra.mxu0 %v14666_v54  ;;  %v9234_v50 = vor.u32 %v13294_v47, %v9233_v15  ;;  %v9217_v56 = vld [vmem:[#allocation5 + $0x388] sm:$0xf]  ;;  %v13290_v4 = vld [vmem:[#allocation5 + $0x394] sm:$0xf0]  ;;  %v8834_v59 = vor.u32 %v13194_v63, %v8833_v60 }
 0x228   :  { %7242 = vmatpush.bf16.msra.mxu0 %v8882_v40  ;;  %7211 = vmatmul.bf16.vlgmr.msrb.gmra.mxu1 %v14670_v55  ;;  %v13226_v40 = vld [vmem:[#allocation5 + $0x194] sm:$0xf0]  ;;  %v8817_v21 = vld [vmem:[#allocation5 + $0x68] sm:$0xf] }
 0x229   :  { %7255 = vmatpush.bf16.msra.mxu1 %v9010_v27  ;;  %7224 = vmatmul.bf16.vlgmr.msrb.gmra.mxu2 %v14668_v34  ;;  %v9089_v27 = vld [vmem:[#allocation5 + $0x288] sm:$0xf]  ;;  %v8962_v52 = vor.u32 %v13226_v40, %v8961_v2  ;;  %v13222_v39 = vld [vmem:[#allocation5 + $0x174] sm:$0xf0] }
 0x22a   :  { %7268 = vmatpush.bf16.msra.mxu2 %v9138_v51  ;;  %7237 = vmatmul.bf16.vlgmr.msrb.gmra.mxu3 %v14672_v53  ;;  %v13258_v51 = vld [vmem:[#allocation5 + $0x294] sm:$0xf0]  ;;  %v9073_v1 = vld [vmem:[#allocation5 + $0x268] sm:$0xf] }
 0x22b   :  { %7281 = vmatpush.bf16.msra.mxu3 %v9266_v6  ;;  %v6992_v6 = vadd.f32 %v6991_v58, %v14727_v26  ;;  %v9090_v14 = vor.u32 %v13258_v51, %v9089_v27  ;;  %v9201_v43 = vld [vmem:[#allocation5 + $0x368] sm:$0xf]  ;;  %v13286_v8 = vld [vmem:[#allocation5 + $0x374] sm:$0xf0] }
 0x22c   :  { %7243 = vmatpush.bf16.msra.mxu0 %v8866_v24  ;;  %v13190_v24 = vld [vmem:[#allocation5 + $0x74] sm:$0xf0]  ;;  %v8801_v47 = vld [vmem:[#allocation5 + $0x48] sm:$0xf]  ;;  %v7017_v60 = vpop.f32.mrf.mxu2 }
 0x22d   :  { %7256 = vmatpush.bf16.msra.mxu1 %v8994_v62  ;;  %v8945_v62 = vld [vmem:[#allocation5 + $0x168] sm:$0xf]  ;;  %v7005_v0 = vadd.f32 %v7004_v61, %v6992_v6  ;;  %v8818_v32 = vor.u32 %v13190_v24, %v8817_v21  ;;  %v13218_v63 = vld [vmem:[#allocation5 + $0x154] sm:$0xf0]  ;;  %v7030_v27 = vpop.f32.mrf.mxu3  ;;  %v7006_v6 = vpop.f32.mrf.mxu1 }
 0x22e   :  { %7269 = vmatpush.bf16.msra.mxu2 %v9122_v48  ;;  %v9218_v48 = vor.u32 %v13290_v4, %v9217_v56  ;;  %v8946_v26 = vor.u32 %v13222_v39, %v8945_v62  ;;  %v9057_v2 = vld [vmem:[#allocation5 + $0x248] sm:$0xf]  ;;  %v13282_v58 = vld [vmem:[#allocation5 + $0x354] sm:$0xf0]  ;;  %v6993_v56 = vpop.f32.mrf.mxu0 }
 0x22f   :  { %7282 = vmatpush.bf16.msra.mxu3 %v9250_v9  ;;  %v13254_v9 = vld [vmem:[#allocation5 + $0x274] sm:$0xf0]  ;;  %v7018_v40 = vadd.f32 %v7017_v60, %v7005_v0  ;;  %v9185_v51 = vld [vmem:[#allocation5 + $0x348] sm:$0xf] }
 0x230   :  { %7244 = vmatpush.bf16.msra.mxu0 %v8850_v57  ;;  %v9074_v15 = vor.u32 %v13254_v9, %v9073_v1  ;;  %v13186_v57 = vld [vmem:[#allocation5 + $0x54] sm:$0xf0]  ;;  %v8913_v24 = vld [vmem:[#allocation5 + $0x128] sm:$0xf]  ;;  %v9186_v62 = vor.u32 %v13282_v58, %v9185_v51 }
 0x231   :  { %7257 = vmatpush.bf16.msra.mxu1 %v8978_v36  ;;  %v8929_v36 = vld [vmem:[#allocation5 + $0x148] sm:$0xf]  ;;  %v8802_v4 = vor.u32 %v13186_v57, %v8801_v47  ;;  %v13182_v21 = vld [vmem:[#allocation5 + $0x34] sm:$0xf0] }
 0x232   :  { %7270 = vmatpush.bf16.msra.mxu2 %v9106_v3  ;;  %v9202_v3 = vor.u32 %v13286_v8, %v9201_v43  ;;  %v8930_v61 = vor.u32 %v13218_v63, %v8929_v36  ;;  %v9041_v0 = vld [vmem:[#allocation5 + $0x228] sm:$0xf]  ;;  %v13246_v39 = vld [vmem:[#allocation5 + $0x234] sm:$0xf0] }
 0x233   :  { %7283 = vmatpush.bf16.msra.mxu3 %v9234_v50  ;;  %v13250_v50 = vld [vmem:[#allocation5 + $0x254] sm:$0xf0]  ;;  %v9169_v1 = vld [vmem:[#allocation5 + $0x328] sm:$0xf] }
 0x234   :  { %7245 = vmatpush.bf16.msra.mxu0 %v8834_v59  ;;  %v14734_v59 = vadd.f32 %v7030_v27, %v7018_v40  ;;  %v13278_v9 = vld [vmem:[#allocation5 + $0x334] sm:$0xf0]  ;;  %v8769_v8 = vld [vmem:[#allocation5 + $0x8] sm:$0xf] }
 0x235   :  { %7258 = vmatpush.bf16.msra.mxu1 %v8962_v52  ;;  %v9058_v52 = vor.u32 %v13250_v50, %v9057_v2  ;;  %v8897_v47 = vld [vmem:[#allocation5 + $0x108] sm:$0xf]  ;;  %v13210_v57 = vld [vmem:[#allocation5 + $0x114] sm:$0xf0]  ;;  %v9170_v60 = vor.u32 %v13278_v9, %v9169_v1  ;;  %v7019_v50 = vpop.f32.mrf.mxu2  ;;  %v7032_v58 = vpop.f32.mrf.mxu3 }
 0x236   :  { %7271 = vmatpush.bf16.msra.mxu2 %v9090_v14  ;;  %v8785_v14 = vld [vmem:[#allocation5 + $0x28] sm:$0xf]  ;;  %v13274_v2 = vld [vmem:[#allocation5 + $0x314] sm:$0xf0] }
 0x237   :  { %7284 = vmatpush.bf16.msra.mxu3 %v9218_v48  ;;  %v13214_v48 = vld [vmem:[#allocation5 + $0x134] sm:$0xf0]  ;;  %v8786_v43 = vor.u32 %v13182_v21, %v8785_v14  ;;  %v9025_v36 = vld [vmem:[#allocation5 + $0x208] sm:$0xf] }
 0x238   :  { %7246 = vmatpush.bf16.msra.mxu0 %v8818_v32  ;;  %v13178_v32 = vld [vmem:[#allocation5 + $0x14] sm:$0xf0]  ;;  %v9153_v63 = vld [vmem:[#allocation5 + $0x308] sm:$0xf] }
 0x239   :  { %7259 = vmatpush.bf16.msra.mxu1 %v8946_v26  ;;  %v8914_v26 = vor.u32 %v13214_v48, %v8913_v24  ;;  %v9393_v40 = vld [vmem:[#allocation5 + $0x4e8] sm:$0xf]  ;;  %v13334_v27 = vld [vmem:[#allocation5 + $0x4f4] sm:$0xf0]  ;;  %v8770_v56 = vor.u32 %v13178_v32, %v8769_v8 }
 0x23a   :  { %7272 = vmatpush.bf16.msra.mxu2 %v9074_v15  ;;  %v9042_v15 = vor.u32 %v13246_v39, %v9041_v0  ;;  %v9521_v51 = vld [vmem:[#allocation5 + $0x5e8] sm:$0xf]  ;;  %v13430_v24 = vld [vmem:[#allocation5 + $0x7f4] sm:$0xf0]  ;;  %v9394_v48 = vor.u32 %v13334_v27, %v9393_v40 }
 0x23b   :  { %7285 = vmatpush.bf16.msra.mxu3 %v9202_v3  ;;  %v13242_v3 = vld [vmem:[#allocation5 + $0x214] sm:$0xf0]  ;;  %v9649_v6 = vld [vmem:[#allocation5 + $0x6e8] sm:$0xf] }
 0x23c   :  { %7247 = vmatpush.bf16.msra.mxu0 %v8802_v4  ;;  %v13366_v4 = vld [vmem:[#allocation5 + $0x5f4] sm:$0xf0]  ;;  %v9026_v14 = vor.u32 %v13242_v3, %v9025_v36  ;;  %v9777_v21 = vld [vmem:[#allocation5 + $0x7e8] sm:$0xf] }
 0x23d   :  { %7260 = vmatpush.bf16.msra.mxu1 %v8930_v61  ;;  %v13398_v61 = vld [vmem:[#allocation5 + $0x6f4] sm:$0xf0]  ;;  %v9522_v0 = vor.u32 %v13366_v4, %v9521_v51  ;;  %v9377_v1 = vld [vmem:[#allocation5 + $0x4c8] sm:$0xf] }
 0x23e   :  { %7273 = vmatpush.bf16.msra.mxu2 %v9058_v52  ;;  %v8898_v52 = vor.u32 %v13210_v57, %v8897_v47  ;;  %v9650_v39 = vor.u32 %v13398_v61, %v9649_v6  ;;  %v13330_v9 = vld [vmem:[#allocation5 + $0x4d4] sm:$0xf0]  ;;  %v9505_v50 = vld [vmem:[#allocation5 + $0x5c8] sm:$0xf] }
 0x23f   :  { %7286 = vmatpush.bf16.msra.mxu3 %v9186_v62  ;;  %v9154_v62 = vor.u32 %v13274_v2, %v9153_v63  ;;  %v13362_v8 = vld [vmem:[#allocation5 + $0x5d4] sm:$0xf0]  ;;  %v9633_v32 = vld [vmem:[#allocation5 + $0x6c8] sm:$0xf]  ;;  %v9378_v47 = vor.u32 %v13330_v9, %v9377_v1 }
 0x240   :  { %7248 = vmatpush.bf16.msra.mxu0 %v8786_v43  ;;  %v9778_v43 = vor.u32 %v13430_v24, %v9777_v21  ;;  %v13394_v58 = vld [vmem:[#allocation5 + $0x6d4] sm:$0xf0]  ;;  %v9506_v57 = vor.u32 %v13362_v8, %v9505_v50  ;;  %v9489_v63 = vld [vmem:[#allocation5 + $0x5a8] sm:$0xf] }
 0x241   :  { %7261 = vmatpush.bf16.msra.mxu1 %v8914_v26  ;;  %v9761_v26 = vld [vmem:[#allocation5 + $0x7c8] sm:$0xf]  ;;  %v9634_v36 = vor.u32 %v13394_v58, %v9633_v32  ;;  %v13326_v3 = vld [vmem:[#allocation5 + $0x4b4] sm:$0xf0] }
 0x242   :  { %7274 = vmatpush.bf16.msra.mxu2 %v9042_v15  ;;  %v13426_v15 = vld [vmem:[#allocation5 + $0x7d4] sm:$0xf0]  ;;  %v9617_v27 = vld [vmem:[#allocation5 + $0x6a8] sm:$0xf] }
 0x243   :  { %7287 = vmatpush.bf16.msra.mxu3 %v9170_v60  ;;  %v9361_v60 = vld [vmem:[#allocation5 + $0x4a8] sm:$0xf]  ;;  %v9762_v2 = vor.u32 %v13426_v15, %v9761_v26  ;;  %v13358_v40 = vld [vmem:[#allocation5 + $0x5b4] sm:$0xf0] }
 0x244   :  { %7249 = vmatpush.bf16.msra.mxu0 %v8770_v56  ;;  %v13390_v51 = vld [vmem:[#allocation5 + $0x6b4] sm:$0xf0]  ;;  %v9745_v56 = vld [vmem:[#allocation5 + $0x7a8] sm:$0xf]  ;;  %v9362_v6 = vor.u32 %v13326_v3, %v9361_v60  ;;  %v9490_v61 = vor.u32 %v13358_v40, %v9489_v63  ;;  %v7043_v1 = vpop.f32.mrf.mxu0 }
 0x245   :  { %7262 = vmatpush.bf16.msra.mxu1 %v8898_v52  ;;  %v13422_v4 = vld [vmem:[#allocation5 + $0x7b4] sm:$0xf0]  ;;  %v9618_v52 = vor.u32 %v13390_v51, %v9617_v27  ;;  %v9473_v24 = vld [vmem:[#allocation5 + $0x588] sm:$0xf]  ;;  %v7056_v32 = vpop.f32.mrf.mxu1 }
 0x246   :  { %7275 = vmatpush.bf16.msra.mxu2 %v9026_v14  ;;  %v9345_v14 = vld [vmem:[#allocation5 + $0x488] sm:$0xf]  ;;  %v13322_v21 = vld [vmem:[#allocation5 + $0x494] sm:$0xf0] }
 0x247   :  { %7288 = vmatpush.bf16.msra.mxu3 %v9154_v62  ;;  %7250 = vmatmul.bf16.vlgmr.msra.gmra.mxu0 %v14576_v19  ;;  %v9746_v62 = vor.u32 %v13422_v4, %v9745_v56  ;;  %v9729_v9 = vld [vmem:[#allocation5 + $0x788] sm:$0xf]  ;;  %v13418_v50 = vld [vmem:[#allocation5 + $0x794] sm:$0xf0]  ;;  %v9346_v8 = vor.u32 %v13322_v21, %v9345_v14 }
 0x248   :  { %7294 = vmatpush.bf16.msrb.mxu0 %v9394_v48  ;;  %7263 = vmatmul.bf16.vlgmr.msra.gmra.mxu1 %v14580_v22  ;;  %v13354_v48 = vld [vmem:[#allocation5 + $0x594] sm:$0xf0]  ;;  %v9329_v15 = vld [vmem:[#allocation5 + $0x468] sm:$0xf] }
 0x249   :  { %7307 = vmatpush.bf16.msrb.mxu1 %v9522_v0  ;;  %7276 = vmatmul.bf16.vlgmr.msra.gmra.mxu2 %v14574_v18  ;;  %v9601_v0 = vld [vmem:[#allocation5 + $0x688] sm:$0xf]  ;;  %v9474_v58 = vor.u32 %v13354_v48, %v9473_v24  ;;  %v13350_v3 = vld [vmem:[#allocation5 + $0x574] sm:$0xf0] }
 0x24a   :  { %7320 = vmatpush.bf16.msrb.mxu2 %v9650_v39  ;;  %7289 = vmatmul.bf16.vlgmr.msra.gmra.mxu3 %v14578_v20  ;;  %v13386_v39 = vld [vmem:[#allocation5 + $0x694] sm:$0xf0]  ;;  %v9585_v63 = vld [vmem:[#allocation5 + $0x668] sm:$0xf] }
 0x24b   :  { %7333 = vmatpush.bf16.msrb.mxu3 %v9778_v43  ;;  %v7044_v43 = vadd.f32 %v7043_v1, %v14734_v59  ;;  %v9602_v26 = vor.u32 %v13386_v39, %v9601_v0  ;;  %v9713_v40 = vld [vmem:[#allocation5 + $0x768] sm:$0xf]  ;;  %v13414_v27 = vld [vmem:[#allocation5 + $0x774] sm:$0xf0] }
 0x24c   :  { %7295 = vmatpush.bf16.msrb.mxu0 %v9378_v47  ;;  %v13318_v47 = vld [vmem:[#allocation5 + $0x474] sm:$0xf0]  ;;  %v9313_v4 = vld [vmem:[#allocation5 + $0x448] sm:$0xf]  ;;  %v7069_v14 = vpop.f32.mrf.mxu2 }
 0x24d   :  { %7308 = vmatpush.bf16.msrb.mxu1 %v9506_v57  ;;  %v9457_v57 = vld [vmem:[#allocation5 + $0x568] sm:$0xf]  ;;  %v7057_v60 = vadd.f32 %v7056_v32, %v7044_v43  ;;  %v9330_v51 = vor.u32 %v13318_v47, %v9329_v15  ;;  %v13346_v21 = vld [vmem:[#allocation5 + $0x554] sm:$0xf0]  ;;  %v7082_v0 = vpop.f32.mrf.mxu3  ;;  %v7058_v43 = vpop.f32.mrf.mxu1 }
 0x24e   :  { %7321 = vmatpush.bf16.msrb.mxu2 %v9634_v36  ;;  %v9730_v36 = vor.u32 %v13418_v50, %v9729_v9  ;;  %v9458_v59 = vor.u32 %v13350_v3, %v9457_v57  ;;  %v9569_v24 = vld [vmem:[#allocation5 + $0x648] sm:$0xf]  ;;  %v13410_v1 = vld [vmem:[#allocation5 + $0x754] sm:$0xf0]  ;;  %v7045_v9 = vpop.f32.mrf.mxu0 }
 0x24f   :  { %7334 = vmatpush.bf16.msrb.mxu3 %v9762_v2  ;;  %v13382_v2 = vld [vmem:[#allocation5 + $0x674] sm:$0xf0]  ;;  %v7070_v48 = vadd.f32 %v7069_v14, %v7057_v60  ;;  %v9697_v39 = vld [vmem:[#allocation5 + $0x748] sm:$0xf] }
 0x250   :  { %7296 = vmatpush.bf16.msrb.mxu0 %v9362_v6  ;;  %v9586_v56 = vor.u32 %v13382_v2, %v9585_v63  ;;  %v13314_v6 = vld [vmem:[#allocation5 + $0x454] sm:$0xf0]  ;;  %v9425_v47 = vld [vmem:[#allocation5 + $0x528] sm:$0xf]  ;;  %v9698_v57 = vor.u32 %v13410_v1, %v9697_v39 }
 0x251   :  { %7309 = vmatpush.bf16.msrb.mxu1 %v9490_v61  ;;  %v9441_v61 = vld [vmem:[#allocation5 + $0x548] sm:$0xf]  ;;  %v9314_v50 = vor.u32 %v13314_v6, %v9313_v4  ;;  %v13310_v15 = vld [vmem:[#allocation5 + $0x434] sm:$0xf0] }
 0x252   :  { %7322 = vmatpush.bf16.msrb.mxu2 %v9618_v52  ;;  %v9714_v52 = vor.u32 %v13414_v27, %v9713_v40  ;;  %v9442_v32 = vor.u32 %v13346_v21, %v9441_v61  ;;  %v9553_v60 = vld [vmem:[#allocation5 + $0x628] sm:$0xf]  ;;  %v13374_v3 = vld [vmem:[#allocation5 + $0x634] sm:$0xf0] }
 0x253   :  { %7335 = vmatpush.bf16.msrb.mxu3 %v9746_v62  ;;  %v13378_v62 = vld [vmem:[#allocation5 + $0x654] sm:$0xf0]  ;;  %v9681_v63 = vld [vmem:[#allocation5 + $0x728] sm:$0xf] }
 0x254   :  { %7297 = vmatpush.bf16.msrb.mxu0 %v9346_v8  ;;  %v14741_v8 = vadd.f32 %v7082_v0, %v7070_v48  ;;  %v13406_v2 = vld [vmem:[#allocation5 + $0x734] sm:$0xf0]  ;;  %v9281_v27 = vld [vmem:[#allocation5 + $0x408] sm:$0xf] }
 0x255   :  { %7310 = vmatpush.bf16.msrb.mxu1 %v9474_v58  ;;  %v9570_v58 = vor.u32 %v13378_v62, %v9569_v24  ;;  %v9409_v4 = vld [vmem:[#allocation5 + $0x508] sm:$0xf]  ;;  %v13338_v6 = vld [vmem:[#allocation5 + $0x514] sm:$0xf0]  ;;  %v9682_v14 = vor.u32 %v13406_v2, %v9681_v63  ;;  %v7071_v62 = vpop.f32.mrf.mxu2  ;;  %v7084_v1 = vpop.f32.mrf.mxu3 }
 0x256   :  { %7323 = vmatpush.bf16.msrb.mxu2 %v9602_v26  ;;  %v9297_v26 = vld [vmem:[#allocation5 + $0x428] sm:$0xf]  ;;  %v13402_v24 = vld [vmem:[#allocation5 + $0x714] sm:$0xf0] }
 0x257   :  { %7336 = vmatpush.bf16.msrb.mxu3 %v9730_v36  ;;  %v13342_v36 = vld [vmem:[#allocation5 + $0x534] sm:$0xf0]  ;;  %v9298_v40 = vor.u32 %v13310_v15, %v9297_v26  ;;  %v9537_v61 = vld [vmem:[#allocation5 + $0x608] sm:$0xf] }
 0x258   :  { %7298 = vmatpush.bf16.msrb.mxu0 %v9330_v51  ;;  %v13306_v51 = vld [vmem:[#allocation5 + $0x414] sm:$0xf0]  ;;  %v9665_v21 = vld [vmem:[#allocation5 + $0x708] sm:$0xf] }
 0x259   :  { %7311 = vmatpush.bf16.msrb.mxu1 %v9458_v59  ;;  %v9426_v59 = vor.u32 %v13342_v36, %v9425_v47  ;;  %v9905_v48 = vld [vmem:[#allocation5 + $0x8e8] sm:$0xf]  ;;  %v13462_v0 = vld [vmem:[#allocation5 + $0x8f4] sm:$0xf0]  ;;  %v9282_v9 = vor.u32 %v13306_v51, %v9281_v27 }
 0x25a   :  { %7324 = vmatpush.bf16.msrb.mxu2 %v9586_v56  ;;  %v9554_v56 = vor.u32 %v13374_v3, %v9553_v60  ;;  %v10033_v39 = vld [vmem:[#allocation5 + $0x9e8] sm:$0xf]  ;;  %v13558_v47 = vld [vmem:[#allocation5 + $0xbf4] sm:$0xf0]  ;;  %v9906_v36 = vor.u32 %v13462_v0, %v9905_v48 }
 0x25b   :  { %7337 = vmatpush.bf16.msrb.mxu3 %v9714_v52  ;;  %v13370_v52 = vld [vmem:[#allocation5 + $0x614] sm:$0xf0]  ;;  %v10161_v43 = vld [vmem:[#allocation5 + $0xae8] sm:$0xf] }
 0x25c   :  { %7299 = vmatpush.bf16.msrb.mxu0 %v9314_v50  ;;  %v13494_v50 = vld [vmem:[#allocation5 + $0x9f4] sm:$0xf0]  ;;  %v9538_v26 = vor.u32 %v13370_v52, %v9537_v61  ;;  %v10289_v15 = vld [vmem:[#allocation5 + $0xbe8] sm:$0xf] }
 0x25d   :  { %7312 = vmatpush.bf16.msrb.mxu1 %v9442_v32  ;;  %v13526_v32 = vld [vmem:[#allocation5 + $0xaf4] sm:$0xf0]  ;;  %v10034_v60 = vor.u32 %v13494_v50, %v10033_v39  ;;  %v9889_v63 = vld [vmem:[#allocation5 + $0x8c8] sm:$0xf] }
 0x25e   :  { %7325 = vmatpush.bf16.msrb.mxu2 %v9570_v58  ;;  %v9410_v58 = vor.u32 %v13338_v6, %v9409_v4  ;;  %v10162_v3 = vor.u32 %v13526_v32, %v10161_v43  ;;  %v13458_v2 = vld [vmem:[#allocation5 + $0x8d4] sm:$0xf0]  ;;  %v10017_v62 = vld [vmem:[#allocation5 + $0x9c8] sm:$0xf] }
 0x25f   :  { %7338 = vmatpush.bf16.msrb.mxu3 %v9698_v57  ;;  %v9666_v57 = vor.u32 %v13402_v24, %v9665_v21  ;;  %v13490_v27 = vld [vmem:[#allocation5 + $0x9d4] sm:$0xf0]  ;;  %v10145_v51 = vld [vmem:[#allocation5 + $0xac8] sm:$0xf]  ;;  %v9890_v4 = vor.u32 %v13458_v2, %v9889_v63 }
 0x260   :  { %7300 = vmatpush.bf16.msrb.mxu0 %v9298_v40  ;;  %v10290_v40 = vor.u32 %v13558_v47, %v10289_v15  ;;  %v13522_v1 = vld [vmem:[#allocation5 + $0xad4] sm:$0xf0]  ;;  %v10018_v6 = vor.u32 %v13490_v27, %v10017_v62  ;;  %v10001_v21 = vld [vmem:[#allocation5 + $0x9a8] sm:$0xf] }
 0x261   :  { %7313 = vmatpush.bf16.msrb.mxu1 %v9426_v59  ;;  %v10273_v59 = vld [vmem:[#allocation5 + $0xbc8] sm:$0xf]  ;;  %v10146_v61 = vor.u32 %v13522_v1, %v10145_v51  ;;  %v13454_v52 = vld [vmem:[#allocation5 + $0x8b4] sm:$0xf0] }
 0x262   :  { %7326 = vmatpush.bf16.msrb.mxu2 %v9554_v56  ;;  %v13554_v56 = vld [vmem:[#allocation5 + $0xbd4] sm:$0xf0]  ;;  %v10129_v0 = vld [vmem:[#allocation5 + $0xaa8] sm:$0xf] }
 0x263   :  { %7339 = vmatpush.bf16.msrb.mxu3 %v9682_v14  ;;  %v9873_v14 = vld [vmem:[#allocation5 + $0x8a8] sm:$0xf]  ;;  %v10274_v24 = vor.u32 %v13554_v56, %v10273_v59  ;;  %v13486_v48 = vld [vmem:[#allocation5 + $0x9b4] sm:$0xf0] }
 0x264   :  { %7301 = vmatpush.bf16.msrb.mxu0 %v9282_v9  ;;  %v13518_v39 = vld [vmem:[#allocation5 + $0xab4] sm:$0xf0]  ;;  %v10257_v9 = vld [vmem:[#allocation5 + $0xba8] sm:$0xf]  ;;  %v9874_v43 = vor.u32 %v13454_v52, %v9873_v14  ;;  %v10002_v32 = vor.u32 %v13486_v48, %v10001_v21  ;;  %v7095_v63 = vpop.f32.mrf.mxu0 }
 0x265   :  { %7314 = vmatpush.bf16.msrb.mxu1 %v9410_v58  ;;  %v13550_v50 = vld [vmem:[#allocation5 + $0xbb4] sm:$0xf0]  ;;  %v10130_v58 = vor.u32 %v13518_v39, %v10129_v0  ;;  %v9985_v47 = vld [vmem:[#allocation5 + $0x988] sm:$0xf]  ;;  %v7108_v51 = vpop.f32.mrf.mxu1 }
 0x266   :  { %7327 = vmatpush.bf16.msrb.mxu2 %v9538_v26  ;;  %v9857_v26 = vld [vmem:[#allocation5 + $0x888] sm:$0xf]  ;;  %v13450_v15 = vld [vmem:[#allocation5 + $0x894] sm:$0xf0] }
 0x267   :  { %7340 = vmatpush.bf16.msrb.mxu3 %v9666_v57  ;;  %7302 = vmatmul.bf16.vlgmr.msrb.gmra.mxu0 %v14588_v41  ;;  %v10258_v57 = vor.u32 %v13550_v50, %v10257_v9  ;;  %v10241_v2 = vld [vmem:[#allocation5 + $0xb88] sm:$0xf]  ;;  %v13546_v62 = vld [vmem:[#allocation5 + $0xb94] sm:$0xf0]  ;;  %v9858_v27 = vor.u32 %v13450_v15, %v9857_v26 }
 0x268   :  { %7346 = vmatpush.bf16.msra.mxu0 %v9906_v36  ;;  %7315 = vmatmul.bf16.vlgmr.msrb.gmra.mxu1 %v14592_v44  ;;  %v13482_v36 = vld [vmem:[#allocation5 + $0x994] sm:$0xf0]  ;;  %v9841_v56 = vld [vmem:[#allocation5 + $0x868] sm:$0xf] }
 0x269   :  { %7359 = vmatpush.bf16.msra.mxu1 %v10034_v60  ;;  %7328 = vmatmul.bf16.vlgmr.msrb.gmra.mxu2 %v14586_v38  ;;  %v10113_v60 = vld [vmem:[#allocation5 + $0xa88] sm:$0xf]  ;;  %v9986_v1 = vor.u32 %v13482_v36, %v9985_v47  ;;  %v13478_v52 = vld [vmem:[#allocation5 + $0x974] sm:$0xf0] }
 0x26a   :  { %7372 = vmatpush.bf16.msra.mxu2 %v10162_v3  ;;  %7341 = vmatmul.bf16.vlgmr.msrb.gmra.mxu3 %v14590_v42  ;;  %v13514_v3 = vld [vmem:[#allocation5 + $0xa94] sm:$0xf0]  ;;  %v10097_v21 = vld [vmem:[#allocation5 + $0xa68] sm:$0xf] }
 0x26b   :  { %7385 = vmatpush.bf16.msra.mxu3 %v10290_v40  ;;  %v7096_v40 = vadd.f32 %v7095_v63, %v14741_v8  ;;  %v10114_v59 = vor.u32 %v13514_v3, %v10113_v60  ;;  %v10225_v48 = vld [vmem:[#allocation5 + $0xb68] sm:$0xf]  ;;  %v13542_v0 = vld [vmem:[#allocation5 + $0xb74] sm:$0xf0] }
 0x26c   :  { %7347 = vmatpush.bf16.msra.mxu0 %v9890_v4  ;;  %v13446_v4 = vld [vmem:[#allocation5 + $0x874] sm:$0xf0]  ;;  %v9825_v50 = vld [vmem:[#allocation5 + $0x848] sm:$0xf]  ;;  %v7121_v26 = vpop.f32.mrf.mxu2 }
 0x26d   :  { %7360 = vmatpush.bf16.msra.mxu1 %v10018_v6  ;;  %v9969_v6 = vld [vmem:[#allocation5 + $0x968] sm:$0xf]  ;;  %v7109_v14 = vadd.f32 %v7108_v51, %v7096_v40  ;;  %v9842_v39 = vor.u32 %v13446_v4, %v9841_v56  ;;  %v13474_v15 = vld [vmem:[#allocation5 + $0x954] sm:$0xf0]  ;;  %v7134_v60 = vpop.f32.mrf.mxu3  ;;  %v7110_v40 = vpop.f32.mrf.mxu1 }
 0x26e   :  { %7373 = vmatpush.bf16.msra.mxu2 %v10146_v61  ;;  %v10242_v61 = vor.u32 %v13546_v62, %v10241_v2  ;;  %v9970_v8 = vor.u32 %v13478_v52, %v9969_v6  ;;  %v10081_v47 = vld [vmem:[#allocation5 + $0xa48] sm:$0xf]  ;;  %v13538_v63 = vld [vmem:[#allocation5 + $0xb54] sm:$0xf0]  ;;  %v7097_v2 = vpop.f32.mrf.mxu0 }
 0x26f   :  { %7386 = vmatpush.bf16.msra.mxu3 %v10274_v24  ;;  %v13510_v24 = vld [vmem:[#allocation5 + $0xa74] sm:$0xf0]  ;;  %v7122_v36 = vadd.f32 %v7121_v26, %v7109_v14  ;;  %v10209_v3 = vld [vmem:[#allocation5 + $0xb48] sm:$0xf] }
 0x270   :  { %7348 = vmatpush.bf16.msra.mxu0 %v9874_v43  ;;  %v10098_v9 = vor.u32 %v13510_v24, %v10097_v21  ;;  %v13442_v43 = vld [vmem:[#allocation5 + $0x854] sm:$0xf0]  ;;  %v9937_v4 = vld [vmem:[#allocation5 + $0x928] sm:$0xf]  ;;  %v10210_v6 = vor.u32 %v13538_v63, %v10209_v3 }
 0x271   :  { %7361 = vmatpush.bf16.msra.mxu1 %v10002_v32  ;;  %v9953_v32 = vld [vmem:[#allocation5 + $0x948] sm:$0xf]  ;;  %v9826_v62 = vor.u32 %v13442_v43, %v9825_v50  ;;  %v13438_v56 = vld [vmem:[#allocation5 + $0x834] sm:$0xf0] }
 0x272   :  { %7374 = vmatpush.bf16.msra.mxu2 %v10130_v58  ;;  %v10226_v58 = vor.u32 %v13542_v0, %v10225_v48  ;;  %v9954_v51 = vor.u32 %v13474_v15, %v9953_v32  ;;  %v10065_v14 = vld [vmem:[#allocation5 + $0xa28] sm:$0xf]  ;;  %v13502_v52 = vld [vmem:[#allocation5 + $0xa34] sm:$0xf0] }
 0x273   :  { %7387 = vmatpush.bf16.msra.mxu3 %v10258_v57  ;;  %v13506_v57 = vld [vmem:[#allocation5 + $0xa54] sm:$0xf0]  ;;  %v10193_v21 = vld [vmem:[#allocation5 + $0xb28] sm:$0xf] }
 0x274   :  { %7349 = vmatpush.bf16.msra.mxu0 %v9858_v27  ;;  %v14748_v27 = vadd.f32 %v7134_v60, %v7122_v36  ;;  %v13534_v24 = vld [vmem:[#allocation5 + $0xb34] sm:$0xf0]  ;;  %v9793_v0 = vld [vmem:[#allocation5 + $0x808] sm:$0xf] }
 0x275   :  { %7362 = vmatpush.bf16.msra.mxu1 %v9986_v1  ;;  %v10082_v1 = vor.u32 %v13506_v57, %v10081_v47  ;;  %v9921_v50 = vld [vmem:[#allocation5 + $0x908] sm:$0xf]  ;;  %v13466_v43 = vld [vmem:[#allocation5 + $0x914] sm:$0xf0]  ;;  %v10194_v26 = vor.u32 %v13534_v24, %v10193_v21  ;;  %v7123_v57 = vpop.f32.mrf.mxu2  ;;  %v7136_v63 = vpop.f32.mrf.mxu3 }
 0x276   :  { %7375 = vmatpush.bf16.msra.mxu2 %v10114_v59  ;;  %v9809_v59 = vld [vmem:[#allocation5 + $0x828] sm:$0xf]  ;;  %v13530_v47 = vld [vmem:[#allocation5 + $0xb14] sm:$0xf0] }
 0x277   :  { %7388 = vmatpush.bf16.msra.mxu3 %v10242_v61  ;;  %v13470_v61 = vld [vmem:[#allocation5 + $0x934] sm:$0xf0]  ;;  %v9810_v48 = vor.u32 %v13438_v56, %v9809_v59  ;;  %v10049_v32 = vld [vmem:[#allocation5 + $0xa08] sm:$0xf] }
 0x278   :  { %7350 = vmatpush.bf16.msra.mxu0 %v9842_v39  ;;  %v13434_v39 = vld [vmem:[#allocation5 + $0x814] sm:$0xf0]  ;;  %v10177_v15 = vld [vmem:[#allocation5 + $0xb08] sm:$0xf] }
 0x279   :  { %7363 = vmatpush.bf16.msra.mxu1 %v9970_v8  ;;  %v9938_v8 = vor.u32 %v13470_v61, %v9937_v4  ;;  %v10417_v36 = vld [vmem:[#allocation5 + $0xce8] sm:$0xf]  ;;  %v13590_v60 = vld [vmem:[#allocation5 + $0xcf4] sm:$0xf0]  ;;  %v9794_v2 = vor.u32 %v13434_v39, %v9793_v0 }
 0x27a   :  { %7376 = vmatpush.bf16.msra.mxu2 %v10098_v9  ;;  %v10066_v9 = vor.u32 %v13502_v52, %v10065_v14  ;;  %v10545_v3 = vld [vmem:[#allocation5 + $0xde8] sm:$0xf]  ;;  %v13686_v4 = vld [vmem:[#allocation5 + $0xff4] sm:$0xf0]  ;;  %v10418_v61 = vor.u32 %v13590_v60, %v10417_v36 }
 0x27b   :  { %7389 = vmatpush.bf16.msra.mxu3 %v10226_v58  ;;  %v13498_v58 = vld [vmem:[#allocation5 + $0xa14] sm:$0xf0]  ;;  %v10673_v40 = vld [vmem:[#allocation5 + $0xee8] sm:$0xf] }
 0x27c   :  { %7351 = vmatpush.bf16.msra.mxu0 %v9826_v62  ;;  %v13622_v62 = vld [vmem:[#allocation5 + $0xdf4] sm:$0xf0]  ;;  %v10050_v59 = vor.u32 %v13498_v58, %v10049_v32  ;;  %v10801_v56 = vld [vmem:[#allocation5 + $0xfe8] sm:$0xf] }
 0x27d   :  { %7364 = vmatpush.bf16.msra.mxu1 %v9954_v51  ;;  %v13654_v51 = vld [vmem:[#allocation5 + $0xef4] sm:$0xf0]  ;;  %v10546_v14 = vor.u32 %v13622_v62, %v10545_v3  ;;  %v10401_v21 = vld [vmem:[#allocation5 + $0xcc8] sm:$0xf] }
 0x27e   :  { %7377 = vmatpush.bf16.msra.mxu2 %v10082_v1  ;;  %v9922_v1 = vor.u32 %v13466_v43, %v9921_v50  ;;  %v10674_v52 = vor.u32 %v13654_v51, %v10673_v40  ;;  %v13586_v24 = vld [vmem:[#allocation5 + $0xcd4] sm:$0xf0]  ;;  %v10529_v57 = vld [vmem:[#allocation5 + $0xdc8] sm:$0xf] }
 0x27f   :  { %7390 = vmatpush.bf16.msra.mxu3 %v10210_v6  ;;  %v10178_v6 = vor.u32 %v13530_v47, %v10177_v15  ;;  %v13618_v0 = vld [vmem:[#allocation5 + $0xdd4] sm:$0xf0]  ;;  %v10657_v39 = vld [vmem:[#allocation5 + $0xec8] sm:$0xf]  ;;  %v10402_v50 = vor.u32 %v13586_v24, %v10401_v21 }
 0x280   :  { %7352 = vmatpush.bf16.msra.mxu0 %v9810_v48  ;;  %v10802_v48 = vor.u32 %v13686_v4, %v10801_v56  ;;  %v13650_v63 = vld [vmem:[#allocation5 + $0xed4] sm:$0xf0]  ;;  %v10530_v43 = vor.u32 %v13618_v0, %v10529_v57  ;;  %v10513_v15 = vld [vmem:[#allocation5 + $0xda8] sm:$0xf] }
 0x281   :  { %7365 = vmatpush.bf16.msra.mxu1 %v9938_v8  ;;  %v10785_v8 = vld [vmem:[#allocation5 + $0xfc8] sm:$0xf]  ;;  %v10658_v32 = vor.u32 %v13650_v63, %v10657_v39  ;;  %v13582_v58 = vld [vmem:[#allocation5 + $0xcb4] sm:$0xf0] }
 0x282   :  { %7378 = vmatpush.bf16.msra.mxu2 %v10066_v9  ;;  %v13682_v9 = vld [vmem:[#allocation5 + $0xfd4] sm:$0xf0]  ;;  %v10641_v60 = vld [vmem:[#allocation5 + $0xea8] sm:$0xf] }
 0x283   :  { %7391 = vmatpush.bf16.msra.mxu3 %v10194_v26  ;;  %v10385_v26 = vld [vmem:[#allocation5 + $0xca8] sm:$0xf]  ;;  %v10786_v47 = vor.u32 %v13682_v9, %v10785_v8  ;;  %v13614_v36 = vld [vmem:[#allocation5 + $0xdb4] sm:$0xf0] }
 0x284   :  { %7353 = vmatpush.bf16.msra.mxu0 %v9794_v2  ;;  %v13646_v3 = vld [vmem:[#allocation5 + $0xeb4] sm:$0xf0]  ;;  %v10769_v2 = vld [vmem:[#allocation5 + $0xfa8] sm:$0xf]  ;;  %v10386_v40 = vor.u32 %v13582_v58, %v10385_v26  ;;  %v10514_v51 = vor.u32 %v13614_v36, %v10513_v15  ;;  %v7147_v21 = vpop.f32.mrf.mxu0 }
 0x285   :  { %7366 = vmatpush.bf16.msra.mxu1 %v9922_v1  ;;  %v13678_v62 = vld [vmem:[#allocation5 + $0xfb4] sm:$0xf0]  ;;  %v10642_v1 = vor.u32 %v13646_v3, %v10641_v60  ;;  %v10497_v4 = vld [vmem:[#allocation5 + $0xd88] sm:$0xf]  ;;  %v7160_v39 = vpop.f32.mrf.mxu1 }
 0x286   :  { %7379 = vmatpush.bf16.msra.mxu2 %v10050_v59  ;;  %v10369_v59 = vld [vmem:[#allocation5 + $0xc88] sm:$0xf]  ;;  %v13578_v56 = vld [vmem:[#allocation5 + $0xc94] sm:$0xf0] }
 0x287   :  { %7392 = vmatpush.bf16.msra.mxu3 %v10178_v6  ;;  %7354 = vmatmul.bf16.vlgmr.msra.gmra.mxu0 %v14598_v25  ;;  %v10770_v6 = vor.u32 %v13678_v62, %v10769_v2  ;;  %v10753_v24 = vld [vmem:[#allocation5 + $0xf88] sm:$0xf]  ;;  %v13674_v57 = vld [vmem:[#allocation5 + $0xf94] sm:$0xf0]  ;;  %v10370_v0 = vor.u32 %v13578_v56, %v10369_v59 }
 0x288   :  { %7398 = vmatpush.bf16.msrb.mxu0 %v10418_v61  ;;  %7367 = vmatmul.bf16.vlgmr.msra.gmra.mxu1 %v14602_v30  ;;  %v13610_v61 = vld [vmem:[#allocation5 + $0xd94] sm:$0xf0]  ;;  %v10353_v9 = vld [vmem:[#allocation5 + $0xc68] sm:$0xf] }
 0x289   :  { %7411 = vmatpush.bf16.msrb.mxu1 %v10546_v14  ;;  %7380 = vmatmul.bf16.vlgmr.msra.gmra.mxu2 %v14600_v29  ;;  %v10625_v14 = vld [vmem:[#allocation5 + $0xe88] sm:$0xf]  ;;  %v10498_v63 = vor.u32 %v13610_v61, %v10497_v4  ;;  %v13606_v58 = vld [vmem:[#allocation5 + $0xd74] sm:$0xf0] }
 0x28a   :  { %7424 = vmatpush.bf16.msrb.mxu2 %v10674_v52  ;;  %7393 = vmatmul.bf16.vlgmr.msra.gmra.mxu3 %v14604_v33  ;;  %v13642_v52 = vld [vmem:[#allocation5 + $0xe94] sm:$0xf0]  ;;  %v10609_v15 = vld [vmem:[#allocation5 + $0xe68] sm:$0xf] }
 0x28b   :  { %7437 = vmatpush.bf16.msrb.mxu3 %v10802_v48  ;;  %v7148_v48 = vadd.f32 %v7147_v21, %v14748_v27  ;;  %v10626_v8 = vor.u32 %v13642_v52, %v10625_v14  ;;  %v10737_v36 = vld [vmem:[#allocation5 + $0xf68] sm:$0xf]  ;;  %v13670_v60 = vld [vmem:[#allocation5 + $0xf74] sm:$0xf0] }
 0x28c   :  { %7399 = vmatpush.bf16.msrb.mxu0 %v10402_v50  ;;  %v13574_v50 = vld [vmem:[#allocation5 + $0xc74] sm:$0xf0]  ;;  %v10337_v62 = vld [vmem:[#allocation5 + $0xc48] sm:$0xf]  ;;  %v7173_v59 = vpop.f32.mrf.mxu2 }
 0x28d   :  { %7412 = vmatpush.bf16.msrb.mxu1 %v10530_v43  ;;  %v10481_v43 = vld [vmem:[#allocation5 + $0xd68] sm:$0xf]  ;;  %v7161_v26 = vadd.f32 %v7160_v39, %v7148_v48  ;;  %v10354_v3 = vor.u32 %v13574_v50, %v10353_v9  ;;  %v13602_v56 = vld [vmem:[#allocation5 + $0xd54] sm:$0xf0]  ;;  %v7186_v14 = vpop.f32.mrf.mxu3  ;;  %v7162_v48 = vpop.f32.mrf.mxu1 }
 0x28e   :  { %7425 = vmatpush.bf16.msrb.mxu2 %v10658_v32  ;;  %v10754_v32 = vor.u32 %v13674_v57, %v10753_v24  ;;  %v10482_v27 = vor.u32 %v13606_v58, %v10481_v43  ;;  %v10593_v4 = vld [vmem:[#allocation5 + $0xe48] sm:$0xf]  ;;  %v13666_v21 = vld [vmem:[#allocation5 + $0xf54] sm:$0xf0]  ;;  %v7149_v24 = vpop.f32.mrf.mxu0 }
 0x28f   :  { %7438 = vmatpush.bf16.msrb.mxu3 %v10786_v47  ;;  %v13638_v47 = vld [vmem:[#allocation5 + $0xe74] sm:$0xf0]  ;;  %v7174_v61 = vadd.f32 %v7173_v59, %v7161_v26  ;;  %v10721_v52 = vld [vmem:[#allocation5 + $0xf48] sm:$0xf] }
 0x290   :  { %7400 = vmatpush.bf16.msrb.mxu0 %v10386_v40  ;;  %v10610_v2 = vor.u32 %v13638_v47, %v10609_v15  ;;  %v13570_v40 = vld [vmem:[#allocation5 + $0xc54] sm:$0xf0]  ;;  %v10449_v50 = vld [vmem:[#allocation5 + $0xd28] sm:$0xf]  ;;  %v10722_v43 = vor.u32 %v13666_v21, %v10721_v52 }
 0x291   :  { %7413 = vmatpush.bf16.msrb.mxu1 %v10514_v51  ;;  %v10465_v51 = vld [vmem:[#allocation5 + $0xd48] sm:$0xf]  ;;  %v10338_v57 = vor.u32 %v13570_v40, %v10337_v62  ;;  %v13566_v9 = vld [vmem:[#allocation5 + $0xc34] sm:$0xf0] }
 0x292   :  { %7426 = vmatpush.bf16.msrb.mxu2 %v10642_v1  ;;  %v10738_v1 = vor.u32 %v13670_v60, %v10737_v36  ;;  %v10466_v39 = vor.u32 %v13602_v56, %v10465_v51  ;;  %v10577_v26 = vld [vmem:[#allocation5 + $0xe28] sm:$0xf]  ;;  %v13630_v58 = vld [vmem:[#allocation5 + $0xe34] sm:$0xf0] }
 0x293   :  { %7439 = vmatpush.bf16.msrb.mxu3 %v10770_v6  ;;  %v13634_v6 = vld [vmem:[#allocation5 + $0xe54] sm:$0xf0]  ;;  %v10705_v15 = vld [vmem:[#allocation5 + $0xf28] sm:$0xf] }
 0x294   :  { %7401 = vmatpush.bf16.msrb.mxu0 %v10370_v0  ;;  %v14755_v0 = vadd.f32 %v7186_v14, %v7174_v61  ;;  %v13662_v47 = vld [vmem:[#allocation5 + $0xf34] sm:$0xf0]  ;;  %v10305_v60 = vld [vmem:[#allocation5 + $0xc08] sm:$0xf] }
 0x295   :  { %7414 = vmatpush.bf16.msrb.mxu1 %v10498_v63  ;;  %v10594_v63 = vor.u32 %v13634_v6, %v10593_v4  ;;  %v10433_v62 = vld [vmem:[#allocation5 + $0xd08] sm:$0xf]  ;;  %v13594_v40 = vld [vmem:[#allocation5 + $0xd14] sm:$0xf0]  ;;  %v10706_v59 = vor.u32 %v13662_v47, %v10705_v15  ;;  %v7175_v6 = vpop.f32.mrf.mxu2  ;;  %v7188_v21 = vpop.f32.mrf.mxu3 }
 0x296   :  { %7427 = vmatpush.bf16.msrb.mxu2 %v10626_v8  ;;  %v10321_v8 = vld [vmem:[#allocation5 + $0xc28] sm:$0xf]  ;;  %v13658_v4 = vld [vmem:[#allocation5 + $0xf14] sm:$0xf0] }
 0x297   :  { %7440 = vmatpush.bf16.msrb.mxu3 %v10754_v32  ;;  %v13598_v32 = vld [vmem:[#allocation5 + $0xd34] sm:$0xf0]  ;;  %v10322_v36 = vor.u32 %v13566_v9, %v10321_v8  ;;  %v10561_v51 = vld [vmem:[#allocation5 + $0xe08] sm:$0xf] }
 0x298   :  { %7402 = vmatpush.bf16.msrb.mxu0 %v10354_v3  ;;  %v13562_v3 = vld [vmem:[#allocation5 + $0xc14] sm:$0xf0]  ;;  %v10689_v56 = vld [vmem:[#allocation5 + $0xf08] sm:$0xf] }
 0x299   :  { %7415 = vmatpush.bf16.msrb.mxu1 %v10482_v27  ;;  %v10450_v27 = vor.u32 %v13598_v32, %v10449_v50  ;;  %v10929_v61 = vld [vmem:[#allocation5 + $0x10e8] sm:$0xf]  ;;  %v13718_v14 = vld [vmem:[#allocation5 + $0x10f4] sm:$0xf0]  ;;  %v10306_v24 = vor.u32 %v13562_v3, %v10305_v60 }
 0x29a   :  { %7428 = vmatpush.bf16.msrb.mxu2 %v10610_v2  ;;  %v10578_v2 = vor.u32 %v13630_v58, %v10577_v26  ;;  %v11057_v52 = vld [vmem:[#allocation5 + $0x11e8] sm:$0xf]  ;;  %v13814_v50 = vld [vmem:[#allocation5 + $0x13f4] sm:$0xf0]  ;;  %v10930_v32 = vor.u32 %v13718_v14, %v10929_v61 }
 0x29b   :  { %7441 = vmatpush.bf16.msrb.mxu3 %v10738_v1  ;;  %v13626_v1 = vld [vmem:[#allocation5 + $0xe14] sm:$0xf0]  ;;  %v11185_v48 = vld [vmem:[#allocation5 + $0x12e8] sm:$0xf] }
 0x29c   :  { %7403 = vmatpush.bf16.msrb.mxu0 %v10338_v57  ;;  %v13750_v57 = vld [vmem:[#allocation5 + $0x11f4] sm:$0xf0]  ;;  %v10562_v8 = vor.u32 %v13626_v1, %v10561_v51  ;;  %v11313_v9 = vld [vmem:[#allocation5 + $0x13e8] sm:$0xf] }
 0x29d   :  { %7416 = vmatpush.bf16.msrb.mxu1 %v10466_v39  ;;  %v13782_v39 = vld [vmem:[#allocation5 + $0x12f4] sm:$0xf0]  ;;  %v11058_v26 = vor.u32 %v13750_v57, %v11057_v52  ;;  %v10913_v15 = vld [vmem:[#allocation5 + $0x10c8] sm:$0xf] }
 0x29e   :  { %7429 = vmatpush.bf16.msrb.mxu2 %v10594_v63  ;;  %v10434_v63 = vor.u32 %v13594_v40, %v10433_v62  ;;  %v11186_v58 = vor.u32 %v13782_v39, %v11185_v48  ;;  %v13714_v47 = vld [vmem:[#allocation5 + $0x10d4] sm:$0xf0]  ;;  %v11041_v6 = vld [vmem:[#allocation5 + $0x11c8] sm:$0xf] }
 0x29f   :  { %7442 = vmatpush.bf16.msrb.mxu3 %v10722_v43  ;;  %v10690_v43 = vor.u32 %v13658_v4, %v10689_v56  ;;  %v13746_v60 = vld [vmem:[#allocation5 + $0x11d4] sm:$0xf0]  ;;  %v11169_v3 = vld [vmem:[#allocation5 + $0x12c8] sm:$0xf]  ;;  %v10914_v62 = vor.u32 %v13714_v47, %v10913_v15 }
 0x2a0   :  { %7404 = vmatpush.bf16.msrb.mxu0 %v10322_v36  ;;  %v11314_v36 = vor.u32 %v13814_v50, %v11313_v9  ;;  %v13778_v21 = vld [vmem:[#allocation5 + $0x12d4] sm:$0xf0]  ;;  %v11042_v40 = vor.u32 %v13746_v60, %v11041_v6  ;;  %v11025_v56 = vld [vmem:[#allocation5 + $0x11a8] sm:$0xf] }
 0x2a1   :  { %7417 = vmatpush.bf16.msrb.mxu1 %v10450_v27  ;;  %v11297_v27 = vld [vmem:[#allocation5 + $0x13c8] sm:$0xf]  ;;  %v11170_v51 = vor.u32 %v13778_v21, %v11169_v3  ;;  %v13710_v1 = vld [vmem:[#allocation5 + $0x10b4] sm:$0xf0] }
 0x2a2   :  { %7430 = vmatpush.bf16.msrb.mxu2 %v10578_v2  ;;  %v13810_v2 = vld [vmem:[#allocation5 + $0x13d4] sm:$0xf0]  ;;  %v11153_v14 = vld [vmem:[#allocation5 + $0x12a8] sm:$0xf] }
 0x2a3   :  { %7443 = vmatpush.bf16.msrb.mxu3 %v10706_v59  ;;  %v10897_v59 = vld [vmem:[#allocation5 + $0x10a8] sm:$0xf]  ;;  %v11298_v4 = vor.u32 %v13810_v2, %v11297_v27  ;;  %v13742_v61 = vld [vmem:[#allocation5 + $0x11b4] sm:$0xf0] }
 0x2a4   :  { %7405 = vmatpush.bf16.msrb.mxu0 %v10306_v24  ;;  %v13774_v52 = vld [vmem:[#allocation5 + $0x12b4] sm:$0xf0]  ;;  %v11281_v24 = vld [vmem:[#allocation5 + $0x13a8] sm:$0xf]  ;;  %v10898_v48 = vor.u32 %v13710_v1, %v10897_v59  ;;  %v11026_v39 = vor.u32 %v13742_v61, %v11025_v56  ;;  %v7199_v15 = vpop.f32.mrf.mxu0 }
 0x2a5   :  { %7418 = vmatpush.bf16.msrb.mxu1 %v10434_v63  ;;  %v13806_v57 = vld [vmem:[#allocation5 + $0x13b4] sm:$0xf0]  ;;  %v11154_v63 = vor.u32 %v13774_v52, %v11153_v14  ;;  %v11009_v50 = vld [vmem:[#allocation5 + $0x1188] sm:$0xf]  ;;  %v7212_v3 = vpop.f32.mrf.mxu1 }
 0x2a6   :  { %7431 = vmatpush.bf16.msrb.mxu2 %v10562_v8  ;;  %v10881_v8 = vld [vmem:[#allocation5 + $0x1088] sm:$0xf]  ;;  %v13706_v9 = vld [vmem:[#allocation5 + $0x1094] sm:$0xf0] }
 0x2a7   :  { %7444 = vmatpush.bf16.msrb.mxu3 %v10690_v43  ;;  %7406 = vmatmul.bf16.vlgmr.msrb.gmra.mxu0 %v14610_v23  ;;  %v11282_v43 = vor.u32 %v13806_v57, %v11281_v24  ;;  %v11265_v47 = vld [vmem:[#allocation5 + $0x1388] sm:$0xf]  ;;  %v13802_v6 = vld [vmem:[#allocation5 + $0x1394] sm:$0xf0]  ;;  %v10882_v60 = vor.u32 %v13706_v9, %v10881_v8 }
 0x2a8   :  { %7450 = vmatpush.bf16.msra.mxu0 %v10930_v32  ;;  %7419 = vmatmul.bf16.vlgmr.msrb.gmra.mxu1 %v14614_v31  ;;  %v13738_v32 = vld [vmem:[#allocation5 + $0x1194] sm:$0xf0]  ;;  %v10865_v2 = vld [vmem:[#allocation5 + $0x1068] sm:$0xf] }
 0x2a9   :  { %7463 = vmatpush.bf16.msra.mxu1 %v11058_v26  ;;  %7432 = vmatmul.bf16.vlgmr.msrb.gmra.mxu2 %v14612_v28  ;;  %v11137_v26 = vld [vmem:[#allocation5 + $0x1288] sm:$0xf]  ;;  %v11010_v21 = vor.u32 %v13738_v32, %v11009_v50  ;;  %v13734_v1 = vld [vmem:[#allocation5 + $0x1174] sm:$0xf0] }
 0x2aa   :  { %7476 = vmatpush.bf16.msra.mxu2 %v11186_v58  ;;  %7445 = vmatmul.bf16.vlgmr.msrb.gmra.mxu3 %v14616_v35  ;;  %v13770_v58 = vld [vmem:[#allocation5 + $0x1294] sm:$0xf0]  ;;  %v11121_v56 = vld [vmem:[#allocation5 + $0x1268] sm:$0xf] }
 0x2ab   :  { %7489 = vmatpush.bf16.msra.mxu3 %v11314_v36  ;;  %v7200_v36 = vadd.f32 %v7199_v15, %v14755_v0  ;;  %v11138_v27 = vor.u32 %v13770_v58, %v11137_v26  ;;  %v11249_v61 = vld [vmem:[#allocation5 + $0x1368] sm:$0xf]  ;;  %v13798_v14 = vld [vmem:[#allocation5 + $0x1374] sm:$0xf0] }
 0x2ac   :  { %7451 = vmatpush.bf16.msra.mxu0 %v10914_v62  ;;  %v13702_v62 = vld [vmem:[#allocation5 + $0x1074] sm:$0xf0]  ;;  %v10849_v57 = vld [vmem:[#allocation5 + $0x1048] sm:$0xf]  ;;  %v7225_v8 = vpop.f32.mrf.mxu2 }
 0x2ad   :  { %7464 = vmatpush.bf16.msra.mxu1 %v11042_v40  ;;  %v10993_v40 = vld [vmem:[#allocation5 + $0x1168] sm:$0xf]  ;;  %v7213_v59 = vadd.f32 %v7212_v3, %v7200_v36  ;;  %v10866_v52 = vor.u32 %v13702_v62, %v10865_v2  ;;  %v13730_v9 = vld [vmem:[#allocation5 + $0x1154] sm:$0xf0]  ;;  %v7238_v26 = vpop.f32.mrf.mxu3  ;;  %v7214_v36 = vpop.f32.mrf.mxu1 }
 0x2ae   :  { %7477 = vmatpush.bf16.msra.mxu2 %v11170_v51  ;;  %v11266_v51 = vor.u32 %v13802_v6, %v11265_v47  ;;  %v10994_v0 = vor.u32 %v13734_v1, %v10993_v40  ;;  %v11105_v50 = vld [vmem:[#allocation5 + $0x1248] sm:$0xf]  ;;  %v13794_v15 = vld [vmem:[#allocation5 + $0x1354] sm:$0xf0]  ;;  %v7201_v47 = vpop.f32.mrf.mxu0 }
 0x2af   :  { %7490 = vmatpush.bf16.msra.mxu3 %v11298_v4  ;;  %v13766_v4 = vld [vmem:[#allocation5 + $0x1274] sm:$0xf0]  ;;  %v7226_v32 = vadd.f32 %v7225_v8, %v7213_v59  ;;  %v11233_v58 = vld [vmem:[#allocation5 + $0x1348] sm:$0xf] }
 0x2b0   :  { %7452 = vmatpush.bf16.msra.mxu0 %v10898_v48  ;;  %v11122_v24 = vor.u32 %v13766_v4, %v11121_v56  ;;  %v13698_v48 = vld [vmem:[#allocation5 + $0x1054] sm:$0xf0]  ;;  %v10961_v62 = vld [vmem:[#allocation5 + $0x1128] sm:$0xf]  ;;  %v11234_v40 = vor.u32 %v13794_v15, %v11233_v58 }
 0x2b1   :  { %7465 = vmatpush.bf16.msra.mxu1 %v11026_v39  ;;  %v10977_v39 = vld [vmem:[#allocation5 + $0x1148] sm:$0xf]  ;;  %v10850_v6 = vor.u32 %v13698_v48, %v10849_v57  ;;  %v13694_v2 = vld [vmem:[#allocation5 + $0x1034] sm:$0xf0] }
 0x2b2   :  { %7478 = vmatpush.bf16.msra.mxu2 %v11154_v63  ;;  %v11250_v63 = vor.u32 %v13798_v14, %v11249_v61  ;;  %v10978_v3 = vor.u32 %v13730_v9, %v10977_v39  ;;  %v11089_v59 = vld [vmem:[#allocation5 + $0x1228] sm:$0xf]  ;;  %v13758_v1 = vld [vmem:[#allocation5 + $0x1234] sm:$0xf0] }
 0x2b3   :  { %7491 = vmatpush.bf16.msra.mxu3 %v11282_v43  ;;  %v13762_v43 = vld [vmem:[#allocation5 + $0x1254] sm:$0xf0]  ;;  %v11217_v56 = vld [vmem:[#allocation5 + $0x1328] sm:$0xf] }
 0x2b4   :  { %7453 = vmatpush.bf16.msra.mxu0 %v10882_v60  ;;  %v14762_v60 = vadd.f32 %v7238_v26, %v7226_v32  ;;  %v13790_v4 = vld [vmem:[#allocation5 + $0x1334] sm:$0xf0]  ;;  %v10817_v14 = vld [vmem:[#allocation5 + $0x1008] sm:$0xf] }
 0x2b5   :  { %7466 = vmatpush.bf16.msra.mxu1 %v11010_v21  ;;  %v11106_v21 = vor.u32 %v13762_v43, %v11105_v50  ;;  %v10945_v57 = vld [vmem:[#allocation5 + $0x1108] sm:$0xf]  ;;  %v13722_v48 = vld [vmem:[#allocation5 + $0x1114] sm:$0xf0]  ;;  %v11218_v8 = vor.u32 %v13790_v4, %v11217_v56  ;;  %v7227_v43 = vpop.f32.mrf.mxu2  ;;  %v7240_v15 = vpop.f32.mrf.mxu3 }
 0x2b6   :  { %7479 = vmatpush.bf16.msra.mxu2 %v11138_v27  ;;  %14877 = vst [vmem:[#allocation21_spill] sm:$0xff] %v14762_v60  ;;  %v10833_v27 = vld [vmem:[#allocation5 + $0x1028] sm:$0xf]  ;;  %v13786_v50 = vld [vmem:[#allocation5 + $0x1314] sm:$0xf0] }
 0x2b7   :  { %7492 = vmatpush.bf16.msra.mxu3 %v11266_v51  ;;  %v13726_v51 = vld [vmem:[#allocation5 + $0x1134] sm:$0xf0]  ;;  %v10834_v61 = vor.u32 %v13694_v2, %v10833_v27  ;;  %v11073_v39 = vld [vmem:[#allocation5 + $0x1208] sm:$0xf] }
 0x2b8   :  { %7454 = vmatpush.bf16.msra.mxu0 %v10866_v52  ;;  %v13690_v52 = vld [vmem:[#allocation5 + $0x1014] sm:$0xf0]  ;;  %v11201_v9 = vld [vmem:[#allocation5 + $0x1308] sm:$0xf] }
 0x2b9   :  { %7467 = vmatpush.bf16.msra.mxu1 %v10994_v0  ;;  %v10962_v0 = vor.u32 %v13726_v51, %v10961_v62  ;;  %v11441_v32 = vld [vmem:[#allocation5 + $0x14e8] sm:$0xf]  ;;  %v13846_v26 = vld [vmem:[#allocation5 + $0x14f4] sm:$0xf0]  ;;  %v10818_v47 = vor.u32 %v13690_v52, %v10817_v14 }
 0x2ba   :  { %7480 = vmatpush.bf16.msra.mxu2 %v11122_v24  ;;  %v11090_v24 = vor.u32 %v13758_v1, %v11089_v59  ;;  %v11569_v58 = vld [vmem:[#allocation5 + $0x15e8] sm:$0xf]  ;;  %v13942_v62 = vld [vmem:[#allocation5 + $0x17f4] sm:$0xf0]  ;;  %v11442_v51 = vor.u32 %v13846_v26, %v11441_v32 }
 0x2bb   :  { %7493 = vmatpush.bf16.msra.mxu3 %v11250_v63  ;;  %v13754_v63 = vld [vmem:[#allocation5 + $0x1214] sm:$0xf0]  ;;  %v11697_v36 = vld [vmem:[#allocation5 + $0x16e8] sm:$0xf] }
 0x2bc   :  { %7455 = vmatpush.bf16.msra.mxu0 %v10850_v6  ;;  %v13878_v6 = vld [vmem:[#allocation5 + $0x15f4] sm:$0xf0]  ;;  %v11074_v27 = vor.u32 %v13754_v63, %v11073_v39  ;;  %v11825_v2 = vld [vmem:[#allocation5 + $0x17e8] sm:$0xf] }
 0x2bd   :  { %7468 = vmatpush.bf16.msra.mxu1 %v10978_v3  ;;  %v13910_v3 = vld [vmem:[#allocation5 + $0x16f4] sm:$0xf0]  ;;  %v11570_v59 = vor.u32 %v13878_v6, %v11569_v58  ;;  %v11425_v56 = vld [vmem:[#allocation5 + $0x14c8] sm:$0xf] }
 0x2be   :  { %7481 = vmatpush.bf16.msra.mxu2 %v11106_v21  ;;  %v10946_v21 = vor.u32 %v13722_v48, %v10945_v57  ;;  %v11698_v1 = vor.u32 %v13910_v3, %v11697_v36  ;;  %v13842_v4 = vld [vmem:[#allocation5 + $0x14d4] sm:$0xf0]  ;;  %v11553_v43 = vld [vmem:[#allocation5 + $0x15c8] sm:$0xf] }
 0x2bf   :  { %7494 = vmatpush.bf16.msra.mxu3 %v11234_v40  ;;  %v11202_v40 = vor.u32 %v13786_v50, %v11201_v9  ;;  %v13874_v14 = vld [vmem:[#allocation5 + $0x15d4] sm:$0xf0]  ;;  %v11681_v52 = vld [vmem:[#allocation5 + $0x16c8] sm:$0xf]  ;;  %v11426_v57 = vor.u32 %v13842_v4, %v11425_v56 }
 0x2c0   :  { %7456 = vmatpush.bf16.msra.mxu0 %v10834_v61  ;;  %v11826_v61 = vor.u32 %v13942_v62, %v11825_v2  ;;  %v13906_v15 = vld [vmem:[#allocation5 + $0x16d4] sm:$0xf0]  ;;  %v11554_v48 = vor.u32 %v13874_v14, %v11553_v43  ;;  %v11537_v9 = vld [vmem:[#allocation5 + $0x15a8] sm:$0xf] }
 0x2c1   :  { %7469 = vmatpush.bf16.msra.mxu1 %v10962_v0  ;;  %v11809_v0 = vld [vmem:[#allocation5 + $0x17c8] sm:$0xf]  ;;  %v11682_v39 = vor.u32 %v13906_v15, %v11681_v52  ;;  %v13838_v63 = vld [vmem:[#allocation5 + $0x14b4] sm:$0xf0] }
 0x2c2   :  { %7482 = vmatpush.bf16.msra.mxu2 %v11090_v24  ;;  %v13938_v24 = vld [vmem:[#allocation5 + $0x17d4] sm:$0xf0]  ;;  %v11665_v26 = vld [vmem:[#allocation5 + $0x16a8] sm:$0xf] }
 0x2c3   :  { %7495 = vmatpush.bf16.msra.mxu3 %v11218_v8  ;;  %v11409_v8 = vld [vmem:[#allocation5 + $0x14a8] sm:$0xf]  ;;  %v11810_v50 = vor.u32 %v13938_v24, %v11809_v0  ;;  %v13870_v32 = vld [vmem:[#allocation5 + $0x15b4] sm:$0xf0] }
 0x2c4   :  { %7457 = vmatpush.bf16.msra.mxu0 %v10818_v47  ;;  %v13902_v58 = vld [vmem:[#allocation5 + $0x16b4] sm:$0xf0]  ;;  %v11793_v47 = vld [vmem:[#allocation5 + $0x17a8] sm:$0xf]  ;;  %v11410_v36 = vor.u32 %v13838_v63, %v11409_v8  ;;  %v7251_v52 = vpop.f32.mrf.mxu0 }
 0x2c5   :  { %7470 = vmatpush.bf16.msra.mxu1 %v10946_v21  ;;  %v13934_v6 = vld [vmem:[#allocation5 + $0x17b4] sm:$0xf0]  ;;  %v11393_v3 = vld [vmem:[#allocation5 + $0x1488] sm:$0xf]  ;;  %v11538_v21 = vor.u32 %v13870_v32, %v11537_v9  ;;  %v7264_v8 = vpop.f32.mrf.mxu1 }
 0x2c6   :  { %7483 = vmatpush.bf16.msra.mxu2 %v11074_v27  ;;  %v11666_v27 = vor.u32 %v13902_v58, %v11665_v26  ;;  %v13834_v2 = vld [vmem:[#allocation5 + $0x1494] sm:$0xf0]  ;;  %v11521_v62 = vld [vmem:[#allocation5 + $0x1588] sm:$0xf] }
 0x2c7   :  { %7496 = vmatpush.bf16.msra.mxu3 %v11202_v40  ;;  %7458 = vmatmul.bf16.vlgmr.msra.gmra.mxu0 %v14622_v37  ;;  %v14295_v40 = vld [vmem:[#allocation7] sm:$0xf]  ;;  %v11649_v56 = vld [vmem:[#allocation5 + $0x1688] sm:$0xf]  ;;  %v13898_v4 = vld [vmem:[#allocation5 + $0x1694] sm:$0xf0]  ;;  %v11394_v14 = vor.u32 %v13834_v2, %v11393_v3 }
 0x2c8   :  { %7502 = vmatpush.bf16.msrb.mxu0 %v11442_v51  ;;  %7471 = vmatmul.bf16.vlgmr.msra.gmra.mxu1 %v14626_v46  ;;  %v1172_v51 = vperm.slane %v14295_v40, 2  ;;  %v11777_v43 = vld [vmem:[#allocation5 + $0x1788] sm:$0xf]  ;;  %v11650_v0 = vor.u32 %v13898_v4, %v11649_v56  ;;  %v13862_v9 = vld [vmem:[#allocation5 + $0x1574] sm:$0xf0] }
 0x2c9   :  { %7515 = vmatpush.bf16.msrb.mxu1 %v11570_v59  ;;  %7484 = vmatmul.bf16.vlgmr.msra.gmra.mxu2 %v14624_v45  ;;  %v11794_v59 = vor.u32 %v13934_v6, %v11793_v47  ;;  %v11377_v24 = vld [vmem:[#allocation5 + $0x1468] sm:$0xf]  ;;  %v13894_v32 = vld [vmem:[#allocation5 + $0x1674] sm:$0xf0] }
 0x2ca   :  { %7528 = vmatpush.bf16.msrb.mxu2 %v11698_v1  ;;  %7497 = vmatmul.bf16.vlgmr.msra.gmra.mxu3 %v14628_v49  ;;  %v13866_v1 = vld [vmem:[#allocation5 + $0x1594] sm:$0xf0]  ;;  %v11761_v26 = vld [vmem:[#allocation5 + $0x1768] sm:$0xf] }
 0x2cb   :  { %7541 = vmatpush.bf16.msrb.mxu3 %v11826_v61  ;;  %v13930_v61 = vld [vmem:[#allocation5 + $0x1794] sm:$0xf0]  ;;  %v11522_v15 = vor.u32 %v13866_v1, %v11521_v62  ;;  %v11489_v2 = vld [vmem:[#allocation5 + $0x1548] sm:$0xf] }
 0x2cc   :  { %7503 = vmatpush.bf16.msrb.mxu0 %v11426_v57  ;;  %v13830_v57 = vld [vmem:[#allocation5 + $0x1474] sm:$0xf0]  ;;  %v11778_v63 = vor.u32 %v13930_v61, %v11777_v43  ;;  %v7277_v62 = vpop.f32.mrf.mxu2  ;;  %v11745_v43 = vld [vmem:[#allocation5 + $0x1748] sm:$0xf] }
 0x2cd   :  { %7516 = vmatpush.bf16.msrb.mxu1 %v11554_v48  ;;  %v11505_v48 = vld [vmem:[#allocation5 + $0x1568] sm:$0xf]  ;;  %v13926_v58 = vld [vmem:[#allocation5 + $0x1774] sm:$0xf0]  ;;  %v11378_v6 = vor.u32 %v13830_v57, %v11377_v24  ;;  %v7290_v4 = vpop.f32.mrf.mxu3 }
 0x2ce   :  { %7529 = vmatpush.bf16.msrb.mxu2 %v11682_v39  ;;  %v7252_v39 = vadd.f32 %v7251_v52, %v1172_v51  ;;  %v11762_v40 = vor.u32 %v13926_v58, %v11761_v26  ;;  %v13858_v51 = vld [vmem:[#allocation5 + $0x1554] sm:$0xf0]  ;;  %v11345_v57 = vld [vmem:[#allocation5 + $0x1428] sm:$0xf] }
 0x2cf   :  { %7542 = vmatpush.bf16.msrb.mxu3 %v11810_v50  ;;  %v11633_v50 = vld [vmem:[#allocation5 + $0x1668] sm:$0xf]  ;;  %v13890_v1 = vld [vmem:[#allocation5 + $0x1654] sm:$0xf0] }
 0x2d0   :  { %7504 = vmatpush.bf16.msrb.mxu0 %v11410_v36  ;;  %v7265_v47 = vadd.f32 %v7264_v8, %v7252_v39  ;;  %v11506_v36 = vor.u32 %v13862_v9, %v11505_v48  ;;  %v11634_v3 = vor.u32 %v13894_v32, %v11633_v50  ;;  %v13922_v61 = vld [vmem:[#allocation5 + $0x1754] sm:$0xf0]  ;;  %v11473_v39 = vld [vmem:[#allocation5 + $0x1528] sm:$0xf]  ;;  %v7266_v8 = vpop.f32.mrf.mxu1 }
 0x2d1   :  { %7517 = vmatpush.bf16.msrb.mxu1 %v11538_v21  ;;  %v11361_v21 = vld [vmem:[#allocation5 + $0x1448] sm:$0xf]  ;;  %v13822_v48 = vld [vmem:[#allocation5 + $0x1434] sm:$0xf0] }
 0x2d2   :  { %7530 = vmatpush.bf16.msrb.mxu2 %v11666_v27  ;;  %v13826_v27 = vld [vmem:[#allocation5 + $0x1454] sm:$0xf0]  ;;  %v7278_v56 = vadd.f32 %v7277_v62, %v7265_v47  ;;  %v11601_v50 = vld [vmem:[#allocation5 + $0x1628] sm:$0xf]  ;;  %v11346_v47 = vor.u32 %v13822_v48, %v11345_v57 }
 0x2d3   :  { %7543 = vmatpush.bf16.msrb.mxu3 %v11794_v59  ;;  %v11617_v59 = vld [vmem:[#allocation5 + $0x1648] sm:$0xf]  ;;  %v13854_v9 = vld [vmem:[#allocation5 + $0x1534] sm:$0xf0] }
 0x2d4   :  { %7505 = vmatpush.bf16.msrb.mxu0 %v11394_v14  ;;  %v11362_v14 = vor.u32 %v13826_v27, %v11361_v21  ;;  %v14768_v52 = vadd.f32 %v7290_v4, %v7278_v56  ;;  %v11618_v24 = vor.u32 %v13890_v1, %v11617_v59  ;;  %v13886_v32 = vld [vmem:[#allocation5 + $0x1634] sm:$0xf0]  ;;  %v11729_v26 = vld [vmem:[#allocation5 + $0x1728] sm:$0xf] }
 0x2d5   :  { %7518 = vmatpush.bf16.msrb.mxu1 %v11522_v15  ;;  %v7253_v15 = vpop.f32.mrf.mxu0  ;;  %v13918_v58 = vld [vmem:[#allocation5 + $0x1734] sm:$0xf0]  ;;  %v11457_v27 = vld [vmem:[#allocation5 + $0x1508] sm:$0xf]  ;;  %v7292_v4 = vpop.f32.mrf.mxu3 }
 0x2d6   :  { %7531 = vmatpush.bf16.msrb.mxu2 %v11650_v0  ;;  %v11490_v0 = vor.u32 %v13858_v51, %v11489_v2  ;;  %v13818_v21 = vld [vmem:[#allocation5 + $0x1414] sm:$0xf0]  ;;  %v11585_v62 = vld [vmem:[#allocation5 + $0x1608] sm:$0xf]  ;;  %v7279_v51 = vpop.f32.mrf.mxu2 }
 0x2d7   :  { %7544 = vmatpush.bf16.msrb.mxu3 %v11778_v63  ;;  %v11746_v63 = vor.u32 %v13922_v61, %v11745_v43  ;;  %v13850_v2 = vld [vmem:[#allocation5 + $0x1514] sm:$0xf0]  ;;  %v11713_v1 = vld [vmem:[#allocation5 + $0x1708] sm:$0xf] }
 0x2d8   :  { %7506 = vmatpush.bf16.msrb.mxu0 %v11378_v6  ;;  %v11329_v6 = vld [vmem:[#allocation5 + $0x1408] sm:$0xf]  ;;  %v13882_v59 = vld [vmem:[#allocation5 + $0x1614] sm:$0xf0]  ;;  %v11458_v48 = vor.u32 %v13850_v2, %v11457_v27 }
 0x2d9   :  { %7519 = vmatpush.bf16.msrb.mxu1 %v11506_v36  ;;  %v11474_v36 = vor.u32 %v13854_v9, %v11473_v39  ;;  %v13914_v56 = vld [vmem:[#allocation5 + $0x1714] sm:$0xf0]  ;;  %v11953_v43 = vld [vmem:[#allocation5 + $0x18e8] sm:$0xf]  ;;  %v11330_v15 = vor.u32 %v13818_v21, %v11329_v6  ;;  %v11586_v39 = vor.u32 %v13882_v59, %v11585_v62 }
 0x2da   :  { %7532 = vmatpush.bf16.msrb.mxu2 %v11634_v3  ;;  %v11602_v3 = vor.u32 %v13886_v32, %v11601_v50  ;;  %v13974_v61 = vld [vmem:[#allocation5 + $0x18f4] sm:$0xf0]  ;;  %v12337_v8 = vld [vmem:[#allocation5 + $0x1be8] sm:$0xf] }
 0x2db   :  { %7545 = vmatpush.bf16.msrb.mxu3 %v11762_v40  ;;  %v11730_v40 = vor.u32 %v13918_v58, %v11729_v26  ;;  %v14006_v57 = vld [vmem:[#allocation5 + $0x19f4] sm:$0xf0]  ;;  %v11954_v50 = vor.u32 %v13974_v61, %v11953_v43  ;;  %v11937_v58 = vld [vmem:[#allocation5 + $0x18c8] sm:$0xf] }
 0x2dc   :  { %7507 = vmatpush.bf16.msrb.mxu0 %v11362_v14  ;;  %v12081_v14 = vld [vmem:[#allocation5 + $0x19e8] sm:$0xf]  ;;  %v14070_v9 = vld [vmem:[#allocation5 + $0x1bf4] sm:$0xf0] }
 0x2dd   :  { %7520 = vmatpush.bf16.msrb.mxu1 %v11490_v0  ;;  %v12209_v0 = vld [vmem:[#allocation5 + $0x1ae8] sm:$0xf]  ;;  %v12082_v32 = vor.u32 %v14006_v57, %v12081_v14  ;;  %v13970_v51 = vld [vmem:[#allocation5 + $0x18d4] sm:$0xf0] }
 0x2de   :  { %7533 = vmatpush.bf16.msrb.mxu2 %v11618_v24  ;;  %v14038_v24 = vld [vmem:[#allocation5 + $0x1af4] sm:$0xf0]  ;;  %v12065_v4 = vld [vmem:[#allocation5 + $0x19c8] sm:$0xf]  ;;  %v11938_v27 = vor.u32 %v13970_v51, %v11937_v58 }
 0x2df   :  { %7546 = vmatpush.bf16.msrb.mxu3 %v11746_v63  ;;  %v11714_v63 = vor.u32 %v13914_v56, %v11713_v1  ;;  %v12210_v26 = vor.u32 %v14038_v24, %v12209_v0  ;;  %v14002_v6 = vld [vmem:[#allocation5 + $0x19d4] sm:$0xf0]  ;;  %v12193_v21 = vld [vmem:[#allocation5 + $0x1ac8] sm:$0xf] }
 0x2e0   :  { %7508 = vmatpush.bf16.msrb.mxu0 %v11346_v47  ;;  %v12338_v47 = vor.u32 %v14070_v9, %v12337_v8  ;;  %v14034_v60 = vld [vmem:[#allocation5 + $0x1ad4] sm:$0xf0]  ;;  %v12066_v2 = vor.u32 %v14002_v6, %v12065_v4  ;;  %v12049_v1 = vld [vmem:[#allocation5 + $0x19a8] sm:$0xf] }
 0x2e1   :  { %7521 = vmatpush.bf16.msrb.mxu1 %v11474_v36  ;;  %v12321_v36 = vld [vmem:[#allocation5 + $0x1bc8] sm:$0xf]  ;;  %v12194_v62 = vor.u32 %v14034_v60, %v12193_v21  ;;  %v13966_v59 = vld [vmem:[#allocation5 + $0x18b4] sm:$0xf0] }
 0x2e2   :  { %7534 = vmatpush.bf16.msrb.mxu2 %v11602_v3  ;;  %v14066_v3 = vld [vmem:[#allocation5 + $0x1bd4] sm:$0xf0]  ;;  %v12177_v61 = vld [vmem:[#allocation5 + $0x1aa8] sm:$0xf] }
 0x2e3   :  { %7547 = vmatpush.bf16.msrb.mxu3 %v11730_v40  ;;  %v11921_v40 = vld [vmem:[#allocation5 + $0x18a8] sm:$0xf]  ;;  %v12322_v56 = vor.u32 %v14066_v3, %v12321_v36  ;;  %v13998_v43 = vld [vmem:[#allocation5 + $0x19b4] sm:$0xf0] }
 0x2e4   :  { %7509 = vmatpush.bf16.msrb.mxu0 %v11330_v15  ;;  %v14030_v14 = vld [vmem:[#allocation5 + $0x1ab4] sm:$0xf0]  ;;  %v12305_v15 = vld [vmem:[#allocation5 + $0x1ba8] sm:$0xf]  ;;  %v11922_v60 = vor.u32 %v13966_v59, %v11921_v40  ;;  %v12050_v0 = vor.u32 %v13998_v43, %v12049_v1  ;;  %v7303_v4 = vpop.f32.mrf.mxu0 }
 0x2e5   :  { %7522 = vmatpush.bf16.msrb.mxu1 %v11458_v48  ;;  %v14062_v57 = vld [vmem:[#allocation5 + $0x1bb4] sm:$0xf0]  ;;  %v12178_v24 = vor.u32 %v14030_v14, %v12177_v61  ;;  %v11905_v48 = vld [vmem:[#allocation5 + $0x1888] sm:$0xf] }
 0x2e6   :  { %7535 = vmatpush.bf16.msrb.mxu2 %v11586_v39  ;;  %v13962_v39 = vld [vmem:[#allocation5 + $0x1894] sm:$0xf0]  ;;  %v12033_v8 = vld [vmem:[#allocation5 + $0x1988] sm:$0xf]  ;;  %v12306_v9 = vor.u32 %v14062_v57, %v12305_v15 }
 0x2e7   :  { %7548 = vmatpush.bf16.msrb.mxu3 %v11714_v63  ;;  %7510 = vmatmul.bf16.vlgmr.msrb.gmra.mxu0 %v14636_v7  ;;  %v13994_v63 = vld [vmem:[#allocation5 + $0x1994] sm:$0xf0]  ;;  %v11906_v51 = vor.u32 %v13962_v39, %v11905_v48  ;;  %v11889_v21 = vld [vmem:[#allocation5 + $0x1868] sm:$0xf] }
 0x2e8   :  { %7554 = vmatpush.bf16.msra.mxu0 %v11954_v50  ;;  %7523 = vmatmul.bf16.vlgmr.msrb.gmra.mxu1 %v14640_v12  ;;  %v12161_v50 = vld [vmem:[#allocation5 + $0x1a88] sm:$0xf]  ;;  %v14058_v58 = vld [vmem:[#allocation5 + $0x1b94] sm:$0xf0] }
 0x2e9   :  { %7567 = vmatpush.bf16.msra.mxu1 %v12082_v32  ;;  %7536 = vmatmul.bf16.vlgmr.msrb.gmra.mxu2 %v14638_v11  ;;  %v14026_v32 = vld [vmem:[#allocation5 + $0x1a94] sm:$0xf0]  ;;  %v12017_v3 = vld [vmem:[#allocation5 + $0x1968] sm:$0xf] }
 0x2ea   :  { %7580 = vmatpush.bf16.msra.mxu2 %v12210_v26  ;;  %7549 = vmatmul.bf16.vlgmr.msrb.gmra.mxu3 %v14642_v16  ;;  %v12289_v26 = vld [vmem:[#allocation5 + $0x1b88] sm:$0xf]  ;;  %v12162_v6 = vor.u32 %v14026_v32, %v12161_v50  ;;  %v13958_v36 = vld [vmem:[#allocation5 + $0x1874] sm:$0xf0] }
 0x2eb   :  { %7593 = vmatpush.bf16.msra.mxu3 %v12338_v47  ;;  %v12034_v47 = vor.u32 %v13994_v63, %v12033_v8  ;;  %v13990_v40 = vld [vmem:[#allocation5 + $0x1974] sm:$0xf0]  ;;  %v12145_v59 = vld [vmem:[#allocation5 + $0x1a68] sm:$0xf]  ;;  %v11890_v14 = vor.u32 %v13958_v36, %v11889_v21 }
 0x2ec   :  { %7555 = vmatpush.bf16.msra.mxu0 %v11938_v27  ;;  %v7304_v27 = vadd.f32 %v7303_v4, %v14768_v52  ;;  %v14022_v1 = vld [vmem:[#allocation5 + $0x1a74] sm:$0xf0]  ;;  %v12018_v15 = vor.u32 %v13990_v40, %v12017_v3  ;;  %v7329_v48 = vpop.f32.mrf.mxu2  ;;  %v12129_v8 = vld [vmem:[#allocation5 + $0x1a48] sm:$0xf]  ;;  %v7305_v4 = vpop.f32.mrf.mxu0 }
 0x2ed   :  { %7568 = vmatpush.bf16.msra.mxu1 %v12066_v2  ;;  %v7316_v2 = vpop.f32.mrf.mxu1  ;;  %v14054_v43 = vld [vmem:[#allocation5 + $0x1b74] sm:$0xf0]  ;;  %v12146_v57 = vor.u32 %v14022_v1, %v12145_v59  ;;  %v7342_v50 = vpop.f32.mrf.mxu3  ;;  %v12257_v32 = vld [vmem:[#allocation5 + $0x1b48] sm:$0xf] }
 0x2ee   :  { %7581 = vmatpush.bf16.msra.mxu2 %v12194_v62  ;;  %v12290_v62 = vor.u32 %v14058_v58, %v12289_v26  ;;  %v7317_v61 = vadd.f32 %v7316_v2, %v7304_v27  ;;  %v13986_v39 = vld [vmem:[#allocation5 + $0x1954] sm:$0xf0]  ;;  %v11857_v21 = vld [vmem:[#allocation5 + $0x1828] sm:$0xf] }
 0x2ef   :  { %7594 = vmatpush.bf16.msra.mxu3 %v12322_v56  ;;  %v12273_v56 = vld [vmem:[#allocation5 + $0x1b68] sm:$0xf]  ;;  %v14050_v26 = vld [vmem:[#allocation5 + $0x1b54] sm:$0xf0] }
 0x2f0   :  { %7556 = vmatpush.bf16.msra.mxu0 %v11922_v60  ;;  %v11873_v60 = vld [vmem:[#allocation5 + $0x1848] sm:$0xf]  ;;  %v12274_v52 = vor.u32 %v14054_v43, %v12273_v56  ;;  %v7330_v63 = vadd.f32 %v7329_v48, %v7317_v61  ;;  %v13950_v36 = vld [vmem:[#allocation5 + $0x1834] sm:$0xf0]  ;;  %v12258_v2 = vor.u32 %v14050_v26, %v12257_v32 }
 0x2f1   :  { %7569 = vmatpush.bf16.msra.mxu1 %v12050_v0  ;;  %v13954_v0 = vld [vmem:[#allocation5 + $0x1854] sm:$0xf0]  ;;  %v11985_v3 = vld [vmem:[#allocation5 + $0x1928] sm:$0xf]  ;;  %v11858_v43 = vor.u32 %v13950_v36, %v11857_v21 }
 0x2f2   :  { %7582 = vmatpush.bf16.msra.mxu2 %v12178_v24  ;;  %v12001_v24 = vld [vmem:[#allocation5 + $0x1948] sm:$0xf]  ;;  %v11874_v58 = vor.u32 %v13954_v0, %v11873_v60  ;;  %v14014_v59 = vld [vmem:[#allocation5 + $0x1a34] sm:$0xf0] }
 0x2f3   :  { %7595 = vmatpush.bf16.msra.mxu3 %v12306_v9  ;;  %v14018_v9 = vld [vmem:[#allocation5 + $0x1a54] sm:$0xf0]  ;;  %v12113_v40 = vld [vmem:[#allocation5 + $0x1a28] sm:$0xf] }
 0x2f4   :  { %7557 = vmatpush.bf16.msra.mxu0 %v11906_v51  ;;  %v14775_v51 = vadd.f32 %v7342_v50, %v7330_v63  ;;  %v12241_v1 = vld [vmem:[#allocation5 + $0x1b28] sm:$0xf]  ;;  %v14046_v56 = vld [vmem:[#allocation5 + $0x1b34] sm:$0xf0]  ;;  %v7331_v48 = vpop.f32.mrf.mxu2 }
 0x2f5   :  { %7570 = vmatpush.bf16.msra.mxu1 %v12034_v47  ;;  %v12002_v47 = vor.u32 %v13986_v39, %v12001_v24  ;;  %v7318_v27 = vpop.f32.mrf.mxu1  ;;  %v11841_v61 = vld [vmem:[#allocation5 + $0x1808] sm:$0xf]  ;;  %v13978_v0 = vld [vmem:[#allocation5 + $0x1914] sm:$0xf0]  ;;  %v7344_v63 = vpop.f32.mrf.mxu3 }
 0x2f6   :  { %7583 = vmatpush.bf16.msra.mxu2 %v12162_v6  ;;  %v12130_v6 = vor.u32 %v14018_v9, %v12129_v8  ;;  %v11969_v60 = vld [vmem:[#allocation5 + $0x1908] sm:$0xf]  ;;  %v14010_v39 = vld [vmem:[#allocation5 + $0x1a14] sm:$0xf0] }
 0x2f7   :  { %7596 = vmatpush.bf16.msra.mxu3 %v12290_v62  ;;  %v13982_v62 = vld [vmem:[#allocation5 + $0x1934] sm:$0xf0]  ;;  %v12097_v24 = vld [vmem:[#allocation5 + $0x1a08] sm:$0xf]  ;;  %v11970_v21 = vor.u32 %v13978_v0, %v11969_v60 }
 0x2f8   :  { %7558 = vmatpush.bf16.msra.mxu0 %v11890_v14  ;;  %v13946_v14 = vld [vmem:[#allocation5 + $0x1814] sm:$0xf0]  ;;  %v12225_v8 = vld [vmem:[#allocation5 + $0x1b08] sm:$0xf]  ;;  %v12098_v36 = vor.u32 %v14010_v39, %v12097_v24 }
 0x2f9   :  { %7571 = vmatpush.bf16.msra.mxu1 %v12018_v15  ;;  %v11986_v15 = vor.u32 %v13982_v62, %v11985_v3  ;;  %v14042_v9 = vld [vmem:[#allocation5 + $0x1b14] sm:$0xf0]  ;;  %v12465_v50 = vld [vmem:[#allocation5 + $0x1ce8] sm:$0xf] }
 0x2fa   :  { %7584 = vmatpush.bf16.msra.mxu2 %v12146_v57  ;;  %v12114_v57 = vor.u32 %v14014_v59, %v12113_v40  ;;  %v14102_v32 = vld [vmem:[#allocation5 + $0x1cf4] sm:$0xf0]  ;;  %v12593_v26 = vld [vmem:[#allocation5 + $0x1de8] sm:$0xf] }
 0x2fb   :  { %7597 = vmatpush.bf16.msra.mxu3 %v12274_v52  ;;  %v12242_v52 = vor.u32 %v14046_v56, %v12241_v1  ;;  %v14134_v4 = vld [vmem:[#allocation5 + $0x1df4] sm:$0xf0]  ;;  %v12849_v3 = vld [vmem:[#allocation5 + $0x1fe8] sm:$0xf]  ;;  %v12466_v62 = vor.u32 %v14102_v32, %v12465_v50 }
 0x2fc   :  { %7559 = vmatpush.bf16.msra.mxu0 %v11874_v58  ;;  %v11842_v58 = vor.u32 %v13946_v14, %v11841_v61  ;;  %v14198_v27 = vld [vmem:[#allocation5 + $0x1ff4] sm:$0xf0]  ;;  %v12594_v40 = vor.u32 %v14134_v4, %v12593_v26  ;;  %v12449_v1 = vld [vmem:[#allocation5 + $0x1cc8] sm:$0xf] }
 0x2fd   :  { %7572 = vmatpush.bf16.msra.mxu1 %v12002_v47  ;;  %v12721_v47 = vld [vmem:[#allocation5 + $0x1ee8] sm:$0xf]  ;;  %v14098_v56 = vld [vmem:[#allocation5 + $0x1cd4] sm:$0xf0] }
 0x2fe   :  { %7585 = vmatpush.bf16.msra.mxu2 %v12130_v6  ;;  %v14166_v6 = vld [vmem:[#allocation5 + $0x1ef4] sm:$0xf0]  ;;  %v12577_v48 = vld [vmem:[#allocation5 + $0x1dc8] sm:$0xf]  ;;  %v12450_v60 = vor.u32 %v14098_v56, %v12449_v1 }
 0x2ff   :  { %7598 = vmatpush.bf16.msra.mxu3 %v12258_v2  ;;  %v12226_v2 = vor.u32 %v14042_v9, %v12225_v8  ;;  %v12722_v59 = vor.u32 %v14166_v6, %v12721_v47  ;;  %v14130_v61 = vld [vmem:[#allocation5 + $0x1dd4] sm:$0xf0]  ;;  %v12705_v14 = vld [vmem:[#allocation5 + $0x1ec8] sm:$0xf] }
 0x300   :  { %7560 = vmatpush.bf16.msra.mxu0 %v11858_v43  ;;  %v12850_v43 = vor.u32 %v14198_v27, %v12849_v3  ;;  %v14162_v63 = vld [vmem:[#allocation5 + $0x1ed4] sm:$0xf0]  ;;  %v12578_v0 = vor.u32 %v14130_v61, %v12577_v48  ;;  %v12561_v8 = vld [vmem:[#allocation5 + $0x1da8] sm:$0xf] }
 0x301   :  { %7573 = vmatpush.bf16.msra.mxu1 %v11986_v15  ;;  %v12833_v15 = vld [vmem:[#allocation5 + $0x1fc8] sm:$0xf]  ;;  %v12706_v24 = vor.u32 %v14162_v63, %v12705_v14  ;;  %v14094_v39 = vld [vmem:[#allocation5 + $0x1cb4] sm:$0xf0] }
 0x302   :  { %7586 = vmatpush.bf16.msra.mxu2 %v12114_v57  ;;  %v14194_v57 = vld [vmem:[#allocation5 + $0x1fd4] sm:$0xf0]  ;;  %v12689_v32 = vld [vmem:[#allocation5 + $0x1ea8] sm:$0xf] }
 0x303   :  { %7599 = vmatpush.bf16.msra.mxu3 %v12242_v52  ;;  %v12433_v52 = vld [vmem:[#allocation5 + $0x1ca8] sm:$0xf]  ;;  %v12834_v9 = vor.u32 %v14194_v57, %v12833_v15  ;;  %v14126_v50 = vld [vmem:[#allocation5 + $0x1db4] sm:$0xf0] }
 0x304   :  { %7561 = vmatpush.bf16.msra.mxu0 %v11842_v58  ;;  %v14158_v26 = vld [vmem:[#allocation5 + $0x1eb4] sm:$0xf0]  ;;  %v12817_v58 = vld [vmem:[#allocation5 + $0x1fa8] sm:$0xf]  ;;  %v12434_v47 = vor.u32 %v14094_v39, %v12433_v52  ;;  %v12562_v6 = vor.u32 %v14126_v50, %v12561_v8  ;;  %v7355_v1 = vpop.f32.mrf.mxu0 }
 0x305   :  { %7574 = vmatpush.bf16.msra.mxu1 %v11970_v21  ;;  %v14190_v4 = vld [vmem:[#allocation5 + $0x1fb4] sm:$0xf0]  ;;  %v12690_v21 = vor.u32 %v14158_v26, %v12689_v32  ;;  %v12545_v27 = vld [vmem:[#allocation5 + $0x1d88] sm:$0xf]  ;;  %v7368_v14 = vpop.f32.mrf.mxu1 }
 0x306   :  { %7587 = vmatpush.bf16.msra.mxu2 %v12098_v36  ;;  %v12417_v36 = vld [vmem:[#allocation5 + $0x1c88] sm:$0xf]  ;;  %v14090_v3 = vld [vmem:[#allocation5 + $0x1c94] sm:$0xf0] }
 0x307   :  { %7600 = vmatpush.bf16.msra.mxu3 %v12226_v2  ;;  %7562 = vmatmul.bf16.vlgmr.msra.gmra.mxu0 %v14651_v5  ;;  %v12818_v2 = vor.u32 %v14190_v4, %v12817_v58  ;;  %v12801_v56 = vld [vmem:[#allocation5 + $0x1f88] sm:$0xf]  ;;  %v14186_v48 = vld [vmem:[#allocation5 + $0x1f94] sm:$0xf0]  ;;  %v12418_v61 = vor.u32 %v14090_v3, %v12417_v36 }
 0x308   :  { %7606 = vmatpush.bf16.msrb.mxu0 %v12466_v62  ;;  %7575 = vmatmul.bf16.vlgmr.msra.gmra.mxu1 %v14655_v13  ;;  %v14122_v62 = vld [vmem:[#allocation5 + $0x1d94] sm:$0xf0]  ;;  %v12401_v57 = vld [vmem:[#allocation5 + $0x1c68] sm:$0xf] }
 0x309   :  { %7619 = vmatpush.bf16.msrb.mxu1 %v12594_v40  ;;  %7588 = vmatmul.bf16.vlgmr.msra.gmra.mxu2 %v14653_v10  ;;  %v12673_v40 = vld [vmem:[#allocation5 + $0x1e88] sm:$0xf]  ;;  %v12546_v63 = vor.u32 %v14122_v62, %v12545_v27  ;;  %v14118_v39 = vld [vmem:[#allocation5 + $0x1d74] sm:$0xf0] }
 0x30a   :  { %7632 = vmatpush.bf16.msrb.mxu2 %v12722_v59  ;;  %7601 = vmatmul.bf16.vlgmr.msra.gmra.mxu3 %v14657_v17  ;;  %v14154_v59 = vld [vmem:[#allocation5 + $0x1e94] sm:$0xf0]  ;;  %v12657_v8 = vld [vmem:[#allocation5 + $0x1e68] sm:$0xf] }
 0x30b   :  { %7645 = vmatpush.bf16.msrb.mxu3 %v12850_v43  ;;  %v7356_v43 = vadd.f32 %v7355_v1, %v14775_v51  ;;  %v12674_v15 = vor.u32 %v14154_v59, %v12673_v40  ;;  %v12785_v50 = vld [vmem:[#allocation5 + $0x1f68] sm:$0xf]  ;;  %v14182_v32 = vld [vmem:[#allocation5 + $0x1f74] sm:$0xf0] }
 0x30c   :  { %7607 = vmatpush.bf16.msrb.mxu0 %v12450_v60  ;;  %v14086_v60 = vld [vmem:[#allocation5 + $0x1c74] sm:$0xf0]  ;;  %v12385_v4 = vld [vmem:[#allocation5 + $0x1c48] sm:$0xf]  ;;  %v7381_v36 = vpop.f32.mrf.mxu2 }
 0x30d   :  { %7620 = vmatpush.bf16.msrb.mxu1 %v12578_v0  ;;  %v12529_v0 = vld [vmem:[#allocation5 + $0x1d68] sm:$0xf]  ;;  %v7369_v52 = vadd.f32 %v7368_v14, %v7356_v43  ;;  %v12402_v26 = vor.u32 %v14086_v60, %v12401_v57  ;;  %v14114_v3 = vld [vmem:[#allocation5 + $0x1d54] sm:$0xf0]  ;;  %v7394_v40 = vpop.f32.mrf.mxu3  ;;  %v7370_v43 = vpop.f32.mrf.mxu1 }
 0x30e   :  { %7633 = vmatpush.bf16.msrb.mxu2 %v12706_v24  ;;  %v12802_v24 = vor.u32 %v14186_v48, %v12801_v56  ;;  %v12530_v51 = vor.u32 %v14118_v39, %v12529_v0  ;;  %v12641_v27 = vld [vmem:[#allocation5 + $0x1e48] sm:$0xf]  ;;  %v14178_v1 = vld [vmem:[#allocation5 + $0x1f54] sm:$0xf0]  ;;  %v7357_v56 = vpop.f32.mrf.mxu0  ;;  %v13268_v43 = vld [vmem:[#allocation5 + $0x2ec] sm:$0xf] }
 0x30f   :  { %7646 = vmatpush.bf16.msrb.mxu3 %v12834_v9  ;;  %v14150_v9 = vld [vmem:[#allocation5 + $0x1e74] sm:$0xf0]  ;;  %v7382_v62 = vadd.f32 %v7381_v36, %v7369_v52  ;;  %v12769_v59 = vld [vmem:[#allocation5 + $0x1f48] sm:$0xf] }
 0x310   :  { %7608 = vmatpush.bf16.msrb.mxu0 %v12434_v47  ;;  %v12658_v58 = vor.u32 %v14150_v9, %v12657_v8  ;;  %v14082_v47 = vld [vmem:[#allocation5 + $0x1c54] sm:$0xf0]  ;;  %v12497_v60 = vld [vmem:[#allocation5 + $0x1d28] sm:$0xf]  ;;  %v12770_v0 = vor.u32 %v14178_v1, %v12769_v59  ;;  %v13236_v59 = vld [vmem:[#allocation5 + $0x1ec] sm:$0xf] }
 0x311   :  { %7621 = vmatpush.bf16.msrb.mxu1 %v12562_v6  ;;  %v12513_v6 = vld [vmem:[#allocation5 + $0x1d48] sm:$0xf]  ;;  %v12386_v48 = vor.u32 %v14082_v47, %v12385_v4  ;;  %v14078_v57 = vld [vmem:[#allocation5 + $0x1c34] sm:$0xf0] }
 0x312   :  { %7634 = vmatpush.bf16.msrb.mxu2 %v12690_v21  ;;  %v12786_v21 = vor.u32 %v14182_v32, %v12785_v50  ;;  %v12514_v14 = vor.u32 %v14114_v3, %v12513_v6  ;;  %v12625_v52 = vld [vmem:[#allocation5 + $0x1e28] sm:$0xf]  ;;  %v14142_v39 = vld [vmem:[#allocation5 + $0x1e34] sm:$0xf0] }
 0x313   :  { %7647 = vmatpush.bf16.msrb.mxu3 %v12818_v2  ;;  %v14146_v2 = vld [vmem:[#allocation5 + $0x1e54] sm:$0xf0]  ;;  %v12753_v8 = vld [vmem:[#allocation5 + $0x1f28] sm:$0xf] }
 0x314   :  { %7609 = vmatpush.bf16.msrb.mxu0 %v12418_v61  ;;  %v14782_v61 = vadd.f32 %v7394_v40, %v7382_v62  ;;  %v14174_v9 = vld [vmem:[#allocation5 + $0x1f34] sm:$0xf0]  ;;  %v12353_v32 = vld [vmem:[#allocation5 + $0x1c08] sm:$0xf]  ;;  %v13204_v62 = vld [vmem:[#allocation5 + $0xec] sm:$0xf] }
 0x315   :  { %7622 = vmatpush.bf16.msrb.mxu1 %v12546_v63  ;;  %v12642_v63 = vor.u32 %v14146_v2, %v12641_v27  ;;  %v12481_v4 = vld [vmem:[#allocation5 + $0x1d08] sm:$0xf]  ;;  %v14106_v47 = vld [vmem:[#allocation5 + $0x1d14] sm:$0xf0]  ;;  %v12754_v36 = vor.u32 %v14174_v9, %v12753_v8  ;;  %v7383_v2 = vpop.f32.mrf.mxu2  ;;  %v8883_v40 = vld [vmem:[#allocation5 + $0xf8] sm:$0xf0]  ;;  %v7396_v1 = vpop.f32.mrf.mxu3 }
 0x316   :  { %7635 = vmatpush.bf16.msrb.mxu2 %v12674_v15  ;;  %v12369_v15 = vld [vmem:[#allocation5 + $0x1c28] sm:$0xf]  ;;  %v14170_v27 = vld [vmem:[#allocation5 + $0x1f14] sm:$0xf0]  ;;  %v13200_v8 = vld [vmem:[#allocation5 + $0xcc] sm:$0xf] }
 0x317   :  { %7648 = vmatpush.bf16.msrb.mxu3 %v12802_v24  ;;  %v14110_v24 = vld [vmem:[#allocation5 + $0x1d34] sm:$0xf0]  ;;  %v12370_v50 = vor.u32 %v14078_v57, %v12369_v15  ;;  %v12609_v6 = vld [vmem:[#allocation5 + $0x1e08] sm:$0xf]  ;;  %v13300_v57 = vld [vmem:[#allocation5 + $0x3ec] sm:$0xf] }
 0x318   :  { %7610 = vmatpush.bf16.msrb.mxu0 %v12402_v26  ;;  %v14074_v26 = vld [vmem:[#allocation5 + $0x1c14] sm:$0xf0]  ;;  %v12737_v3 = vld [vmem:[#allocation5 + $0x1f08] sm:$0xf]  ;;  %v8867_v9 = vld [vmem:[#allocation5 + $0xd8] sm:$0xf0] }
 0x319   :  { %7623 = vmatpush.bf16.msrb.mxu1 %v12530_v51  ;;  %v12498_v51 = vor.u32 %v14110_v24, %v12497_v60  ;;  %v12354_v56 = vor.u32 %v14074_v26, %v12353_v32  ;;  %v9267_v60 = vld [vmem:[#allocation5 + $0x3f8] sm:$0xf0]  ;;  %v8886_v24 = vor.u32 %v13204_v62, %v8883_v40  ;;  %v13232_v2 = vld [vmem:[#allocation5 + $0x1cc] sm:$0xf] }
 0x31a   :  { %7636 = vmatpush.bf16.msrb.mxu2 %v12658_v58  ;;  %v12626_v58 = vor.u32 %v14142_v39, %v12625_v52  ;;  %v8995_v32 = vld [vmem:[#allocation5 + $0x1d8] sm:$0xf0]  ;;  %v13264_v26 = vld [vmem:[#allocation5 + $0x2cc] sm:$0xf] }
 0x31b   :  { %7649 = vmatpush.bf16.msrb.mxu3 %v12786_v21  ;;  %v14138_v21 = vld [vmem:[#allocation5 + $0x1e14] sm:$0xf0]  ;;  %v9123_v1 = vld [vmem:[#allocation5 + $0x2d8] sm:$0xf0]  ;;  %v13260_v40 = vld [vmem:[#allocation5 + $0x2ac] sm:$0xf] }
 0x31c   :  { %7611 = vmatpush.bf16.msrb.mxu0 %v12386_v48  ;;  %v9011_v48 = vld [vmem:[#allocation5 + $0x1f8] sm:$0xf0]  ;;  %v12610_v15 = vor.u32 %v14138_v21, %v12609_v6  ;;  %v9126_v6 = vor.u32 %v13264_v26, %v9123_v1 }
 0x31d   :  { %7624 = vmatpush.bf16.msrb.mxu1 %v12514_v14  ;;  %v9139_v14 = vld [vmem:[#allocation5 + $0x2f8] sm:$0xf0]  ;;  %v9014_v52 = vor.u32 %v13236_v59, %v9011_v48 }
 0x31e   :  { %7637 = vmatpush.bf16.msrb.mxu2 %v12642_v63  ;;  %v12482_v63 = vor.u32 %v14106_v47, %v12481_v4  ;;  %v9142_v39 = vor.u32 %v13268_v43, %v9139_v14  ;;  %v8870_v4 = vor.u32 %v13200_v8, %v8867_v9  ;;  %v8998_v47 = vor.u32 %v13232_v2, %v8995_v32  ;;  %v8851_v21 = vld [vmem:[#allocation5 + $0xb8] sm:$0xf0]  ;;  %v13288_v9 = vld [vmem:[#allocation5 + $0x38c] sm:$0xf] }
 0x31f   :  { %7650 = vmatpush.bf16.msrb.mxu3 %v12770_v0  ;;  %v12738_v0 = vor.u32 %v14170_v27, %v12737_v3  ;;  %v13228_v3 = vld [vmem:[#allocation5 + $0x1ac] sm:$0xf]  ;;  %v8979_v62 = vld [vmem:[#allocation5 + $0x1b8] sm:$0xf0] }
 0x320   :  { %7612 = vmatpush.bf16.msrb.mxu0 %v12370_v50  ;;  %v9270_v50 = vor.u32 %v13300_v57, %v9267_v60  ;;  %v9107_v59 = vld [vmem:[#allocation5 + $0x2b8] sm:$0xf0]  ;;  %v8982_v14 = vor.u32 %v13228_v3, %v8979_v62  ;;  %v13224_v60 = vld [vmem:[#allocation5 + $0x18c] sm:$0xf] }
 0x321   :  { %7625 = vmatpush.bf16.msrb.mxu1 %v12498_v51  ;;  %v13296_v51 = vld [vmem:[#allocation5 + $0x3cc] sm:$0xf]  ;;  %v9235_v48 = vld [vmem:[#allocation5 + $0x3b8] sm:$0xf0] }
 0x322   :  { %7638 = vmatpush.bf16.msrb.mxu2 %v12626_v58  ;;  %v9251_v58 = vld [vmem:[#allocation5 + $0x3d8] sm:$0xf0]  ;;  %v13252_v3 = vld [vmem:[#allocation5 + $0x26c] sm:$0xf] }
 0x323   :  { %7651 = vmatpush.bf16.msrb.mxu3 %v12754_v36  ;;  %v13196_v36 = vld [vmem:[#allocation5 + $0xac] sm:$0xf]  ;;  %v9254_v27 = vor.u32 %v13296_v51, %v9251_v58  ;;  %v8835_v57 = vld [vmem:[#allocation5 + $0x98] sm:$0xf0] }
 0x324   :  { %7613 = vmatpush.bf16.msrb.mxu0 %v12354_v56  ;;  %v13292_v56 = vld [vmem:[#allocation5 + $0x3ac] sm:$0xf]  ;;  %v8854_v43 = vor.u32 %v13196_v36, %v8851_v21  ;;  %v7407_v8 = vpop.f32.mrf.mxu0  ;;  %v9219_v2 = vld [vmem:[#allocation5 + $0x398] sm:$0xf0] }
 0x325   :  { %7626 = vmatpush.bf16.msrb.mxu1 %v12482_v63  ;;  %v9110_v63 = vor.u32 %v13260_v40, %v9107_v59  ;;  %v7420_v26 = vpop.f32.mrf.mxu1  ;;  %v13188_v58 = vld [vmem:[#allocation5 + $0x6c] sm:$0xf]  ;;  %v8947_v21 = vld [vmem:[#allocation5 + $0x178] sm:$0xf0] }
 0x326   :  { %7639 = vmatpush.bf16.msrb.mxu2 %v12610_v15  ;;  %v13192_v15 = vld [vmem:[#allocation5 + $0x8c] sm:$0xf]  ;;  %v9203_v40 = vld [vmem:[#allocation5 + $0x378] sm:$0xf0] }
 0x327   :  { %7652 = vmatpush.bf16.msrb.mxu3 %v12738_v0  ;;  %7614 = vmatmul.bf16.vlgmr.msrb.gmra.mxu0 %v14666_v54  ;;  %v9238_v0 = vor.u32 %v13292_v56, %v9235_v48  ;;  %v8838_v32 = vor.u32 %v13192_v15, %v8835_v57  ;;  %v13284_v62 = vld [vmem:[#allocation5 + $0x36c] sm:$0xf]  ;;  %v8931_v57 = vld [vmem:[#allocation5 + $0x158] sm:$0xf0] }
 0x328   :  { %7658 = vmatpush.bf16.msra.mxu0 %v8886_v24  ;;  %7627 = vmatmul.bf16.vlgmr.msrb.gmra.mxu1 %v14670_v55  ;;  %v8963_v24 = vld [vmem:[#allocation5 + $0x198] sm:$0xf0]  ;;  %v13184_v48 = vld [vmem:[#allocation5 + $0x4c] sm:$0xf] }
 0x329   :  { %7671 = vmatpush.bf16.msra.mxu1 %v9014_v52  ;;  %7640 = vmatmul.bf16.vlgmr.msrb.gmra.mxu2 %v14668_v34  ;;  %v13256_v52 = vld [vmem:[#allocation5 + $0x28c] sm:$0xf]  ;;  %v8966_v1 = vor.u32 %v13224_v60, %v8963_v24 }
 0x32a   :  { %7684 = vmatpush.bf16.msra.mxu2 %v9142_v39  ;;  %7653 = vmatmul.bf16.vlgmr.msrb.gmra.mxu3 %v14672_v53  ;;  %v9091_v39 = vld [vmem:[#allocation5 + $0x298] sm:$0xf0]  ;;  %v13248_v60 = vld [vmem:[#allocation5 + $0x24c] sm:$0xf] }
 0x32b   :  { %7697 = vmatpush.bf16.msra.mxu3 %v9270_v50  ;;  %v7408_v50 = vadd.f32 %v7407_v8, %v14782_v61  ;;  %v9094_v51 = vor.u32 %v13256_v52, %v9091_v39  ;;  %v13280_v39 = vld [vmem:[#allocation5 + $0x34c] sm:$0xf]  ;;  %v9187_v8 = vld [vmem:[#allocation5 + $0x358] sm:$0xf0] }
 0x32c   :  { %7659 = vmatpush.bf16.msra.mxu0 %v8870_v4  ;;  %v8819_v4 = vld [vmem:[#allocation5 + $0x78] sm:$0xf0]  ;;  %v7433_v15 = vpop.f32.mrf.mxu2 }
 0x32d   :  { %7672 = vmatpush.bf16.msra.mxu1 %v8998_v47  ;;  %v13220_v47 = vld [vmem:[#allocation5 + $0x16c] sm:$0xf]  ;;  %v7421_v36 = vadd.f32 %v7420_v26, %v7408_v50  ;;  %v8822_v59 = vor.u32 %v13188_v58, %v8819_v4  ;;  %v7446_v52 = vpop.f32.mrf.mxu3  ;;  %v7422_v50 = vpop.f32.mrf.mxu1  ;;  %v8787_v58 = vld [vmem:[#allocation5 + $0x38] sm:$0xf0] }
 0x32e   :  { %7685 = vmatpush.bf16.msra.mxu2 %v9126_v6  ;;  %v9222_v6 = vor.u32 %v13288_v9, %v9219_v2  ;;  %v8950_v61 = vor.u32 %v13220_v47, %v8947_v21  ;;  %v7409_v9 = vpop.f32.mrf.mxu0  ;;  %v13212_v4 = vld [vmem:[#allocation5 + $0x12c] sm:$0xf]  ;;  %v9190_v47 = vor.u32 %v13280_v39, %v9187_v8  ;;  %v9043_v21 = vld [vmem:[#allocation5 + $0x238] sm:$0xf0] }
 0x32f   :  { %7698 = vmatpush.bf16.msra.mxu3 %v9254_v27  ;;  %v9075_v27 = vld [vmem:[#allocation5 + $0x278] sm:$0xf0]  ;;  %v7434_v24 = vadd.f32 %v7433_v15, %v7421_v36  ;;  %v13244_v36 = vld [vmem:[#allocation5 + $0x22c] sm:$0xf] }
 0x330   :  { %7660 = vmatpush.bf16.msra.mxu0 %v8854_v43  ;;  %v9078_v56 = vor.u32 %v13252_v3, %v9075_v27  ;;  %v8803_v43 = vld [vmem:[#allocation5 + $0x58] sm:$0xf0]  ;;  %v13276_v3 = vld [vmem:[#allocation5 + $0x32c] sm:$0xf] }
 0x331   :  { %7673 = vmatpush.bf16.msra.mxu1 %v8982_v14  ;;  %v13216_v14 = vld [vmem:[#allocation5 + $0x14c] sm:$0xf]  ;;  %v8806_v2 = vor.u32 %v13184_v48, %v8803_v43  ;;  %v9171_v27 = vld [vmem:[#allocation5 + $0x338] sm:$0xf0] }
 0x332   :  { %7686 = vmatpush.bf16.msra.mxu2 %v9110_v63  ;;  %v9206_v63 = vor.u32 %v13284_v62, %v9203_v40  ;;  %v8934_v26 = vor.u32 %v13216_v14, %v8931_v57  ;;  %v13176_v40 = vld [vmem:[#allocation5 + $0xc] sm:$0xf]  ;;  %v8899_v43 = vld [vmem:[#allocation5 + $0x118] sm:$0xf0]  ;;  %v9174_v15 = vor.u32 %v13276_v3, %v9171_v27 }
 0x333   :  { %7699 = vmatpush.bf16.msra.mxu3 %v9238_v0  ;;  %v9059_v0 = vld [vmem:[#allocation5 + $0x258] sm:$0xf0]  ;;  %v13208_v48 = vld [vmem:[#allocation5 + $0x10c] sm:$0xf] }
 0x334   :  { %7661 = vmatpush.bf16.msra.mxu0 %v8838_v32  ;;  %v14789_v32 = vadd.f32 %v7446_v52, %v7434_v24  ;;  %v13240_v14 = vld [vmem:[#allocation5 + $0x20c] sm:$0xf]  ;;  %v9395_v52 = vld [vmem:[#allocation5 + $0x4f8] sm:$0xf0] }
 0x335   :  { %7674 = vmatpush.bf16.msra.mxu1 %v8966_v1  ;;  %v9062_v1 = vor.u32 %v13248_v60, %v9059_v0  ;;  %v13272_v57 = vld [vmem:[#allocation5 + $0x30c] sm:$0xf]  ;;  %v9155_v60 = vld [vmem:[#allocation5 + $0x318] sm:$0xf0]  ;;  %v7435_v0 = vpop.f32.mrf.mxu2  ;;  %v7448_v8 = vpop.f32.mrf.mxu3 }
 0x336   :  { %7687 = vmatpush.bf16.msra.mxu2 %v9094_v51  ;;  %v13180_v51 = vld [vmem:[#allocation5 + $0x2c] sm:$0xf]  ;;  %v9379_v27 = vld [vmem:[#allocation5 + $0x4d8] sm:$0xf0] }
 0x337   :  { %7700 = vmatpush.bf16.msra.mxu3 %v9222_v6  ;;  %v8915_v6 = vld [vmem:[#allocation5 + $0x138] sm:$0xf0]  ;;  %v8790_v62 = vor.u32 %v13180_v51, %v8787_v58  ;;  %v13332_v24 = vld [vmem:[#allocation5 + $0x4ec] sm:$0xf] }
 0x338   :  { %7662 = vmatpush.bf16.msra.mxu0 %v8822_v59  ;;  %v8771_v59 = vld [vmem:[#allocation5 + $0x18] sm:$0xf0]  ;;  %v13364_v39 = vld [vmem:[#allocation5 + $0x5ec] sm:$0xf] }
 0x339   :  { %7675 = vmatpush.bf16.msra.mxu1 %v8950_v61  ;;  %v8918_v61 = vor.u32 %v13212_v4, %v8915_v6  ;;  %v8774_v9 = vor.u32 %v13176_v40, %v8771_v59  ;;  %v13396_v50 = vld [vmem:[#allocation5 + $0x6ec] sm:$0xf]  ;;  %v9779_v4 = vld [vmem:[#allocation5 + $0x7f8] sm:$0xf0]  ;;  %v9398_v6 = vor.u32 %v13332_v24, %v9395_v52 }
 0x33a   :  { %7688 = vmatpush.bf16.msra.mxu2 %v9078_v56  ;;  %v9046_v56 = vor.u32 %v13244_v36, %v9043_v21  ;;  %v13428_v58 = vld [vmem:[#allocation5 + $0x7ec] sm:$0xf]  ;;  %v9507_v40 = vld [vmem:[#allocation5 + $0x5d8] sm:$0xf0] }
 0x33b   :  { %7701 = vmatpush.bf16.msra.mxu3 %v9206_v63  ;;  %v9027_v63 = vld [vmem:[#allocation5 + $0x218] sm:$0xf0]  ;;  %v13328_v3 = vld [vmem:[#allocation5 + $0x4cc] sm:$0xf] }
 0x33c   :  { %7663 = vmatpush.bf16.msra.mxu0 %v8806_v2  ;;  %v9523_v2 = vld [vmem:[#allocation5 + $0x5f8] sm:$0xf0]  ;;  %v9030_v51 = vor.u32 %v13240_v14, %v9027_v63  ;;  %v13360_v0 = vld [vmem:[#allocation5 + $0x5cc] sm:$0xf] }
 0x33d   :  { %7676 = vmatpush.bf16.msra.mxu1 %v8934_v26  ;;  %v9651_v26 = vld [vmem:[#allocation5 + $0x6f8] sm:$0xf0]  ;;  %v9526_v36 = vor.u32 %v13364_v39, %v9523_v2  ;;  %v13392_v59 = vld [vmem:[#allocation5 + $0x6cc] sm:$0xf] }
 0x33e   :  { %7689 = vmatpush.bf16.msra.mxu2 %v9062_v1  ;;  %v8902_v1 = vor.u32 %v13208_v48, %v8899_v43  ;;  %v9654_v21 = vor.u32 %v13396_v50, %v9651_v26  ;;  %v9635_v8 = vld [vmem:[#allocation5 + $0x6d8] sm:$0xf0]  ;;  %v9382_v48 = vor.u32 %v13328_v3, %v9379_v27  ;;  %v9510_v43 = vor.u32 %v13360_v0, %v9507_v40  ;;  %v13388_v52 = vld [vmem:[#allocation5 + $0x6ac] sm:$0xf] }
 0x33f   :  { %7702 = vmatpush.bf16.msra.mxu3 %v9190_v47  ;;  %v9158_v47 = vor.u32 %v13272_v57, %v9155_v60  ;;  %v9638_v14 = vor.u32 %v13392_v59, %v9635_v8  ;;  %v9363_v63 = vld [vmem:[#allocation5 + $0x4b8] sm:$0xf0]  ;;  %v13356_v57 = vld [vmem:[#allocation5 + $0x5ac] sm:$0xf] }
 0x340   :  { %7664 = vmatpush.bf16.msra.mxu0 %v8790_v62  ;;  %v9782_v62 = vor.u32 %v13428_v58, %v9779_v4  ;;  %v9491_v24 = vld [vmem:[#allocation5 + $0x5b8] sm:$0xf0]  ;;  %v13352_v4 = vld [vmem:[#allocation5 + $0x58c] sm:$0xf] }
 0x341   :  { %7677 = vmatpush.bf16.msra.mxu1 %v8918_v61  ;;  %v13424_v61 = vld [vmem:[#allocation5 + $0x7cc] sm:$0xf]  ;;  %v9619_v39 = vld [vmem:[#allocation5 + $0x6b8] sm:$0xf0]  ;;  %v9494_v26 = vor.u32 %v13356_v57, %v9491_v24 }
 0x342   :  { %7690 = vmatpush.bf16.msra.mxu2 %v9046_v56  ;;  %v9763_v56 = vld [vmem:[#allocation5 + $0x7d8] sm:$0xf0]  ;;  %v13316_v40 = vld [vmem:[#allocation5 + $0x46c] sm:$0xf] }
 0x343   :  { %7703 = vmatpush.bf16.msra.mxu3 %v9174_v15  ;;  %v13324_v15 = vld [vmem:[#allocation5 + $0x4ac] sm:$0xf]  ;;  %v9766_v60 = vor.u32 %v13424_v61, %v9763_v56  ;;  %v9747_v2 = vld [vmem:[#allocation5 + $0x7b8] sm:$0xf0] }
 0x344   :  { %7665 = vmatpush.bf16.msra.mxu0 %v8774_v9  ;;  %v13420_v9 = vld [vmem:[#allocation5 + $0x7ac] sm:$0xf]  ;;  %v9366_v50 = vor.u32 %v13324_v15, %v9363_v63  ;;  %v9347_v58 = vld [vmem:[#allocation5 + $0x498] sm:$0xf0] }
 0x345   :  { %7678 = vmatpush.bf16.msra.mxu1 %v8902_v1  ;;  %v9622_v1 = vor.u32 %v13388_v52, %v9619_v39  ;;  %v9731_v3 = vld [vmem:[#allocation5 + $0x798] sm:$0xf0]  ;;  %v13348_v8 = vld [vmem:[#allocation5 + $0x56c] sm:$0xf] }
 0x346   :  { %7691 = vmatpush.bf16.msra.mxu2 %v9030_v51  ;;  %v13320_v51 = vld [vmem:[#allocation5 + $0x48c] sm:$0xf]  ;;  %v9331_v59 = vld [vmem:[#allocation5 + $0x478] sm:$0xf0] }
 0x347   :  { %7704 = vmatpush.bf16.msra.mxu3 %v9158_v47  ;;  %7666 = vmatmul.bf16.vlgmr.msra.gmra.mxu0 %v14576_v19  ;;  %v9750_v47 = vor.u32 %v13420_v9, %v9747_v2  ;;  %v13416_v19 = vld [vmem:[#allocation5 + $0x78c] sm:$0xf]  ;;  %v9350_v27 = vor.u32 %v13320_v51, %v9347_v58  ;;  %v9715_v63 = vld [vmem:[#allocation5 + $0x778] sm:$0xf0]  ;;  %v9334_v57 = vor.u32 %v13316_v40, %v9331_v59 }
 0x348   :  { %7710 = vmatpush.bf16.msrb.mxu0 %v9398_v6  ;;  %7679 = vmatmul.bf16.vlgmr.msra.gmra.mxu1 %v14580_v22  ;;  %v13384_v6 = vld [vmem:[#allocation5 + $0x68c] sm:$0xf]  ;;  %v7472_v22 = vpop.f32.mrf.mxu1  ;;  %v9734_v61 = vor.u32 %v13416_v19, %v9731_v3  ;;  %v9315_v52 = vld [vmem:[#allocation5 + $0x458] sm:$0xf0] }
 0x349   :  { %7723 = vmatpush.bf16.msrb.mxu1 %v9526_v36  ;;  %7692 = vmatmul.bf16.vlgmr.msra.gmra.mxu2 %v14574_v18  ;;  %v9475_v18 = vld [vmem:[#allocation5 + $0x598] sm:$0xf0]  ;;  %v13412_v15 = vld [vmem:[#allocation5 + $0x76c] sm:$0xf] }
 0x34a   :  { %7736 = vmatpush.bf16.msrb.mxu2 %v9654_v21  ;;  %7705 = vmatmul.bf16.vlgmr.msra.gmra.mxu3 %v14578_v20  ;;  %v9603_v36 = vld [vmem:[#allocation5 + $0x698] sm:$0xf0]  ;;  %v7459_v21 = vpop.f32.mrf.mxu0  ;;  %v9478_v0 = vor.u32 %v13352_v4, %v9475_v18  ;;  %v13312_v24 = vld [vmem:[#allocation5 + $0x44c] sm:$0xf]  ;;  %v9718_v9 = vor.u32 %v13412_v15, %v9715_v63 }
 0x34b   :  { %7749 = vmatpush.bf16.msrb.mxu3 %v9782_v62  ;;  %v7460_v20 = vadd.f32 %v7459_v21, %v14789_v32  ;;  %v9606_v62 = vor.u32 %v13384_v6, %v9603_v36  ;;  %v13344_v39 = vld [vmem:[#allocation5 + $0x54c] sm:$0xf]  ;;  %v9318_v6 = vor.u32 %v13312_v24, %v9315_v52  ;;  %v9555_v59 = vld [vmem:[#allocation5 + $0x638] sm:$0xf0] }
 0x34c   :  { %7711 = vmatpush.bf16.msrb.mxu0 %v9382_v48  ;;  %v9459_v48 = vld [vmem:[#allocation5 + $0x578] sm:$0xf0]  ;;  %v7485_v2 = vpop.f32.mrf.mxu2  ;;  %v13408_v4 = vld [vmem:[#allocation5 + $0x74c] sm:$0xf] }
 0x34d   :  { %7724 = vmatpush.bf16.msrb.mxu1 %v9510_v43  ;;  %v7473_v56 = vadd.f32 %v7472_v22, %v7460_v20  ;;  %v13380_v43 = vld [vmem:[#allocation5 + $0x66c] sm:$0xf]  ;;  %v9462_v32 = vor.u32 %v13348_v8, %v9459_v48  ;;  %v7498_v58 = vpop.f32.mrf.mxu3  ;;  %v9539_v24 = vld [vmem:[#allocation5 + $0x618] sm:$0xf0] }
 0x34e   :  { %7737 = vmatpush.bf16.msrb.mxu2 %v9638_v14  ;;  %v9587_v14 = vld [vmem:[#allocation5 + $0x678] sm:$0xf0]  ;;  %v13308_v20 = vld [vmem:[#allocation5 + $0x42c] sm:$0xf] }
 0x34f   :  { %7750 = vmatpush.bf16.msrb.mxu3 %v9766_v60  ;;  %v9590_v60 = vor.u32 %v13380_v43, %v9587_v14  ;;  %v7486_v51 = vadd.f32 %v7485_v2, %v7473_v56  ;;  %v13340_v22 = vld [vmem:[#allocation5 + $0x52c] sm:$0xf]  ;;  %v9283_v43 = vld [vmem:[#allocation5 + $0x418] sm:$0xf0] }
 0x350   :  { %7712 = vmatpush.bf16.msrb.mxu0 %v9366_v50  ;;  %v9443_v50 = vld [vmem:[#allocation5 + $0x558] sm:$0xf0]  ;;  %v7474_v36 = vpop.f32.mrf.mxu1  ;;  %v13372_v40 = vld [vmem:[#allocation5 + $0x62c] sm:$0xf] }
 0x351   :  { %7725 = vmatpush.bf16.msrb.mxu1 %v9494_v26  ;;  %v13376_v26 = vld [vmem:[#allocation5 + $0x64c] sm:$0xf]  ;;  %v14796_v21 = vadd.f32 %v7498_v58, %v7486_v51  ;;  %v9446_v19 = vor.u32 %v13344_v39, %v9443_v50  ;;  %v9558_v15 = vor.u32 %v13372_v40, %v9555_v59  ;;  %v9667_v39 = vld [vmem:[#allocation5 + $0x718] sm:$0xf0] }
 0x352   :  { %7738 = vmatpush.bf16.msrb.mxu2 %v9622_v1  ;;  %v9571_v1 = vld [vmem:[#allocation5 + $0x658] sm:$0xf0]  ;;  %v7461_v18 = vpop.f32.mrf.mxu0  ;;  %v13404_v8 = vld [vmem:[#allocation5 + $0x72c] sm:$0xf] }
 0x353   :  { %7751 = vmatpush.bf16.msrb.mxu3 %v9750_v47  ;;  %v9699_v47 = vld [vmem:[#allocation5 + $0x758] sm:$0xf0]  ;;  %v9574_v3 = vor.u32 %v13376_v26, %v9571_v1  ;;  %v13304_v48 = vld [vmem:[#allocation5 + $0x40c] sm:$0xf] }
 0x354   :  { %7713 = vmatpush.bf16.msrb.mxu0 %v9350_v27  ;;  %v9299_v27 = vld [vmem:[#allocation5 + $0x438] sm:$0xf0]  ;;  %v13336_v63 = vld [vmem:[#allocation5 + $0x50c] sm:$0xf]  ;;  %v9286_v51 = vor.u32 %v13304_v48, %v9283_v43 }
 0x355   :  { %7726 = vmatpush.bf16.msrb.mxu1 %v9478_v0  ;;  %v9702_v0 = vor.u32 %v13408_v4, %v9699_v47  ;;  %v9302_v56 = vor.u32 %v13308_v20, %v9299_v27  ;;  %v13400_v52 = vld [vmem:[#allocation5 + $0x70c] sm:$0xf]  ;;  %v9907_v50 = vld [vmem:[#allocation5 + $0x8f8] sm:$0xf0]  ;;  %v7500_v1 = vpop.f32.mrf.mxu3 }
 0x356   :  { %7739 = vmatpush.bf16.msrb.mxu2 %v9606_v62  ;;  %v9427_v62 = vld [vmem:[#allocation5 + $0x538] sm:$0xf0]  ;;  %v13460_v2 = vld [vmem:[#allocation5 + $0x8ec] sm:$0xf] }
 0x357   :  { %7752 = vmatpush.bf16.msrb.mxu3 %v9734_v61  ;;  %v9683_v61 = vld [vmem:[#allocation5 + $0x738] sm:$0xf0]  ;;  %v9430_v14 = vor.u32 %v13340_v22, %v9427_v62  ;;  %v13492_v26 = vld [vmem:[#allocation5 + $0x9ec] sm:$0xf]  ;;  %v9910_v20 = vor.u32 %v13460_v2, %v9907_v50 }
 0x358   :  { %7714 = vmatpush.bf16.msrb.mxu0 %v9334_v57  ;;  %v9411_v57 = vld [vmem:[#allocation5 + $0x518] sm:$0xf0]  ;;  %v13524_v4 = vld [vmem:[#allocation5 + $0xaec] sm:$0xf] }
 0x359   :  { %7727 = vmatpush.bf16.msrb.mxu1 %v9462_v32  ;;  %v13368_v32 = vld [vmem:[#allocation5 + $0x60c] sm:$0xf]  ;;  %v10035_v58 = vld [vmem:[#allocation5 + $0x9f8] sm:$0xf0]  ;;  %v9414_v18 = vor.u32 %v13336_v63, %v9411_v57 }
 0x35a   :  { %7740 = vmatpush.bf16.msrb.mxu2 %v9590_v60  ;;  %v9686_v60 = vor.u32 %v13404_v8, %v9683_v61  ;;  %v10163_v47 = vld [vmem:[#allocation5 + $0xaf8] sm:$0xf0]  ;;  %v13556_v36 = vld [vmem:[#allocation5 + $0xbec] sm:$0xf]  ;;  %v10038_v27 = vor.u32 %v13492_v26, %v10035_v58 }
 0x35b   :  { %7753 = vmatpush.bf16.msrb.mxu3 %v9718_v9  ;;  %v7487_v9 = vpop.f32.mrf.mxu2  ;;  %v10166_v22 = vor.u32 %v13524_v4, %v10163_v47  ;;  %v9891_v62 = vld [vmem:[#allocation5 + $0x8d8] sm:$0xf0]  ;;  %v13488_v40 = vld [vmem:[#allocation5 + $0x9cc] sm:$0xf] }
 0x35c   :  { %7715 = vmatpush.bf16.msrb.mxu0 %v9318_v6  ;;  %v9542_v6 = vor.u32 %v13368_v32, %v9539_v24  ;;  %v10019_v8 = vld [vmem:[#allocation5 + $0x9d8] sm:$0xf0]  ;;  %v13520_v61 = vld [vmem:[#allocation5 + $0xacc] sm:$0xf] }
 0x35d   :  { %7728 = vmatpush.bf16.msrb.mxu1 %v9446_v19  ;;  %v10291_v19 = vld [vmem:[#allocation5 + $0xbf8] sm:$0xf0]  ;;  %v13552_v48 = vld [vmem:[#allocation5 + $0xbcc] sm:$0xf] }
 0x35e   :  { %7741 = vmatpush.bf16.msrb.mxu2 %v9574_v3  ;;  %v9670_v3 = vor.u32 %v13400_v52, %v9667_v39  ;;  %v10294_v59 = vor.u32 %v13556_v36, %v10291_v19  ;;  %v10275_v43 = vld [vmem:[#allocation5 + $0xbd8] sm:$0xf0]  ;;  %v13452_v57 = vld [vmem:[#allocation5 + $0x8ac] sm:$0xf] }
 0x35f   :  { %7754 = vmatpush.bf16.msrb.mxu3 %v9702_v0  ;;  %v13456_v0 = vld [vmem:[#allocation5 + $0x8cc] sm:$0xf]  ;;  %v9875_v32 = vld [vmem:[#allocation5 + $0x8b8] sm:$0xf0]  ;;  %v10278_v24 = vor.u32 %v13552_v48, %v10275_v43 }
 0x360   :  { %7716 = vmatpush.bf16.msrb.mxu0 %v9302_v56  ;;  %v10147_v56 = vld [vmem:[#allocation5 + $0xad8] sm:$0xf0]  ;;  %v13516_v39 = vld [vmem:[#allocation5 + $0xaac] sm:$0xf]  ;;  %v9878_v26 = vor.u32 %v13452_v57, %v9875_v32 }
 0x361   :  { %7729 = vmatpush.bf16.msrb.mxu1 %v9430_v14  ;;  %v9894_v14 = vor.u32 %v13456_v0, %v9891_v62  ;;  %v10150_v63 = vor.u32 %v13520_v61, %v10147_v56  ;;  %v10003_v52 = vld [vmem:[#allocation5 + $0x9b8] sm:$0xf0]  ;;  %v13548_v2 = vld [vmem:[#allocation5 + $0xbac] sm:$0xf] }
 0x362   :  { %7742 = vmatpush.bf16.msrb.mxu2 %v9558_v15  ;;  %v10022_v15 = vor.u32 %v13488_v40, %v10019_v8  ;;  %v10131_v9 = vld [vmem:[#allocation5 + $0xab8] sm:$0xf0]  ;;  %v13448_v58 = vld [vmem:[#allocation5 + $0x88c] sm:$0xf] }
 0x363   :  { %7755 = vmatpush.bf16.msrb.mxu3 %v9686_v60  ;;  %v13484_v60 = vld [vmem:[#allocation5 + $0x9ac] sm:$0xf]  ;;  %v10259_v50 = vld [vmem:[#allocation5 + $0xbb8] sm:$0xf0] }
 0x364   :  { %7717 = vmatpush.bf16.msrb.mxu0 %v9286_v51  ;;  %v10006_v1 = vor.u32 %v13484_v60, %v10003_v52  ;;  %v10134_v51 = vor.u32 %v13516_v39, %v10131_v9  ;;  %v9859_v4 = vld [vmem:[#allocation5 + $0x898] sm:$0xf0]  ;;  %v10262_v47 = vor.u32 %v13548_v2, %v10259_v50  ;;  %v7511_v19 = vpop.f32.mrf.mxu0  ;;  %v13444_v0 = vld [vmem:[#allocation5 + $0x86c] sm:$0xf] }
 0x365   :  { %7730 = vmatpush.bf16.msrb.mxu1 %v9414_v18  ;;  %v9987_v18 = vld [vmem:[#allocation5 + $0x998] sm:$0xf0]  ;;  %v13476_v40 = vld [vmem:[#allocation5 + $0x96c] sm:$0xf] }
 0x366   :  { %7743 = vmatpush.bf16.msrb.mxu2 %v9542_v6  ;;  %v13512_v6 = vld [vmem:[#allocation5 + $0xa8c] sm:$0xf]  ;;  %v10115_v36 = vld [vmem:[#allocation5 + $0xa98] sm:$0xf0] }
 0x367   :  { %7756 = vmatpush.bf16.msrb.mxu3 %v9670_v3  ;;  %7718 = vmatmul.bf16.vlgmr.msrb.gmra.mxu0 %v14588_v41  ;;  %v13544_v41 = vld [vmem:[#allocation5 + $0xb8c] sm:$0xf]  ;;  %v10243_v3 = vld [vmem:[#allocation5 + $0xb98] sm:$0xf0] }
 0x368   :  { %7762 = vmatpush.bf16.msra.mxu0 %v9910_v20  ;;  %7731 = vmatmul.bf16.vlgmr.msrb.gmra.mxu1 %v14592_v44  ;;  %v9862_v20 = vor.u32 %v13448_v58, %v9859_v4  ;;  %v7524_v44 = vpop.f32.mrf.mxu1  ;;  %v9843_v62 = vld [vmem:[#allocation5 + $0x878] sm:$0xf0]  ;;  %v13508_v56 = vld [vmem:[#allocation5 + $0xa6c] sm:$0xf] }
 0x369   :  { %7775 = vmatpush.bf16.msra.mxu1 %v10038_v27  ;;  %7744 = vmatmul.bf16.vlgmr.msrb.gmra.mxu2 %v14586_v38  ;;  %v13480_v38 = vld [vmem:[#allocation5 + $0x98c] sm:$0xf]  ;;  %v9971_v61 = vld [vmem:[#allocation5 + $0x978] sm:$0xf0] }
 0x36a   :  { %7788 = vmatpush.bf16.msra.mxu2 %v10166_v22  ;;  %7757 = vmatmul.bf16.vlgmr.msrb.gmra.mxu3 %v14590_v42  ;;  %v7512_v42 = vadd.f32 %v7511_v19, %v14796_v21  ;;  %v9990_v27 = vor.u32 %v13480_v38, %v9987_v18  ;;  %v10118_v22 = vor.u32 %v13512_v6, %v10115_v36  ;;  %v10099_v48 = vld [vmem:[#allocation5 + $0xa78] sm:$0xf0]  ;;  %v13540_v43 = vld [vmem:[#allocation5 + $0xb6c] sm:$0xf] }
 0x36b   :  { %7801 = vmatpush.bf16.msra.mxu3 %v10294_v59  ;;  %v10246_v59 = vor.u32 %v13544_v41, %v10243_v3  ;;  %v9974_v21 = vor.u32 %v13476_v40, %v9971_v61  ;;  %v13440_v57 = vld [vmem:[#allocation5 + $0x84c] sm:$0xf]  ;;  %v9827_v32 = vld [vmem:[#allocation5 + $0x858] sm:$0xf0] }
 0x36c   :  { %7763 = vmatpush.bf16.msra.mxu0 %v9894_v14  ;;  %v7525_v8 = vadd.f32 %v7524_v44, %v7512_v42  ;;  %v10227_v14 = vld [vmem:[#allocation5 + $0xb78] sm:$0xf0]  ;;  %v13472_v60 = vld [vmem:[#allocation5 + $0x94c] sm:$0xf]  ;;  %v7537_v52 = vpop.f32.mrf.mxu2  ;;  %v7513_v58 = vpop.f32.mrf.mxu0  ;;  %v9830_v4 = vor.u32 %v13440_v57, %v9827_v32 }
 0x36d   :  { %7776 = vmatpush.bf16.msra.mxu1 %v10022_v15  ;;  %v9846_v15 = vor.u32 %v13444_v0, %v9843_v62  ;;  %v9955_v39 = vld [vmem:[#allocation5 + $0x958] sm:$0xf0]  ;;  %v13504_v9 = vld [vmem:[#allocation5 + $0xa4c] sm:$0xf] }
 0x36e   :  { %7789 = vmatpush.bf16.msra.mxu2 %v10150_v63  ;;  %v10102_v63 = vor.u32 %v13508_v56, %v10099_v48  ;;  %v10083_v2 = vld [vmem:[#allocation5 + $0xa58] sm:$0xf0]  ;;  %v7538_v50 = vadd.f32 %v7537_v52, %v7525_v8  ;;  %v9958_v18 = vor.u32 %v13472_v60, %v9955_v39  ;;  %v13436_v36 = vld [vmem:[#allocation5 + $0x82c] sm:$0xf] }
 0x36f   :  { %7802 = vmatpush.bf16.msra.mxu3 %v10278_v24  ;;  %v10230_v24 = vor.u32 %v13540_v43, %v10227_v14  ;;  %v10086_v6 = vor.u32 %v13504_v9, %v10083_v2  ;;  %v9811_v19 = vld [vmem:[#allocation5 + $0x838] sm:$0xf0]  ;;  %v13468_v41 = vld [vmem:[#allocation5 + $0x92c] sm:$0xf] }
 0x370   :  { %7764 = vmatpush.bf16.msra.mxu0 %v9878_v26  ;;  %v7550_v26 = vpop.f32.mrf.mxu3  ;;  %v7526_v38 = vpop.f32.mrf.mxu1  ;;  %v9939_v42 = vld [vmem:[#allocation5 + $0x938] sm:$0xf0]  ;;  %v9814_v0 = vor.u32 %v13436_v36, %v9811_v19  ;;  %v13432_v62 = vld [vmem:[#allocation5 + $0x80c] sm:$0xf] }
 0x371   :  { %7777 = vmatpush.bf16.msra.mxu1 %v10006_v1  ;;  %v13536_v1 = vld [vmem:[#allocation5 + $0xb4c] sm:$0xf]  ;;  %v10067_v44 = vld [vmem:[#allocation5 + $0xa38] sm:$0xf0] }
 0x372   :  { %7790 = vmatpush.bf16.msra.mxu2 %v10134_v51  ;;  %v10211_v51 = vld [vmem:[#allocation5 + $0xb58] sm:$0xf0]  ;;  %v13464_v61 = vld [vmem:[#allocation5 + $0x90c] sm:$0xf] }
 0x373   :  { %7803 = vmatpush.bf16.msra.mxu3 %v10262_v47  ;;  %v14803_v47 = vadd.f32 %v7550_v26, %v7538_v50  ;;  %v10214_v3 = vor.u32 %v13536_v1, %v10211_v51  ;;  %v9795_v40 = vld [vmem:[#allocation5 + $0x818] sm:$0xf0]  ;;  %v13496_v48 = vld [vmem:[#allocation5 + $0xa0c] sm:$0xf] }
 0x374   :  { %7765 = vmatpush.bf16.msra.mxu0 %v9862_v20  ;;  %v13500_v20 = vld [vmem:[#allocation5 + $0xa2c] sm:$0xf]  ;;  %v9923_v56 = vld [vmem:[#allocation5 + $0x918] sm:$0xf0]  ;;  %v9798_v52 = vor.u32 %v13432_v62, %v9795_v40 }
 0x375   :  { %7778 = vmatpush.bf16.msra.mxu1 %v9990_v27  ;;  %v13532_v27 = vld [vmem:[#allocation5 + $0xb2c] sm:$0xf]  ;;  %v10070_v8 = vor.u32 %v13500_v20, %v10067_v44  ;;  %v10051_v14 = vld [vmem:[#allocation5 + $0xa18] sm:$0xf0]  ;;  %v9926_v50 = vor.u32 %v13464_v61, %v9923_v56 }
 0x376   :  { %7791 = vmatpush.bf16.msra.mxu2 %v10118_v22  ;;  %v10195_v22 = vld [vmem:[#allocation5 + $0xb38] sm:$0xf0]  ;;  %v13588_v57 = vld [vmem:[#allocation5 + $0xcec] sm:$0xf]  ;;  %v10054_v26 = vor.u32 %v13496_v48, %v10051_v14 }
 0x377   :  { %7804 = vmatpush.bf16.msra.mxu3 %v10246_v59  ;;  %v9942_v59 = vor.u32 %v13468_v41, %v9939_v42  ;;  %v10198_v43 = vor.u32 %v13532_v27, %v10195_v22  ;;  %v10419_v32 = vld [vmem:[#allocation5 + $0xcf8] sm:$0xf0]  ;;  %v13620_v60 = vld [vmem:[#allocation5 + $0xdec] sm:$0xf] }
 0x378   :  { %7766 = vmatpush.bf16.msra.mxu0 %v9846_v15  ;;  %v13528_v15 = vld [vmem:[#allocation5 + $0xb0c] sm:$0xf]  ;;  %v10547_v39 = vld [vmem:[#allocation5 + $0xdf8] sm:$0xf0] }
 0x379   :  { %7779 = vmatpush.bf16.msra.mxu1 %v9974_v21  ;;  %v10179_v21 = vld [vmem:[#allocation5 + $0xb18] sm:$0xf0]  ;;  %v13652_v9 = vld [vmem:[#allocation5 + $0xeec] sm:$0xf]  ;;  %v10550_v38 = vor.u32 %v13620_v60, %v10547_v39 }
 0x37a   :  { %7792 = vmatpush.bf16.msra.mxu2 %v10102_v63  ;;  %v7539_v63 = vpop.f32.mrf.mxu2  ;;  %v10675_v2 = vld [vmem:[#allocation5 + $0xef8] sm:$0xf0]  ;;  %v13684_v1 = vld [vmem:[#allocation5 + $0xfec] sm:$0xf]  ;;  %v10182_v58 = vor.u32 %v13528_v15, %v10179_v21 }
 0x37b   :  { %7805 = vmatpush.bf16.msra.mxu3 %v10230_v24  ;;  %v7552_v24 = vpop.f32.mrf.mxu3  ;;  %v10803_v51 = vld [vmem:[#allocation5 + $0xff8] sm:$0xf0]  ;;  %v13616_v19 = vld [vmem:[#allocation5 + $0xdcc] sm:$0xf] }
 0x37c   :  { %7767 = vmatpush.bf16.msra.mxu0 %v9830_v4  ;;  %v10422_v4 = vor.u32 %v13588_v57, %v10419_v32  ;;  %v10403_v36 = vld [vmem:[#allocation5 + $0xcd8] sm:$0xf0]  ;;  %v10806_v41 = vor.u32 %v13684_v1, %v10803_v51  ;;  %v13648_v42 = vld [vmem:[#allocation5 + $0xecc] sm:$0xf] }
 0x37d   :  { %7780 = vmatpush.bf16.msra.mxu1 %v9958_v18  ;;  %v10678_v18 = vor.u32 %v13652_v9, %v10675_v2  ;;  %v10659_v20 = vld [vmem:[#allocation5 + $0xed8] sm:$0xf0]  ;;  %v13680_v44 = vld [vmem:[#allocation5 + $0xfcc] sm:$0xf] }
 0x37e   :  { %7793 = vmatpush.bf16.msra.mxu2 %v10086_v6  ;;  %v13584_v6 = vld [vmem:[#allocation5 + $0xccc] sm:$0xf]  ;;  %v10787_v27 = vld [vmem:[#allocation5 + $0xfd8] sm:$0xf0]  ;;  %v10662_v62 = vor.u32 %v13648_v42, %v10659_v20 }
 0x37f   :  { %7806 = vmatpush.bf16.msra.mxu3 %v10214_v3  ;;  %v10531_v3 = vld [vmem:[#allocation5 + $0xdd8] sm:$0xf0]  ;;  %v10406_v22 = vor.u32 %v13584_v6, %v10403_v36  ;;  %v13580_v40 = vld [vmem:[#allocation5 + $0xcac] sm:$0xf]  ;;  %v10790_v61 = vor.u32 %v13680_v44, %v10787_v27 }
 0x380   :  { %7768 = vmatpush.bf16.msra.mxu0 %v9814_v0  ;;  %v10534_v0 = vor.u32 %v13616_v19, %v10531_v3  ;;  %v10515_v56 = vld [vmem:[#allocation5 + $0xdb8] sm:$0xf0]  ;;  %v13644_v48 = vld [vmem:[#allocation5 + $0xeac] sm:$0xf] }
 0x381   :  { %7781 = vmatpush.bf16.msra.mxu1 %v9942_v59  ;;  %v10387_v59 = vld [vmem:[#allocation5 + $0xcb8] sm:$0xf0]  ;;  %v13676_v14 = vld [vmem:[#allocation5 + $0xfac] sm:$0xf] }
 0x382   :  { %7794 = vmatpush.bf16.msra.mxu2 %v10070_v8  ;;  %v13612_v8 = vld [vmem:[#allocation5 + $0xdac] sm:$0xf]  ;;  %v10771_v15 = vld [vmem:[#allocation5 + $0xfb8] sm:$0xf0]  ;;  %v10390_v21 = vor.u32 %v13580_v40, %v10387_v59 }
 0x383   :  { %7807 = vmatpush.bf16.msra.mxu3 %v10198_v43  ;;  %v10643_v43 = vld [vmem:[#allocation5 + $0xeb8] sm:$0xf0]  ;;  %v10518_v63 = vor.u32 %v13612_v8, %v10515_v56  ;;  %v13576_v32 = vld [vmem:[#allocation5 + $0xc8c] sm:$0xf]  ;;  %v10774_v24 = vor.u32 %v13676_v14, %v10771_v15 }
 0x384   :  { %7769 = vmatpush.bf16.msra.mxu0 %v9798_v52  ;;  %v10646_v57 = vor.u32 %v13644_v48, %v10643_v43  ;;  %v13608_v60 = vld [vmem:[#allocation5 + $0xd8c] sm:$0xf]  ;;  %v10499_v52 = vld [vmem:[#allocation5 + $0xd98] sm:$0xf0]  ;;  %v7563_v9 = vpop.f32.mrf.mxu0 }
 0x385   :  { %7782 = vmatpush.bf16.msra.mxu1 %v9926_v50  ;;  %v13640_v39 = vld [vmem:[#allocation5 + $0xe8c] sm:$0xf]  ;;  %v10755_v2 = vld [vmem:[#allocation5 + $0xf98] sm:$0xf0]  ;;  %v10502_v1 = vor.u32 %v13608_v60, %v10499_v52 }
 0x386   :  { %7795 = vmatpush.bf16.msra.mxu2 %v10054_v26  ;;  %v7576_v26 = vpop.f32.mrf.mxu1  ;;  %v10483_v36 = vld [vmem:[#allocation5 + $0xd78] sm:$0xf0]  ;;  %v13636_v19 = vld [vmem:[#allocation5 + $0xe6c] sm:$0xf] }
 0x387   :  { %7808 = vmatpush.bf16.msra.mxu3 %v10182_v58  ;;  %7770 = vmatmul.bf16.vlgmr.msra.gmra.mxu0 %v14598_v25  ;;  %v10371_v25 = vld [vmem:[#allocation5 + $0xc98] sm:$0xf0]  ;;  %v13572_v58 = vld [vmem:[#allocation5 + $0xc6c] sm:$0xf] }
 0x388   :  { %7814 = vmatpush.bf16.msrb.mxu0 %v10422_v4  ;;  %7783 = vmatmul.bf16.vlgmr.msra.gmra.mxu1 %v14602_v30  ;;  %v13672_v30 = vld [vmem:[#allocation5 + $0xf8c] sm:$0xf]  ;;  %v10374_v50 = vor.u32 %v13576_v32, %v10371_v25  ;;  %v10355_v4 = vld [vmem:[#allocation5 + $0xc78] sm:$0xf0] }
 0x389   :  { %7827 = vmatpush.bf16.msrb.mxu1 %v10550_v38  ;;  %7796 = vmatmul.bf16.vlgmr.msra.gmra.mxu2 %v14600_v29  ;;  %v10627_v29 = vld [vmem:[#allocation5 + $0xe98] sm:$0xf0]  ;;  %v13604_v38 = vld [vmem:[#allocation5 + $0xd6c] sm:$0xf]  ;;  %v10358_v20 = vor.u32 %v13572_v58, %v10355_v4 }
 0x38a   :  { %7840 = vmatpush.bf16.msrb.mxu2 %v10678_v18  ;;  %7809 = vmatmul.bf16.vlgmr.msra.gmra.mxu3 %v14604_v33  ;;  %v7564_v33 = vadd.f32 %v7563_v9, %v14803_v47  ;;  %v10630_v51 = vor.u32 %v13640_v39, %v10627_v29  ;;  %v10758_v18 = vor.u32 %v13672_v30, %v10755_v2  ;;  %v13668_v3 = vld [vmem:[#allocation5 + $0xf6c] sm:$0xf]  ;;  %v10739_v42 = vld [vmem:[#allocation5 + $0xf78] sm:$0xf0] }
 0x38b   :  { %7853 = vmatpush.bf16.msrb.mxu3 %v10806_v41  ;;  %v10611_v41 = vld [vmem:[#allocation5 + $0xe78] sm:$0xf0]  ;;  %v10486_v47 = vor.u32 %v13604_v38, %v10483_v36  ;;  %v13568_v27 = vld [vmem:[#allocation5 + $0xc4c] sm:$0xf] }
 0x38c   :  { %7815 = vmatpush.bf16.msrb.mxu0 %v10406_v22  ;;  %v7577_v6 = vadd.f32 %v7576_v26, %v7564_v33  ;;  %v10614_v44 = vor.u32 %v13636_v19, %v10611_v41  ;;  %v10339_v22 = vld [vmem:[#allocation5 + $0xc58] sm:$0xf0]  ;;  %v7589_v40 = vpop.f32.mrf.mxu2  ;;  %v13632_v8 = vld [vmem:[#allocation5 + $0xe4c] sm:$0xf]  ;;  %v7565_v15 = vpop.f32.mrf.mxu0 }
 0x38d   :  { %7828 = vmatpush.bf16.msrb.mxu1 %v10534_v0  ;;  %v13600_v0 = vld [vmem:[#allocation5 + $0xd4c] sm:$0xf]  ;;  %v10467_v59 = vld [vmem:[#allocation5 + $0xd58] sm:$0xf0]  ;;  %v7602_v48 = vpop.f32.mrf.mxu3 }
 0x38e   :  { %7841 = vmatpush.bf16.msrb.mxu2 %v10662_v62  ;;  %v10742_v62 = vor.u32 %v13668_v3, %v10739_v42  ;;  %v7590_v56 = vadd.f32 %v7589_v40, %v7577_v6  ;;  %v13664_v43 = vld [vmem:[#allocation5 + $0xf4c] sm:$0xf]  ;;  %v10723_v14 = vld [vmem:[#allocation5 + $0xf58] sm:$0xf0]  ;;  %v10470_v32 = vor.u32 %v13600_v0, %v10467_v59 }
 0x38f   :  { %7854 = vmatpush.bf16.msrb.mxu3 %v10790_v61  ;;  %v10595_v61 = vld [vmem:[#allocation5 + $0xe58] sm:$0xf0]  ;;  %v13564_v60 = vld [vmem:[#allocation5 + $0xc2c] sm:$0xf]  ;;  %v10726_v39 = vor.u32 %v13664_v43, %v10723_v14 }
 0x390   :  { %7816 = vmatpush.bf16.msrb.mxu0 %v10390_v21  ;;  %v10342_v21 = vor.u32 %v13568_v27, %v10339_v22  ;;  %v10598_v25 = vor.u32 %v13632_v8, %v10595_v61  ;;  %v13596_v52 = vld [vmem:[#allocation5 + $0xd2c] sm:$0xf]  ;;  %v10451_v29 = vld [vmem:[#allocation5 + $0xd38] sm:$0xf0] }
 0x391   :  { %7829 = vmatpush.bf16.msrb.mxu1 %v10518_v63  ;;  %v7578_v63 = vpop.f32.mrf.mxu1  ;;  %v13628_v9 = vld [vmem:[#allocation5 + $0xe2c] sm:$0xf]  ;;  %v10579_v30 = vld [vmem:[#allocation5 + $0xe38] sm:$0xf0] }
 0x392   :  { %7842 = vmatpush.bf16.msrb.mxu2 %v10646_v57  ;;  %v14810_v57 = vadd.f32 %v7602_v48, %v7590_v56  ;;  %v13660_v2 = vld [vmem:[#allocation5 + $0xf2c] sm:$0xf]  ;;  %v10707_v33 = vld [vmem:[#allocation5 + $0xf38] sm:$0xf0]  ;;  %v10582_v58 = vor.u32 %v13628_v9, %v10579_v30 }
 0x393   :  { %7855 = vmatpush.bf16.msrb.mxu3 %v10774_v24  ;;  %v10323_v24 = vld [vmem:[#allocation5 + $0xc38] sm:$0xf0]  ;;  %v13560_v26 = vld [vmem:[#allocation5 + $0xc0c] sm:$0xf]  ;;  %v10710_v6 = vor.u32 %v13660_v2, %v10707_v33 }
 0x394   :  { %7817 = vmatpush.bf16.msrb.mxu0 %v10374_v50  ;;  %v10326_v50 = vor.u32 %v13564_v60, %v10323_v24  ;;  %v13592_v4 = vld [vmem:[#allocation5 + $0xd0c] sm:$0xf]  ;;  %v10435_v38 = vld [vmem:[#allocation5 + $0xd18] sm:$0xf0]  ;;  %v7591_v3 = vpop.f32.mrf.mxu2 }
 0x395   :  { %7830 = vmatpush.bf16.msrb.mxu1 %v10502_v1  ;;  %v10307_v1 = vld [vmem:[#allocation5 + $0xc18] sm:$0xf0]  ;;  %v13656_v19 = vld [vmem:[#allocation5 + $0xf0c] sm:$0xf]  ;;  %v10438_v40 = vor.u32 %v13592_v4, %v10435_v38 }
 0x396   :  { %7843 = vmatpush.bf16.msrb.mxu2 %v10630_v51  ;;  %v10454_v51 = vor.u32 %v13596_v52, %v10451_v29  ;;  %v10563_v36 = vld [vmem:[#allocation5 + $0xe18] sm:$0xf0]  ;;  %v13716_v42 = vld [vmem:[#allocation5 + $0x10ec] sm:$0xf]  ;;  %v10310_v27 = vor.u32 %v13560_v26, %v10307_v1 }
 0x397   :  { %7856 = vmatpush.bf16.msrb.mxu3 %v10758_v18  ;;  %v13624_v18 = vld [vmem:[#allocation5 + $0xe0c] sm:$0xf]  ;;  %v10691_v41 = vld [vmem:[#allocation5 + $0xf18] sm:$0xf0] }
 0x398   :  { %7818 = vmatpush.bf16.msrb.mxu0 %v10358_v20  ;;  %v10931_v20 = vld [vmem:[#allocation5 + $0x10f8] sm:$0xf0]  ;;  %v13780_v0 = vld [vmem:[#allocation5 + $0x12ec] sm:$0xf]  ;;  %v10566_v59 = vor.u32 %v13624_v18, %v10563_v36  ;;  %v10694_v56 = vor.u32 %v13656_v19, %v10691_v41 }
 0x399   :  { %7831 = vmatpush.bf16.msrb.mxu1 %v10486_v47  ;;  %v13748_v47 = vld [vmem:[#allocation5 + $0x11ec] sm:$0xf]  ;;  %v11059_v22 = vld [vmem:[#allocation5 + $0x11f8] sm:$0xf0]  ;;  %v10934_v48 = vor.u32 %v13716_v42, %v10931_v20 }
 0x39a   :  { %7844 = vmatpush.bf16.msrb.mxu2 %v10614_v44  ;;  %v7604_v44 = vpop.f32.mrf.mxu3  ;;  %v13812_v8 = vld [vmem:[#allocation5 + $0x13ec] sm:$0xf]  ;;  %v11315_v61 = vld [vmem:[#allocation5 + $0x13f8] sm:$0xf0]  ;;  %v11062_v43 = vor.u32 %v13748_v47, %v11059_v22 }
 0x39b   :  { %7857 = vmatpush.bf16.msrb.mxu3 %v10742_v62  ;;  %v11187_v62 = vld [vmem:[#allocation5 + $0x12f8] sm:$0xf0]  ;;  %v13712_v15 = vld [vmem:[#allocation5 + $0x10cc] sm:$0xf] }
 0x39c   :  { %7819 = vmatpush.bf16.msrb.mxu0 %v10342_v21  ;;  %v11190_v14 = vor.u32 %v13780_v0, %v11187_v62  ;;  %v10915_v21 = vld [vmem:[#allocation5 + $0x10d8] sm:$0xf0]  ;;  %v13744_v63 = vld [vmem:[#allocation5 + $0x11cc] sm:$0xf] }
 0x39d   :  { %7832 = vmatpush.bf16.msrb.mxu1 %v10470_v32  ;;  %v11318_v32 = vor.u32 %v13812_v8, %v11315_v61  ;;  %v13776_v60 = vld [vmem:[#allocation5 + $0x12cc] sm:$0xf]  ;;  %v11171_v24 = vld [vmem:[#allocation5 + $0x12d8] sm:$0xf0]  ;;  %v10918_v29 = vor.u32 %v13712_v15, %v10915_v21 }
 0x39e   :  { %7845 = vmatpush.bf16.msrb.mxu2 %v10598_v25  ;;  %v11043_v25 = vld [vmem:[#allocation5 + $0x11d8] sm:$0xf0]  ;;  %v13808_v52 = vld [vmem:[#allocation5 + $0x13cc] sm:$0xf]  ;;  %v11174_v30 = vor.u32 %v13776_v60, %v11171_v24 }
 0x39f   :  { %7858 = vmatpush.bf16.msrb.mxu3 %v10726_v39  ;;  %v11299_v39 = vld [vmem:[#allocation5 + $0x13d8] sm:$0xf0]  ;;  %v11046_v9 = vor.u32 %v13744_v63, %v11043_v25  ;;  %v13708_v2 = vld [vmem:[#allocation5 + $0x10ac] sm:$0xf] }
 0x3a0   :  { %7820 = vmatpush.bf16.msrb.mxu0 %v10326_v50  ;;  %v10899_v33 = vld [vmem:[#allocation5 + $0x10b8] sm:$0xf0]  ;;  %v13740_v50 = vld [vmem:[#allocation5 + $0x11ac] sm:$0xf]  ;;  %v11302_v26 = vor.u32 %v13808_v52, %v11299_v39 }
 0x3a1   :  { %7833 = vmatpush.bf16.msrb.mxu1 %v10454_v51  ;;  %v11027_v1 = vld [vmem:[#allocation5 + $0x11b8] sm:$0xf0]  ;;  %v13772_v51 = vld [vmem:[#allocation5 + $0x12ac] sm:$0xf]  ;;  %v10902_v18 = vor.u32 %v13708_v2, %v10899_v33 }
 0x3a2   :  { %7846 = vmatpush.bf16.msrb.mxu2 %v10582_v58  ;;  %v11155_v58 = vld [vmem:[#allocation5 + $0x12b8] sm:$0xf0]  ;;  %v13804_v4 = vld [vmem:[#allocation5 + $0x13ac] sm:$0xf] }
 0x3a3   :  { %7859 = vmatpush.bf16.msrb.mxu3 %v10710_v6  ;;  %v11283_v38 = vld [vmem:[#allocation5 + $0x13b8] sm:$0xf0]  ;;  %v11030_v6 = vor.u32 %v13740_v50, %v11027_v1  ;;  %v11158_v36 = vor.u32 %v13772_v51, %v11155_v58  ;;  %v13704_v19 = vld [vmem:[#allocation5 + $0x108c] sm:$0xf] }
 0x3a4   :  { %7821 = vmatpush.bf16.msrb.mxu0 %v10310_v27  ;;  %v13736_v41 = vld [vmem:[#allocation5 + $0x118c] sm:$0xf]  ;;  %v11286_v3 = vor.u32 %v13804_v4, %v11283_v38  ;;  %v11011_v42 = vld [vmem:[#allocation5 + $0x1198] sm:$0xf0]  ;;  %v7615_v47 = vpop.f32.mrf.mxu0 }
 0x3a5   :  { %7834 = vmatpush.bf16.msrb.mxu1 %v10438_v40  ;;  %v13768_v20 = vld [vmem:[#allocation5 + $0x128c] sm:$0xf]  ;;  %v11267_v44 = vld [vmem:[#allocation5 + $0x1398] sm:$0xf0]  ;;  %v7628_v22 = vpop.f32.mrf.mxu1  ;;  %v11014_v0 = vor.u32 %v13736_v41, %v11011_v42 }
 0x3a6   :  { %7847 = vmatpush.bf16.msrb.mxu2 %v10566_v59  ;;  %v13700_v40 = vld [vmem:[#allocation5 + $0x106c] sm:$0xf]  ;;  %v10867_v59 = vld [vmem:[#allocation5 + $0x1078] sm:$0xf0] }
 0x3a7   :  { %7860 = vmatpush.bf16.msrb.mxu3 %v10694_v56  ;;  %7822 = vmatmul.bf16.vlgmr.msrb.gmra.mxu0 %v14610_v23  ;;  %v10883_v23 = vld [vmem:[#allocation5 + $0x1098] sm:$0xf0]  ;;  %v13732_v8 = vld [vmem:[#allocation5 + $0x116c] sm:$0xf]  ;;  %v10870_v63 = vor.u32 %v13700_v40, %v10867_v59 }
 0x3a8   :  { %7866 = vmatpush.bf16.msra.mxu0 %v10934_v48  ;;  %7835 = vmatmul.bf16.vlgmr.msrb.gmra.mxu1 %v14614_v31  ;;  %v13800_v31 = vld [vmem:[#allocation5 + $0x138c] sm:$0xf]  ;;  %v10886_v27 = vor.u32 %v13704_v19, %v10883_v23  ;;  %v10995_v48 = vld [vmem:[#allocation5 + $0x1178] sm:$0xf0] }
 0x3a9   :  { %7879 = vmatpush.bf16.msra.mxu1 %v11062_v43  ;;  %7848 = vmatmul.bf16.vlgmr.msrb.gmra.mxu2 %v14612_v28  ;;  %v11139_v28 = vld [vmem:[#allocation5 + $0x1298] sm:$0xf0]  ;;  %v11270_v61 = vor.u32 %v13800_v31, %v11267_v44  ;;  %v13764_v43 = vld [vmem:[#allocation5 + $0x126c] sm:$0xf] }
 0x3aa   :  { %7892 = vmatpush.bf16.msra.mxu2 %v11190_v14  ;;  %7861 = vmatmul.bf16.vlgmr.msrb.gmra.mxu3 %v14616_v35  ;;  %v7616_v35 = vadd.f32 %v7615_v47, %v14810_v57  ;;  %v11142_v62 = vor.u32 %v13768_v20, %v11139_v28  ;;  %v11123_v14 = vld [vmem:[#allocation5 + $0x1278] sm:$0xf0]  ;;  %v13796_v15 = vld [vmem:[#allocation5 + $0x136c] sm:$0xf]  ;;  %v10998_v57 = vor.u32 %v13732_v8, %v10995_v48 }
 0x3ab   :  { %7905 = vmatpush.bf16.msra.mxu3 %v11318_v32  ;;  %v11251_v21 = vld [vmem:[#allocation5 + $0x1378] sm:$0xf0]  ;;  %v11126_v32 = vor.u32 %v13764_v43, %v11123_v14  ;;  %v13696_v25 = vld [vmem:[#allocation5 + $0x104c] sm:$0xf] }
 0x3ac   :  { %7867 = vmatpush.bf16.msra.mxu0 %v10918_v29  ;;  %v7629_v56 = vadd.f32 %v7628_v22, %v7616_v35  ;;  %v10851_v60 = vld [vmem:[#allocation5 + $0x1058] sm:$0xf0]  ;;  %v13728_v24 = vld [vmem:[#allocation5 + $0x114c] sm:$0xf]  ;;  %v11254_v52 = vor.u32 %v13796_v15, %v11251_v21  ;;  %v7641_v39 = vpop.f32.mrf.mxu2  ;;  %v7617_v1 = vpop.f32.mrf.mxu0 }
 0x3ad   :  { %7880 = vmatpush.bf16.msra.mxu1 %v11046_v9  ;;  %v10979_v29 = vld [vmem:[#allocation5 + $0x1158] sm:$0xf0]  ;;  %v13760_v9 = vld [vmem:[#allocation5 + $0x124c] sm:$0xf]  ;;  %v7654_v33 = vpop.f32.mrf.mxu3  ;;  %v10854_v51 = vor.u32 %v13696_v25, %v10851_v60  ;;  %v7630_v58 = vpop.f32.mrf.mxu1 }
 0x3ae   :  { %7893 = vmatpush.bf16.msra.mxu2 %v11174_v30  ;;  %v11107_v30 = vld [vmem:[#allocation5 + $0x1258] sm:$0xf0]  ;;  %v7642_v2 = vadd.f32 %v7641_v39, %v7629_v56  ;;  %v13792_v50 = vld [vmem:[#allocation5 + $0x134c] sm:$0xf]  ;;  %v10982_v38 = vor.u32 %v13728_v24, %v10979_v29 }
 0x3af   :  { %7906 = vmatpush.bf16.msra.mxu3 %v11302_v26  ;;  %v11235_v26 = vld [vmem:[#allocation5 + $0x1358] sm:$0xf0]  ;;  %v13724_v19 = vld [vmem:[#allocation5 + $0x112c] sm:$0xf] }
 0x3b0   :  { %7868 = vmatpush.bf16.msra.mxu0 %v10902_v18  ;;  %v14817_v4 = vadd.f32 %v7654_v33, %v7642_v2  ;;  %v11110_v18 = vor.u32 %v13760_v9, %v11107_v30  ;;  %v11238_v23 = vor.u32 %v13792_v50, %v11235_v26  ;;  %v10963_v41 = vld [vmem:[#allocation5 + $0x1138] sm:$0xf0]  ;;  %v13788_v20 = vld [vmem:[#allocation5 + $0x132c] sm:$0xf] }
 0x3b1   :  { %7881 = vmatpush.bf16.msra.mxu1 %v11030_v6  ;;  %v13692_v6 = vld [vmem:[#allocation5 + $0x102c] sm:$0xf]  ;;  %v11091_v42 = vld [vmem:[#allocation5 + $0x1238] sm:$0xf0]  ;;  %v10966_v35 = vor.u32 %v13724_v19, %v10963_v41 }
 0x3b2   :  { %7894 = vmatpush.bf16.msra.mxu2 %v11158_v36  ;;  %v10835_v36 = vld [vmem:[#allocation5 + $0x1038] sm:$0xf0]  ;;  %v13688_v31 = vld [vmem:[#allocation5 + $0x100c] sm:$0xf] }
 0x3b3   :  { %7907 = vmatpush.bf16.msra.mxu3 %v11286_v3  ;;  %v13756_v3 = vld [vmem:[#allocation5 + $0x122c] sm:$0xf]  ;;  %v11219_v28 = vld [vmem:[#allocation5 + $0x1338] sm:$0xf0]  ;;  %v10838_v47 = vor.u32 %v13692_v6, %v10835_v36 }
 0x3b4   :  { %7869 = vmatpush.bf16.msra.mxu0 %v10886_v27  ;;  %v10819_v44 = vld [vmem:[#allocation5 + $0x1018] sm:$0xf0]  ;;  %v11094_v27 = vor.u32 %v13756_v3, %v11091_v42  ;;  %v13720_v22 = vld [vmem:[#allocation5 + $0x110c] sm:$0xf]  ;;  %v11222_v40 = vor.u32 %v13788_v20, %v11219_v28  ;;  %v7643_v56 = vpop.f32.mrf.mxu2 }
 0x3b5   :  { %7882 = vmatpush.bf16.msra.mxu1 %v11014_v0  ;;  %v10947_v0 = vld [vmem:[#allocation5 + $0x1118] sm:$0xf0]  ;;  %v13784_v8 = vld [vmem:[#allocation5 + $0x130c] sm:$0xf]  ;;  %v7656_v15 = vpop.f32.mrf.mxu3  ;;  %v10822_v21 = vor.u32 %v13688_v31, %v10819_v44 }
 0x3b6   :  { %7895 = vmatpush.bf16.msra.mxu2 %v11142_v62  ;;  %v13752_v62 = vld [vmem:[#allocation5 + $0x120c] sm:$0xf]  ;;  %v11075_v59 = vld [vmem:[#allocation5 + $0x1218] sm:$0xf0]  ;;  %v10950_v25 = vor.u32 %v13720_v22, %v10947_v0 }
 0x3b7   :  { %7908 = vmatpush.bf16.msra.mxu3 %v11270_v61  ;;  %v11203_v61 = vld [vmem:[#allocation5 + $0x1318] sm:$0xf0]  ;;  %v13844_v48 = vld [vmem:[#allocation5 + $0x14ec] sm:$0xf]  ;;  %v11078_v60 = vor.u32 %v13752_v62, %v11075_v59 }
 0x3b8   :  { %7870 = vmatpush.bf16.msra.mxu0 %v10870_v63  ;;  %v11443_v43 = vld [vmem:[#allocation5 + $0x14f8] sm:$0xf0]  ;;  %v13876_v14 = vld [vmem:[#allocation5 + $0x15ec] sm:$0xf]  ;;  %v11206_v39 = vor.u32 %v13784_v8, %v11203_v61 }
 0x3b9   :  { %7883 = vmatpush.bf16.msra.mxu1 %v10998_v57  ;;  %v11571_v63 = vld [vmem:[#allocation5 + $0x15f8] sm:$0xf0]  ;;  %v13908_v57 = vld [vmem:[#allocation5 + $0x16ec] sm:$0xf]  ;;  %v11446_v29 = vor.u32 %v13844_v48, %v11443_v43 }
 0x3ba   :  { %7896 = vmatpush.bf16.msra.mxu2 %v11126_v32  ;;  %v11699_v32 = vld [vmem:[#allocation5 + $0x16f8] sm:$0xf0]  ;;  %v13940_v24 = vld [vmem:[#allocation5 + $0x17ec] sm:$0xf]  ;;  %v11574_v9 = vor.u32 %v13876_v14, %v11571_v63 }
 0x3bb   :  { %7909 = vmatpush.bf16.msra.mxu3 %v11254_v52  ;;  %v11827_v52 = vld [vmem:[#allocation5 + $0x17f8] sm:$0xf0]  ;;  %v11702_v30 = vor.u32 %v13908_v57, %v11699_v32  ;;  %v13840_v2 = vld [vmem:[#allocation5 + $0x14cc] sm:$0xf] }
 0x3bc   :  { %7871 = vmatpush.bf16.msra.mxu0 %v10854_v51  ;;  %v11427_v33 = vld [vmem:[#allocation5 + $0x14d8] sm:$0xf0]  ;;  %v13872_v50 = vld [vmem:[#allocation5 + $0x15cc] sm:$0xf]  ;;  %v11830_v26 = vor.u32 %v13940_v24, %v11827_v52 }
 0x3bd   :  { %7884 = vmatpush.bf16.msra.mxu1 %v10982_v38  ;;  %v11555_v1 = vld [vmem:[#allocation5 + $0x15d8] sm:$0xf0]  ;;  %v13904_v51 = vld [vmem:[#allocation5 + $0x16cc] sm:$0xf]  ;;  %v11430_v6 = vor.u32 %v13840_v2, %v11427_v33 }
 0x3be   :  { %7897 = vmatpush.bf16.msra.mxu2 %v11110_v18  ;;  %v11683_v58 = vld [vmem:[#allocation5 + $0x16d8] sm:$0xf0]  ;;  %v13936_v38 = vld [vmem:[#allocation5 + $0x17cc] sm:$0xf]  ;;  %v11558_v36 = vor.u32 %v13872_v50, %v11555_v1 }
 0x3bf   :  { %7910 = vmatpush.bf16.msra.mxu3 %v11238_v23  ;;  %v11811_v18 = vld [vmem:[#allocation5 + $0x17d8] sm:$0xf0]  ;;  %v11686_v19 = vor.u32 %v13904_v51, %v11683_v58  ;;  %v13836_v23 = vld [vmem:[#allocation5 + $0x14ac] sm:$0xf] }
 0x3c0   :  { %7872 = vmatpush.bf16.msra.mxu0 %v10838_v47  ;;  %v11411_v41 = vld [vmem:[#allocation5 + $0x14b8] sm:$0xf0]  ;;  %v13868_v3 = vld [vmem:[#allocation5 + $0x15ac] sm:$0xf]  ;;  %v11814_v42 = vor.u32 %v13936_v38, %v11811_v18 }
 0x3c1   :  { %7885 = vmatpush.bf16.msra.mxu1 %v10966_v35  ;;  %v11539_v20 = vld [vmem:[#allocation5 + $0x15b8] sm:$0xf0]  ;;  %v13900_v28 = vld [vmem:[#allocation5 + $0x16ac] sm:$0xf]  ;;  %v11414_v35 = vor.u32 %v13836_v23, %v11411_v41 }
 0x3c2   :  { %7898 = vmatpush.bf16.msra.mxu2 %v11094_v27  ;;  %v11667_v47 = vld [vmem:[#allocation5 + $0x16b8] sm:$0xf0]  ;;  %v13932_v31 = vld [vmem:[#allocation5 + $0x17ac] sm:$0xf]  ;;  %v11542_v22 = vor.u32 %v13868_v3, %v11539_v20 }
 0x3c3   :  { %7911 = vmatpush.bf16.msra.mxu3 %v11222_v40  ;;  %v11795_v44 = vld [vmem:[#allocation5 + $0x17b8] sm:$0xf0]  ;;  %v13832_v27 = vld [vmem:[#allocation5 + $0x148c] sm:$0xf]  ;;  %v11670_v0 = vor.u32 %v13900_v28, %v11667_v47  ;;  %v14296_v40 = vld [vmem:[#allocation7] sm:$0xf] }
 0x3c4   :  { %7873 = vmatpush.bf16.msra.mxu0 %v10822_v21  ;;  %v13864_v62 = vld [vmem:[#allocation5 + $0x158c] sm:$0xf]  ;;  %v1173_v59 = vperm.slane %v14296_v40, 3  ;;  %v11798_v8 = vor.u32 %v13932_v31, %v11795_v44  ;;  %v11779_v48 = vld [vmem:[#allocation5 + $0x1798] sm:$0xf0]  ;;  %v7667_v43 = vpop.f32.mrf.mxu0 }
 0x3c5   :  { %7886 = vmatpush.bf16.msra.mxu1 %v10950_v25  ;;  %v13896_v61 = vld [vmem:[#allocation5 + $0x168c] sm:$0xf]  ;;  %v11379_v63 = vld [vmem:[#allocation5 + $0x1478] sm:$0xf0]  ;;  %v7680_v25 = vpop.f32.mrf.mxu1 }
 0x3c6   :  { %7899 = vmatpush.bf16.msra.mxu2 %v11078_v60  ;;  %v13928_v56 = vld [vmem:[#allocation5 + $0x178c] sm:$0xf]  ;;  %v7668_v32 = vadd.f32 %v7667_v43, %v1173_v59  ;;  %v11507_v24 = vld [vmem:[#allocation5 + $0x1578] sm:$0xf0] }
 0x3c7   :  { %7912 = vmatpush.bf16.msra.mxu3 %v11206_v39  ;;  %7874 = vmatmul.bf16.vlgmr.msra.gmra.mxu0 %v14622_v37  ;;  %v11395_v37 = vld [vmem:[#allocation5 + $0x1498] sm:$0xf0]  ;;  %v13828_v21 = vld [vmem:[#allocation5 + $0x146c] sm:$0xf]  ;;  %v11782_v60 = vor.u32 %v13928_v56, %v11779_v48 }
 0x3c8   :  { %7918 = vmatpush.bf16.msrb.mxu0 %v11446_v29  ;;  %7887 = vmatmul.bf16.vlgmr.msra.gmra.mxu1 %v14626_v46  ;;  %v11651_v46 = vld [vmem:[#allocation5 + $0x1698] sm:$0xf0]  ;;  %v13860_v57 = vld [vmem:[#allocation5 + $0x156c] sm:$0xf]  ;;  %v11382_v2 = vor.u32 %v13828_v21, %v11379_v63 }
 0x3c9   :  { %7931 = vmatpush.bf16.msrb.mxu1 %v11574_v9  ;;  %7900 = vmatmul.bf16.vlgmr.msra.gmra.mxu2 %v14624_v45  ;;  %v11523_v45 = vld [vmem:[#allocation5 + $0x1598] sm:$0xf0]  ;;  %v11654_v15 = vor.u32 %v13896_v61, %v11651_v46  ;;  %v13892_v52 = vld [vmem:[#allocation5 + $0x166c] sm:$0xf]  ;;  %v11510_v33 = vor.u32 %v13860_v57, %v11507_v24 }
 0x3ca   :  { %7944 = vmatpush.bf16.msrb.mxu2 %v11702_v30  ;;  %7913 = vmatmul.bf16.vlgmr.msra.gmra.mxu3 %v14628_v49  ;;  %v11398_v49 = vor.u32 %v13832_v27, %v11395_v37  ;;  %v11526_v14 = vor.u32 %v13864_v62, %v11523_v45  ;;  %v11635_v39 = vld [vmem:[#allocation5 + $0x1678] sm:$0xf0]  ;;  %v13924_v29 = vld [vmem:[#allocation5 + $0x176c] sm:$0xf]  ;;  %v7681_v30 = vadd.f32 %v7680_v25, %v7668_v32 }
 0x3cb   :  { %7957 = vmatpush.bf16.msrb.mxu3 %v11830_v26  ;;  %v11763_v9 = vld [vmem:[#allocation5 + $0x1778] sm:$0xf0]  ;;  %v11638_v50 = vor.u32 %v13892_v52, %v11635_v39  ;;  %v13824_v26 = vld [vmem:[#allocation5 + $0x144c] sm:$0xf] }
 0x3cc   :  { %7919 = vmatpush.bf16.msrb.mxu0 %v11430_v6  ;;  %v11363_v1 = vld [vmem:[#allocation5 + $0x1458] sm:$0xf0]  ;;  %v13856_v51 = vld [vmem:[#allocation5 + $0x154c] sm:$0xf]  ;;  %v7693_v58 = vpop.f32.mrf.mxu2  ;;  %v11766_v38 = vor.u32 %v13924_v29, %v11763_v9  ;;  %v7669_v28 = vpop.f32.mrf.mxu0 }
 0x3cd   :  { %7932 = vmatpush.bf16.msrb.mxu1 %v11558_v36  ;;  %v11491_v18 = vld [vmem:[#allocation5 + $0x1558] sm:$0xf0]  ;;  %v13888_v6 = vld [vmem:[#allocation5 + $0x164c] sm:$0xf]  ;;  %v7706_v23 = vpop.f32.mrf.mxu3 }
 0x3ce   :  { %7945 = vmatpush.bf16.msrb.mxu2 %v11686_v19  ;;  %v11619_v36 = vld [vmem:[#allocation5 + $0x1658] sm:$0xf0]  ;;  %v7694_v19 = vadd.f32 %v7693_v58, %v7681_v30  ;;  %v13920_v41 = vld [vmem:[#allocation5 + $0x174c] sm:$0xf]  ;;  %v11494_v47 = vor.u32 %v13856_v51, %v11491_v18 }
 0x3cf   :  { %7958 = vmatpush.bf16.msrb.mxu3 %v11814_v42  ;;  %v11747_v3 = vld [vmem:[#allocation5 + $0x1758] sm:$0xf0]  ;;  %v11366_v42 = vor.u32 %v13824_v26, %v11363_v1  ;;  %v11622_v31 = vor.u32 %v13888_v6, %v11619_v36  ;;  %v13820_v44 = vld [vmem:[#allocation5 + $0x142c] sm:$0xf] }
 0x3d0   :  { %7920 = vmatpush.bf16.msrb.mxu0 %v11414_v35  ;;  %v14823_v20 = vadd.f32 %v7706_v23, %v7694_v19  ;;  %v11347_v35 = vld [vmem:[#allocation5 + $0x1438] sm:$0xf0]  ;;  %v13852_v27 = vld [vmem:[#allocation5 + $0x152c] sm:$0xf] }
 0x3d1   :  { %7933 = vmatpush.bf16.msrb.mxu1 %v11542_v22  ;;  %v7682_v22 = vpop.f32.mrf.mxu1  ;;  %v11475_v37 = vld [vmem:[#allocation5 + $0x1538] sm:$0xf0]  ;;  %v13884_v62 = vld [vmem:[#allocation5 + $0x162c] sm:$0xf]  ;;  %v11350_v45 = vor.u32 %v13820_v44, %v11347_v35 }
 0x3d2   :  { %7946 = vmatpush.bf16.msrb.mxu2 %v11670_v0  ;;  %v11750_v0 = vor.u32 %v13920_v41, %v11747_v3  ;;  %v11603_v40 = vld [vmem:[#allocation5 + $0x1638] sm:$0xf0]  ;;  %v13916_v59 = vld [vmem:[#allocation5 + $0x172c] sm:$0xf]  ;;  %v11478_v56 = vor.u32 %v13852_v27, %v11475_v37 }
 0x3d3   :  { %7959 = vmatpush.bf16.msrb.mxu3 %v11798_v8  ;;  %v11731_v8 = vld [vmem:[#allocation5 + $0x1738] sm:$0xf0]  ;;  %v13816_v61 = vld [vmem:[#allocation5 + $0x140c] sm:$0xf]  ;;  %v11606_v48 = vor.u32 %v13884_v62, %v11603_v40 }
 0x3d4   :  { %7921 = vmatpush.bf16.msrb.mxu0 %v11398_v49  ;;  %v11331_v46 = vld [vmem:[#allocation5 + $0x1418] sm:$0xf0]  ;;  %v13848_v49 = vld [vmem:[#allocation5 + $0x150c] sm:$0xf]  ;;  %v11734_v21 = vor.u32 %v13916_v59, %v11731_v8 }
 0x3d5   :  { %7934 = vmatpush.bf16.msrb.mxu1 %v11526_v14  ;;  %v11459_v43 = vld [vmem:[#allocation5 + $0x1518] sm:$0xf0]  ;;  %v13880_v14 = vld [vmem:[#allocation5 + $0x160c] sm:$0xf]  ;;  %v7708_v25 = vpop.f32.mrf.mxu3  ;;  %v11334_v39 = vor.u32 %v13816_v61, %v11331_v46 }
 0x3d6   :  { %7947 = vmatpush.bf16.msrb.mxu2 %v11654_v15  ;;  %v7695_v15 = vpop.f32.mrf.mxu2  ;;  %v11587_v63 = vld [vmem:[#allocation5 + $0x1618] sm:$0xf0]  ;;  %v13912_v57 = vld [vmem:[#allocation5 + $0x170c] sm:$0xf] }
 0x3d7   :  { %7960 = vmatpush.bf16.msrb.mxu3 %v11782_v60  ;;  %v11715_v32 = vld [vmem:[#allocation5 + $0x1718] sm:$0xf0]  ;;  %v13972_v60 = vld [vmem:[#allocation5 + $0x18ec] sm:$0xf] }
 0x3d8   :  { %7922 = vmatpush.bf16.msrb.mxu0 %v11382_v2  ;;  %v11955_v24 = vld [vmem:[#allocation5 + $0x18f8] sm:$0xf0]  ;;  %v14004_v52 = vld [vmem:[#allocation5 + $0x19ec] sm:$0xf]  ;;  %v11462_v2 = vor.u32 %v13848_v49, %v11459_v43  ;;  %v11718_v1 = vor.u32 %v13912_v57, %v11715_v32 }
 0x3d9   :  { %7935 = vmatpush.bf16.msrb.mxu1 %v11510_v33  ;;  %v12083_v29 = vld [vmem:[#allocation5 + $0x19f8] sm:$0xf0]  ;;  %v14036_v9 = vld [vmem:[#allocation5 + $0x1aec] sm:$0xf]  ;;  %v11590_v33 = vor.u32 %v13880_v14, %v11587_v63  ;;  %v11958_v51 = vor.u32 %v13972_v60, %v11955_v24 }
 0x3da   :  { %7948 = vmatpush.bf16.msrb.mxu2 %v11638_v50  ;;  %v12211_v30 = vld [vmem:[#allocation5 + $0x1af8] sm:$0xf0]  ;;  %v14068_v50 = vld [vmem:[#allocation5 + $0x1bec] sm:$0xf]  ;;  %v12086_v58 = vor.u32 %v14004_v52, %v12083_v29 }
 0x3db   :  { %7961 = vmatpush.bf16.msrb.mxu3 %v11766_v38  ;;  %v12339_v26 = vld [vmem:[#allocation5 + $0x1bf8] sm:$0xf0]  ;;  %v12214_v38 = vor.u32 %v14036_v9, %v12211_v30  ;;  %v13968_v18 = vld [vmem:[#allocation5 + $0x18cc] sm:$0xf] }
 0x3dc   :  { %7923 = vmatpush.bf16.msrb.mxu0 %v11366_v42  ;;  %v11939_v6 = vld [vmem:[#allocation5 + $0x18d8] sm:$0xf0]  ;;  %v14000_v36 = vld [vmem:[#allocation5 + $0x19cc] sm:$0xf]  ;;  %v12342_v19 = vor.u32 %v14068_v50, %v12339_v26 }
 0x3dd   :  { %7936 = vmatpush.bf16.msrb.mxu1 %v11494_v47  ;;  %v12067_v23 = vld [vmem:[#allocation5 + $0x19d8] sm:$0xf0]  ;;  %v14032_v41 = vld [vmem:[#allocation5 + $0x1acc] sm:$0xf]  ;;  %v11942_v47 = vor.u32 %v13968_v18, %v11939_v6 }
 0x3de   :  { %7949 = vmatpush.bf16.msrb.mxu2 %v11622_v31  ;;  %v12195_v3 = vld [vmem:[#allocation5 + $0x1ad8] sm:$0xf0]  ;;  %v14064_v42 = vld [vmem:[#allocation5 + $0x1bcc] sm:$0xf]  ;;  %v12070_v31 = vor.u32 %v14000_v36, %v12067_v23 }
 0x3df   :  { %7962 = vmatpush.bf16.msrb.mxu3 %v11750_v0  ;;  %v12323_v28 = vld [vmem:[#allocation5 + $0x1bd8] sm:$0xf0]  ;;  %v12198_v44 = vor.u32 %v14032_v41, %v12195_v3  ;;  %v13964_v35 = vld [vmem:[#allocation5 + $0x18ac] sm:$0xf] }
 0x3e0   :  { %7924 = vmatpush.bf16.msrb.mxu0 %v11350_v45  ;;  %v11923_v27 = vld [vmem:[#allocation5 + $0x18b8] sm:$0xf0]  ;;  %v13996_v22 = vld [vmem:[#allocation5 + $0x19ac] sm:$0xf]  ;;  %v12326_v0 = vor.u32 %v14064_v42, %v12323_v28 }
 0x3e1   :  { %7937 = vmatpush.bf16.msrb.mxu1 %v11478_v56  ;;  %v12051_v37 = vld [vmem:[#allocation5 + $0x19b8] sm:$0xf0]  ;;  %v14028_v62 = vld [vmem:[#allocation5 + $0x1aac] sm:$0xf]  ;;  %v11926_v45 = vor.u32 %v13964_v35, %v11923_v27 }
 0x3e2   :  { %7950 = vmatpush.bf16.msrb.mxu2 %v11606_v48  ;;  %v12179_v40 = vld [vmem:[#allocation5 + $0x1ab8] sm:$0xf0]  ;;  %v14060_v59 = vld [vmem:[#allocation5 + $0x1bac] sm:$0xf]  ;;  %v12054_v61 = vor.u32 %v13996_v22, %v12051_v37 }
 0x3e3   :  { %7963 = vmatpush.bf16.msrb.mxu3 %v11734_v21  ;;  %v12307_v8 = vld [vmem:[#allocation5 + $0x1bb8] sm:$0xf0]  ;;  %v12182_v46 = vor.u32 %v14028_v62, %v12179_v40  ;;  %v13960_v56 = vld [vmem:[#allocation5 + $0x188c] sm:$0xf] }
 0x3e4   :  { %7925 = vmatpush.bf16.msrb.mxu0 %v11334_v39  ;;  %v13992_v48 = vld [vmem:[#allocation5 + $0x198c] sm:$0xf]  ;;  %v12310_v49 = vor.u32 %v14060_v59, %v12307_v8  ;;  %v12035_v43 = vld [vmem:[#allocation5 + $0x1998] sm:$0xf0]  ;;  %v7719_v63 = vpop.f32.mrf.mxu0 }
 0x3e5   :  { %7938 = vmatpush.bf16.msrb.mxu1 %v11462_v2  ;;  %v14024_v14 = vld [vmem:[#allocation5 + $0x1a8c] sm:$0xf]  ;;  %v11891_v25 = vld [vmem:[#allocation5 + $0x1878] sm:$0xf0]  ;;  %v7720_v24 = vadd.f32 %v7719_v63, %v14823_v20  ;;  %v7732_v52 = vpop.f32.mrf.mxu1 }
 0x3e6   :  { %7951 = vmatpush.bf16.msrb.mxu2 %v11590_v33  ;;  %v14056_v15 = vld [vmem:[#allocation5 + $0x1b8c] sm:$0xf]  ;;  %v12019_v29 = vld [vmem:[#allocation5 + $0x1978] sm:$0xf0] }
 0x3e7   :  { %7964 = vmatpush.bf16.msrb.mxu3 %v11718_v1  ;;  %7926 = vmatmul.bf16.vlgmr.msrb.gmra.mxu0 %v14636_v7  ;;  %v11907_v7 = vld [vmem:[#allocation5 + $0x1898] sm:$0xf0]  ;;  %v13956_v32 = vld [vmem:[#allocation5 + $0x186c] sm:$0xf]  ;;  %v7733_v50 = vadd.f32 %v7732_v52, %v7720_v24 }
 0x3e8   :  { %7970 = vmatpush.bf16.msra.mxu0 %v11958_v51  ;;  %7939 = vmatmul.bf16.vlgmr.msrb.gmra.mxu1 %v14640_v12  ;;  %v12291_v12 = vld [vmem:[#allocation5 + $0x1b98] sm:$0xf0]  ;;  %v11910_v21 = vor.u32 %v13960_v56, %v11907_v7  ;;  %v13988_v60 = vld [vmem:[#allocation5 + $0x196c] sm:$0xf]  ;;  %v11894_v26 = vor.u32 %v13956_v32, %v11891_v25 }
 0x3e9   :  { %7983 = vmatpush.bf16.msra.mxu1 %v12086_v58  ;;  %7952 = vmatmul.bf16.vlgmr.msrb.gmra.mxu2 %v14638_v11  ;;  %v12163_v11 = vld [vmem:[#allocation5 + $0x1a98] sm:$0xf0]  ;;  %v12294_v39 = vor.u32 %v14056_v15, %v12291_v12  ;;  %v14020_v9 = vld [vmem:[#allocation5 + $0x1a6c] sm:$0xf]  ;;  %v12022_v1 = vor.u32 %v13988_v60, %v12019_v29 }
 0x3ea   :  { %7996 = vmatpush.bf16.msra.mxu2 %v12214_v38  ;;  %7965 = vmatmul.bf16.vlgmr.msrb.gmra.mxu3 %v14642_v16  ;;  %v12038_v16 = vor.u32 %v13992_v48, %v12035_v43  ;;  %v12166_v57 = vor.u32 %v14024_v14, %v12163_v11  ;;  %v12147_v30 = vld [vmem:[#allocation5 + $0x1a78] sm:$0xf0]  ;;  %v14052_v2 = vld [vmem:[#allocation5 + $0x1b6c] sm:$0xf] }
 0x3eb   :  { %8009 = vmatpush.bf16.msra.mxu3 %v12342_v19  ;;  %v12275_v33 = vld [vmem:[#allocation5 + $0x1b78] sm:$0xf0]  ;;  %v12150_v51 = vor.u32 %v14020_v9, %v12147_v30  ;;  %v13952_v58 = vld [vmem:[#allocation5 + $0x184c] sm:$0xf] }
 0x3ec   :  { %7971 = vmatpush.bf16.msra.mxu0 %v11942_v47  ;;  %v11875_v38 = vld [vmem:[#allocation5 + $0x1858] sm:$0xf0]  ;;  %v13984_v18 = vld [vmem:[#allocation5 + $0x194c] sm:$0xf]  ;;  %v7745_v6 = vpop.f32.mrf.mxu2  ;;  %v12278_v20 = vor.u32 %v14052_v2, %v12275_v33 }
 0x3ed   :  { %7984 = vmatpush.bf16.msra.mxu1 %v12070_v31  ;;  %v12003_v36 = vld [vmem:[#allocation5 + $0x1958] sm:$0xf0]  ;;  %v14016_v19 = vld [vmem:[#allocation5 + $0x1a4c] sm:$0xf]  ;;  %v7746_v41 = vadd.f32 %v7745_v6, %v7733_v50  ;;  %v7758_v3 = vpop.f32.mrf.mxu3  ;;  %v11878_v47 = vor.u32 %v13952_v58, %v11875_v38  ;;  %v7734_v62 = vpop.f32.mrf.mxu1 }
 0x3ee   :  { %7997 = vmatpush.bf16.msra.mxu2 %v12198_v44  ;;  %v12131_v23 = vld [vmem:[#allocation5 + $0x1a58] sm:$0xf0]  ;;  %v14048_v42 = vld [vmem:[#allocation5 + $0x1b4c] sm:$0xf]  ;;  %v7721_v44 = vpop.f32.mrf.mxu0  ;;  %v12006_v35 = vor.u32 %v13984_v18, %v12003_v36 }
 0x3ef   :  { %8010 = vmatpush.bf16.msra.mxu3 %v12326_v0  ;;  %v12259_v28 = vld [vmem:[#allocation5 + $0x1b58] sm:$0xf0]  ;;  %v14830_v31 = vadd.f32 %v7758_v3, %v7746_v41  ;;  %v12134_v27 = vor.u32 %v14016_v19, %v12131_v23  ;;  %v13948_v22 = vld [vmem:[#allocation5 + $0x182c] sm:$0xf] }
 0x3f0   :  { %7972 = vmatpush.bf16.msra.mxu0 %v11926_v45  ;;  %v11859_v0 = vld [vmem:[#allocation5 + $0x1838] sm:$0xf0]  ;;  %v13980_v37 = vld [vmem:[#allocation5 + $0x192c] sm:$0xf]  ;;  %v12262_v40 = vor.u32 %v14048_v42, %v12259_v28 }
 0x3f1   :  { %7985 = vmatpush.bf16.msra.mxu1 %v12054_v61  ;;  %v11987_v59 = vld [vmem:[#allocation5 + $0x1938] sm:$0xf0]  ;;  %v14012_v8 = vld [vmem:[#allocation5 + $0x1a2c] sm:$0xf]  ;;  %v11862_v56 = vor.u32 %v13948_v22, %v11859_v0 }
 0x3f2   :  { %7998 = vmatpush.bf16.msra.mxu2 %v12182_v46  ;;  %v12115_v45 = vld [vmem:[#allocation5 + $0x1a38] sm:$0xf0]  ;;  %v14044_v61 = vld [vmem:[#allocation5 + $0x1b2c] sm:$0xf] }
 0x3f3   :  { %8011 = vmatpush.bf16.msra.mxu3 %v12310_v49  ;;  %v12243_v46 = vld [vmem:[#allocation5 + $0x1b38] sm:$0xf0]  ;;  %v13944_v7 = vld [vmem:[#allocation5 + $0x180c] sm:$0xf]  ;;  %v11990_v49 = vor.u32 %v13980_v37, %v11987_v59  ;;  %v12118_v43 = vor.u32 %v14012_v8, %v12115_v45 }
 0x3f4   :  { %7973 = vmatpush.bf16.msra.mxu0 %v11910_v21  ;;  %v11843_v48 = vld [vmem:[#allocation5 + $0x1818] sm:$0xf0]  ;;  %v13976_v14 = vld [vmem:[#allocation5 + $0x190c] sm:$0xf]  ;;  %v7747_v12 = vpop.f32.mrf.mxu2  ;;  %v12246_v21 = vor.u32 %v14044_v61, %v12243_v46 }
 0x3f5   :  { %7986 = vmatpush.bf16.msra.mxu1 %v12038_v16  ;;  %v11971_v11 = vld [vmem:[#allocation5 + $0x1918] sm:$0xf0]  ;;  %v14008_v15 = vld [vmem:[#allocation5 + $0x1a0c] sm:$0xf]  ;;  %v7760_v32 = vpop.f32.mrf.mxu3  ;;  %v11846_v52 = vor.u32 %v13944_v7, %v11843_v48 }
 0x3f6   :  { %7999 = vmatpush.bf16.msra.mxu2 %v12166_v57  ;;  %v12099_v63 = vld [vmem:[#allocation5 + $0x1a18] sm:$0xf0]  ;;  %v14040_v16 = vld [vmem:[#allocation5 + $0x1b0c] sm:$0xf]  ;;  %v11974_v30 = vor.u32 %v13976_v14, %v11971_v11 }
 0x3f7   :  { %8012 = vmatpush.bf16.msra.mxu3 %v12294_v39  ;;  %v12227_v57 = vld [vmem:[#allocation5 + $0x1b18] sm:$0xf0]  ;;  %v14100_v25 = vld [vmem:[#allocation5 + $0x1cec] sm:$0xf]  ;;  %v12102_v2 = vor.u32 %v14008_v15, %v12099_v63 }
 0x3f8   :  { %7974 = vmatpush.bf16.msra.mxu0 %v11894_v26  ;;  %v12467_v60 = vld [vmem:[#allocation5 + $0x1cf8] sm:$0xf0]  ;;  %v14132_v24 = vld [vmem:[#allocation5 + $0x1dec] sm:$0xf]  ;;  %v12230_v26 = vor.u32 %v14040_v16, %v12227_v57 }
 0x3f9   :  { %7987 = vmatpush.bf16.msra.mxu1 %v12022_v1  ;;  %v12595_v39 = vld [vmem:[#allocation5 + $0x1df8] sm:$0xf0]  ;;  %v14164_v29 = vld [vmem:[#allocation5 + $0x1eec] sm:$0xf]  ;;  %v12470_v1 = vor.u32 %v14100_v25, %v12467_v60 }
 0x3fa   :  { %8000 = vmatpush.bf16.msra.mxu2 %v12150_v51  ;;  %v12723_v9 = vld [vmem:[#allocation5 + $0x1ef8] sm:$0xf0]  ;;  %v14196_v33 = vld [vmem:[#allocation5 + $0x1fec] sm:$0xf]  ;;  %v12598_v51 = vor.u32 %v14132_v24, %v12595_v39 }
 0x3fb   :  { %8013 = vmatpush.bf16.msra.mxu3 %v12278_v20  ;;  %v12851_v50 = vld [vmem:[#allocation5 + $0x1ff8] sm:$0xf0]  ;;  %v12726_v58 = vor.u32 %v14164_v29, %v12723_v9  ;;  %v14096_v38 = vld [vmem:[#allocation5 + $0x1ccc] sm:$0xf] }
 0x3fc   :  { %7975 = vmatpush.bf16.msra.mxu0 %v11878_v47  ;;  %v12451_v18 = vld [vmem:[#allocation5 + $0x1cd8] sm:$0xf0]  ;;  %v14128_v6 = vld [vmem:[#allocation5 + $0x1dcc] sm:$0xf]  ;;  %v12854_v20 = vor.u32 %v14196_v33, %v12851_v50 }
 0x3fd   :  { %7988 = vmatpush.bf16.msra.mxu1 %v12006_v35  ;;  %v12579_v36 = vld [vmem:[#allocation5 + $0x1dd8] sm:$0xf0]  ;;  %v14160_v19 = vld [vmem:[#allocation5 + $0x1ecc] sm:$0xf]  ;;  %v12454_v42 = vor.u32 %v14096_v38, %v12451_v18 }
 0x3fe   :  { %8001 = vmatpush.bf16.msra.mxu2 %v12134_v27  ;;  %v12707_v23 = vld [vmem:[#allocation5 + $0x1ed8] sm:$0xf0]  ;;  %v14192_v41 = vld [vmem:[#allocation5 + $0x1fcc] sm:$0xf]  ;;  %v12582_v28 = vor.u32 %v14128_v6, %v12579_v36 }
 0x3ff   :  { %8014 = vmatpush.bf16.msra.mxu3 %v12262_v40  ;;  %v12835_v3 = vld [vmem:[#allocation5 + $0x1fd8] sm:$0xf0]  ;;  %v12710_v47 = vor.u32 %v14160_v19, %v12707_v23  ;;  %v14092_v44 = vld [vmem:[#allocation5 + $0x1cac] sm:$0xf] }
 0x400   :  { %7976 = vmatpush.bf16.msra.mxu0 %v11862_v56  ;;  %v12435_v35 = vld [vmem:[#allocation5 + $0x1cb8] sm:$0xf0]  ;;  %v14124_v27 = vld [vmem:[#allocation5 + $0x1dac] sm:$0xf]  ;;  %v12838_v22 = vor.u32 %v14192_v41, %v12835_v3 }
 0x401   :  { %7989 = vmatpush.bf16.msra.mxu1 %v11990_v49  ;;  %v12563_v0 = vld [vmem:[#allocation5 + $0x1db8] sm:$0xf0]  ;;  %v14156_v37 = vld [vmem:[#allocation5 + $0x1eac] sm:$0xf]  ;;  %v12438_v8 = vor.u32 %v14092_v44, %v12435_v35 }
 0x402   :  { %8002 = vmatpush.bf16.msra.mxu2 %v12118_v43  ;;  %v12691_v62 = vld [vmem:[#allocation5 + $0x1eb8] sm:$0xf0]  ;;  %v14188_v40 = vld [vmem:[#allocation5 + $0x1fac] sm:$0xf]  ;;  %v12566_v45 = vor.u32 %v14124_v27, %v12563_v0 }
 0x403   :  { %8015 = vmatpush.bf16.msra.mxu3 %v12246_v21  ;;  %v12819_v59 = vld [vmem:[#allocation5 + $0x1fb8] sm:$0xf0]  ;;  %v12694_v61 = vor.u32 %v14156_v37, %v12691_v62  ;;  %v14088_v46 = vld [vmem:[#allocation5 + $0x1c8c] sm:$0xf] }
 0x404   :  { %7977 = vmatpush.bf16.msra.mxu0 %v11846_v52  ;;  %v14120_v56 = vld [vmem:[#allocation5 + $0x1d8c] sm:$0xf]  ;;  %v12822_v7 = vor.u32 %v14188_v40, %v12819_v59  ;;  %v12547_v48 = vld [vmem:[#allocation5 + $0x1d98] sm:$0xf0]  ;;  %v7771_v43 = vpop.f32.mrf.mxu0 }
 0x405   :  { %7990 = vmatpush.bf16.msra.mxu1 %v11974_v30  ;;  %v14152_v49 = vld [vmem:[#allocation5 + $0x1e8c] sm:$0xf]  ;;  %v12803_v14 = vld [vmem:[#allocation5 + $0x1f98] sm:$0xf0]  ;;  %v7784_v15 = vpop.f32.mrf.mxu1  ;;  %v12550_v12 = vor.u32 %v14120_v56, %v12547_v48 }
 0x406   :  { %8003 = vmatpush.bf16.msra.mxu2 %v12102_v2  ;;  %v14084_v63 = vld [vmem:[#allocation5 + $0x1c6c] sm:$0xf]  ;;  %v12403_v16 = vld [vmem:[#allocation5 + $0x1c78] sm:$0xf0] }
 0x407   :  { %8016 = vmatpush.bf16.msra.mxu3 %v12230_v26  ;;  %7978 = vmatmul.bf16.vlgmr.msra.gmra.mxu0 %v14651_v5  ;;  %v12419_v5 = vld [vmem:[#allocation5 + $0x1c98] sm:$0xf0]  ;;  %v14116_v57 = vld [vmem:[#allocation5 + $0x1d6c] sm:$0xf]  ;;  %v12406_v9 = vor.u32 %v14084_v63, %v12403_v16  ;;  %v13041_v63 = vld [vmem:[#allocation8 + $0x170] sm:$0xf] }
 0x408   :  { %8022 = vmatpush.bf16.msrb.mxu0 %v12470_v1  ;;  %7991 = vmatmul.bf16.vlgmr.msra.gmra.mxu1 %v14655_v13  ;;  %v14184_v13 = vld [vmem:[#allocation5 + $0x1f8c] sm:$0xf]  ;;  %v12422_v11 = vor.u32 %v14088_v46, %v12419_v5  ;;  %v12531_v60 = vld [vmem:[#allocation5 + $0x1d78] sm:$0xf0] }
 0x409   :  { %8035 = vmatpush.bf16.msrb.mxu1 %v12598_v51  ;;  %8004 = vmatmul.bf16.vlgmr.msra.gmra.mxu2 %v14653_v10  ;;  %v12675_v10 = vld [vmem:[#allocation5 + $0x1e98] sm:$0xf0]  ;;  %v12806_v32 = vor.u32 %v14184_v13, %v12803_v14  ;;  %v14148_v24 = vld [vmem:[#allocation5 + $0x1e6c] sm:$0xf]  ;;  %v12913_v14 = vld [vmem:[#allocation8 + $0x70] sm:$0xf] }
 0x40a   :  { %8048 = vmatpush.bf16.msrb.mxu2 %v12726_v58  ;;  %8017 = vmatmul.bf16.vlgmr.msra.gmra.mxu3 %v14657_v17  ;;  %v7772_v17 = vadd.f32 %v7771_v43, %v14830_v31  ;;  %v12678_v21 = vor.u32 %v14152_v49, %v12675_v10  ;;  %v12659_v52 = vld [vmem:[#allocation5 + $0x1e78] sm:$0xf0]  ;;  %v14180_v39 = vld [vmem:[#allocation5 + $0x1f6c] sm:$0xf]  ;;  %v12534_v31 = vor.u32 %v14116_v57, %v12531_v60 }
 0x40b   :  { %8061 = vmatpush.bf16.msrb.mxu3 %v12854_v20  ;;  %v12787_v29 = vld [vmem:[#allocation5 + $0x1f78] sm:$0xf0]  ;;  %v12662_v30 = vor.u32 %v14148_v24, %v12659_v52  ;;  %v14080_v2 = vld [vmem:[#allocation5 + $0x1c4c] sm:$0xf] }
 0x40c   :  { %8023 = vmatpush.bf16.msrb.mxu0 %v12454_v42  ;;  %v7785_v25 = vadd.f32 %v7784_v15, %v7772_v17  ;;  %v12387_v33 = vld [vmem:[#allocation5 + $0x1c58] sm:$0xf0]  ;;  %v14112_v50 = vld [vmem:[#allocation5 + $0x1d4c] sm:$0xf]  ;;  %v12790_v26 = vor.u32 %v14180_v39, %v12787_v29  ;;  %v7797_v1 = vpop.f32.mrf.mxu2  ;;  %v7773_v19 = vpop.f32.mrf.mxu0  ;;  %v12905_v39 = vld [vmem:[#allocation8 + $0x60] sm:$0xf] }
 0x40d   :  { %8036 = vmatpush.bf16.msrb.mxu1 %v12582_v28  ;;  %v12515_v51 = vld [vmem:[#allocation5 + $0x1d58] sm:$0xf0]  ;;  %v14144_v58 = vld [vmem:[#allocation5 + $0x1e4c] sm:$0xf]  ;;  %v7810_v6 = vpop.f32.mrf.mxu3  ;;  %v12390_v23 = vor.u32 %v14080_v2, %v12387_v33  ;;  %v7786_v41 = vpop.f32.mrf.mxu1 }
 0x40e   :  { %8049 = vmatpush.bf16.msrb.mxu2 %v12710_v47  ;;  %v12643_v38 = vld [vmem:[#allocation5 + $0x1e58] sm:$0xf0]  ;;  %v7798_v18 = vadd.f32 %v7797_v1, %v7785_v25  ;;  %v14176_v20 = vld [vmem:[#allocation5 + $0x1f4c] sm:$0xf]  ;;  %v12518_v42 = vor.u32 %v14112_v50, %v12515_v51  ;;  %v12897_v1 = vld [vmem:[#allocation8 + $0x50] sm:$0xf] }
 0x40f   :  { %8062 = vmatpush.bf16.msrb.mxu3 %v12838_v22  ;;  %v12771_v36 = vld [vmem:[#allocation5 + $0x1f58] sm:$0xf0]  ;;  %v12646_v28 = vor.u32 %v14144_v58, %v12643_v38  ;;  %v14076_v47 = vld [vmem:[#allocation5 + $0x1c2c] sm:$0xf]  ;;  %v12961_v58 = vld [vmem:[#allocation8 + $0xd0] sm:$0xf] }
 0x410   :  { %8024 = vmatpush.bf16.msrb.mxu0 %v12438_v8  ;;  %v14837_v3 = vadd.f32 %v7810_v6, %v7798_v18  ;;  %v12371_v44 = vld [vmem:[#allocation5 + $0x1c38] sm:$0xf0]  ;;  %v14108_v35 = vld [vmem:[#allocation5 + $0x1d2c] sm:$0xf]  ;;  %v12774_v27 = vor.u32 %v14176_v20, %v12771_v36  ;;  %v13025_v18 = vld [vmem:[#allocation8 + $0x150] sm:$0xf] }
 0x411   :  { %8037 = vmatpush.bf16.msrb.mxu1 %v12566_v45  ;;  %v12499_v22 = vld [vmem:[#allocation5 + $0x1d38] sm:$0xf0]  ;;  %v14140_v0 = vld [vmem:[#allocation5 + $0x1e2c] sm:$0xf]  ;;  %v12374_v59 = vor.u32 %v14076_v47, %v12371_v44 }
 0x412   :  { %8050 = vmatpush.bf16.msrb.mxu2 %v12694_v61  ;;  %v12627_v37 = vld [vmem:[#allocation5 + $0x1e38] sm:$0xf0]  ;;  %v14172_v62 = vld [vmem:[#allocation5 + $0x1f2c] sm:$0xf]  ;;  %v12502_v61 = vor.u32 %v14108_v35, %v12499_v22  ;;  %v12881_v22 = vld [vmem:[#allocation8 + $0x30] sm:$0xf] }
 0x413   :  { %8063 = vmatpush.bf16.msrb.mxu3 %v12822_v7  ;;  %v12755_v40 = vld [vmem:[#allocation5 + $0x1f38] sm:$0xf0]  ;;  %v14072_v8 = vld [vmem:[#allocation5 + $0x1c0c] sm:$0xf]  ;;  %v12630_v46 = vor.u32 %v14140_v0, %v12627_v37  ;;  %v12945_v37 = vld [vmem:[#allocation8 + $0xb0] sm:$0xf] }
 0x414   :  { %8025 = vmatpush.bf16.msrb.mxu0 %v12422_v11  ;;  %v12355_v45 = vld [vmem:[#allocation5 + $0x1c18] sm:$0xf0]  ;;  %v14104_v5 = vld [vmem:[#allocation5 + $0x1d0c] sm:$0xf]  ;;  %v12758_v48 = vor.u32 %v14172_v62, %v12755_v40  ;;  %v7799_v13 = vpop.f32.mrf.mxu2  ;;  %v12977_v11 = vld [vmem:[#allocation8 + $0xf0] sm:$0xf] }
 0x415   :  { %8038 = vmatpush.bf16.msrb.mxu1 %v12550_v12  ;;  %v12483_v56 = vld [vmem:[#allocation5 + $0x1d18] sm:$0xf0]  ;;  %v14136_v7 = vld [vmem:[#allocation5 + $0x1e0c] sm:$0xf]  ;;  %v7812_v15 = vpop.f32.mrf.mxu3  ;;  %v12358_v12 = vor.u32 %v14072_v8, %v12355_v45 }
 0x416   :  { %8051 = vmatpush.bf16.msrb.mxu2 %v12678_v21  ;;  %v12611_v49 = vld [vmem:[#allocation5 + $0x1e18] sm:$0xf0]  ;;  %v14168_v10 = vld [vmem:[#allocation5 + $0x1f0c] sm:$0xf]  ;;  %v12486_v57 = vor.u32 %v14104_v5, %v12483_v56  ;;  %v12937_v56 = vld [vmem:[#allocation8 + $0xa0] sm:$0xf] }
 0x417   :  { %8064 = vmatpush.bf16.msrb.mxu3 %v12806_v32  ;;  %v12739_v43 = vld [vmem:[#allocation5 + $0x1f18] sm:$0xf0]  ;;  %v12614_v32 = vor.u32 %v14136_v7, %v12611_v49  ;;  %v14212_v29 = vld [vmem:[#allocation8 + $0x64] sm:$0xf0]  ;;  %v13001_v49 = vld [vmem:[#allocation8 + $0x120] sm:$0xf] }
 0x418   :  { %8026 = vmatpush.bf16.msrb.mxu0 %v12406_v9  ;;  %v14214_v17 = vld [vmem:[#allocation8 + $0x74] sm:$0xf0]  ;;  %v12742_v25 = vor.u32 %v14168_v10, %v12739_v43  ;;  %v12969_v9 = vld [vmem:[#allocation8 + $0xe0] sm:$0xf]  ;;  %v14244_v2 = vld [vmem:[#allocation8 + $0x164] sm:$0xf0]  ;;  %v12906_v33 = vor.u32 %v14212_v29, %v12905_v39 }
 0x419   :  { %8039 = vmatpush.bf16.msrb.mxu1 %v12534_v31  ;;  %v14230_v21 = vld [vmem:[#allocation8 + $0xf4] sm:$0xf0]  ;;  %v12914_v60 = vor.u32 %v14214_v17, %v12913_v14  ;;  %v14228_v31 = vld [vmem:[#allocation8 + $0xe4] sm:$0xf0] }
 0x41a   :  { %8052 = vmatpush.bf16.msrb.mxu2 %v12662_v30  ;;  %v14246_v16 = vld [vmem:[#allocation8 + $0x174] sm:$0xf0]  ;;  %v12978_v24 = vor.u32 %v14230_v21, %v12977_v11  ;;  %v13033_v30 = vld [vmem:[#allocation8 + $0x160] sm:$0xf]  ;;  %v12970_v50 = vor.u32 %v14228_v31, %v12969_v9  ;;  %v14208_v41 = vld [vmem:[#allocation8 + $0x44] sm:$0xf0] }
 0x41b   :  { %8065 = vmatpush.bf16.msrb.mxu3 %v12790_v26  ;;  %v13042_v52 = vor.u32 %v14246_v16, %v13041_v63  ;;  %v13034_v26 = vor.u32 %v14244_v2, %v13033_v30  ;;  %v14210_v51 = vld [vmem:[#allocation8 + $0x54] sm:$0xf0]  ;;  %v14240_v47 = vld [vmem:[#allocation8 + $0x144] sm:$0xf0]  ;;  %v12865_v63 = vld [vmem:[#allocation8 + $0x10] sm:$0xf] }
 0x41c   :  { %8027 = vmatpush.bf16.msrb.mxu0 %v12390_v23  ;;  %v14226_v38 = vld [vmem:[#allocation8 + $0xd4] sm:$0xf0]  ;;  %v12898_v20 = vor.u32 %v14210_v51, %v12897_v1  ;;  %v12889_v23 = vld [vmem:[#allocation8 + $0x40] sm:$0xf]  ;;  %v14204_v5 = vld [vmem:[#allocation8 + $0x24] sm:$0xf0] }
 0x41d   :  { %8040 = vmatpush.bf16.msrb.mxu1 %v12518_v42  ;;  %v14242_v6 = vld [vmem:[#allocation8 + $0x154] sm:$0xf0]  ;;  %v12962_v36 = vor.u32 %v14226_v38, %v12961_v58  ;;  %v12953_v42 = vld [vmem:[#allocation8 + $0xc0] sm:$0xf]  ;;  %v12890_v35 = vor.u32 %v14208_v41, %v12889_v23  ;;  %v14236_v10 = vld [vmem:[#allocation8 + $0x124] sm:$0xf0] }
 0x41e   :  { %8053 = vmatpush.bf16.msrb.mxu2 %v12646_v28  ;;  %v13026_v19 = vor.u32 %v14242_v6, %v13025_v18  ;;  %v14224_v28 = vld [vmem:[#allocation8 + $0xc4] sm:$0xf0]  ;;  %v14206_v0 = vld [vmem:[#allocation8 + $0x34] sm:$0xf0]  ;;  %v13002_v21 = vor.u32 %v14236_v10, %v13001_v49  ;;  %v12921_v31 = vld [vmem:[#allocation8 + $0x80] sm:$0xf] }
 0x41f   :  { %8066 = vmatpush.bf16.msrb.mxu3 %v12774_v27  ;;  %v14222_v40 = vld [vmem:[#allocation8 + $0xb4] sm:$0xf0]  ;;  %v12882_v45 = vor.u32 %v14206_v0, %v12881_v22  ;;  %v14200_v9 = vld [vmem:[#allocation8 + $0x4] sm:$0xf0]  ;;  %v12985_v2 = vld [vmem:[#allocation8 + $0x100] sm:$0xf] }
 0x420   :  { %8028 = vmatpush.bf16.msrb.mxu0 %v12374_v59  ;;  %v13009_v59 = vld [vmem:[#allocation8 + $0x130] sm:$0xf]  ;;  %v14238_v8 = vld [vmem:[#allocation8 + $0x134] sm:$0xf0]  ;;  %v14216_v30 = vld [vmem:[#allocation8 + $0x84] sm:$0xf0] }
 0x421   :  { %8041 = vmatpush.bf16.msrb.mxu1 %v12502_v61  ;;  %v12946_v61 = vor.u32 %v14222_v40, %v12945_v37  ;;  %v14202_v16 = vld [vmem:[#allocation8 + $0x14] sm:$0xf0]  ;;  %v12915_v1 = vld [vmem:[#allocation8 + $0x78] sm:$0xf0]  ;;  %v14229_v51 = vld [vmem:[#allocation8 + $0xf4] sm:$0xf] }
 0x422   :  { %8054 = vmatpush.bf16.msrb.mxu2 %v12630_v46  ;;  %v13010_v46 = vor.u32 %v14238_v8, %v13009_v59  ;;  %v12979_v58 = vld [vmem:[#allocation8 + $0xf8] sm:$0xf0]  ;;  %v14245_v6 = vld [vmem:[#allocation8 + $0x174] sm:$0xf]  ;;  %v14243_v22 = vld [vmem:[#allocation8 + $0x164] sm:$0xf] }
 0x423   :  { %8067 = vmatpush.bf16.msrb.mxu3 %v12758_v48  ;;  %v14220_v48 = vld [vmem:[#allocation8 + $0xa4] sm:$0xf0]  ;;  %v14879_v23 = vld [vmem:[#allocation21_spill] sm:$0xff]  ;;  %v13035_v0 = vld [vmem:[#allocation8 + $0x168] sm:$0xf0] }
 0x424   :  { %8029 = vmatpush.bf16.msrb.mxu0 %v12358_v12  ;;  %v12938_v12 = vor.u32 %v14220_v48, %v12937_v56  ;;  %v8075_v41 = vmax.f32 %v14879_v23, 0.0  ;;  %v14209_v8 = vld [vmem:[#allocation8 + $0x54] sm:$0xf]  ;;  %v13027_v56 = vld [vmem:[#allocation8 + $0x158] sm:$0xf0] }
 0x425   :  { %8042 = vmatpush.bf16.msrb.mxu1 %v12486_v57  ;;  %v12929_v57 = vld [vmem:[#allocation8 + $0x90] sm:$0xf]  ;;  %v14207_v49 = vld [vmem:[#allocation8 + $0x44] sm:$0xf] }
 0x426   :  { %8055 = vmatpush.bf16.msrb.mxu2 %v12614_v32  ;;  %v14218_v32 = vld [vmem:[#allocation8 + $0x94] sm:$0xf0] }
 0x427   :  { %8068 = vmatpush.bf16.msrb.mxu3 %v12742_v25  ;;  %8030 = vmatmul.bf16.vlgmr.msrb.gmra.mxu0 %v14666_v54  ;;  %v13017_v54 = vld [vmem:[#allocation8 + $0x140] sm:$0xf]  ;;  %v12993_v25 = vld [vmem:[#allocation8 + $0x110] sm:$0xf]  ;;  %v12930_v39 = vor.u32 %v14218_v32, %v12929_v57  ;;  %v14205_v32 = vld [vmem:[#allocation8 + $0x34] sm:$0xf] }
 0x428   :  { %8472 = vmatpush.bf16.msra.mxu0 %v12914_v60  ;;  %8043 = vmatmul.bf16.vlgmr.msrb.gmra.mxu1 %v14670_v55  ;;  %v7823_v55 = vpop.f32.mrf.mxu0  ;;  %v13018_v27 = vor.u32 %v14240_v47, %v13017_v54  ;;  %v14234_v60 = vld [vmem:[#allocation8 + $0x114] sm:$0xf0]  ;;  %v8076_v54 = vmax.f32 %v14817_v4, 0.0 }
 0x429   :  { %8485 = vmatpush.bf16.msra.mxu1 %v12978_v24  ;;  %8056 = vmatmul.bf16.vlgmr.msrb.gmra.mxu2 %v14668_v34  ;;  %v7824_v44 = vadd.f32 %v7823_v55, %v14837_v3  ;;  %v7836_v34 = vpop.f32.mrf.mxu1  ;;  %v12873_v3 = vld [vmem:[#allocation8 + $0x20] sm:$0xf]  ;;  %v12866_v24 = vor.u32 %v14202_v16, %v12865_v63  ;;  %v12994_v29 = vor.u32 %v14234_v60, %v12993_v25  ;;  %v12883_v60 = vld [vmem:[#allocation8 + $0x38] sm:$0xf0] }
 0x42a   :  { %8498 = vmatpush.bf16.msra.mxu2 %v13042_v52  ;;  %8069 = vmatmul.bf16.vlgmr.msrb.gmra.mxu3 %v14672_v53  ;;  %v12954_v53 = vor.u32 %v14224_v28, %v12953_v42  ;;  %v12874_v17 = vor.u32 %v14204_v5, %v12873_v3  ;;  %v12857_v52 = vld [vmem:[#allocation8] sm:$0xf]  ;;  %v12922_v42 = vor.u32 %v14216_v30, %v12921_v31  ;;  %v12963_v3 = vld [vmem:[#allocation8 + $0xd8] sm:$0xf0]  ;;  %v14241_v5 = vld [vmem:[#allocation8 + $0x154] sm:$0xf] }
 0x42b   :  { %v7837_v62 = vadd.f32 %v7836_v34, %v7824_v44  ;;  %v12858_v18 = vor.u32 %v14200_v9, %v12857_v52  ;;  %v12982_v55 = vor.u32 %v14229_v51, %v12979_v58  ;;  %v14211_v44 = vld [vmem:[#allocation8 + $0x64] sm:$0xf]  ;;  %v12907_v34 = vld [vmem:[#allocation8 + $0x68] sm:$0xf0]  ;;  %v14853_v40 = vpack.c.bf16 %v8076_v54, %v8076_v54  ;;  %v12947_v52 = vld [vmem:[#allocation8 + $0xb8] sm:$0xf0] }
 0x42c   :  { %8473 = vmatpush.bf16.msra.mxu0 %v12906_v33  ;;  %v7849_v7 = vpop.f32.mrf.mxu2  ;;  %v14232_v33 = vld [vmem:[#allocation8 + $0x104] sm:$0xf0]  ;;  %v12910_v4 = vor.u32 %v14211_v44, %v12907_v34  ;;  %v13030_v10 = vor.u32 %v14241_v5, %v13027_v56  ;;  %v13011_v9 = vld [vmem:[#allocation8 + $0x138] sm:$0xf0]  ;;  %v12886_v31 = vor.u32 %v14205_v32, %v12883_v60  ;;  %v14235_v51 = vld [vmem:[#allocation8 + $0x124] sm:$0xf] }
 0x42d   :  { %8486 = vmatpush.bf16.msra.mxu1 %v12970_v50  ;;  %v7850_v43 = vadd.f32 %v7849_v7, %v7837_v62  ;;  %v7862_v13 = vpop.f32.mrf.mxu3  ;;  %v14213_v50 = vld [vmem:[#allocation8 + $0x74] sm:$0xf]  ;;  %v12986_v28 = vor.u32 %v14232_v33, %v12985_v2  ;;  %v14851_v62 = vpack.c.bf16 %v8075_v41, %v8075_v41  ;;  %v14203_v2 = vld [vmem:[#allocation8 + $0x24] sm:$0xf]  ;;  %v13003_v58 = vld [vmem:[#allocation8 + $0x128] sm:$0xf0] }
 0x42e   :  { %8499 = vmatpush.bf16.msra.mxu2 %v13034_v26  ;;  %v12918_v47 = vor.u32 %v14213_v50, %v12915_v1  ;;  %v14219_v50 = vld [vmem:[#allocation8 + $0xa4] sm:$0xf]  ;;  %v14217_v54 = vld [vmem:[#allocation8 + $0x94] sm:$0xf]  ;;  %v12995_v44 = vld [vmem:[#allocation8 + $0x118] sm:$0xf0] }
 0x42f   :  { %v14844_v15 = vadd.f32 %v7862_v13, %v7850_v43  ;;  %v12891_v43 = vld [vmem:[#allocation8 + $0x48] sm:$0xf0]  ;;  %v14223_v13 = vld [vmem:[#allocation8 + $0xc4] sm:$0xf]  ;;  %v13105_v56 = vld [vmem:[#allocation8 + $0x1f0] sm:$0xf] }
 0x430   :  { %8474 = vmatpush.bf16.msra.mxu0 %v12898_v20  ;;  %v7825_v14 = vpop.f32.mrf.mxu0  ;;  %v13043_v20 = vld [vmem:[#allocation8 + $0x178] sm:$0xf0]  ;;  %v12894_v63 = vor.u32 %v14207_v49, %v12891_v43  ;;  %v13097_v43 = vld [vmem:[#allocation8 + $0x1e0] sm:$0xf]  ;;  %v13073_v32 = vld [vmem:[#allocation8 + $0x1b0] sm:$0xf] }
 0x431   :  { %8487 = vmatpush.bf16.msra.mxu1 %v12962_v36  ;;  %v7838_v11 = vpop.f32.mrf.mxu1  ;;  %v14878_v36 = vld [vmem:[#allocation20_spill] sm:$0xff] }
 0x432   :  { %8500 = vmatpush.bf16.msra.mxu2 %v13026_v19  ;;  %v8074_v19 = vmax.f32 %v14878_v36, 0.0  ;;  %v12955_v14 = vld [vmem:[#allocation8 + $0xc8] sm:$0xf0] }
 0x433   :  { %v13019_v11 = vld [vmem:[#allocation8 + $0x148] sm:$0xf0]  ;;  %v12958_v16 = vor.u32 %v14223_v13, %v12955_v14  ;;  %v14260_v13 = vld [vmem:[#allocation8 + $0x1e4] sm:$0xf0] }
 0x434   :  { %8475 = vmatpush.bf16.msra.mxu0 %v12890_v35  ;;  %v7851_v26 = vpop.f32.mrf.mxu2  ;;  %v13046_v35 = vor.u32 %v14245_v6, %v13043_v20  ;;  %v14849_v37 = vpack.c.bf16 %v8074_v19, %v8074_v19  ;;  %v14201_v19 = vld [vmem:[#allocation8 + $0x14] sm:$0xf]  ;;  %v13098_v14 = vor.u32 %v14260_v13, %v13097_v43 }
 0x435   :  { %8488 = vmatpush.bf16.msra.mxu1 %v12954_v53  ;;  %v7864_v38 = vpop.f32.mrf.mxu3  ;;  %v14227_v53 = vld [vmem:[#allocation8 + $0xe4] sm:$0xf]  ;;  %v12939_v26 = vld [vmem:[#allocation8 + $0xa8] sm:$0xf0] }
 0x436   :  { %8501 = vmatpush.bf16.msra.mxu2 %v13018_v27  ;;  %v12971_v27 = vld [vmem:[#allocation8 + $0xe8] sm:$0xf0]  ;;  %v12942_v36 = vor.u32 %v14219_v50, %v12939_v26  ;;  %v14261_v26 = vld [vmem:[#allocation8 + $0x1f4] sm:$0xf] }
 0x437   :  { %v12974_v59 = vor.u32 %v14227_v53, %v12971_v27  ;;  %v14199_v53 = vld [vmem:[#allocation8 + $0x4] sm:$0xf] }
 0x438   :  { %8476 = vmatpush.bf16.msra.mxu0 %v12882_v45  ;;  %v13038_v45 = vor.u32 %v14243_v22, %v13035_v0  ;;  %v12859_v22 = vld [vmem:[#allocation8 + $0x8] sm:$0xf0]  ;;  %v14215_v0 = vld [vmem:[#allocation8 + $0x84] sm:$0xf] }
 0x439   :  { %8489 = vmatpush.bf16.msra.mxu1 %v12946_v61  ;;  %v12899_v61 = vld [vmem:[#allocation8 + $0x58] sm:$0xf0] }
 0x43a   :  { %8502 = vmatpush.bf16.msra.mxu2 %v13010_v46  ;;  %v14225_v46 = vld [vmem:[#allocation8 + $0xd4] sm:$0xf]  ;;  %v12902_v7 = vor.u32 %v14209_v8, %v12899_v61  ;;  %v12987_v8 = vld [vmem:[#allocation8 + $0x108] sm:$0xf0] }
 0x43b   :  { %v12966_v48 = vor.u32 %v14225_v46, %v12963_v3  ;;  %v12862_v46 = vor.u32 %v14199_v53, %v12859_v22  ;;  %v13075_v22 = vld [vmem:[#allocation8 + $0x1b8] sm:$0xf0] }
 0x43c   :  { %8477 = vmatpush.bf16.msra.mxu0 %v12874_v17  ;;  %v14239_v17 = vld [vmem:[#allocation8 + $0x144] sm:$0xf] }
 0x43d   :  { %8490 = vmatpush.bf16.msra.mxu1 %v12938_v12  ;;  %v13022_v25 = vor.u32 %v14239_v17, %v13019_v11  ;;  %v13089_v17 = vld [vmem:[#allocation8 + $0x1d0] sm:$0xf]  ;;  %v14258_v11 = vld [vmem:[#allocation8 + $0x1d4] sm:$0xf0] }
 0x43e   :  { %8503 = vmatpush.bf16.msra.mxu2 %v13002_v21 }
 0x440   :  { %8478 = vmatpush.bf16.msra.mxu0 %v12866_v24  ;;  %v14221_v24 = vld [vmem:[#allocation8 + $0xb4] sm:$0xf] }
 0x441   :  { %8491 = vmatpush.bf16.msra.mxu1 %v12930_v39  ;;  %v12950_v30 = vor.u32 %v14221_v24, %v12947_v52  ;;  %v13065_v24 = vld [vmem:[#allocation8 + $0x1a0] sm:$0xf]  ;;  %v14252_v52 = vld [vmem:[#allocation8 + $0x1a4] sm:$0xf0] }
 0x442   :  { %8504 = vmatpush.bf16.msra.mxu2 %v12994_v29  ;;  %v14237_v29 = vld [vmem:[#allocation8 + $0x134] sm:$0xf] }
 0x443   :  { %v13014_v33 = vor.u32 %v14237_v29, %v13011_v9  ;;  %v13066_v9 = vor.u32 %v14252_v52, %v13065_v24  ;;  %v8146_v52 = vld [vmem:[#allocation10] sm:$0x3] }
 0x444   :  { %8479 = vmatpush.bf16.msra.mxu0 %v12858_v18  ;;  %v7875_v12 = vpop.f32.mrf.mxu0 }
 0x445   :  { %8492 = vmatpush.bf16.msra.mxu1 %v12922_v42  ;;  %v7876_v21 = vadd.f32 %v7875_v12, %v14844_v15  ;;  %v7888_v57 = vpop.f32.mrf.mxu1  ;;  %v12875_v15 = vld [vmem:[#allocation8 + $0x28] sm:$0xf0]  ;;  %v13006_v42 = vor.u32 %v14235_v51, %v13003_v58 }
 0x446   :  { %8505 = vmatpush.bf16.msra.mxu2 %v12986_v28  ;;  %v12878_v20 = vor.u32 %v14203_v2, %v12875_v15  ;;  %v12867_v28 = vld [vmem:[#allocation8 + $0x18] sm:$0xf0]  ;;  %v14248_v15 = vld [vmem:[#allocation8 + $0x184] sm:$0xf0] }
 0x447   :  { %8480 = vmatmul.bf16.vlgmr.msra.gmra.mxu0 %v14849_v37  ;;  %v7889_v39 = vadd.f32 %v7888_v57, %v7876_v21  ;;  %v13090_v21 = vor.u32 %v14258_v11, %v13089_v17 }
 0x448   :  { %8524 = vmatpush.bf16.msrb.mxu0 %v12918_v47  ;;  %8493 = vmatmul.bf16.vlgmr.msra.gmra.mxu1 %v14851_v62  ;;  %v12931_v47 = vld [vmem:[#allocation8 + $0x98] sm:$0xf0] }
 0x449   :  { %8537 = vmatpush.bf16.msrb.mxu1 %v12982_v55  ;;  %8506 = vmatmul.bf16.vlgmr.msra.gmra.mxu2 %v14853_v40  ;;  %v14233_v55 = vld [vmem:[#allocation8 + $0x114] sm:$0xf]  ;;  %v12934_v34 = vor.u32 %v14217_v54, %v12931_v47 }
 0x44a   :  { %8550 = vmatpush.bf16.msrb.mxu2 %v13046_v35  ;;  %v12870_v35 = vor.u32 %v14201_v19, %v12867_v28  ;;  %v12998_v27 = vor.u32 %v14233_v55, %v12995_v44  ;;  %v13091_v19 = vld [vmem:[#allocation8 + $0x1d8] sm:$0xf0]  ;;  %v14255_v44 = vld [vmem:[#allocation8 + $0x1c4] sm:$0xf] }
 0x44c   :  { %8525 = vmatpush.bf16.msrb.mxu0 %v12910_v4  ;;  %v7901_v1 = vpop.f32.mrf.mxu2  ;;  %v7877_v6 = vpop.f32.mrf.mxu0  ;;  %v12923_v4 = vld [vmem:[#allocation8 + $0x88] sm:$0xf0] }
 0x44d   :  { %8538 = vmatpush.bf16.msrb.mxu1 %v12974_v59  ;;  %v7902_v38 = vadd.f32 %v7901_v1, %v7889_v39  ;;  %v7914_v18 = vpop.f32.mrf.mxu3  ;;  %v7890_v23 = vpop.f32.mrf.mxu1  ;;  %v14231_v59 = vld [vmem:[#allocation8 + $0x104] sm:$0xf]  ;;  %v12926_v3 = vor.u32 %v14215_v0, %v12923_v4  ;;  %v13107_v1 = vld [vmem:[#allocation8 + $0x1f8] sm:$0xf0]  ;;  %v13099_v6 = vld [vmem:[#allocation8 + $0x1e8] sm:$0xf0] }
 0x44e   :  { %8551 = vmatpush.bf16.msrb.mxu2 %v13038_v45  ;;  %v12990_v5 = vor.u32 %v14231_v59, %v12987_v8  ;;  %v13110_v51 = vor.u32 %v14261_v26, %v13107_v1  ;;  %v14251_v59 = vld [vmem:[#allocation8 + $0x1a4] sm:$0xf]  ;;  %v13067_v8 = vld [vmem:[#allocation8 + $0x1a8] sm:$0xf0]  ;;  %v14270_v26 = vld [vmem:[#allocation11 + $0x38] sm:$0xff] }
 0x44f   :  { %v14859_v41 = vadd.f32 %v7914_v18, %v7902_v38  ;;  %v14259_v18 = vld [vmem:[#allocation8 + $0x1e4] sm:$0xf]  ;;  %v14278_v1 = vld [vmem:[#allocation11 + $0x78] sm:$0xff] }
 0x450   :  { %8526 = vmatpush.bf16.msrb.mxu0 %v12902_v7  ;;  %v14262_v7 = vld [vmem:[#allocation8 + $0x1f4] sm:$0xf0] }
 0x451   :  { %8539 = vmatpush.bf16.msrb.mxu1 %v12966_v48  ;;  %v13106_v48 = vor.u32 %v14262_v7, %v13105_v56 }
 0x452   :  { %8552 = vmatpush.bf16.msrb.mxu2 %v13030_v10 }
 0x453   :  { %8511 = vmatpush.bf16.msra.mxu3 %v13106_v48  ;;  %v14247_v48 = vld [vmem:[#allocation8 + $0x184] sm:$0xf] }
 0x454   :  { %8527 = vmatpush.bf16.msrb.mxu0 %v12894_v63  ;;  %v7903_v45 = vpop.f32.mrf.mxu2 }
 0x455   :  { %8540 = vmatpush.bf16.msrb.mxu1 %v12958_v16  ;;  %v7916_v61 = vpop.f32.mrf.mxu3  ;;  %v13081_v16 = vld [vmem:[#allocation8 + $0x1c0] sm:$0xf] }
 0x456   :  { %8553 = vmatpush.bf16.msrb.mxu2 %v13022_v25  ;;  %v14254_v25 = vld [vmem:[#allocation8 + $0x1b4] sm:$0xf0] }
 0x457   :  { %8512 = vmatpush.bf16.msra.mxu3 %v13098_v14  ;;  %v13074_v60 = vor.u32 %v14254_v25, %v13073_v32 }
 0x458   :  { %8528 = vmatpush.bf16.msrb.mxu0 %v12886_v31  ;;  %v13057_v31 = vld [vmem:[#allocation8 + $0x190] sm:$0xf] }
 0x459   :  { %8541 = vmatpush.bf16.msrb.mxu1 %v12950_v30  ;;  %v14250_v30 = vld [vmem:[#allocation8 + $0x194] sm:$0xf0] }
 0x45a   :  { %8554 = vmatpush.bf16.msrb.mxu2 %v13014_v33  ;;  %v13058_v2 = vor.u32 %v14250_v30, %v13057_v31  ;;  %v13049_v33 = vld [vmem:[#allocation8 + $0x180] sm:$0xf] }
 0x45b   :  { %8513 = vmatpush.bf16.msra.mxu3 %v13090_v21  ;;  %v13050_v50 = vor.u32 %v14248_v15, %v13049_v33 }
 0x45c   :  { %8529 = vmatpush.bf16.msrb.mxu0 %v12878_v20  ;;  %v13102_v20 = vor.u32 %v14259_v18, %v13099_v6  ;;  %v14268_v18 = vld [vmem:[#allocation11 + $0x28] sm:$0xff]  ;;  %v14267_v6 = vld [vmem:[#allocation11 + $0x20] sm:$0xff] }
 0x45d   :  { %8542 = vmatpush.bf16.msrb.mxu1 %v12942_v36  ;;  %v14257_v36 = vld [vmem:[#allocation8 + $0x1d4] sm:$0xf] }
 0x45e   :  { %8555 = vmatpush.bf16.msrb.mxu2 %v13006_v42  ;;  %v13094_v23 = vor.u32 %v14257_v36, %v13091_v19  ;;  %v14266_v36 = vld [vmem:[#allocation11 + $0x18] sm:$0xff] }
 0x460   :  { %8530 = vmatpush.bf16.msrb.mxu0 %v12870_v35  ;;  %v13083_v35 = vld [vmem:[#allocation8 + $0x1c8] sm:$0xf0] }
 0x461   :  { %8543 = vmatpush.bf16.msrb.mxu1 %v12934_v34  ;;  %v13086_v34 = vor.u32 %v14255_v44, %v13083_v35 }
 0x462   :  { %8556 = vmatpush.bf16.msrb.mxu2 %v12998_v27  ;;  %v14253_v27 = vld [vmem:[#allocation8 + $0x1b4] sm:$0xf] }
 0x463   :  { %v13078_v4 = vor.u32 %v14253_v27, %v13075_v22  ;;  %v14276_v27 = vld [vmem:[#allocation11 + $0x68] sm:$0xff]  ;;  %v14263_v22 = vld [vmem:[#allocation11] sm:$0xff] }
 0x464   :  { %8531 = vmatpush.bf16.msrb.mxu0 %v12862_v46  ;;  %v7927_v49 = vpop.f32.mrf.mxu0  ;;  %v13070_v46 = vor.u32 %v14251_v59, %v13067_v8  ;;  %v14273_v59 = vld [vmem:[#allocation11 + $0x50] sm:$0xff]  ;;  %v14272_v8 = vld [vmem:[#allocation11 + $0x48] sm:$0xff] }
 0x465   :  { %8544 = vmatpush.bf16.msrb.mxu1 %v12926_v3  ;;  %v7940_v10 = vpop.f32.mrf.mxu1  ;;  %v7928_v28 = vadd.f32 %v7927_v49, %v14859_v41  ;;  %v14249_v41 = vld [vmem:[#allocation8 + $0x194] sm:$0xf]  ;;  %v13059_v3 = vld [vmem:[#allocation8 + $0x198] sm:$0xf0]  ;;  %v13051_v49 = vld [vmem:[#allocation8 + $0x188] sm:$0xf0] }
 0x466   :  { %8557 = vmatpush.bf16.msrb.mxu2 %v12990_v5  ;;  %v13062_v7 = vor.u32 %v14249_v41, %v13059_v3  ;;  %v13054_v43 = vor.u32 %v14247_v48, %v13051_v49 }
 0x467   :  { %8532 = vmatmul.bf16.vlgmr.msrb.gmra.mxu0 %v14849_v37  ;;  %v7941_v53 = vadd.f32 %v7940_v10, %v7928_v28  ;;  %v14265_v28 = vld [vmem:[#allocation11 + $0x10] sm:$0xff] }
 0x468   :  { %8545 = vmatmul.bf16.vlgmr.msrb.gmra.mxu1 %v14851_v62  ;;  %v14256_v62 = vld [vmem:[#allocation8 + $0x1c4] sm:$0xf0]  ;;  %8712 = vmatpush.bf16.msra.mxu0 %v14270_v26 }
 0x469   :  { %8558 = vmatmul.bf16.vlgmr.msrb.gmra.mxu2 %v14853_v40  ;;  %v13082_v40 = vor.u32 %v14256_v62, %v13081_v16  ;;  %8725 = vmatpush.bf16.msra.mxu1 %v14278_v1 }
 0x46b   :  { %8514 = vmatpush.bf16.msra.mxu3 %v13082_v40 }
 0x46c   :  { %v7953_v12 = vpop.f32.mrf.mxu2  ;;  %v7929_v37 = vpop.f32.mrf.mxu0 }
 0x46d   :  { %v7966_v63 = vpop.f32.mrf.mxu3  ;;  %v7942_v57 = vpop.f32.mrf.mxu1  ;;  %v7954_v0 = vadd.f32 %v7953_v12, %v7941_v53  ;;  %v14264_v53 = vld [vmem:[#allocation11 + $0x8] sm:$0xff] }
 0x46f   :  { %8515 = vmatpush.bf16.msra.mxu3 %v13074_v60  ;;  %v7967_v5 = vadd.f32 %v7966_v63, %v7954_v0  ;;  %v14275_v0 = vld [vmem:[#allocation11 + $0x60] sm:$0xff] }
 0x473   :  { %8516 = vmatpush.bf16.msra.mxu3 %v13066_v9 }
 0x474   :  { %v7955_v39 = vpop.f32.mrf.mxu2 }
 0x475   :  { %v7968_v29 = vpop.f32.mrf.mxu3  ;;  %v8148_v39 = vperm.slane %v8146_v52, 0 }
 0x477   :  { %8517 = vmatpush.bf16.msra.mxu3 %v13058_v2 }
 0x47b   :  { %8518 = vmatpush.bf16.msra.mxu3 %v13050_v50 }
 0x47f   :  { %8563 = vmatpush.bf16.msrb.mxu3 %v13110_v51 }
 0x483   :  { %8564 = vmatpush.bf16.msrb.mxu3 %v13102_v20  ;;  %v8149_v20 = vperm.slane %v8146_v52, 1 }
 0x484   :  { %v7979_v58 = vpop.f32.mrf.mxu0 }
 0x485   :  { %v7992_v38 = vpop.f32.mrf.mxu1  ;;  %v7980_v56 = vadd.f32 %v7979_v58, %v7967_v5  ;;  %v14269_v58 = vld [vmem:[#allocation11 + $0x30] sm:$0xff] }
 0x486   :  { %8713 = vmatpush.bf16.msra.mxu0 %v14269_v58 }
 0x487   :  { %8565 = vmatpush.bf16.msrb.mxu3 %v13094_v23  ;;  %v7993_v10 = vadd.f32 %v7992_v38, %v7980_v56  ;;  %v14277_v38 = vld [vmem:[#allocation11 + $0x70] sm:$0xff] }
 0x488   :  { %8726 = vmatpush.bf16.msra.mxu1 %v14277_v38 }
 0x48a   :  { %8714 = vmatpush.bf16.msra.mxu0 %v14268_v18 }
 0x48b   :  { %8566 = vmatpush.bf16.msrb.mxu3 %v13086_v34 }
 0x48c   :  { %v8005_v42 = vpop.f32.mrf.mxu2  ;;  %v7981_v47 = vpop.f32.mrf.mxu0  ;;  %8727 = vmatpush.bf16.msra.mxu1 %v14276_v27 }
 0x48d   :  { %v8018_v54 = vpop.f32.mrf.mxu3  ;;  %v7994_v55 = vpop.f32.mrf.mxu1  ;;  %v8006_v13 = vadd.f32 %v8005_v42, %v7993_v10 }
 0x48e   :  { %8715 = vmatpush.bf16.msra.mxu0 %v14267_v6 }
 0x48f   :  { %8567 = vmatpush.bf16.msrb.mxu3 %v13078_v4  ;;  %v8019_v14 = vadd.f32 %v8018_v54, %v8006_v13  ;;  %v14274_v4 = vld [vmem:[#allocation11 + $0x58] sm:$0xff] }
 0x490   :  { %8728 = vmatpush.bf16.msra.mxu1 %v14275_v0 }
 0x492   :  { %8716 = vmatpush.bf16.msra.mxu0 %v14266_v36 }
 0x493   :  { %8568 = vmatpush.bf16.msrb.mxu3 %v13070_v46 }
 0x494   :  { %v8007_v45 = vpop.f32.mrf.mxu2  ;;  %8729 = vmatpush.bf16.msra.mxu1 %v14274_v4 }
 0x495   :  { %v8020_v61 = vpop.f32.mrf.mxu3  ;;  %v14271_v45 = vld [vmem:[#allocation11 + $0x40] sm:$0xff] }
 0x496   :  { %8717 = vmatpush.bf16.msra.mxu0 %v14265_v28 }
 0x497   :  { %8569 = vmatpush.bf16.msrb.mxu3 %v13062_v7 }
 0x498   :  { %8730 = vmatpush.bf16.msra.mxu1 %v14273_v59 }
 0x49a   :  { %8718 = vmatpush.bf16.msra.mxu0 %v14264_v53 }
 0x49b   :  { %8570 = vmatpush.bf16.msrb.mxu3 %v13054_v43 }
 0x49c   :  { %8731 = vmatpush.bf16.msra.mxu1 %v14272_v8 }
 0x49e   :  { %8719 = vmatpush.bf16.msra.mxu0 %v14263_v22 }
 0x4a0   :  { %8732 = vmatpush.bf16.msra.mxu1 %v14271_v45 }
 0x4a4   :  { %v8031_v17 = vpop.f32.mrf.mxu0 }
 0x4a5   :  { %v8044_v11 = vpop.f32.mrf.mxu1  ;;  %v8032_v12 = vadd.f32 %v8031_v17, %v8019_v14  ;;  %v14293_v14 = vld [vmem:[#allocation13] ss:$0 sm:$0xff] }
 0x4a7   :  { %v8045_v21 = vadd.f32 %v8044_v11, %v8032_v12 }
 0x4ac   :  { %v8057_v37 = vpop.f32.mrf.mxu2  ;;  %v8033_v57 = vpop.f32.mrf.mxu0 }
 0x4ad   :  { %v8070_v16 = vpop.f32.mrf.mxu3  ;;  %v8058_v62 = vadd.f32 %v8057_v37, %v8045_v21  ;;  %v8046_v63 = vpop.f32.mrf.mxu1 }
 0x4af   :  { %v8071_v40 = vadd.f32 %v8070_v16, %v8058_v62 }
 0x4b1   :  { %v8077_v32 = vmax.f32 %v8071_v40, 0.0 }
 0x4b3   :  { %v8081_v25 = vpack.c.bf16 %v8077_v32, %v8077_v32 }
 0x4b4   :  { %v8059_v60 = vpop.f32.mrf.mxu2 }
 0x4b5   :  { %v8072_v24 = vpop.f32.mrf.mxu3  ;;  %8519 = vmatmul.bf16.vlgmr.msra.gmra.mxu3 %v8081_v25 }
 0x4c4   :  { %v8481_v29 = vpop.f32.mrf.mxu0 }
 0x4c5   :  { %v8482_v9 = vadd.f32 %v8481_v29, %v8148_v39  ;;  %v8494_v31 = vpop.f32.mrf.mxu1  ;;  %8571 = vmatmul.bf16.vlgmr.msrb.gmra.mxu3 %v8081_v25 }
 0x4c7   :  { %v8495_v30 = vadd.f32 %v8494_v31, %v8482_v9 }
 0x4cc   :  { %v8507_v2 = vpop.f32.mrf.mxu2  ;;  %v8483_v15 = vpop.f32.mrf.mxu0 }
 0x4cd   :  { %v8508_v33 = vadd.f32 %v8507_v2, %v8495_v30  ;;  %v8496_v50 = vpop.f32.mrf.mxu1 }
 0x4d4   :  { %v8509_v51 = vpop.f32.mrf.mxu2 }
 0x4e4   :  { %v8533_v19 = vpop.f32.mrf.mxu0 }
 0x4e5   :  { %v8546_v23 = vpop.f32.mrf.mxu1  ;;  %v8534_v42 = vadd.f32 %v8533_v19, %v8149_v20 }
 0x4e7   :  { %v8547_v54 = vadd.f32 %v8546_v23, %v8534_v42 }
 0x4ec   :  { %v8559_v47 = vpop.f32.mrf.mxu2  ;;  %v8535_v44 = vpop.f32.mrf.mxu0 }
 0x4ed   :  { %v8560_v55 = vadd.f32 %v8559_v47, %v8547_v54  ;;  %v8548_v35 = vpop.f32.mrf.mxu1 }
 0x4f4   :  { %v8561_v34 = vpop.f32.mrf.mxu2 }
 0x538   :  { %v8520_v61 = vpop.f32.mrf.mxu3 }
 0x539   :  { %v8521_v46 = vadd.f32 %v8520_v61, %v8508_v33 }
 0x53b   :  { %v8576_v41 = vmax.f32 %v8521_v46, 0.0 }
 0x53d   :  { %v8578_v3 = vpack.c.bf16 %v8576_v41, %v8576_v41 }
 0x53f   :  { %8720 = vmatmul.bf16.vlgmr.msra.gmra.mxu0 %v8578_v3 }
 0x540   :  { %v8522_v5 = vpop.f32.mrf.mxu3 }
 0x548   :  { %v8572_v56 = vpop.f32.mrf.mxu3 }
 0x549   :  { %v8573_v7 = vadd.f32 %v8572_v56, %v8560_v55 }
 0x54b   :  { %v8577_v48 = vmax.f32 %v8573_v7, 0.0 }
 0x54d   :  { %v8579_v49 = vpack.c.bf16 %v8577_v48, %v8577_v48 }
 0x54f   :  { %8733 = vmatmul.bf16.vlgmr.msra.gmra.mxu1 %v8579_v49 }
 0x550   :  { %v8574_v10 = vpop.f32.mrf.mxu3 }
 0x5bc   :  { %v8721_v43 = vpop.f32.mrf.mxu0 }
 0x5bd   :  { %v8722_v17 = vadd.f32 %v14293_v14, %v8721_v43 }
 0x5c4   :  { %v8723_v13 = vpop.f32.mrf.mxu0 }
 0x5cc   :  { %v8734_v11 = vpop.f32.mrf.mxu1 }
 0x5cd   :  { %v8735_v12 = vadd.f32 %v8734_v11, %v8722_v17 }
 0x5cf   :  { %8738 = vst [vmem:[#allocation14] sm:$0xff] %v8735_v12 }
 0x5d0   :  { %8749 = dma.vmem_to_hbm [thread:$0]  %s8745_s6, 128, %s8747_s15, [#allocation4]  }
 0x5d4   :  { %v8736_v21 = vpop.f32.mrf.mxu1 }
 0x5d5   :  { %14497 = dma.done.wait [#allocation4], 128  }
 0x5d6   :  { %14498 = vsyncadd [#allocation4], 4294967168 }
 0x5d7   :  { %8754 = vsyncpa [#allocation3], 1 }
 0x5d8   :  { %8755 = vsyncpa [#allocation6], 1 }
 0x5d9   :  { %8756 = vsyncpa [#allocation9], 1 }
 0x5da   :  { %8757 = vsyncpa [#allocation12], 1 }
 0x5db   :  { %8758 = vsyncpa [#allocation4], 1 }

</bundles_post_ra>
